<compile_context>
chip_gen: v7x
topology: tpu7x:2x2x1
jax: 0.10.0
libtpu: 0.0.40
codegen_flags: <defaults>
</compile_context>

<pallas_src>
import functools

import jax
import jax.numpy as jnp
from jax import lax
from jax.experimental import pallas as pl
from jax.experimental.pallas import tpu as pltpu


_MAX_TILE_M = 256          # rows per grid step (two 128-row chains per tile)
_VMEM_BUDGET = 12 << 20    # conservative: fits v5e's 16 MiB scoped default
_VMEM_LIMIT = 32 << 20     # scoped VMEM limit (well under v7x 64 MiB physical)


def _pick_tile_m(m, h, c, itemsize=4, vmem_budget_bytes=_VMEM_BUDGET):
    """Largest MXU-friendly M tile whose double-buffered in+out slabs fit VMEM."""
    if m <= _MAX_TILE_M:
        return m
    bytes_per_col = 2 * 2 * h * c * itemsize        # (in + out) x double-buffer
    cap = max(int(vmem_budget_bytes // bytes_per_col), 8)
    tile = min(_MAX_TILE_M, cap, m)
    tile -= tile % 128 if tile >= 128 else tile % 8
    return max(tile, 8)


def _convdu_kernel(h, chain_slices, compute_dtype, loop_unroll,
                   x_ref, w_ref, b_ref, o_ref):
    """One M tile.

    x_ref : (H, TILE_M, C)  input rows (f32)
    w_ref : (C_in, C_out)   center-tap channel-mixing matrix (compute dtype)
    b_ref : (1, C_out)      bias (f32)
    o_ref : (H, TILE_M, C)  output rows (f32); HBM-aliased with the input
    """
    # Hoist weight / bias loads out of the recurrence (JAX does not CSE them).
    w = w_ref[...]
    b = b_ref[...]

    def conv_relu(row_cd):
        # row_cd: (chain, C_in) in compute dtype -> (chain, C_out) f32
        y = jnp.dot(row_cd, w, preferred_element_type=jnp.float32)
        return jnp.maximum(y + b, 0.0)

    slices = [pl.ds(off, size) for off, size in chain_slices]

    # ---- Down sweep: s[0] = x[0];  s[i] = relu(W s[i-1] + b) + x[i] ----
    o_ref[0] = x_ref[0]
    carry0 = tuple(x_ref[0, sl, :].astype(compute_dtype) for sl in slices)

    def down_body(i, carry):
        nxt = []
        for sl, prev in zip(slices, carry):          # independent chains
            cur = conv_relu(prev) + x_ref[i, sl, :]
            o_ref[i, sl, :] = cur.astype(o_ref.dtype)
            nxt.append(cur.astype(compute_dtype))    # carry; no VMEM reload
        return tuple(nxt)

    carry = lax.fori_loop(1, h, down_body, carry0, unroll=loop_unroll)

    # ---- Up sweep: s[p] = relu(W s[p+1] + b) + s[p],  p = h-2 .. 0 ----
    def up_body(j, carry):
        pos = h - 2 - j
        nxt = []
        for sl, above in zip(slices, carry):
            cur = conv_relu(above) + o_ref[pos, sl, :]
            o_ref[pos, sl, :] = cur.astype(o_ref.dtype)
            nxt.append(cur.astype(compute_dtype))
        return tuple(nxt)

    lax.fori_loop(0, h - 1, up_body, carry, unroll=loop_unroll)


def conv_du_hmc(x_hmc, w_t, bias, *, compute_dtype=jnp.bfloat16, tile_m=None,
                interpret=False):
    """convDU on the (H, M, C) layout (M = N*W, channels lane-dense)."""
    h, m, c = x_hmc.shape
    if tile_m is None:
        tile_m = _pick_tile_m(m, h, c, jnp.dtype(x_hmc.dtype).itemsize)
    tile_m = min(tile_m, m)

    # Two independent recurrence chains per tile hide the MXU result latency of
    # the serial H recurrence; fall back to one chain if the split would not
    # land on an 8-sublane boundary.
    half = tile_m // 2
    if tile_m >= 16 and half % 8 == 0:
        chain_slices = ((0, half), (half, tile_m - half))
    else:
        chain_slices = ((0, tile_m),)

    loop_unroll = True if h <= 16 else 4

    kernel = functools.partial(
        _convdu_kernel, h, chain_slices, compute_dtype, loop_unroll)

    grid = (pl.cdiv(m, tile_m),)
    return pl.pallas_call(
        kernel,
        out_shape=jax.ShapeDtypeStruct((h, m, c), x_hmc.dtype),
        grid=grid,
        in_specs=[
            pl.BlockSpec((h, tile_m, c), lambda i: (0, i, 0)),
            pl.BlockSpec((c, c), lambda i: (0, 0)),
            pl.BlockSpec((1, c), lambda i: (0, 0)),
        ],
        out_specs=pl.BlockSpec((h, tile_m, c), lambda i: (0, i, 0)),
        # Row i of x is consumed exactly when row i of the output is produced,
        # and M tiles are disjoint, so alias input 0 -> output 0 in HBM.
        input_output_aliases={0: 0},
        compiler_params=pltpu.CompilerParams(
            dimension_semantics=("parallel",),   # M tiles independent (megacore on v7x)
            vmem_limit_bytes=_VMEM_LIMIT,
        ),
        interpret=interpret,
    )(x_hmc, w_t.astype(compute_dtype), bias.reshape(1, c).astype(jnp.float32))


@functools.partial(jax.jit, static_argnames=("compute_dtype", "tile_m"))
def conv_du(x_nchw, weight, bias, *, compute_dtype=jnp.bfloat16, tile_m=None):
    """Forward pass of convDU.

    x_nchw : (N, C, H, W) float32
    weight : (C, C, KH, 1) float32   (Conv2d weight; only center tap matters)
    bias   : (C,) float32
    returns: (N, C, H, W) float32
    """
    n, c, h, w = x_nchw.shape
    kh = weight.shape[2]
    # Only the center tap of the (KH,1) kernel ever sees real data (the module
    # convolves height-1 slices padded with zeros).
    w_center = weight[:, :, (kh - 1) // 2, 0]      # (C_out, C_in)
    w_t = jnp.transpose(w_center)                  # (C_in, C_out): row @ W

    # NCHW -> (H, N*W, C).  Callers that can stay in this layout should use
    # conv_du_hmc directly and skip the two transposes (extra HBM passes).
    x_hmc = jnp.transpose(x_nchw, (2, 0, 3, 1)).reshape(h, n * w, c)
    out_hmc = conv_du_hmc(x_hmc, w_t, bias,
                          compute_dtype=compute_dtype, tile_m=tile_m)
    return jnp.transpose(out_hmc.reshape(h, n, w, c), (1, 3, 0, 2))


def conv_du_reference(x, weight, bias):
    """Pure-JAX f32 reference matching the PyTorch module step by step."""
    n, c, h, w = x.shape
    kh = weight.shape[2]
    w_center = weight[:, :, (kh - 1) // 2, 0]      # (C_out, C_in)

    def conv_relu(t):                              # t: (N, C, W)
        y = jnp.einsum('oc,ncw->now', w_center, t) + bias[None, :, None]
        return jnp.maximum(y, 0.0)

    stack = [x[:, :, 0, :]]
    for i in range(1, h):
        stack.append(conv_relu(stack[i - 1]) + x[:, :, i, :])
    for i in range(1, h):
        pos = h - i - 1
        stack[pos] = conv_relu(stack[pos + 1]) + stack[pos]
    return jnp.stack(stack, axis=2)


if __name__ == "__main__":
    # Small but grid/MXU-exercising shapes: M = N*W = 512 -> grid of 2 tiles
    # of 256 rows, each tile running two interleaved 128-row recurrence chains.
    N, C, H, W = 2, 128, 8, 256
    KH = 9

    key = jax.random.PRNGKey(0)
    kx, kw, kb = jax.random.split(key, 3)
    x = jax.random.normal(kx, (N, C, H, W), dtype=jnp.float32)
    weight = jax.random.normal(kw, (C, C, KH, 1), dtype=jnp.float32) * 0.02
    bias = jax.random.normal(kb, (C,), dtype=jnp.float32) * 0.1

    ref = conv_du_reference(x, weight, bias)

    # Exact path (f32 MXU operands).
    out_f32 = jax.block_until_ready(conv_du(x, weight, bias,
                                            compute_dtype=jnp.float32))
    assert out_f32.shape == (N, C, H, W)
    assert jnp.allclose(out_f32, ref, atol=1e-4, rtol=1e-4), "f32 path mismatch"

    # Fast path (bf16 MXU operands, f32 accumulate) -- default for v6e/v7x.
    out_bf16 = jax.block_until_ready(conv_du(x, weight, bias))
    assert out_bf16.shape == (N, C, H, W)
    assert jnp.allclose(out_bf16, ref, atol=5e-2, rtol=5e-2), "bf16 path mismatch"

    print("KERNEL_OK")
</pallas_src>

<mosaic_0001>
module attributes {stable_mosaic.version = 11 : i64} {
  func.func @_convdu_kernel(%arg0: i32, %arg1: memref<8x256x128xf32, #tpu.memory_space<vmem>>, %arg2: memref<128x128xf32, #tpu.memory_space<vmem>>, %arg3: memref<1x128xf32, #tpu.memory_space<vmem>>, %arg4: memref<8x256x128xf32, #tpu.memory_space<vmem>>) attributes {dimension_semantics = [#tpu.dimension_semantics<parallel>], iteration_bounds = array<i64: 2>, scalar_prefetch = 0 : i64, scratch_operands = 0 : i64, tpu.core_type = #tpu.core_type<tc>, window_params = [{transform_indices = @transform_0, window_bounds = array<i64: 8, 256, 128>}, {pipeline_mode = #tpu.pipeline_mode<synchronous>, transform_indices = @transform_1, window_bounds = array<i64: 128, 128>}, {pipeline_mode = #tpu.pipeline_mode<synchronous>, transform_indices = @transform_2, window_bounds = array<i64: 1, 128>}, {transform_indices = @transform_3, window_bounds = array<i64: 8, 256, 128>}]} {
    %c0 = arith.constant 0 : index
    %c0_0 = arith.constant 0 : index
    %0 = vector.load %arg2[%c0, %c0_0] : memref<128x128xf32, #tpu.memory_space<vmem>>, vector<128x128xf32>
    %c0_1 = arith.constant 0 : index
    %c0_2 = arith.constant 0 : index
    %1 = vector.load %arg3[%c0_1, %c0_2] : memref<1x128xf32, #tpu.memory_space<vmem>>, vector<1x128xf32>
    %c0_3 = arith.constant 0 : index
    %c0_4 = arith.constant 0 : index
    %c0_5 = arith.constant 0 : index
    %2 = vector.load %arg1[%c0_3, %c0_4, %c0_5] : memref<8x256x128xf32, #tpu.memory_space<vmem>>, vector<1x256x128xf32>
    %3 = vector.shape_cast %2 : vector<1x256x128xf32> to vector<256x128xf32>
    %c0_6 = arith.constant 0 : index
    %c0_7 = arith.constant 0 : index
    %c0_8 = arith.constant 0 : index
    %4 = vector.load %arg4[%c0_6, %c0_7, %c0_8] : memref<8x256x128xf32, #tpu.memory_space<vmem>>, vector<1x256x128xf32>
    %5 = vector.shape_cast %4 : vector<1x256x128xf32> to vector<256x128xf32>
    %6 = vector.shape_cast %3 : vector<256x128xf32> to vector<1x256x128xf32>
    tpu.vector_store %arg4[%c0_6, %c0_7, %c0_8], %6 {strides = array<i32>} : memref<8x256x128xf32, #tpu.memory_space<vmem>>, vector<1x256x128xf32>,
    %c0_9 = arith.constant 0 : index
    %c0_10 = arith.constant 0 : index
    %c0_11 = arith.constant 0 : index
    %7 = vector.load %arg1[%c0_9, %c0_10, %c0_11] : memref<8x256x128xf32, #tpu.memory_space<vmem>>, vector<1x128x128xf32>
    %8 = vector.shape_cast %7 : vector<1x128x128xf32> to vector<128x128xf32>
    %c0_12 = arith.constant 0 : index
    %c128 = arith.constant 128 : index
    %c0_13 = arith.constant 0 : index
    %9 = vector.load %arg1[%c0_12, %c128, %c0_13] : memref<8x256x128xf32, #tpu.memory_space<vmem>>, vector<1x128x128xf32>
    %10 = vector.shape_cast %9 : vector<1x128x128xf32> to vector<128x128xf32>
    %c1_i32 = arith.constant 1 : i32
    %cst = arith.constant dense<0.000000e+00> : vector<128x128xf32>
    %11 = tpu.matmul %8, %0, %cst {dimension_numbers = #tpu.dot_dimension_numbers<[1], [0], [0], [1], [0, 0, 1, 1], [], []>} : vector<128x128xf32>, vector<128x128xf32>, vector<128x128xf32> -> vector<128x128xf32>
    %12 = vector.broadcast %1 : vector<1x128xf32> to vector<128x128xf32>
    %13 = arith.addf %11, %12 : vector<128x128xf32>
    %cst_14 = arith.constant 0.000000e+00 : f32
    %14 = vector.broadcast %cst_14 : f32 to vector<128x128xf32>
    %15 = arith.maximumf %13, %14 : vector<128x128xf32>
    %16 = arith.index_cast %c1_i32 : i32 to index
    %c0_15 = arith.constant 0 : index
    %c0_16 = arith.constant 0 : index
    %17 = vector.load %arg1[%16, %c0_15, %c0_16] : memref<8x256x128xf32, #tpu.memory_space<vmem>>, vector<1x128x128xf32>
    %18 = vector.shape_cast %17 : vector<1x128x128xf32> to vector<128x128xf32>
    %19 = arith.addf %15, %18 : vector<128x128xf32>
    %20 = arith.index_cast %c1_i32 : i32 to index
    %c0_17 = arith.constant 0 : index
    %c0_18 = arith.constant 0 : index
    %21 = vector.load %arg4[%20, %c0_17, %c0_18] : memref<8x256x128xf32, #tpu.memory_space<vmem>>, vector<1x128x128xf32>
    %22 = vector.shape_cast %21 : vector<1x128x128xf32> to vector<128x128xf32>
    %23 = vector.shape_cast %19 : vector<128x128xf32> to vector<1x128x128xf32>
    tpu.vector_store %arg4[%20, %c0_17, %c0_18], %23 {strides = array<i32>} : memref<8x256x128xf32, #tpu.memory_space<vmem>>, vector<1x128x128xf32>,
    %cst_19 = arith.constant dense<0.000000e+00> : vector<128x128xf32>
    %24 = tpu.matmul %10, %0, %cst_19 {dimension_numbers = #tpu.dot_dimension_numbers<[1], [0], [0], [1], [0, 0, 1, 1], [], []>} : vector<128x128xf32>, vector<128x128xf32>, vector<128x128xf32> -> vector<128x128xf32>
    %25 = vector.broadcast %1 : vector<1x128xf32> to vector<128x128xf32>
    %26 = arith.addf %24, %25 : vector<128x128xf32>
    %cst_20 = arith.constant 0.000000e+00 : f32
    %27 = vector.broadcast %cst_20 : f32 to vector<128x128xf32>
    %28 = arith.maximumf %26, %27 : vector<128x128xf32>
    %29 = arith.index_cast %c1_i32 : i32 to index
    %c128_21 = arith.constant 128 : index
    %c0_22 = arith.constant 0 : index
    %30 = vector.load %arg1[%29, %c128_21, %c0_22] : memref<8x256x128xf32, #tpu.memory_space<vmem>>, vector<1x128x128xf32>
    %31 = vector.shape_cast %30 : vector<1x128x128xf32> to vector<128x128xf32>
    %32 = arith.addf %28, %31 : vector<128x128xf32>
    %33 = arith.index_cast %c1_i32 : i32 to index
    %c128_23 = arith.constant 128 : index
    %c0_24 = arith.constant 0 : index
    %34 = vector.load %arg4[%33, %c128_23, %c0_24] : memref<8x256x128xf32, #tpu.memory_space<vmem>>, vector<1x128x128xf32>
    %35 = vector.shape_cast %34 : vector<1x128x128xf32> to vector<128x128xf32>
    %36 = vector.shape_cast %32 : vector<128x128xf32> to vector<1x128x128xf32>
    tpu.vector_store %arg4[%33, %c128_23, %c0_24], %36 {strides = array<i32>} : memref<8x256x128xf32, #tpu.memory_space<vmem>>, vector<1x128x128xf32>,
    %c2_i32 = arith.constant 2 : i32
    %cst_25 = arith.constant dense<0.000000e+00> : vector<128x128xf32>
    %37 = tpu.matmul %19, %0, %cst_25 {dimension_numbers = #tpu.dot_dimension_numbers<[1], [0], [0], [1], [0, 0, 1, 1], [], []>} : vector<128x128xf32>, vector<128x128xf32>, vector<128x128xf32> -> vector<128x128xf32>
    %38 = vector.broadcast %1 : vector<1x128xf32> to vector<128x128xf32>
    %39 = arith.addf %37, %38 : vector<128x128xf32>
    %cst_26 = arith.constant 0.000000e+00 : f32
    %40 = vector.broadcast %cst_26 : f32 to vector<128x128xf32>
    %41 = arith.maximumf %39, %40 : vector<128x128xf32>
    %42 = arith.index_cast %c2_i32 : i32 to index
    %c0_27 = arith.constant 0 : index
    %c0_28 = arith.constant 0 : index
    %43 = vector.load %arg1[%42, %c0_27, %c0_28] : memref<8x256x128xf32, #tpu.memory_space<vmem>>, vector<1x128x128xf32>
    %44 = vector.shape_cast %43 : vector<1x128x128xf32> to vector<128x128xf32>
    %45 = arith.addf %41, %44 : vector<128x128xf32>
    %46 = arith.index_cast %c2_i32 : i32 to index
    %c0_29 = arith.constant 0 : index
    %c0_30 = arith.constant 0 : index
    %47 = vector.load %arg4[%46, %c0_29, %c0_30] : memref<8x256x128xf32, #tpu.memory_space<vmem>>, vector<1x128x128xf32>
    %48 = vector.shape_cast %47 : vector<1x128x128xf32> to vector<128x128xf32>
    %49 = vector.shape_cast %45 : vector<128x128xf32> to vector<1x128x128xf32>
    tpu.vector_store %arg4[%46, %c0_29, %c0_30], %49 {strides = array<i32>} : memref<8x256x128xf32, #tpu.memory_space<vmem>>, vector<1x128x128xf32>,
    %cst_31 = arith.constant dense<0.000000e+00> : vector<128x128xf32>
    %50 = tpu.matmul %32, %0, %cst_31 {dimension_numbers = #tpu.dot_dimension_numbers<[1], [0], [0], [1], [0, 0, 1, 1], [], []>} : vector<128x128xf32>, vector<128x128xf32>, vector<128x128xf32> -> vector<128x128xf32>
    %51 = vector.broadcast %1 : vector<1x128xf32> to vector<128x128xf32>
    %52 = arith.addf %50, %51 : vector<128x128xf32>
    %cst_32 = arith.constant 0.000000e+00 : f32
    %53 = vector.broadcast %cst_32 : f32 to vector<128x128xf32>
    %54 = arith.maximumf %52, %53 : vector<128x128xf32>
    %55 = arith.index_cast %c2_i32 : i32 to index
    %c128_33 = arith.constant 128 : index
    %c0_34 = arith.constant 0 : index
    %56 = vector.load %arg1[%55, %c128_33, %c0_34] : memref<8x256x128xf32, #tpu.memory_space<vmem>>, vector<1x128x128xf32>
    %57 = vector.shape_cast %56 : vector<1x128x128xf32> to vector<128x128xf32>
    %58 = arith.addf %54, %57 : vector<128x128xf32>
    %59 = arith.index_cast %c2_i32 : i32 to index
    %c128_35 = arith.constant 128 : index
    %c0_36 = arith.constant 0 : index
    %60 = vector.load %arg4[%59, %c128_35, %c0_36] : memref<8x256x128xf32, #tpu.memory_space<vmem>>, vector<1x128x128xf32>
    %61 = vector.shape_cast %60 : vector<1x128x128xf32> to vector<128x128xf32>
    %62 = vector.shape_cast %58 : vector<128x128xf32> to vector<1x128x128xf32>
    tpu.vector_store %arg4[%59, %c128_35, %c0_36], %62 {strides = array<i32>} : memref<8x256x128xf32, #tpu.memory_space<vmem>>, vector<1x128x128xf32>,
    %c3_i32 = arith.constant 3 : i32
    %cst_37 = arith.constant dense<0.000000e+00> : vector<128x128xf32>
    %63 = tpu.matmul %45, %0, %cst_37 {dimension_numbers = #tpu.dot_dimension_numbers<[1], [0], [0], [1], [0, 0, 1, 1], [], []>} : vector<128x128xf32>, vector<128x128xf32>, vector<128x128xf32> -> vector<128x128xf32>
    %64 = vector.broadcast %1 : vector<1x128xf32> to vector<128x128xf32>
    %65 = arith.addf %63, %64 : vector<128x128xf32>
    %cst_38 = arith.constant 0.000000e+00 : f32
    %66 = vector.broadcast %cst_38 : f32 to vector<128x128xf32>
    %67 = arith.maximumf %65, %66 : vector<128x128xf32>
    %68 = arith.index_cast %c3_i32 : i32 to index
    %c0_39 = arith.constant 0 : index
    %c0_40 = arith.constant 0 : index
    %69 = vector.load %arg1[%68, %c0_39, %c0_40] : memref<8x256x128xf32, #tpu.memory_space<vmem>>, vector<1x128x128xf32>
    %70 = vector.shape_cast %69 : vector<1x128x128xf32> to vector<128x128xf32>
    %71 = arith.addf %67, %70 : vector<128x128xf32>
    %72 = arith.index_cast %c3_i32 : i32 to index
    %c0_41 = arith.constant 0 : index
    %c0_42 = arith.constant 0 : index
    %73 = vector.load %arg4[%72, %c0_41, %c0_42] : memref<8x256x128xf32, #tpu.memory_space<vmem>>, vector<1x128x128xf32>
    %74 = vector.shape_cast %73 : vector<1x128x128xf32> to vector<128x128xf32>
    %75 = vector.shape_cast %71 : vector<128x128xf32> to vector<1x128x128xf32>
    tpu.vector_store %arg4[%72, %c0_41, %c0_42], %75 {strides = array<i32>} : memref<8x256x128xf32, #tpu.memory_space<vmem>>, vector<1x128x128xf32>,
    %cst_43 = arith.constant dense<0.000000e+00> : vector<128x128xf32>
    %76 = tpu.matmul %58, %0, %cst_43 {dimension_numbers = #tpu.dot_dimension_numbers<[1], [0], [0], [1], [0, 0, 1, 1], [], []>} : vector<128x128xf32>, vector<128x128xf32>, vector<128x128xf32> -> vector<128x128xf32>
    %77 = vector.broadcast %1 : vector<1x128xf32> to vector<128x128xf32>
    %78 = arith.addf %76, %77 : vector<128x128xf32>
    %cst_44 = arith.constant 0.000000e+00 : f32
    %79 = vector.broadcast %cst_44 : f32 to vector<128x128xf32>
    %80 = arith.maximumf %78, %79 : vector<128x128xf32>
    %81 = arith.index_cast %c3_i32 : i32 to index
    %c128_45 = arith.constant 128 : index
    %c0_46 = arith.constant 0 : index
    %82 = vector.load %arg1[%81, %c128_45, %c0_46] : memref<8x256x128xf32, #tpu.memory_space<vmem>>, vector<1x128x128xf32>
    %83 = vector.shape_cast %82 : vector<1x128x128xf32> to vector<128x128xf32>
    %84 = arith.addf %80, %83 : vector<128x128xf32>
    %85 = arith.index_cast %c3_i32 : i32 to index
    %c128_47 = arith.constant 128 : index
    %c0_48 = arith.constant 0 : index
    %86 = vector.load %arg4[%85, %c128_47, %c0_48] : memref<8x256x128xf32, #tpu.memory_space<vmem>>, vector<1x128x128xf32>
    %87 = vector.shape_cast %86 : vector<1x128x128xf32> to vector<128x128xf32>
    %88 = vector.shape_cast %84 : vector<128x128xf32> to vector<1x128x128xf32>
    tpu.vector_store %arg4[%85, %c128_47, %c0_48], %88 {strides = array<i32>} : memref<8x256x128xf32, #tpu.memory_space<vmem>>, vector<1x128x128xf32>,
    %c4_i32 = arith.constant 4 : i32
    %cst_49 = arith.constant dense<0.000000e+00> : vector<128x128xf32>
    %89 = tpu.matmul %71, %0, %cst_49 {dimension_numbers = #tpu.dot_dimension_numbers<[1], [0], [0], [1], [0, 0, 1, 1], [], []>} : vector<128x128xf32>, vector<128x128xf32>, vector<128x128xf32> -> vector<128x128xf32>
    %90 = vector.broadcast %1 : vector<1x128xf32> to vector<128x128xf32>
    %91 = arith.addf %89, %90 : vector<128x128xf32>
    %cst_50 = arith.constant 0.000000e+00 : f32
    %92 = vector.broadcast %cst_50 : f32 to vector<128x128xf32>
    %93 = arith.maximumf %91, %92 : vector<128x128xf32>
    %94 = arith.index_cast %c4_i32 : i32 to index
    %c0_51 = arith.constant 0 : index
    %c0_52 = arith.constant 0 : index
    %95 = vector.load %arg1[%94, %c0_51, %c0_52] : memref<8x256x128xf32, #tpu.memory_space<vmem>>, vector<1x128x128xf32>
    %96 = vector.shape_cast %95 : vector<1x128x128xf32> to vector<128x128xf32>
    %97 = arith.addf %93, %96 : vector<128x128xf32>
    %98 = arith.index_cast %c4_i32 : i32 to index
    %c0_53 = arith.constant 0 : index
    %c0_54 = arith.constant 0 : index
    %99 = vector.load %arg4[%98, %c0_53, %c0_54] : memref<8x256x128xf32, #tpu.memory_space<vmem>>, vector<1x128x128xf32>
    %100 = vector.shape_cast %99 : vector<1x128x128xf32> to vector<128x128xf32>
    %101 = vector.shape_cast %97 : vector<128x128xf32> to vector<1x128x128xf32>
    tpu.vector_store %arg4[%98, %c0_53, %c0_54], %101 {strides = array<i32>} : memref<8x256x128xf32, #tpu.memory_space<vmem>>, vector<1x128x128xf32>,
    %cst_55 = arith.constant dense<0.000000e+00> : vector<128x128xf32>
    %102 = tpu.matmul %84, %0, %cst_55 {dimension_numbers = #tpu.dot_dimension_numbers<[1], [0], [0], [1], [0, 0, 1, 1], [], []>} : vector<128x128xf32>, vector<128x128xf32>, vector<128x128xf32> -> vector<128x128xf32>
    %103 = vector.broadcast %1 : vector<1x128xf32> to vector<128x128xf32>
    %104 = arith.addf %102, %103 : vector<128x128xf32>
    %cst_56 = arith.constant 0.000000e+00 : f32
    %105 = vector.broadcast %cst_56 : f32 to vector<128x128xf32>
    %106 = arith.maximumf %104, %105 : vector<128x128xf32>
    %107 = arith.index_cast %c4_i32 : i32 to index
    %c128_57 = arith.constant 128 : index
    %c0_58 = arith.constant 0 : index
    %108 = vector.load %arg1[%107, %c128_57, %c0_58] : memref<8x256x128xf32, #tpu.memory_space<vmem>>, vector<1x128x128xf32>
    %109 = vector.shape_cast %108 : vector<1x128x128xf32> to vector<128x128xf32>
    %110 = arith.addf %106, %109 : vector<128x128xf32>
    %111 = arith.index_cast %c4_i32 : i32 to index
    %c128_59 = arith.constant 128 : index
    %c0_60 = arith.constant 0 : index
    %112 = vector.load %arg4[%111, %c128_59, %c0_60] : memref<8x256x128xf32, #tpu.memory_space<vmem>>, vector<1x128x128xf32>
    %113 = vector.shape_cast %112 : vector<1x128x128xf32> to vector<128x128xf32>
    %114 = vector.shape_cast %110 : vector<128x128xf32> to vector<1x128x128xf32>
    tpu.vector_store %arg4[%111, %c128_59, %c0_60], %114 {strides = array<i32>} : memref<8x256x128xf32, #tpu.memory_space<vmem>>, vector<1x128x128xf32>,
    %c5_i32 = arith.constant 5 : i32
    %cst_61 = arith.constant dense<0.000000e+00> : vector<128x128xf32>
    %115 = tpu.matmul %97, %0, %cst_61 {dimension_numbers = #tpu.dot_dimension_numbers<[1], [0], [0], [1], [0, 0, 1, 1], [], []>} : vector<128x128xf32>, vector<128x128xf32>, vector<128x128xf32> -> vector<128x128xf32>
    %116 = vector.broadcast %1 : vector<1x128xf32> to vector<128x128xf32>
    %117 = arith.addf %115, %116 : vector<128x128xf32>
    %cst_62 = arith.constant 0.000000e+00 : f32
    %118 = vector.broadcast %cst_62 : f32 to vector<128x128xf32>
    %119 = arith.maximumf %117, %118 : vector<128x128xf32>
    %120 = arith.index_cast %c5_i32 : i32 to index
    %c0_63 = arith.constant 0 : index
    %c0_64 = arith.constant 0 : index
    %121 = vector.load %arg1[%120, %c0_63, %c0_64] : memref<8x256x128xf32, #tpu.memory_space<vmem>>, vector<1x128x128xf32>
    %122 = vector.shape_cast %121 : vector<1x128x128xf32> to vector<128x128xf32>
    %123 = arith.addf %119, %122 : vector<128x128xf32>
    %124 = arith.index_cast %c5_i32 : i32 to index
    %c0_65 = arith.constant 0 : index
    %c0_66 = arith.constant 0 : index
    %125 = vector.load %arg4[%124, %c0_65, %c0_66] : memref<8x256x128xf32, #tpu.memory_space<vmem>>, vector<1x128x128xf32>
    %126 = vector.shape_cast %125 : vector<1x128x128xf32> to vector<128x128xf32>
    %127 = vector.shape_cast %123 : vector<128x128xf32> to vector<1x128x128xf32>
    tpu.vector_store %arg4[%124, %c0_65, %c0_66], %127 {strides = array<i32>} : memref<8x256x128xf32, #tpu.memory_space<vmem>>, vector<1x128x128xf32>,
    %cst_67 = arith.constant dense<0.000000e+00> : vector<128x128xf32>
    %128 = tpu.matmul %110, %0, %cst_67 {dimension_numbers = #tpu.dot_dimension_numbers<[1], [0], [0], [1], [0, 0, 1, 1], [], []>} : vector<128x128xf32>, vector<128x128xf32>, vector<128x128xf32> -> vector<128x128xf32>
    %129 = vector.broadcast %1 : vector<1x128xf32> to vector<128x128xf32>
    %130 = arith.addf %128, %129 : vector<128x128xf32>
    %cst_68 = arith.constant 0.000000e+00 : f32
    %131 = vector.broadcast %cst_68 : f32 to vector<128x128xf32>
    %132 = arith.maximumf %130, %131 : vector<128x128xf32>
    %133 = arith.index_cast %c5_i32 : i32 to index
    %c128_69 = arith.constant 128 : index
    %c0_70 = arith.constant 0 : index
    %134 = vector.load %arg1[%133, %c128_69, %c0_70] : memref<8x256x128xf32, #tpu.memory_space<vmem>>, vector<1x128x128xf32>
    %135 = vector.shape_cast %134 : vector<1x128x128xf32> to vector<128x128xf32>
    %136 = arith.addf %132, %135 : vector<128x128xf32>
    %137 = arith.index_cast %c5_i32 : i32 to index
    %c128_71 = arith.constant 128 : index
    %c0_72 = arith.constant 0 : index
    %138 = vector.load %arg4[%137, %c128_71, %c0_72] : memref<8x256x128xf32, #tpu.memory_space<vmem>>, vector<1x128x128xf32>
    %139 = vector.shape_cast %138 : vector<1x128x128xf32> to vector<128x128xf32>
    %140 = vector.shape_cast %136 : vector<128x128xf32> to vector<1x128x128xf32>
    tpu.vector_store %arg4[%137, %c128_71, %c0_72], %140 {strides = array<i32>} : memref<8x256x128xf32, #tpu.memory_space<vmem>>, vector<1x128x128xf32>,
    %c6_i32 = arith.constant 6 : i32
    %cst_73 = arith.constant dense<0.000000e+00> : vector<128x128xf32>
    %141 = tpu.matmul %123, %0, %cst_73 {dimension_numbers = #tpu.dot_dimension_numbers<[1], [0], [0], [1], [0, 0, 1, 1], [], []>} : vector<128x128xf32>, vector<128x128xf32>, vector<128x128xf32> -> vector<128x128xf32>
    %142 = vector.broadcast %1 : vector<1x128xf32> to vector<128x128xf32>
    %143 = arith.addf %141, %142 : vector<128x128xf32>
    %cst_74 = arith.constant 0.000000e+00 : f32
    %144 = vector.broadcast %cst_74 : f32 to vector<128x128xf32>
    %145 = arith.maximumf %143, %144 : vector<128x128xf32>
    %146 = arith.index_cast %c6_i32 : i32 to index
    %c0_75 = arith.constant 0 : index
    %c0_76 = arith.constant 0 : index
    %147 = vector.load %arg1[%146, %c0_75, %c0_76] : memref<8x256x128xf32, #tpu.memory_space<vmem>>, vector<1x128x128xf32>
    %148 = vector.shape_cast %147 : vector<1x128x128xf32> to vector<128x128xf32>
    %149 = arith.addf %145, %148 : vector<128x128xf32>
    %150 = arith.index_cast %c6_i32 : i32 to index
    %c0_77 = arith.constant 0 : index
    %c0_78 = arith.constant 0 : index
    %151 = vector.load %arg4[%150, %c0_77, %c0_78] : memref<8x256x128xf32, #tpu.memory_space<vmem>>, vector<1x128x128xf32>
    %152 = vector.shape_cast %151 : vector<1x128x128xf32> to vector<128x128xf32>
    %153 = vector.shape_cast %149 : vector<128x128xf32> to vector<1x128x128xf32>
    tpu.vector_store %arg4[%150, %c0_77, %c0_78], %153 {strides = array<i32>} : memref<8x256x128xf32, #tpu.memory_space<vmem>>, vector<1x128x128xf32>,
    %cst_79 = arith.constant dense<0.000000e+00> : vector<128x128xf32>
    %154 = tpu.matmul %136, %0, %cst_79 {dimension_numbers = #tpu.dot_dimension_numbers<[1], [0], [0], [1], [0, 0, 1, 1], [], []>} : vector<128x128xf32>, vector<128x128xf32>, vector<128x128xf32> -> vector<128x128xf32>
    %155 = vector.broadcast %1 : vector<1x128xf32> to vector<128x128xf32>
    %156 = arith.addf %154, %155 : vector<128x128xf32>
    %cst_80 = arith.constant 0.000000e+00 : f32
    %157 = vector.broadcast %cst_80 : f32 to vector<128x128xf32>
    %158 = arith.maximumf %156, %157 : vector<128x128xf32>
    %159 = arith.index_cast %c6_i32 : i32 to index
    %c128_81 = arith.constant 128 : index
    %c0_82 = arith.constant 0 : index
    %160 = vector.load %arg1[%159, %c128_81, %c0_82] : memref<8x256x128xf32, #tpu.memory_space<vmem>>, vector<1x128x128xf32>
    %161 = vector.shape_cast %160 : vector<1x128x128xf32> to vector<128x128xf32>
    %162 = arith.addf %158, %161 : vector<128x128xf32>
    %163 = arith.index_cast %c6_i32 : i32 to index
    %c128_83 = arith.constant 128 : index
    %c0_84 = arith.constant 0 : index
    %164 = vector.load %arg4[%163, %c128_83, %c0_84] : memref<8x256x128xf32, #tpu.memory_space<vmem>>, vector<1x128x128xf32>
    %165 = vector.shape_cast %164 : vector<1x128x128xf32> to vector<128x128xf32>
    %166 = vector.shape_cast %162 : vector<128x128xf32> to vector<1x128x128xf32>
    tpu.vector_store %arg4[%163, %c128_83, %c0_84], %166 {strides = array<i32>} : memref<8x256x128xf32, #tpu.memory_space<vmem>>, vector<1x128x128xf32>,
    %c7_i32 = arith.constant 7 : i32
    %cst_85 = arith.constant dense<0.000000e+00> : vector<128x128xf32>
    %167 = tpu.matmul %149, %0, %cst_85 {dimension_numbers = #tpu.dot_dimension_numbers<[1], [0], [0], [1], [0, 0, 1, 1], [], []>} : vector<128x128xf32>, vector<128x128xf32>, vector<128x128xf32> -> vector<128x128xf32>
    %168 = vector.broadcast %1 : vector<1x128xf32> to vector<128x128xf32>
    %169 = arith.addf %167, %168 : vector<128x128xf32>
    %cst_86 = arith.constant 0.000000e+00 : f32
    %170 = vector.broadcast %cst_86 : f32 to vector<128x128xf32>
    %171 = arith.maximumf %169, %170 : vector<128x128xf32>
    %172 = arith.index_cast %c7_i32 : i32 to index
    %c0_87 = arith.constant 0 : index
    %c0_88 = arith.constant 0 : index
    %173 = vector.load %arg1[%172, %c0_87, %c0_88] : memref<8x256x128xf32, #tpu.memory_space<vmem>>, vector<1x128x128xf32>
    %174 = vector.shape_cast %173 : vector<1x128x128xf32> to vector<128x128xf32>
    %175 = arith.addf %171, %174 : vector<128x128xf32>
    %176 = arith.index_cast %c7_i32 : i32 to index
    %c0_89 = arith.constant 0 : index
    %c0_90 = arith.constant 0 : index
    %177 = vector.load %arg4[%176, %c0_89, %c0_90] : memref<8x256x128xf32, #tpu.memory_space<vmem>>, vector<1x128x128xf32>
    %178 = vector.shape_cast %177 : vector<1x128x128xf32> to vector<128x128xf32>
    %179 = vector.shape_cast %175 : vector<128x128xf32> to vector<1x128x128xf32>
    tpu.vector_store %arg4[%176, %c0_89, %c0_90], %179 {strides = array<i32>} : memref<8x256x128xf32, #tpu.memory_space<vmem>>, vector<1x128x128xf32>,
    %cst_91 = arith.constant dense<0.000000e+00> : vector<128x128xf32>
    %180 = tpu.matmul %162, %0, %cst_91 {dimension_numbers = #tpu.dot_dimension_numbers<[1], [0], [0], [1], [0, 0, 1, 1], [], []>} : vector<128x128xf32>, vector<128x128xf32>, vector<128x128xf32> -> vector<128x128xf32>
    %181 = vector.broadcast %1 : vector<1x128xf32> to vector<128x128xf32>
    %182 = arith.addf %180, %181 : vector<128x128xf32>
    %cst_92 = arith.constant 0.000000e+00 : f32
    %183 = vector.broadcast %cst_92 : f32 to vector<128x128xf32>
    %184 = arith.maximumf %182, %183 : vector<128x128xf32>
    %185 = arith.index_cast %c7_i32 : i32 to index
    %c128_93 = arith.constant 128 : index
    %c0_94 = arith.constant 0 : index
    %186 = vector.load %arg1[%185, %c128_93, %c0_94] : memref<8x256x128xf32, #tpu.memory_space<vmem>>, vector<1x128x128xf32>
    %187 = vector.shape_cast %186 : vector<1x128x128xf32> to vector<128x128xf32>
    %188 = arith.addf %184, %187 : vector<128x128xf32>
    %189 = arith.index_cast %c7_i32 : i32 to index
    %c128_95 = arith.constant 128 : index
    %c0_96 = arith.constant 0 : index
    %190 = vector.load %arg4[%189, %c128_95, %c0_96] : memref<8x256x128xf32, #tpu.memory_space<vmem>>, vector<1x128x128xf32>
    %191 = vector.shape_cast %190 : vector<1x128x128xf32> to vector<128x128xf32>
    %192 = vector.shape_cast %188 : vector<128x128xf32> to vector<1x128x128xf32>
    tpu.vector_store %arg4[%189, %c128_95, %c0_96], %192 {strides = array<i32>} : memref<8x256x128xf32, #tpu.memory_space<vmem>>, vector<1x128x128xf32>,
    %c7_i32_97 = arith.constant 7 : i32
    %c0_i32 = arith.constant 0 : i32
    %c6_i32_98 = arith.constant 6 : i32
    %193 = arith.subi %c6_i32_98, %c0_i32 : i32
    %cst_99 = arith.constant dense<0.000000e+00> : vector<128x128xf32>
    %194 = tpu.matmul %175, %0, %cst_99 {dimension_numbers = #tpu.dot_dimension_numbers<[1], [0], [0], [1], [0, 0, 1, 1], [], []>} : vector<128x128xf32>, vector<128x128xf32>, vector<128x128xf32> -> vector<128x128xf32>
    %195 = vector.broadcast %1 : vector<1x128xf32> to vector<128x128xf32>
    %196 = arith.addf %194, %195 : vector<128x128xf32>
    %cst_100 = arith.constant 0.000000e+00 : f32
    %197 = vector.broadcast %cst_100 : f32 to vector<128x128xf32>
    %198 = arith.maximumf %196, %197 : vector<128x128xf32>
    %199 = arith.index_cast %193 : i32 to index
    %c0_101 = arith.constant 0 : index
    %c0_102 = arith.constant 0 : index
    %200 = vector.load %arg4[%199, %c0_101, %c0_102] : memref<8x256x128xf32, #tpu.memory_space<vmem>>, vector<1x128x128xf32>
    %201 = vector.shape_cast %200 : vector<1x128x128xf32> to vector<128x128xf32>
    %202 = arith.addf %198, %201 : vector<128x128xf32>
    %203 = arith.index_cast %193 : i32 to index
    %c0_103 = arith.constant 0 : index
    %c0_104 = arith.constant 0 : index
    %204 = vector.load %arg4[%203, %c0_103, %c0_104] : memref<8x256x128xf32, #tpu.memory_space<vmem>>, vector<1x128x128xf32>
    %205 = vector.shape_cast %204 : vector<1x128x128xf32> to vector<128x128xf32>
    %206 = vector.shape_cast %202 : vector<128x128xf32> to vector<1x128x128xf32>
    tpu.vector_store %arg4[%203, %c0_103, %c0_104], %206 {strides = array<i32>} : memref<8x256x128xf32, #tpu.memory_space<vmem>>, vector<1x128x128xf32>,
    %cst_105 = arith.constant dense<0.000000e+00> : vector<128x128xf32>
    %207 = tpu.matmul %188, %0, %cst_105 {dimension_numbers = #tpu.dot_dimension_numbers<[1], [0], [0], [1], [0, 0, 1, 1], [], []>} : vector<128x128xf32>, vector<128x128xf32>, vector<128x128xf32> -> vector<128x128xf32>
    %208 = vector.broadcast %1 : vector<1x128xf32> to vector<128x128xf32>
    %209 = arith.addf %207, %208 : vector<128x128xf32>
    %cst_106 = arith.constant 0.000000e+00 : f32
    %210 = vector.broadcast %cst_106 : f32 to vector<128x128xf32>
    %211 = arith.maximumf %209, %210 : vector<128x128xf32>
    %212 = arith.index_cast %193 : i32 to index
    %c128_107 = arith.constant 128 : index
    %c0_108 = arith.constant 0 : index
    %213 = vector.load %arg4[%212, %c128_107, %c0_108] : memref<8x256x128xf32, #tpu.memory_space<vmem>>, vector<1x128x128xf32>
    %214 = vector.shape_cast %213 : vector<1x128x128xf32> to vector<128x128xf32>
    %215 = arith.addf %211, %214 : vector<128x128xf32>
    %216 = arith.index_cast %193 : i32 to index
    %c128_109 = arith.constant 128 : index
    %c0_110 = arith.constant 0 : index
    %217 = vector.load %arg4[%216, %c128_109, %c0_110] : memref<8x256x128xf32, #tpu.memory_space<vmem>>, vector<1x128x128xf32>
    %218 = vector.shape_cast %217 : vector<1x128x128xf32> to vector<128x128xf32>
    %219 = vector.shape_cast %215 : vector<128x128xf32> to vector<1x128x128xf32>
    tpu.vector_store %arg4[%216, %c128_109, %c0_110], %219 {strides = array<i32>} : memref<8x256x128xf32, #tpu.memory_space<vmem>>, vector<1x128x128xf32>,
    %c1_i32_111 = arith.constant 1 : i32
    %c6_i32_112 = arith.constant 6 : i32
    %220 = arith.subi %c6_i32_112, %c1_i32_111 : i32
    %cst_113 = arith.constant dense<0.000000e+00> : vector<128x128xf32>
    %221 = tpu.matmul %202, %0, %cst_113 {dimension_numbers = #tpu.dot_dimension_numbers<[1], [0], [0], [1], [0, 0, 1, 1], [], []>} : vector<128x128xf32>, vector<128x128xf32>, vector<128x128xf32> -> vector<128x128xf32>
    %222 = vector.broadcast %1 : vector<1x128xf32> to vector<128x128xf32>
    %223 = arith.addf %221, %222 : vector<128x128xf32>
    %cst_114 = arith.constant 0.000000e+00 : f32
    %224 = vector.broadcast %cst_114 : f32 to vector<128x128xf32>
    %225 = arith.maximumf %223, %224 : vector<128x128xf32>
    %226 = arith.index_cast %220 : i32 to index
    %c0_115 = arith.constant 0 : index
    %c0_116 = arith.constant 0 : index
    %227 = vector.load %arg4[%226, %c0_115, %c0_116] : memref<8x256x128xf32, #tpu.memory_space<vmem>>, vector<1x128x128xf32>
    %228 = vector.shape_cast %227 : vector<1x128x128xf32> to vector<128x128xf32>
    %229 = arith.addf %225, %228 : vector<128x128xf32>
    %230 = arith.index_cast %220 : i32 to index
    %c0_117 = arith.constant 0 : index
    %c0_118 = arith.constant 0 : index
    %231 = vector.load %arg4[%230, %c0_117, %c0_118] : memref<8x256x128xf32, #tpu.memory_space<vmem>>, vector<1x128x128xf32>
    %232 = vector.shape_cast %231 : vector<1x128x128xf32> to vector<128x128xf32>
    %233 = vector.shape_cast %229 : vector<128x128xf32> to vector<1x128x128xf32>
    tpu.vector_store %arg4[%230, %c0_117, %c0_118], %233 {strides = array<i32>} : memref<8x256x128xf32, #tpu.memory_space<vmem>>, vector<1x128x128xf32>,
    %cst_119 = arith.constant dense<0.000000e+00> : vector<128x128xf32>
    %234 = tpu.matmul %215, %0, %cst_119 {dimension_numbers = #tpu.dot_dimension_numbers<[1], [0], [0], [1], [0, 0, 1, 1], [], []>} : vector<128x128xf32>, vector<128x128xf32>, vector<128x128xf32> -> vector<128x128xf32>
    %235 = vector.broadcast %1 : vector<1x128xf32> to vector<128x128xf32>
    %236 = arith.addf %234, %235 : vector<128x128xf32>
    %cst_120 = arith.constant 0.000000e+00 : f32
    %237 = vector.broadcast %cst_120 : f32 to vector<128x128xf32>
    %238 = arith.maximumf %236, %237 : vector<128x128xf32>
    %239 = arith.index_cast %220 : i32 to index
    %c128_121 = arith.constant 128 : index
    %c0_122 = arith.constant 0 : index
    %240 = vector.load %arg4[%239, %c128_121, %c0_122] : memref<8x256x128xf32, #tpu.memory_space<vmem>>, vector<1x128x128xf32>
    %241 = vector.shape_cast %240 : vector<1x128x128xf32> to vector<128x128xf32>
    %242 = arith.addf %238, %241 : vector<128x128xf32>
    %243 = arith.index_cast %220 : i32 to index
    %c128_123 = arith.constant 128 : index
    %c0_124 = arith.constant 0 : index
    %244 = vector.load %arg4[%243, %c128_123, %c0_124] : memref<8x256x128xf32, #tpu.memory_space<vmem>>, vector<1x128x128xf32>
    %245 = vector.shape_cast %244 : vector<1x128x128xf32> to vector<128x128xf32>
    %246 = vector.shape_cast %242 : vector<128x128xf32> to vector<1x128x128xf32>
    tpu.vector_store %arg4[%243, %c128_123, %c0_124], %246 {strides = array<i32>} : memref<8x256x128xf32, #tpu.memory_space<vmem>>, vector<1x128x128xf32>,
    %c2_i32_125 = arith.constant 2 : i32
    %c6_i32_126 = arith.constant 6 : i32
    %247 = arith.subi %c6_i32_126, %c2_i32_125 : i32
    %cst_127 = arith.constant dense<0.000000e+00> : vector<128x128xf32>
    %248 = tpu.matmul %229, %0, %cst_127 {dimension_numbers = #tpu.dot_dimension_numbers<[1], [0], [0], [1], [0, 0, 1, 1], [], []>} : vector<128x128xf32>, vector<128x128xf32>, vector<128x128xf32> -> vector<128x128xf32>
    %249 = vector.broadcast %1 : vector<1x128xf32> to vector<128x128xf32>
    %250 = arith.addf %248, %249 : vector<128x128xf32>
    %cst_128 = arith.constant 0.000000e+00 : f32
    %251 = vector.broadcast %cst_128 : f32 to vector<128x128xf32>
    %252 = arith.maximumf %250, %251 : vector<128x128xf32>
    %253 = arith.index_cast %247 : i32 to index
    %c0_129 = arith.constant 0 : index
    %c0_130 = arith.constant 0 : index
    %254 = vector.load %arg4[%253, %c0_129, %c0_130] : memref<8x256x128xf32, #tpu.memory_space<vmem>>, vector<1x128x128xf32>
    %255 = vector.shape_cast %254 : vector<1x128x128xf32> to vector<128x128xf32>
    %256 = arith.addf %252, %255 : vector<128x128xf32>
    %257 = arith.index_cast %247 : i32 to index
    %c0_131 = arith.constant 0 : index
    %c0_132 = arith.constant 0 : index
    %258 = vector.load %arg4[%257, %c0_131, %c0_132] : memref<8x256x128xf32, #tpu.memory_space<vmem>>, vector<1x128x128xf32>
    %259 = vector.shape_cast %258 : vector<1x128x128xf32> to vector<128x128xf32>
    %260 = vector.shape_cast %256 : vector<128x128xf32> to vector<1x128x128xf32>
    tpu.vector_store %arg4[%257, %c0_131, %c0_132], %260 {strides = array<i32>} : memref<8x256x128xf32, #tpu.memory_space<vmem>>, vector<1x128x128xf32>,
    %cst_133 = arith.constant dense<0.000000e+00> : vector<128x128xf32>
    %261 = tpu.matmul %242, %0, %cst_133 {dimension_numbers = #tpu.dot_dimension_numbers<[1], [0], [0], [1], [0, 0, 1, 1], [], []>} : vector<128x128xf32>, vector<128x128xf32>, vector<128x128xf32> -> vector<128x128xf32>
    %262 = vector.broadcast %1 : vector<1x128xf32> to vector<128x128xf32>
    %263 = arith.addf %261, %262 : vector<128x128xf32>
    %cst_134 = arith.constant 0.000000e+00 : f32
    %264 = vector.broadcast %cst_134 : f32 to vector<128x128xf32>
    %265 = arith.maximumf %263, %264 : vector<128x128xf32>
    %266 = arith.index_cast %247 : i32 to index
    %c128_135 = arith.constant 128 : index
    %c0_136 = arith.constant 0 : index
    %267 = vector.load %arg4[%266, %c128_135, %c0_136] : memref<8x256x128xf32, #tpu.memory_space<vmem>>, vector<1x128x128xf32>
    %268 = vector.shape_cast %267 : vector<1x128x128xf32> to vector<128x128xf32>
    %269 = arith.addf %265, %268 : vector<128x128xf32>
    %270 = arith.index_cast %247 : i32 to index
    %c128_137 = arith.constant 128 : index
    %c0_138 = arith.constant 0 : index
    %271 = vector.load %arg4[%270, %c128_137, %c0_138] : memref<8x256x128xf32, #tpu.memory_space<vmem>>, vector<1x128x128xf32>
    %272 = vector.shape_cast %271 : vector<1x128x128xf32> to vector<128x128xf32>
    %273 = vector.shape_cast %269 : vector<128x128xf32> to vector<1x128x128xf32>
    tpu.vector_store %arg4[%270, %c128_137, %c0_138], %273 {strides = array<i32>} : memref<8x256x128xf32, #tpu.memory_space<vmem>>, vector<1x128x128xf32>,
    %c3_i32_139 = arith.constant 3 : i32
    %c6_i32_140 = arith.constant 6 : i32
    %274 = arith.subi %c6_i32_140, %c3_i32_139 : i32
    %cst_141 = arith.constant dense<0.000000e+00> : vector<128x128xf32>
    %275 = tpu.matmul %256, %0, %cst_141 {dimension_numbers = #tpu.dot_dimension_numbers<[1], [0], [0], [1], [0, 0, 1, 1], [], []>} : vector<128x128xf32>, vector<128x128xf32>, vector<128x128xf32> -> vector<128x128xf32>
    %276 = vector.broadcast %1 : vector<1x128xf32> to vector<128x128xf32>
    %277 = arith.addf %275, %276 : vector<128x128xf32>
    %cst_142 = arith.constant 0.000000e+00 : f32
    %278 = vector.broadcast %cst_142 : f32 to vector<128x128xf32>
    %279 = arith.maximumf %277, %278 : vector<128x128xf32>
    %280 = arith.index_cast %274 : i32 to index
    %c0_143 = arith.constant 0 : index
    %c0_144 = arith.constant 0 : index
    %281 = vector.load %arg4[%280, %c0_143, %c0_144] : memref<8x256x128xf32, #tpu.memory_space<vmem>>, vector<1x128x128xf32>
    %282 = vector.shape_cast %281 : vector<1x128x128xf32> to vector<128x128xf32>
    %283 = arith.addf %279, %282 : vector<128x128xf32>
    %284 = arith.index_cast %274 : i32 to index
    %c0_145 = arith.constant 0 : index
    %c0_146 = arith.constant 0 : index
    %285 = vector.load %arg4[%284, %c0_145, %c0_146] : memref<8x256x128xf32, #tpu.memory_space<vmem>>, vector<1x128x128xf32>
    %286 = vector.shape_cast %285 : vector<1x128x128xf32> to vector<128x128xf32>
    %287 = vector.shape_cast %283 : vector<128x128xf32> to vector<1x128x128xf32>
    tpu.vector_store %arg4[%284, %c0_145, %c0_146], %287 {strides = array<i32>} : memref<8x256x128xf32, #tpu.memory_space<vmem>>, vector<1x128x128xf32>,
    %cst_147 = arith.constant dense<0.000000e+00> : vector<128x128xf32>
    %288 = tpu.matmul %269, %0, %cst_147 {dimension_numbers = #tpu.dot_dimension_numbers<[1], [0], [0], [1], [0, 0, 1, 1], [], []>} : vector<128x128xf32>, vector<128x128xf32>, vector<128x128xf32> -> vector<128x128xf32>
    %289 = vector.broadcast %1 : vector<1x128xf32> to vector<128x128xf32>
    %290 = arith.addf %288, %289 : vector<128x128xf32>
    %cst_148 = arith.constant 0.000000e+00 : f32
    %291 = vector.broadcast %cst_148 : f32 to vector<128x128xf32>
    %292 = arith.maximumf %290, %291 : vector<128x128xf32>
    %293 = arith.index_cast %274 : i32 to index
    %c128_149 = arith.constant 128 : index
    %c0_150 = arith.constant 0 : index
    %294 = vector.load %arg4[%293, %c128_149, %c0_150] : memref<8x256x128xf32, #tpu.memory_space<vmem>>, vector<1x128x128xf32>
    %295 = vector.shape_cast %294 : vector<1x128x128xf32> to vector<128x128xf32>
    %296 = arith.addf %292, %295 : vector<128x128xf32>
    %297 = arith.index_cast %274 : i32 to index
    %c128_151 = arith.constant 128 : index
    %c0_152 = arith.constant 0 : index
    %298 = vector.load %arg4[%297, %c128_151, %c0_152] : memref<8x256x128xf32, #tpu.memory_space<vmem>>, vector<1x128x128xf32>
    %299 = vector.shape_cast %298 : vector<1x128x128xf32> to vector<128x128xf32>
    %300 = vector.shape_cast %296 : vector<128x128xf32> to vector<1x128x128xf32>
    tpu.vector_store %arg4[%297, %c128_151, %c0_152], %300 {strides = array<i32>} : memref<8x256x128xf32, #tpu.memory_space<vmem>>, vector<1x128x128xf32>,
    %c4_i32_153 = arith.constant 4 : i32
    %c6_i32_154 = arith.constant 6 : i32
    %301 = arith.subi %c6_i32_154, %c4_i32_153 : i32
    %cst_155 = arith.constant dense<0.000000e+00> : vector<128x128xf32>
    %302 = tpu.matmul %283, %0, %cst_155 {dimension_numbers = #tpu.dot_dimension_numbers<[1], [0], [0], [1], [0, 0, 1, 1], [], []>} : vector<128x128xf32>, vector<128x128xf32>, vector<128x128xf32> -> vector<128x128xf32>
    %303 = vector.broadcast %1 : vector<1x128xf32> to vector<128x128xf32>
    %304 = arith.addf %302, %303 : vector<128x128xf32>
    %cst_156 = arith.constant 0.000000e+00 : f32
    %305 = vector.broadcast %cst_156 : f32 to vector<128x128xf32>
    %306 = arith.maximumf %304, %305 : vector<128x128xf32>
    %307 = arith.index_cast %301 : i32 to index
    %c0_157 = arith.constant 0 : index
    %c0_158 = arith.constant 0 : index
    %308 = vector.load %arg4[%307, %c0_157, %c0_158] : memref<8x256x128xf32, #tpu.memory_space<vmem>>, vector<1x128x128xf32>
    %309 = vector.shape_cast %308 : vector<1x128x128xf32> to vector<128x128xf32>
    %310 = arith.addf %306, %309 : vector<128x128xf32>
    %311 = arith.index_cast %301 : i32 to index
    %c0_159 = arith.constant 0 : index
    %c0_160 = arith.constant 0 : index
    %312 = vector.load %arg4[%311, %c0_159, %c0_160] : memref<8x256x128xf32, #tpu.memory_space<vmem>>, vector<1x128x128xf32>
    %313 = vector.shape_cast %312 : vector<1x128x128xf32> to vector<128x128xf32>
    %314 = vector.shape_cast %310 : vector<128x128xf32> to vector<1x128x128xf32>
    tpu.vector_store %arg4[%311, %c0_159, %c0_160], %314 {strides = array<i32>} : memref<8x256x128xf32, #tpu.memory_space<vmem>>, vector<1x128x128xf32>,
    %cst_161 = arith.constant dense<0.000000e+00> : vector<128x128xf32>
    %315 = tpu.matmul %296, %0, %cst_161 {dimension_numbers = #tpu.dot_dimension_numbers<[1], [0], [0], [1], [0, 0, 1, 1], [], []>} : vector<128x128xf32>, vector<128x128xf32>, vector<128x128xf32> -> vector<128x128xf32>
    %316 = vector.broadcast %1 : vector<1x128xf32> to vector<128x128xf32>
    %317 = arith.addf %315, %316 : vector<128x128xf32>
    %cst_162 = arith.constant 0.000000e+00 : f32
    %318 = vector.broadcast %cst_162 : f32 to vector<128x128xf32>
    %319 = arith.maximumf %317, %318 : vector<128x128xf32>
    %320 = arith.index_cast %301 : i32 to index
    %c128_163 = arith.constant 128 : index
    %c0_164 = arith.constant 0 : index
    %321 = vector.load %arg4[%320, %c128_163, %c0_164] : memref<8x256x128xf32, #tpu.memory_space<vmem>>, vector<1x128x128xf32>
    %322 = vector.shape_cast %321 : vector<1x128x128xf32> to vector<128x128xf32>
    %323 = arith.addf %319, %322 : vector<128x128xf32>
    %324 = arith.index_cast %301 : i32 to index
    %c128_165 = arith.constant 128 : index
    %c0_166 = arith.constant 0 : index
    %325 = vector.load %arg4[%324, %c128_165, %c0_166] : memref<8x256x128xf32, #tpu.memory_space<vmem>>, vector<1x128x128xf32>
    %326 = vector.shape_cast %325 : vector<1x128x128xf32> to vector<128x128xf32>
    %327 = vector.shape_cast %323 : vector<128x128xf32> to vector<1x128x128xf32>
    tpu.vector_store %arg4[%324, %c128_165, %c0_166], %327 {strides = array<i32>} : memref<8x256x128xf32, #tpu.memory_space<vmem>>, vector<1x128x128xf32>,
    %c5_i32_167 = arith.constant 5 : i32
    %c6_i32_168 = arith.constant 6 : i32
    %328 = arith.subi %c6_i32_168, %c5_i32_167 : i32
    %cst_169 = arith.constant dense<0.000000e+00> : vector<128x128xf32>
    %329 = tpu.matmul %310, %0, %cst_169 {dimension_numbers = #tpu.dot_dimension_numbers<[1], [0], [0], [1], [0, 0, 1, 1], [], []>} : vector<128x128xf32>, vector<128x128xf32>, vector<128x128xf32> -> vector<128x128xf32>
    %330 = vector.broadcast %1 : vector<1x128xf32> to vector<128x128xf32>
    %331 = arith.addf %329, %330 : vector<128x128xf32>
    %cst_170 = arith.constant 0.000000e+00 : f32
    %332 = vector.broadcast %cst_170 : f32 to vector<128x128xf32>
    %333 = arith.maximumf %331, %332 : vector<128x128xf32>
    %334 = arith.index_cast %328 : i32 to index
    %c0_171 = arith.constant 0 : index
    %c0_172 = arith.constant 0 : index
    %335 = vector.load %arg4[%334, %c0_171, %c0_172] : memref<8x256x128xf32, #tpu.memory_space<vmem>>, vector<1x128x128xf32>
    %336 = vector.shape_cast %335 : vector<1x128x128xf32> to vector<128x128xf32>
    %337 = arith.addf %333, %336 : vector<128x128xf32>
    %338 = arith.index_cast %328 : i32 to index
    %c0_173 = arith.constant 0 : index
    %c0_174 = arith.constant 0 : index
    %339 = vector.load %arg4[%338, %c0_173, %c0_174] : memref<8x256x128xf32, #tpu.memory_space<vmem>>, vector<1x128x128xf32>
    %340 = vector.shape_cast %339 : vector<1x128x128xf32> to vector<128x128xf32>
    %341 = vector.shape_cast %337 : vector<128x128xf32> to vector<1x128x128xf32>
    tpu.vector_store %arg4[%338, %c0_173, %c0_174], %341 {strides = array<i32>} : memref<8x256x128xf32, #tpu.memory_space<vmem>>, vector<1x128x128xf32>,
    %cst_175 = arith.constant dense<0.000000e+00> : vector<128x128xf32>
    %342 = tpu.matmul %323, %0, %cst_175 {dimension_numbers = #tpu.dot_dimension_numbers<[1], [0], [0], [1], [0, 0, 1, 1], [], []>} : vector<128x128xf32>, vector<128x128xf32>, vector<128x128xf32> -> vector<128x128xf32>
    %343 = vector.broadcast %1 : vector<1x128xf32> to vector<128x128xf32>
    %344 = arith.addf %342, %343 : vector<128x128xf32>
    %cst_176 = arith.constant 0.000000e+00 : f32
    %345 = vector.broadcast %cst_176 : f32 to vector<128x128xf32>
    %346 = arith.maximumf %344, %345 : vector<128x128xf32>
    %347 = arith.index_cast %328 : i32 to index
    %c128_177 = arith.constant 128 : index
    %c0_178 = arith.constant 0 : index
    %348 = vector.load %arg4[%347, %c128_177, %c0_178] : memref<8x256x128xf32, #tpu.memory_space<vmem>>, vector<1x128x128xf32>
    %349 = vector.shape_cast %348 : vector<1x128x128xf32> to vector<128x128xf32>
    %350 = arith.addf %346, %349 : vector<128x128xf32>
    %351 = arith.index_cast %328 : i32 to index
    %c128_179 = arith.constant 128 : index
    %c0_180 = arith.constant 0 : index
    %352 = vector.load %arg4[%351, %c128_179, %c0_180] : memref<8x256x128xf32, #tpu.memory_space<vmem>>, vector<1x128x128xf32>
    %353 = vector.shape_cast %352 : vector<1x128x128xf32> to vector<128x128xf32>
    %354 = vector.shape_cast %350 : vector<128x128xf32> to vector<1x128x128xf32>
    tpu.vector_store %arg4[%351, %c128_179, %c0_180], %354 {strides = array<i32>} : memref<8x256x128xf32, #tpu.memory_space<vmem>>, vector<1x128x128xf32>,
    %c6_i32_181 = arith.constant 6 : i32
    %c6_i32_182 = arith.constant 6 : i32
    %355 = arith.subi %c6_i32_182, %c6_i32_181 : i32
    %cst_183 = arith.constant dense<0.000000e+00> : vector<128x128xf32>
    %356 = tpu.matmul %337, %0, %cst_183 {dimension_numbers = #tpu.dot_dimension_numbers<[1], [0], [0], [1], [0, 0, 1, 1], [], []>} : vector<128x128xf32>, vector<128x128xf32>, vector<128x128xf32> -> vector<128x128xf32>
    %357 = vector.broadcast %1 : vector<1x128xf32> to vector<128x128xf32>
    %358 = arith.addf %356, %357 : vector<128x128xf32>
    %cst_184 = arith.constant 0.000000e+00 : f32
    %359 = vector.broadcast %cst_184 : f32 to vector<128x128xf32>
    %360 = arith.maximumf %358, %359 : vector<128x128xf32>
    %361 = arith.index_cast %355 : i32 to index
    %c0_185 = arith.constant 0 : index
    %c0_186 = arith.constant 0 : index
    %362 = vector.load %arg4[%361, %c0_185, %c0_186] : memref<8x256x128xf32, #tpu.memory_space<vmem>>, vector<1x128x128xf32>
    %363 = vector.shape_cast %362 : vector<1x128x128xf32> to vector<128x128xf32>
    %364 = arith.addf %360, %363 : vector<128x128xf32>
    %365 = arith.index_cast %355 : i32 to index
    %c0_187 = arith.constant 0 : index
    %c0_188 = arith.constant 0 : index
    %366 = vector.load %arg4[%365, %c0_187, %c0_188] : memref<8x256x128xf32, #tpu.memory_space<vmem>>, vector<1x128x128xf32>
    %367 = vector.shape_cast %366 : vector<1x128x128xf32> to vector<128x128xf32>
    %368 = vector.shape_cast %364 : vector<128x128xf32> to vector<1x128x128xf32>
    tpu.vector_store %arg4[%365, %c0_187, %c0_188], %368 {strides = array<i32>} : memref<8x256x128xf32, #tpu.memory_space<vmem>>, vector<1x128x128xf32>,
    %cst_189 = arith.constant dense<0.000000e+00> : vector<128x128xf32>
    %369 = tpu.matmul %350, %0, %cst_189 {dimension_numbers = #tpu.dot_dimension_numbers<[1], [0], [0], [1], [0, 0, 1, 1], [], []>} : vector<128x128xf32>, vector<128x128xf32>, vector<128x128xf32> -> vector<128x128xf32>
    %370 = vector.broadcast %1 : vector<1x128xf32> to vector<128x128xf32>
    %371 = arith.addf %369, %370 : vector<128x128xf32>
    %cst_190 = arith.constant 0.000000e+00 : f32
    %372 = vector.broadcast %cst_190 : f32 to vector<128x128xf32>
    %373 = arith.maximumf %371, %372 : vector<128x128xf32>
    %374 = arith.index_cast %355 : i32 to index
    %c128_191 = arith.constant 128 : index
    %c0_192 = arith.constant 0 : index
    %375 = vector.load %arg4[%374, %c128_191, %c0_192] : memref<8x256x128xf32, #tpu.memory_space<vmem>>, vector<1x128x128xf32>
    %376 = vector.shape_cast %375 : vector<1x128x128xf32> to vector<128x128xf32>
    %377 = arith.addf %373, %376 : vector<128x128xf32>
    %378 = arith.index_cast %355 : i32 to index
    %c128_193 = arith.constant 128 : index
    %c0_194 = arith.constant 0 : index
    %379 = vector.load %arg4[%378, %c128_193, %c0_194] : memref<8x256x128xf32, #tpu.memory_space<vmem>>, vector<1x128x128xf32>
    %380 = vector.shape_cast %379 : vector<1x128x128xf32> to vector<128x128xf32>
    %381 = vector.shape_cast %377 : vector<128x128xf32> to vector<1x128x128xf32>
    tpu.vector_store %arg4[%378, %c128_193, %c0_194], %381 {strides = array<i32>} : memref<8x256x128xf32, #tpu.memory_space<vmem>>, vector<1x128x128xf32>,
    %c7_i32_195 = arith.constant 7 : i32
    return
  }
  func.func @transform_0(%arg0: i32) -> (i32, i32, i32) {
    %c0_i32 = arith.constant 0 : i32
    %c0_i32_0 = arith.constant 0 : i32
    %c0_i32_1 = arith.constant 0 : i32
    return %c0_i32, %arg0, %c0_i32_0 : i32, i32, i32
  }
  func.func @transform_1(%arg0: i32) -> (i32, i32) {
    %c0_i32 = arith.constant 0 : i32
    %c0_i32_0 = arith.constant 0 : i32
    %c0_i32_1 = arith.constant 0 : i32
    return %c0_i32, %c0_i32_0 : i32, i32
  }
  func.func @transform_2(%arg0: i32) -> (i32, i32) {
    %c0_i32 = arith.constant 0 : i32
    %c0_i32_0 = arith.constant 0 : i32
    %c0_i32_1 = arith.constant 0 : i32
    return %c0_i32, %c0_i32_0 : i32, i32
  }
  func.func @transform_3(%arg0: i32) -> (i32, i32, i32) {
    %c0_i32 = arith.constant 0 : i32
    %c0_i32_0 = arith.constant 0 : i32
    %c0_i32_1 = arith.constant 0 : i32
    return %c0_i32, %arg0, %c0_i32_0 : i32, i32, i32
  }
}

</mosaic_0001>

<bundles_post_ra>
// kernel: conv_du.1
= control target key start
LH: loop header
LB: loop body
LE: loop exit
PB: predicated region body
PF: predicated region fallthrough
CT: control target
= control target key end

     0   :  { %s12609_s12 = smov 0   ;;  %s12611_s13 = smov 0   ;;  %s15694_s0 = inlined_call_operand.vmem [shape: f32[8,512,128], index: 0, kind: input, shape index: {}, may-alias: {0,3}]   ;;  %s15695_s1 = inlined_call_operand.vmem [shape: f32[128,128], index: 1, kind: input, shape index: {}]   ;;  %s15696_s2 = inlined_call_operand.vmem [shape: f32[1,128], index: 2, kind: input, shape index: {}]   ;;  %s15697_s3 = inlined_call_operand.vmem [shape: f32[8,512,128], index: 3, kind: output, shape index: {}, may-alias: {0,3}]  }
   0x1   :  { %s12613_s14 = smov 0  }
   0x2 LB: > { %s8325_s15 = sadd.s32 4294967295, %s12587_s14   ;;  %s12626_s16 = sadd.s32 1, %s12587_s14   ;;  %s12587_s14 = sphi %s12613_s14, %s15701_s14   ;;  %s12583_s13 = sphi %s12611_s13, %s15700_s13   ;;  %s12579_s12 = sphi %s12609_s12, %s15699_s12  }
   0x3   : > { %s17_s17 = ssub.s32 %s12587_s14, %s12626_s16  ;;  %s20_s18 = sadd.s32 1, %s12583_s13 }
   0x4   : > { %p18_p0 = scmp.eq.s32.totalorder %s17_s17, 0  ;;  %p27_p1 = scmp.ne.s32.totalorder %s12583_s13, %s12579_s12 }
   0x5   : > { %p28_p2 = scmp.eq.s32.totalorder %s12587_s14, 0  ;;  %p99_p3 = scmp.eq.s32.totalorder %s8325_s15, 1 }
   0x6   : > { %s12637_s19 = scalar_select %p18_p0, %s12583_s13, %s20_s18  }
   0x7   : > { %p29_p4 = por %p28_p2, %p27_p1  ;;  %p12639_p5 = por %p99_p3, %p27_p1 }
   0x8   : > { %p8328_p6 = scmp.ge.s32.totalorder %s12587_s14, 2 }
   0xa   : > { %127 = sbr.rel (%p8328_p6) target bundleno = 149 (0x95), region = 24 }
  0x11   : > { %130 = sbr.rel (!%p29_p4) target bundleno = 149 (0x95), region = 28  ;;  %s132_s21 = sand.u32 (%p29_p4), 1, %s12583_s13  }
  0x12   : > { %s9173_s22 = sshll.u32 (%p29_p4), %s12587_s14, 8  ;;  %s8329_s23 = sshll.u32 (%p29_p4), %s132_s21, 11 }
  0x13   : > { %s12649_s26 = scalar_lea.vmem (%p29_p4), %s15694_s0, %s9173_s22  ;;  %s12654_s27 = scalar_lea.vmem (%p29_p4), [#allocation2], %s8329_s23 }
  0x14   : > { %v675_v0 = vld [vmem:[%s12649_s26] sm:$0xff] (%p29_p4)  ;;  %v677_v1 = vld [vmem:[%s12649_s26 + $0x8] sm:$0xff] (%p29_p4)  ;;  %v679_v2 = vld [vmem:[%s12649_s26 + $0x10] sm:$0xff] (%p29_p4) }
  0x15   : > { %676 = vst [vmem:[%s12654_s27] sm:$0xff] (%p29_p4), %v675_v0  ;;  %678 = vst [vmem:[%s12654_s27 + $0x8] sm:$0xff] (%p29_p4), %v677_v1  ;;  %v681_v3 = vld [vmem:[%s12649_s26 + $0x18] sm:$0xff] (%p29_p4)  ;;  %v683_v4 = vld [vmem:[%s12649_s26 + $0x20] sm:$0xff] (%p29_p4) }
  0x16   : > { %680 = vst [vmem:[%s12654_s27 + $0x10] sm:$0xff] (%p29_p4), %v679_v2  ;;  %v685_v5 = vld [vmem:[%s12649_s26 + $0x28] sm:$0xff] (%p29_p4)  ;;  %682 = vst [vmem:[%s12654_s27 + $0x18] sm:$0xff] (%p29_p4), %v681_v3  ;;  %v687_v6 = vld [vmem:[%s12649_s26 + $0x30] sm:$0xff] (%p29_p4) }
  0x17   : > { %684 = vst [vmem:[%s12654_s27 + $0x20] sm:$0xff] (%p29_p4), %v683_v4  ;;  %686 = vst [vmem:[%s12654_s27 + $0x28] sm:$0xff] (%p29_p4), %v685_v5  ;;  %v689_v7 = vld [vmem:[%s12649_s26 + $0x38] sm:$0xff] (%p29_p4)  ;;  %v691_v8 = vld [vmem:[%s12649_s26 + $0x40] sm:$0xff] (%p29_p4) }
  0x18   : > { %688 = vst [vmem:[%s12654_s27 + $0x30] sm:$0xff] %v687_v6  ;;  %690 = vst [vmem:[%s12654_s27 + $0x38] sm:$0xff] %v689_v7  ;;  %v693_v9 = vld [vmem:[%s12649_s26 + $0x48] sm:$0xff]  ;;  %v695_v10 = vld [vmem:[%s12649_s26 + $0x50] sm:$0xff] }
  0x19   : > { %692 = vst [vmem:[%s12654_s27 + $0x40] sm:$0xff] %v691_v8  ;;  %v697_v11 = vld [vmem:[%s12649_s26 + $0x58] sm:$0xff]  ;;  %694 = vst [vmem:[%s12654_s27 + $0x48] sm:$0xff] %v693_v9  ;;  %v699_v12 = vld [vmem:[%s12649_s26 + $0x60] sm:$0xff] }
  0x1a   : > { %696 = vst [vmem:[%s12654_s27 + $0x50] sm:$0xff] %v695_v10  ;;  %698 = vst [vmem:[%s12654_s27 + $0x58] sm:$0xff] %v697_v11  ;;  %v701_v13 = vld [vmem:[%s12649_s26 + $0x68] sm:$0xff]  ;;  %v703_v14 = vld [vmem:[%s12649_s26 + $0x70] sm:$0xff] }
  0x1b   : > { %700 = vst [vmem:[%s12654_s27 + $0x60] sm:$0xff] %v699_v12  ;;  %702 = vst [vmem:[%s12654_s27 + $0x68] sm:$0xff] %v701_v13  ;;  %v705_v15 = vld [vmem:[%s12649_s26 + $0x78] sm:$0xff]  ;;  %v707_v16 = vld [vmem:[%s12649_s26 + $0x80] sm:$0xff] }
  0x1c   : > { %704 = vst [vmem:[%s12654_s27 + $0x70] sm:$0xff] %v703_v14  ;;  %v709_v17 = vld [vmem:[%s12649_s26 + $0x88] sm:$0xff]  ;;  %706 = vst [vmem:[%s12654_s27 + $0x78] sm:$0xff] %v705_v15  ;;  %v711_v18 = vld [vmem:[%s12649_s26 + $0x90] sm:$0xff] }
  0x1d   : > { %708 = vst [vmem:[%s12654_s27 + $0x80] sm:$0xff] %v707_v16  ;;  %710 = vst [vmem:[%s12654_s27 + $0x88] sm:$0xff] %v709_v17  ;;  %v713_v19 = vld [vmem:[%s12649_s26 + $0x98] sm:$0xff]  ;;  %v715_v20 = vld [vmem:[%s12649_s26 + $0xa0] sm:$0xff] }
  0x1e   : > { %712 = vst [vmem:[%s12654_s27 + $0x90] sm:$0xff] %v711_v18  ;;  %714 = vst [vmem:[%s12654_s27 + $0x98] sm:$0xff] %v713_v19  ;;  %v717_v21 = vld [vmem:[%s12649_s26 + $0xa8] sm:$0xff]  ;;  %v719_v22 = vld [vmem:[%s12649_s26 + $0xb0] sm:$0xff] }
  0x1f   : > { %716 = vst [vmem:[%s12654_s27 + $0xa0] sm:$0xff] %v715_v20  ;;  %v721_v23 = vld [vmem:[%s12649_s26 + $0xb8] sm:$0xff]  ;;  %718 = vst [vmem:[%s12654_s27 + $0xa8] sm:$0xff] %v717_v21  ;;  %v723_v24 = vld [vmem:[%s12649_s26 + $0xc0] sm:$0xff] }
  0x20   : > { %720 = vst [vmem:[%s12654_s27 + $0xb0] sm:$0xff] %v719_v22  ;;  %722 = vst [vmem:[%s12654_s27 + $0xb8] sm:$0xff] %v721_v23  ;;  %v725_v25 = vld [vmem:[%s12649_s26 + $0xc8] sm:$0xff]  ;;  %v727_v26 = vld [vmem:[%s12649_s26 + $0xd0] sm:$0xff] }
  0x21   : > { %724 = vst [vmem:[%s12654_s27 + $0xc0] sm:$0xff] %v723_v24  ;;  %726 = vst [vmem:[%s12654_s27 + $0xc8] sm:$0xff] %v725_v25  ;;  %v729_v27 = vld [vmem:[%s12649_s26 + $0xd8] sm:$0xff]  ;;  %v731_v28 = vld [vmem:[%s12649_s26 + $0xe0] sm:$0xff] }
  0x22   : > { %728 = vst [vmem:[%s12654_s27 + $0xd0] sm:$0xff] %v727_v26  ;;  %v733_v29 = vld [vmem:[%s12649_s26 + $0xe8] sm:$0xff]  ;;  %730 = vst [vmem:[%s12654_s27 + $0xd8] sm:$0xff] %v729_v27  ;;  %v735_v30 = vld [vmem:[%s12649_s26 + $0xf0] sm:$0xff] }
  0x23   : > { %732 = vst [vmem:[%s12654_s27 + $0xe0] sm:$0xff] %v731_v28  ;;  %734 = vst [vmem:[%s12654_s27 + $0xe8] sm:$0xff] %v733_v29  ;;  %v737_v31 = vld [vmem:[%s12649_s26 + $0xf8] sm:$0xff]  ;;  %v739_v32 = vld [vmem:[%s12649_s26 + $0x200] sm:$0xff] }
  0x24   : > { %736 = vst [vmem:[%s12654_s27 + $0xf0] sm:$0xff] %v735_v30  ;;  %738 = vst [vmem:[%s12654_s27 + $0xf8] sm:$0xff] %v737_v31  ;;  %v741_v33 = vld [vmem:[%s12649_s26 + $0x208] sm:$0xff]  ;;  %v743_v34 = vld [vmem:[%s12649_s26 + $0x210] sm:$0xff] }
  0x25   : > { %740 = vst [vmem:[%s12654_s27 + $0x100] sm:$0xff] %v739_v32  ;;  %v745_v35 = vld [vmem:[%s12649_s26 + $0x218] sm:$0xff]  ;;  %742 = vst [vmem:[%s12654_s27 + $0x108] sm:$0xff] %v741_v33  ;;  %v747_v36 = vld [vmem:[%s12649_s26 + $0x220] sm:$0xff] }
  0x26   : > { %744 = vst [vmem:[%s12654_s27 + $0x110] sm:$0xff] %v743_v34  ;;  %746 = vst [vmem:[%s12654_s27 + $0x118] sm:$0xff] %v745_v35  ;;  %v749_v37 = vld [vmem:[%s12649_s26 + $0x228] sm:$0xff]  ;;  %v751_v38 = vld [vmem:[%s12649_s26 + $0x230] sm:$0xff] }
  0x27   : > { %748 = vst [vmem:[%s12654_s27 + $0x120] sm:$0xff] %v747_v36  ;;  %750 = vst [vmem:[%s12654_s27 + $0x128] sm:$0xff] %v749_v37  ;;  %v753_v39 = vld [vmem:[%s12649_s26 + $0x238] sm:$0xff]  ;;  %v755_v40 = vld [vmem:[%s12649_s26 + $0x240] sm:$0xff] }
  0x28   : > { %752 = vst [vmem:[%s12654_s27 + $0x130] sm:$0xff] %v751_v38  ;;  %v757_v41 = vld [vmem:[%s12649_s26 + $0x248] sm:$0xff]  ;;  %754 = vst [vmem:[%s12654_s27 + $0x138] sm:$0xff] %v753_v39  ;;  %v759_v42 = vld [vmem:[%s12649_s26 + $0x250] sm:$0xff] }
  0x29   : > { %756 = vst [vmem:[%s12654_s27 + $0x140] sm:$0xff] %v755_v40  ;;  %758 = vst [vmem:[%s12654_s27 + $0x148] sm:$0xff] %v757_v41  ;;  %v761_v43 = vld [vmem:[%s12649_s26 + $0x258] sm:$0xff]  ;;  %v763_v44 = vld [vmem:[%s12649_s26 + $0x260] sm:$0xff] }
  0x2a   : > { %760 = vst [vmem:[%s12654_s27 + $0x150] sm:$0xff] %v759_v42  ;;  %762 = vst [vmem:[%s12654_s27 + $0x158] sm:$0xff] %v761_v43  ;;  %v765_v45 = vld [vmem:[%s12649_s26 + $0x268] sm:$0xff]  ;;  %v767_v46 = vld [vmem:[%s12649_s26 + $0x270] sm:$0xff] }
  0x2b   : > { %764 = vst [vmem:[%s12654_s27 + $0x160] sm:$0xff] %v763_v44  ;;  %v769_v47 = vld [vmem:[%s12649_s26 + $0x278] sm:$0xff]  ;;  %766 = vst [vmem:[%s12654_s27 + $0x168] sm:$0xff] %v765_v45  ;;  %v771_v48 = vld [vmem:[%s12649_s26 + $0x280] sm:$0xff] }
  0x2c   : > { %768 = vst [vmem:[%s12654_s27 + $0x170] sm:$0xff] %v767_v46  ;;  %770 = vst [vmem:[%s12654_s27 + $0x178] sm:$0xff] %v769_v47  ;;  %v773_v49 = vld [vmem:[%s12649_s26 + $0x288] sm:$0xff]  ;;  %v775_v50 = vld [vmem:[%s12649_s26 + $0x290] sm:$0xff] }
  0x2d   : > { %772 = vst [vmem:[%s12654_s27 + $0x180] sm:$0xff] %v771_v48  ;;  %774 = vst [vmem:[%s12654_s27 + $0x188] sm:$0xff] %v773_v49  ;;  %v777_v51 = vld [vmem:[%s12649_s26 + $0x298] sm:$0xff]  ;;  %v779_v52 = vld [vmem:[%s12649_s26 + $0x2a0] sm:$0xff] }
  0x2e   : > { %776 = vst [vmem:[%s12654_s27 + $0x190] sm:$0xff] %v775_v50  ;;  %v781_v53 = vld [vmem:[%s12649_s26 + $0x2a8] sm:$0xff]  ;;  %778 = vst [vmem:[%s12654_s27 + $0x198] sm:$0xff] %v777_v51  ;;  %v783_v54 = vld [vmem:[%s12649_s26 + $0x2b0] sm:$0xff] }
  0x2f   : > { %780 = vst [vmem:[%s12654_s27 + $0x1a0] sm:$0xff] %v779_v52  ;;  %782 = vst [vmem:[%s12654_s27 + $0x1a8] sm:$0xff] %v781_v53  ;;  %v785_v55 = vld [vmem:[%s12649_s26 + $0x2b8] sm:$0xff]  ;;  %v787_v56 = vld [vmem:[%s12649_s26 + $0x2c0] sm:$0xff] }
  0x30   : > { %784 = vst [vmem:[%s12654_s27 + $0x1b0] sm:$0xff] %v783_v54  ;;  %786 = vst [vmem:[%s12654_s27 + $0x1b8] sm:$0xff] %v785_v55  ;;  %v789_v57 = vld [vmem:[%s12649_s26 + $0x2c8] sm:$0xff]  ;;  %v791_v58 = vld [vmem:[%s12649_s26 + $0x2d0] sm:$0xff] }
  0x31   : > { %788 = vst [vmem:[%s12654_s27 + $0x1c0] sm:$0xff] %v787_v56  ;;  %v793_v59 = vld [vmem:[%s12649_s26 + $0x2d8] sm:$0xff]  ;;  %790 = vst [vmem:[%s12654_s27 + $0x1c8] sm:$0xff] %v789_v57  ;;  %v795_v60 = vld [vmem:[%s12649_s26 + $0x2e0] sm:$0xff] }
  0x32   : > { %792 = vst [vmem:[%s12654_s27 + $0x1d0] sm:$0xff] %v791_v58  ;;  %794 = vst [vmem:[%s12654_s27 + $0x1d8] sm:$0xff] %v793_v59  ;;  %v797_v61 = vld [vmem:[%s12649_s26 + $0x2e8] sm:$0xff]  ;;  %v799_v62 = vld [vmem:[%s12649_s26 + $0x2f0] sm:$0xff] }
  0x33   : > { %796 = vst [vmem:[%s12654_s27 + $0x1e0] sm:$0xff] %v795_v60  ;;  %798 = vst [vmem:[%s12654_s27 + $0x1e8] sm:$0xff] %v797_v61  ;;  %v801_v63 = vld [vmem:[%s12649_s26 + $0x2f8] sm:$0xff]  ;;  %v803_v0 = vld [vmem:[%s12649_s26 + $0x400] sm:$0xff] }
  0x34   : > { %800 = vst [vmem:[%s12654_s27 + $0x1f0] sm:$0xff] %v799_v62  ;;  %v805_v1 = vld [vmem:[%s12649_s26 + $0x408] sm:$0xff]  ;;  %802 = vst [vmem:[%s12654_s27 + $0x1f8] sm:$0xff] %v801_v63  ;;  %v807_v2 = vld [vmem:[%s12649_s26 + $0x410] sm:$0xff] }
  0x35   : > { %804 = vst [vmem:[%s12654_s27 + $0x200] sm:$0xff] %v803_v0  ;;  %806 = vst [vmem:[%s12654_s27 + $0x208] sm:$0xff] %v805_v1  ;;  %v809_v3 = vld [vmem:[%s12649_s26 + $0x418] sm:$0xff]  ;;  %v811_v4 = vld [vmem:[%s12649_s26 + $0x420] sm:$0xff] }
  0x36   : > { %808 = vst [vmem:[%s12654_s27 + $0x210] sm:$0xff] %v807_v2  ;;  %810 = vst [vmem:[%s12654_s27 + $0x218] sm:$0xff] %v809_v3  ;;  %v813_v5 = vld [vmem:[%s12649_s26 + $0x428] sm:$0xff]  ;;  %v815_v6 = vld [vmem:[%s12649_s26 + $0x430] sm:$0xff] }
  0x37   : > { %812 = vst [vmem:[%s12654_s27 + $0x220] sm:$0xff] %v811_v4  ;;  %v817_v7 = vld [vmem:[%s12649_s26 + $0x438] sm:$0xff]  ;;  %814 = vst [vmem:[%s12654_s27 + $0x228] sm:$0xff] %v813_v5  ;;  %v819_v8 = vld [vmem:[%s12649_s26 + $0x440] sm:$0xff] }
  0x38   : > { %816 = vst [vmem:[%s12654_s27 + $0x230] sm:$0xff] %v815_v6  ;;  %818 = vst [vmem:[%s12654_s27 + $0x238] sm:$0xff] %v817_v7  ;;  %v821_v9 = vld [vmem:[%s12649_s26 + $0x448] sm:$0xff]  ;;  %v823_v10 = vld [vmem:[%s12649_s26 + $0x450] sm:$0xff] }
  0x39   : > { %820 = vst [vmem:[%s12654_s27 + $0x240] sm:$0xff] %v819_v8  ;;  %822 = vst [vmem:[%s12654_s27 + $0x248] sm:$0xff] %v821_v9  ;;  %v825_v11 = vld [vmem:[%s12649_s26 + $0x458] sm:$0xff]  ;;  %v827_v12 = vld [vmem:[%s12649_s26 + $0x460] sm:$0xff] }
  0x3a   : > { %824 = vst [vmem:[%s12654_s27 + $0x250] sm:$0xff] %v823_v10  ;;  %v829_v13 = vld [vmem:[%s12649_s26 + $0x468] sm:$0xff]  ;;  %826 = vst [vmem:[%s12654_s27 + $0x258] sm:$0xff] %v825_v11  ;;  %v831_v14 = vld [vmem:[%s12649_s26 + $0x470] sm:$0xff] }
  0x3b   : > { %828 = vst [vmem:[%s12654_s27 + $0x260] sm:$0xff] %v827_v12  ;;  %830 = vst [vmem:[%s12654_s27 + $0x268] sm:$0xff] %v829_v13  ;;  %v833_v15 = vld [vmem:[%s12649_s26 + $0x478] sm:$0xff]  ;;  %v835_v16 = vld [vmem:[%s12649_s26 + $0x480] sm:$0xff] }
  0x3c   : > { %832 = vst [vmem:[%s12654_s27 + $0x270] sm:$0xff] %v831_v14  ;;  %834 = vst [vmem:[%s12654_s27 + $0x278] sm:$0xff] %v833_v15  ;;  %v837_v17 = vld [vmem:[%s12649_s26 + $0x488] sm:$0xff]  ;;  %v839_v18 = vld [vmem:[%s12649_s26 + $0x490] sm:$0xff] }
  0x3d   : > { %836 = vst [vmem:[%s12654_s27 + $0x280] sm:$0xff] %v835_v16  ;;  %v841_v19 = vld [vmem:[%s12649_s26 + $0x498] sm:$0xff]  ;;  %838 = vst [vmem:[%s12654_s27 + $0x288] sm:$0xff] %v837_v17  ;;  %v843_v20 = vld [vmem:[%s12649_s26 + $0x4a0] sm:$0xff] }
  0x3e   : > { %840 = vst [vmem:[%s12654_s27 + $0x290] sm:$0xff] %v839_v18  ;;  %842 = vst [vmem:[%s12654_s27 + $0x298] sm:$0xff] %v841_v19  ;;  %v845_v21 = vld [vmem:[%s12649_s26 + $0x4a8] sm:$0xff]  ;;  %v847_v22 = vld [vmem:[%s12649_s26 + $0x4b0] sm:$0xff] }
  0x3f   : > { %844 = vst [vmem:[%s12654_s27 + $0x2a0] sm:$0xff] %v843_v20  ;;  %846 = vst [vmem:[%s12654_s27 + $0x2a8] sm:$0xff] %v845_v21  ;;  %v849_v23 = vld [vmem:[%s12649_s26 + $0x4b8] sm:$0xff]  ;;  %v851_v24 = vld [vmem:[%s12649_s26 + $0x4c0] sm:$0xff] }
  0x40   : > { %848 = vst [vmem:[%s12654_s27 + $0x2b0] sm:$0xff] %v847_v22  ;;  %v853_v25 = vld [vmem:[%s12649_s26 + $0x4c8] sm:$0xff]  ;;  %850 = vst [vmem:[%s12654_s27 + $0x2b8] sm:$0xff] %v849_v23  ;;  %v855_v26 = vld [vmem:[%s12649_s26 + $0x4d0] sm:$0xff] }
  0x41   : > { %852 = vst [vmem:[%s12654_s27 + $0x2c0] sm:$0xff] %v851_v24  ;;  %854 = vst [vmem:[%s12654_s27 + $0x2c8] sm:$0xff] %v853_v25  ;;  %v857_v27 = vld [vmem:[%s12649_s26 + $0x4d8] sm:$0xff]  ;;  %v859_v28 = vld [vmem:[%s12649_s26 + $0x4e0] sm:$0xff] }
  0x42   : > { %856 = vst [vmem:[%s12654_s27 + $0x2d0] sm:$0xff] %v855_v26  ;;  %858 = vst [vmem:[%s12654_s27 + $0x2d8] sm:$0xff] %v857_v27  ;;  %v861_v29 = vld [vmem:[%s12649_s26 + $0x4e8] sm:$0xff]  ;;  %v863_v30 = vld [vmem:[%s12649_s26 + $0x4f0] sm:$0xff] }
  0x43   : > { %860 = vst [vmem:[%s12654_s27 + $0x2e0] sm:$0xff] %v859_v28  ;;  %v865_v31 = vld [vmem:[%s12649_s26 + $0x4f8] sm:$0xff]  ;;  %862 = vst [vmem:[%s12654_s27 + $0x2e8] sm:$0xff] %v861_v29  ;;  %v867_v32 = vld [vmem:[%s12649_s26 + $0x600] sm:$0xff] }
  0x44   : > { %864 = vst [vmem:[%s12654_s27 + $0x2f0] sm:$0xff] %v863_v30  ;;  %866 = vst [vmem:[%s12654_s27 + $0x2f8] sm:$0xff] %v865_v31  ;;  %v869_v33 = vld [vmem:[%s12649_s26 + $0x608] sm:$0xff]  ;;  %v871_v34 = vld [vmem:[%s12649_s26 + $0x610] sm:$0xff] }
  0x45   : > { %868 = vst [vmem:[%s12654_s27 + $0x300] sm:$0xff] %v867_v32  ;;  %870 = vst [vmem:[%s12654_s27 + $0x308] sm:$0xff] %v869_v33  ;;  %v873_v35 = vld [vmem:[%s12649_s26 + $0x618] sm:$0xff]  ;;  %v875_v36 = vld [vmem:[%s12649_s26 + $0x620] sm:$0xff] }
  0x46   : > { %872 = vst [vmem:[%s12654_s27 + $0x310] sm:$0xff] %v871_v34  ;;  %v877_v37 = vld [vmem:[%s12649_s26 + $0x628] sm:$0xff]  ;;  %874 = vst [vmem:[%s12654_s27 + $0x318] sm:$0xff] %v873_v35  ;;  %v879_v38 = vld [vmem:[%s12649_s26 + $0x630] sm:$0xff] }
  0x47   : > { %876 = vst [vmem:[%s12654_s27 + $0x320] sm:$0xff] %v875_v36  ;;  %878 = vst [vmem:[%s12654_s27 + $0x328] sm:$0xff] %v877_v37  ;;  %v881_v39 = vld [vmem:[%s12649_s26 + $0x638] sm:$0xff]  ;;  %v883_v40 = vld [vmem:[%s12649_s26 + $0x640] sm:$0xff] }
  0x48   : > { %880 = vst [vmem:[%s12654_s27 + $0x330] sm:$0xff] %v879_v38  ;;  %882 = vst [vmem:[%s12654_s27 + $0x338] sm:$0xff] %v881_v39  ;;  %v885_v41 = vld [vmem:[%s12649_s26 + $0x648] sm:$0xff]  ;;  %v887_v42 = vld [vmem:[%s12649_s26 + $0x650] sm:$0xff] }
  0x49   : > { %884 = vst [vmem:[%s12654_s27 + $0x340] sm:$0xff] %v883_v40  ;;  %v889_v43 = vld [vmem:[%s12649_s26 + $0x658] sm:$0xff]  ;;  %886 = vst [vmem:[%s12654_s27 + $0x348] sm:$0xff] %v885_v41  ;;  %v891_v44 = vld [vmem:[%s12649_s26 + $0x660] sm:$0xff] }
  0x4a   : > { %888 = vst [vmem:[%s12654_s27 + $0x350] sm:$0xff] %v887_v42  ;;  %890 = vst [vmem:[%s12654_s27 + $0x358] sm:$0xff] %v889_v43  ;;  %v893_v45 = vld [vmem:[%s12649_s26 + $0x668] sm:$0xff]  ;;  %v895_v46 = vld [vmem:[%s12649_s26 + $0x670] sm:$0xff] }
  0x4b   : > { %892 = vst [vmem:[%s12654_s27 + $0x360] sm:$0xff] %v891_v44  ;;  %894 = vst [vmem:[%s12654_s27 + $0x368] sm:$0xff] %v893_v45  ;;  %v897_v47 = vld [vmem:[%s12649_s26 + $0x678] sm:$0xff]  ;;  %v899_v48 = vld [vmem:[%s12649_s26 + $0x680] sm:$0xff] }
  0x4c   : > { %896 = vst [vmem:[%s12654_s27 + $0x370] sm:$0xff] %v895_v46  ;;  %v901_v49 = vld [vmem:[%s12649_s26 + $0x688] sm:$0xff]  ;;  %898 = vst [vmem:[%s12654_s27 + $0x378] sm:$0xff] %v897_v47  ;;  %v903_v50 = vld [vmem:[%s12649_s26 + $0x690] sm:$0xff] }
  0x4d   : > { %900 = vst [vmem:[%s12654_s27 + $0x380] sm:$0xff] %v899_v48  ;;  %902 = vst [vmem:[%s12654_s27 + $0x388] sm:$0xff] %v901_v49  ;;  %v905_v51 = vld [vmem:[%s12649_s26 + $0x698] sm:$0xff]  ;;  %v907_v52 = vld [vmem:[%s12649_s26 + $0x6a0] sm:$0xff] }
  0x4e   : > { %904 = vst [vmem:[%s12654_s27 + $0x390] sm:$0xff] %v903_v50  ;;  %906 = vst [vmem:[%s12654_s27 + $0x398] sm:$0xff] %v905_v51  ;;  %v909_v53 = vld [vmem:[%s12649_s26 + $0x6a8] sm:$0xff]  ;;  %v911_v54 = vld [vmem:[%s12649_s26 + $0x6b0] sm:$0xff] }
  0x4f   : > { %908 = vst [vmem:[%s12654_s27 + $0x3a0] sm:$0xff] %v907_v52  ;;  %v913_v55 = vld [vmem:[%s12649_s26 + $0x6b8] sm:$0xff]  ;;  %910 = vst [vmem:[%s12654_s27 + $0x3a8] sm:$0xff] %v909_v53  ;;  %v915_v56 = vld [vmem:[%s12649_s26 + $0x6c0] sm:$0xff] }
  0x50   : > { %912 = vst [vmem:[%s12654_s27 + $0x3b0] sm:$0xff] %v911_v54  ;;  %914 = vst [vmem:[%s12654_s27 + $0x3b8] sm:$0xff] %v913_v55  ;;  %v917_v57 = vld [vmem:[%s12649_s26 + $0x6c8] sm:$0xff]  ;;  %v919_v58 = vld [vmem:[%s12649_s26 + $0x6d0] sm:$0xff] }
  0x51   : > { %916 = vst [vmem:[%s12654_s27 + $0x3c0] sm:$0xff] %v915_v56  ;;  %918 = vst [vmem:[%s12654_s27 + $0x3c8] sm:$0xff] %v917_v57  ;;  %v921_v59 = vld [vmem:[%s12649_s26 + $0x6d8] sm:$0xff]  ;;  %v923_v60 = vld [vmem:[%s12649_s26 + $0x6e0] sm:$0xff] }
  0x52   : > { %920 = vst [vmem:[%s12654_s27 + $0x3d0] sm:$0xff] %v919_v58  ;;  %v925_v61 = vld [vmem:[%s12649_s26 + $0x6e8] sm:$0xff]  ;;  %922 = vst [vmem:[%s12654_s27 + $0x3d8] sm:$0xff] %v921_v59  ;;  %v927_v62 = vld [vmem:[%s12649_s26 + $0x6f0] sm:$0xff] }
  0x53   : > { %924 = vst [vmem:[%s12654_s27 + $0x3e0] sm:$0xff] %v923_v60  ;;  %926 = vst [vmem:[%s12654_s27 + $0x3e8] sm:$0xff] %v925_v61  ;;  %v929_v63 = vld [vmem:[%s12649_s26 + $0x6f8] sm:$0xff]  ;;  %v931_v0 = vld [vmem:[%s12649_s26 + $0x800] sm:$0xff] }
  0x54   : > { %928 = vst [vmem:[%s12654_s27 + $0x3f0] sm:$0xff] %v927_v62  ;;  %930 = vst [vmem:[%s12654_s27 + $0x3f8] sm:$0xff] %v929_v63  ;;  %v933_v1 = vld [vmem:[%s12649_s26 + $0x808] sm:$0xff]  ;;  %v935_v2 = vld [vmem:[%s12649_s26 + $0x810] sm:$0xff] }
  0x55   : > { %932 = vst [vmem:[%s12654_s27 + $0x400] sm:$0xff] %v931_v0  ;;  %v937_v3 = vld [vmem:[%s12649_s26 + $0x818] sm:$0xff]  ;;  %934 = vst [vmem:[%s12654_s27 + $0x408] sm:$0xff] %v933_v1  ;;  %v939_v4 = vld [vmem:[%s12649_s26 + $0x820] sm:$0xff] }
  0x56   : > { %936 = vst [vmem:[%s12654_s27 + $0x410] sm:$0xff] %v935_v2  ;;  %938 = vst [vmem:[%s12654_s27 + $0x418] sm:$0xff] %v937_v3  ;;  %v941_v5 = vld [vmem:[%s12649_s26 + $0x828] sm:$0xff]  ;;  %v943_v6 = vld [vmem:[%s12649_s26 + $0x830] sm:$0xff] }
  0x57   : > { %940 = vst [vmem:[%s12654_s27 + $0x420] sm:$0xff] %v939_v4  ;;  %942 = vst [vmem:[%s12654_s27 + $0x428] sm:$0xff] %v941_v5  ;;  %v945_v7 = vld [vmem:[%s12649_s26 + $0x838] sm:$0xff]  ;;  %v947_v8 = vld [vmem:[%s12649_s26 + $0x840] sm:$0xff] }
  0x58   : > { %944 = vst [vmem:[%s12654_s27 + $0x430] sm:$0xff] %v943_v6  ;;  %v949_v9 = vld [vmem:[%s12649_s26 + $0x848] sm:$0xff]  ;;  %946 = vst [vmem:[%s12654_s27 + $0x438] sm:$0xff] %v945_v7  ;;  %v951_v10 = vld [vmem:[%s12649_s26 + $0x850] sm:$0xff] }
  0x59   : > { %948 = vst [vmem:[%s12654_s27 + $0x440] sm:$0xff] %v947_v8  ;;  %950 = vst [vmem:[%s12654_s27 + $0x448] sm:$0xff] %v949_v9  ;;  %v953_v11 = vld [vmem:[%s12649_s26 + $0x858] sm:$0xff]  ;;  %v955_v12 = vld [vmem:[%s12649_s26 + $0x860] sm:$0xff] }
  0x5a   : > { %952 = vst [vmem:[%s12654_s27 + $0x450] sm:$0xff] %v951_v10  ;;  %954 = vst [vmem:[%s12654_s27 + $0x458] sm:$0xff] %v953_v11  ;;  %v957_v13 = vld [vmem:[%s12649_s26 + $0x868] sm:$0xff]  ;;  %v959_v14 = vld [vmem:[%s12649_s26 + $0x870] sm:$0xff] }
  0x5b   : > { %956 = vst [vmem:[%s12654_s27 + $0x460] sm:$0xff] %v955_v12  ;;  %v961_v15 = vld [vmem:[%s12649_s26 + $0x878] sm:$0xff]  ;;  %958 = vst [vmem:[%s12654_s27 + $0x468] sm:$0xff] %v957_v13  ;;  %v963_v16 = vld [vmem:[%s12649_s26 + $0x880] sm:$0xff] }
  0x5c   : > { %960 = vst [vmem:[%s12654_s27 + $0x470] sm:$0xff] %v959_v14  ;;  %962 = vst [vmem:[%s12654_s27 + $0x478] sm:$0xff] %v961_v15  ;;  %v965_v17 = vld [vmem:[%s12649_s26 + $0x888] sm:$0xff]  ;;  %v967_v18 = vld [vmem:[%s12649_s26 + $0x890] sm:$0xff] }
  0x5d   : > { %964 = vst [vmem:[%s12654_s27 + $0x480] sm:$0xff] %v963_v16  ;;  %966 = vst [vmem:[%s12654_s27 + $0x488] sm:$0xff] %v965_v17  ;;  %v969_v19 = vld [vmem:[%s12649_s26 + $0x898] sm:$0xff]  ;;  %v971_v20 = vld [vmem:[%s12649_s26 + $0x8a0] sm:$0xff] }
  0x5e   : > { %968 = vst [vmem:[%s12654_s27 + $0x490] sm:$0xff] %v967_v18  ;;  %v973_v21 = vld [vmem:[%s12649_s26 + $0x8a8] sm:$0xff]  ;;  %970 = vst [vmem:[%s12654_s27 + $0x498] sm:$0xff] %v969_v19  ;;  %v975_v22 = vld [vmem:[%s12649_s26 + $0x8b0] sm:$0xff] }
  0x5f   : > { %972 = vst [vmem:[%s12654_s27 + $0x4a0] sm:$0xff] %v971_v20  ;;  %974 = vst [vmem:[%s12654_s27 + $0x4a8] sm:$0xff] %v973_v21  ;;  %v977_v23 = vld [vmem:[%s12649_s26 + $0x8b8] sm:$0xff]  ;;  %v979_v24 = vld [vmem:[%s12649_s26 + $0x8c0] sm:$0xff] }
  0x60   : > { %976 = vst [vmem:[%s12654_s27 + $0x4b0] sm:$0xff] %v975_v22  ;;  %978 = vst [vmem:[%s12654_s27 + $0x4b8] sm:$0xff] %v977_v23  ;;  %v981_v25 = vld [vmem:[%s12649_s26 + $0x8c8] sm:$0xff]  ;;  %v983_v26 = vld [vmem:[%s12649_s26 + $0x8d0] sm:$0xff] }
  0x61   : > { %980 = vst [vmem:[%s12654_s27 + $0x4c0] sm:$0xff] %v979_v24  ;;  %v985_v27 = vld [vmem:[%s12649_s26 + $0x8d8] sm:$0xff]  ;;  %982 = vst [vmem:[%s12654_s27 + $0x4c8] sm:$0xff] %v981_v25  ;;  %v987_v28 = vld [vmem:[%s12649_s26 + $0x8e0] sm:$0xff] }
  0x62   : > { %984 = vst [vmem:[%s12654_s27 + $0x4d0] sm:$0xff] %v983_v26  ;;  %986 = vst [vmem:[%s12654_s27 + $0x4d8] sm:$0xff] %v985_v27  ;;  %v989_v29 = vld [vmem:[%s12649_s26 + $0x8e8] sm:$0xff]  ;;  %v991_v30 = vld [vmem:[%s12649_s26 + $0x8f0] sm:$0xff] }
  0x63   : > { %988 = vst [vmem:[%s12654_s27 + $0x4e0] sm:$0xff] %v987_v28  ;;  %990 = vst [vmem:[%s12654_s27 + $0x4e8] sm:$0xff] %v989_v29  ;;  %v993_v31 = vld [vmem:[%s12649_s26 + $0x8f8] sm:$0xff]  ;;  %v995_v32 = vld [vmem:[%s12649_s26 + $0xa00] sm:$0xff] }
  0x64   : > { %992 = vst [vmem:[%s12654_s27 + $0x4f0] sm:$0xff] %v991_v30  ;;  %v997_v33 = vld [vmem:[%s12649_s26 + $0xa08] sm:$0xff]  ;;  %994 = vst [vmem:[%s12654_s27 + $0x4f8] sm:$0xff] %v993_v31  ;;  %v999_v34 = vld [vmem:[%s12649_s26 + $0xa10] sm:$0xff] }
  0x65   : > { %996 = vst [vmem:[%s12654_s27 + $0x500] sm:$0xff] %v995_v32  ;;  %998 = vst [vmem:[%s12654_s27 + $0x508] sm:$0xff] %v997_v33  ;;  %v1001_v35 = vld [vmem:[%s12649_s26 + $0xa18] sm:$0xff]  ;;  %v1003_v36 = vld [vmem:[%s12649_s26 + $0xa20] sm:$0xff] }
  0x66   : > { %1000 = vst [vmem:[%s12654_s27 + $0x510] sm:$0xff] %v999_v34  ;;  %1002 = vst [vmem:[%s12654_s27 + $0x518] sm:$0xff] %v1001_v35  ;;  %v1005_v37 = vld [vmem:[%s12649_s26 + $0xa28] sm:$0xff]  ;;  %v1007_v38 = vld [vmem:[%s12649_s26 + $0xa30] sm:$0xff] }
  0x67   : > { %1004 = vst [vmem:[%s12654_s27 + $0x520] sm:$0xff] %v1003_v36  ;;  %v1009_v39 = vld [vmem:[%s12649_s26 + $0xa38] sm:$0xff]  ;;  %1006 = vst [vmem:[%s12654_s27 + $0x528] sm:$0xff] %v1005_v37  ;;  %v1011_v40 = vld [vmem:[%s12649_s26 + $0xa40] sm:$0xff] }
  0x68   : > { %1008 = vst [vmem:[%s12654_s27 + $0x530] sm:$0xff] %v1007_v38  ;;  %1010 = vst [vmem:[%s12654_s27 + $0x538] sm:$0xff] %v1009_v39  ;;  %v1013_v41 = vld [vmem:[%s12649_s26 + $0xa48] sm:$0xff]  ;;  %v1015_v42 = vld [vmem:[%s12649_s26 + $0xa50] sm:$0xff] }
  0x69   : > { %1012 = vst [vmem:[%s12654_s27 + $0x540] sm:$0xff] %v1011_v40  ;;  %1014 = vst [vmem:[%s12654_s27 + $0x548] sm:$0xff] %v1013_v41  ;;  %v1017_v43 = vld [vmem:[%s12649_s26 + $0xa58] sm:$0xff]  ;;  %v1019_v44 = vld [vmem:[%s12649_s26 + $0xa60] sm:$0xff] }
  0x6a   : > { %1016 = vst [vmem:[%s12654_s27 + $0x550] sm:$0xff] %v1015_v42  ;;  %v1021_v45 = vld [vmem:[%s12649_s26 + $0xa68] sm:$0xff]  ;;  %1018 = vst [vmem:[%s12654_s27 + $0x558] sm:$0xff] %v1017_v43  ;;  %v1023_v46 = vld [vmem:[%s12649_s26 + $0xa70] sm:$0xff] }
  0x6b   : > { %1020 = vst [vmem:[%s12654_s27 + $0x560] sm:$0xff] %v1019_v44  ;;  %1022 = vst [vmem:[%s12654_s27 + $0x568] sm:$0xff] %v1021_v45  ;;  %v1025_v47 = vld [vmem:[%s12649_s26 + $0xa78] sm:$0xff]  ;;  %v1027_v48 = vld [vmem:[%s12649_s26 + $0xa80] sm:$0xff] }
  0x6c   : > { %1024 = vst [vmem:[%s12654_s27 + $0x570] sm:$0xff] %v1023_v46  ;;  %1026 = vst [vmem:[%s12654_s27 + $0x578] sm:$0xff] %v1025_v47  ;;  %v1029_v49 = vld [vmem:[%s12649_s26 + $0xa88] sm:$0xff]  ;;  %v1031_v50 = vld [vmem:[%s12649_s26 + $0xa90] sm:$0xff] }
  0x6d   : > { %1028 = vst [vmem:[%s12654_s27 + $0x580] sm:$0xff] %v1027_v48  ;;  %v1033_v51 = vld [vmem:[%s12649_s26 + $0xa98] sm:$0xff]  ;;  %1030 = vst [vmem:[%s12654_s27 + $0x588] sm:$0xff] %v1029_v49  ;;  %v1035_v52 = vld [vmem:[%s12649_s26 + $0xaa0] sm:$0xff] }
  0x6e   : > { %1032 = vst [vmem:[%s12654_s27 + $0x590] sm:$0xff] %v1031_v50  ;;  %1034 = vst [vmem:[%s12654_s27 + $0x598] sm:$0xff] %v1033_v51  ;;  %v1037_v53 = vld [vmem:[%s12649_s26 + $0xaa8] sm:$0xff]  ;;  %v1039_v54 = vld [vmem:[%s12649_s26 + $0xab0] sm:$0xff] }
  0x6f   : > { %1036 = vst [vmem:[%s12654_s27 + $0x5a0] sm:$0xff] %v1035_v52  ;;  %1038 = vst [vmem:[%s12654_s27 + $0x5a8] sm:$0xff] %v1037_v53  ;;  %v1041_v55 = vld [vmem:[%s12649_s26 + $0xab8] sm:$0xff]  ;;  %v1043_v56 = vld [vmem:[%s12649_s26 + $0xac0] sm:$0xff] }
  0x70   : > { %1040 = vst [vmem:[%s12654_s27 + $0x5b0] sm:$0xff] %v1039_v54  ;;  %v1045_v57 = vld [vmem:[%s12649_s26 + $0xac8] sm:$0xff]  ;;  %1042 = vst [vmem:[%s12654_s27 + $0x5b8] sm:$0xff] %v1041_v55  ;;  %v1047_v58 = vld [vmem:[%s12649_s26 + $0xad0] sm:$0xff] }
  0x71   : > { %1044 = vst [vmem:[%s12654_s27 + $0x5c0] sm:$0xff] %v1043_v56  ;;  %1046 = vst [vmem:[%s12654_s27 + $0x5c8] sm:$0xff] %v1045_v57  ;;  %v1049_v59 = vld [vmem:[%s12649_s26 + $0xad8] sm:$0xff]  ;;  %v1051_v60 = vld [vmem:[%s12649_s26 + $0xae0] sm:$0xff] }
  0x72   : > { %1048 = vst [vmem:[%s12654_s27 + $0x5d0] sm:$0xff] %v1047_v58  ;;  %1050 = vst [vmem:[%s12654_s27 + $0x5d8] sm:$0xff] %v1049_v59  ;;  %v1053_v61 = vld [vmem:[%s12649_s26 + $0xae8] sm:$0xff]  ;;  %v1055_v62 = vld [vmem:[%s12649_s26 + $0xaf0] sm:$0xff] }
  0x73   : > { %1052 = vst [vmem:[%s12654_s27 + $0x5e0] sm:$0xff] %v1051_v60  ;;  %v1057_v63 = vld [vmem:[%s12649_s26 + $0xaf8] sm:$0xff]  ;;  %1054 = vst [vmem:[%s12654_s27 + $0x5e8] sm:$0xff] %v1053_v61  ;;  %v1059_v0 = vld [vmem:[%s12649_s26 + $0xc00] sm:$0xff] }
  0x74   : > { %1056 = vst [vmem:[%s12654_s27 + $0x5f0] sm:$0xff] %v1055_v62  ;;  %1058 = vst [vmem:[%s12654_s27 + $0x5f8] sm:$0xff] %v1057_v63  ;;  %v1061_v1 = vld [vmem:[%s12649_s26 + $0xc08] sm:$0xff]  ;;  %v1063_v2 = vld [vmem:[%s12649_s26 + $0xc10] sm:$0xff] }
  0x75   : > { %1060 = vst [vmem:[%s12654_s27 + $0x600] sm:$0xff] %v1059_v0  ;;  %1062 = vst [vmem:[%s12654_s27 + $0x608] sm:$0xff] %v1061_v1  ;;  %v1065_v3 = vld [vmem:[%s12649_s26 + $0xc18] sm:$0xff]  ;;  %v1067_v4 = vld [vmem:[%s12649_s26 + $0xc20] sm:$0xff] }
  0x76   : > { %1064 = vst [vmem:[%s12654_s27 + $0x610] sm:$0xff] %v1063_v2  ;;  %v1069_v5 = vld [vmem:[%s12649_s26 + $0xc28] sm:$0xff]  ;;  %1066 = vst [vmem:[%s12654_s27 + $0x618] sm:$0xff] %v1065_v3  ;;  %v1071_v6 = vld [vmem:[%s12649_s26 + $0xc30] sm:$0xff] }
  0x77   : > { %1068 = vst [vmem:[%s12654_s27 + $0x620] sm:$0xff] %v1067_v4  ;;  %1070 = vst [vmem:[%s12654_s27 + $0x628] sm:$0xff] %v1069_v5  ;;  %v1073_v7 = vld [vmem:[%s12649_s26 + $0xc38] sm:$0xff]  ;;  %v1075_v8 = vld [vmem:[%s12649_s26 + $0xc40] sm:$0xff] }
  0x78   : > { %1072 = vst [vmem:[%s12654_s27 + $0x630] sm:$0xff] %v1071_v6  ;;  %1074 = vst [vmem:[%s12654_s27 + $0x638] sm:$0xff] %v1073_v7  ;;  %v1077_v9 = vld [vmem:[%s12649_s26 + $0xc48] sm:$0xff]  ;;  %v1079_v10 = vld [vmem:[%s12649_s26 + $0xc50] sm:$0xff] }
  0x79   : > { %1076 = vst [vmem:[%s12654_s27 + $0x640] sm:$0xff] %v1075_v8  ;;  %v1081_v11 = vld [vmem:[%s12649_s26 + $0xc58] sm:$0xff]  ;;  %1078 = vst [vmem:[%s12654_s27 + $0x648] sm:$0xff] %v1077_v9  ;;  %v1083_v12 = vld [vmem:[%s12649_s26 + $0xc60] sm:$0xff] }
  0x7a   : > { %1080 = vst [vmem:[%s12654_s27 + $0x650] sm:$0xff] %v1079_v10  ;;  %1082 = vst [vmem:[%s12654_s27 + $0x658] sm:$0xff] %v1081_v11  ;;  %v1085_v13 = vld [vmem:[%s12649_s26 + $0xc68] sm:$0xff]  ;;  %v1087_v14 = vld [vmem:[%s12649_s26 + $0xc70] sm:$0xff] }
  0x7b   : > { %1084 = vst [vmem:[%s12654_s27 + $0x660] sm:$0xff] %v1083_v12  ;;  %1086 = vst [vmem:[%s12654_s27 + $0x668] sm:$0xff] %v1085_v13  ;;  %v1089_v15 = vld [vmem:[%s12649_s26 + $0xc78] sm:$0xff]  ;;  %v1091_v16 = vld [vmem:[%s12649_s26 + $0xc80] sm:$0xff] }
  0x7c   : > { %1088 = vst [vmem:[%s12654_s27 + $0x670] sm:$0xff] %v1087_v14  ;;  %v1093_v17 = vld [vmem:[%s12649_s26 + $0xc88] sm:$0xff]  ;;  %1090 = vst [vmem:[%s12654_s27 + $0x678] sm:$0xff] %v1089_v15  ;;  %v1095_v18 = vld [vmem:[%s12649_s26 + $0xc90] sm:$0xff] }
  0x7d   : > { %1092 = vst [vmem:[%s12654_s27 + $0x680] sm:$0xff] %v1091_v16  ;;  %1094 = vst [vmem:[%s12654_s27 + $0x688] sm:$0xff] %v1093_v17  ;;  %v1097_v19 = vld [vmem:[%s12649_s26 + $0xc98] sm:$0xff]  ;;  %v1099_v20 = vld [vmem:[%s12649_s26 + $0xca0] sm:$0xff] }
  0x7e   : > { %1096 = vst [vmem:[%s12654_s27 + $0x690] sm:$0xff] %v1095_v18  ;;  %1098 = vst [vmem:[%s12654_s27 + $0x698] sm:$0xff] %v1097_v19  ;;  %v1101_v21 = vld [vmem:[%s12649_s26 + $0xca8] sm:$0xff]  ;;  %v1103_v22 = vld [vmem:[%s12649_s26 + $0xcb0] sm:$0xff] }
  0x7f   : > { %1100 = vst [vmem:[%s12654_s27 + $0x6a0] sm:$0xff] %v1099_v20  ;;  %v1105_v23 = vld [vmem:[%s12649_s26 + $0xcb8] sm:$0xff]  ;;  %1102 = vst [vmem:[%s12654_s27 + $0x6a8] sm:$0xff] %v1101_v21  ;;  %v1107_v24 = vld [vmem:[%s12649_s26 + $0xcc0] sm:$0xff] }
  0x80   : > { %1104 = vst [vmem:[%s12654_s27 + $0x6b0] sm:$0xff] %v1103_v22  ;;  %1106 = vst [vmem:[%s12654_s27 + $0x6b8] sm:$0xff] %v1105_v23  ;;  %v1109_v25 = vld [vmem:[%s12649_s26 + $0xcc8] sm:$0xff]  ;;  %v1111_v26 = vld [vmem:[%s12649_s26 + $0xcd0] sm:$0xff] }
  0x81   : > { %1108 = vst [vmem:[%s12654_s27 + $0x6c0] sm:$0xff] %v1107_v24  ;;  %1110 = vst [vmem:[%s12654_s27 + $0x6c8] sm:$0xff] %v1109_v25  ;;  %v1113_v27 = vld [vmem:[%s12649_s26 + $0xcd8] sm:$0xff]  ;;  %v1115_v28 = vld [vmem:[%s12649_s26 + $0xce0] sm:$0xff] }
  0x82   : > { %1112 = vst [vmem:[%s12654_s27 + $0x6d0] sm:$0xff] %v1111_v26  ;;  %v1117_v29 = vld [vmem:[%s12649_s26 + $0xce8] sm:$0xff]  ;;  %1114 = vst [vmem:[%s12654_s27 + $0x6d8] sm:$0xff] %v1113_v27  ;;  %v1119_v30 = vld [vmem:[%s12649_s26 + $0xcf0] sm:$0xff] }
  0x83   : > { %1116 = vst [vmem:[%s12654_s27 + $0x6e0] sm:$0xff] %v1115_v28  ;;  %1118 = vst [vmem:[%s12654_s27 + $0x6e8] sm:$0xff] %v1117_v29  ;;  %v1121_v31 = vld [vmem:[%s12649_s26 + $0xcf8] sm:$0xff]  ;;  %v1123_v32 = vld [vmem:[%s12649_s26 + $0xe00] sm:$0xff] }
  0x84   : > { %1120 = vst [vmem:[%s12654_s27 + $0x6f0] sm:$0xff] %v1119_v30  ;;  %1122 = vst [vmem:[%s12654_s27 + $0x6f8] sm:$0xff] %v1121_v31  ;;  %v1125_v33 = vld [vmem:[%s12649_s26 + $0xe08] sm:$0xff]  ;;  %v1127_v34 = vld [vmem:[%s12649_s26 + $0xe10] sm:$0xff] }
  0x85   : > { %1124 = vst [vmem:[%s12654_s27 + $0x700] sm:$0xff] %v1123_v32  ;;  %v1129_v35 = vld [vmem:[%s12649_s26 + $0xe18] sm:$0xff]  ;;  %1126 = vst [vmem:[%s12654_s27 + $0x708] sm:$0xff] %v1125_v33  ;;  %v1131_v36 = vld [vmem:[%s12649_s26 + $0xe20] sm:$0xff] }
  0x86   : > { %1128 = vst [vmem:[%s12654_s27 + $0x710] sm:$0xff] %v1127_v34  ;;  %1130 = vst [vmem:[%s12654_s27 + $0x718] sm:$0xff] %v1129_v35  ;;  %v1133_v37 = vld [vmem:[%s12649_s26 + $0xe28] sm:$0xff]  ;;  %v1135_v38 = vld [vmem:[%s12649_s26 + $0xe30] sm:$0xff] }
  0x87   : > { %1132 = vst [vmem:[%s12654_s27 + $0x720] sm:$0xff] %v1131_v36  ;;  %1134 = vst [vmem:[%s12654_s27 + $0x728] sm:$0xff] %v1133_v37  ;;  %v1137_v39 = vld [vmem:[%s12649_s26 + $0xe38] sm:$0xff]  ;;  %v1139_v40 = vld [vmem:[%s12649_s26 + $0xe40] sm:$0xff] }
  0x88   : > { %1136 = vst [vmem:[%s12654_s27 + $0x730] sm:$0xff] %v1135_v38  ;;  %v1141_v41 = vld [vmem:[%s12649_s26 + $0xe48] sm:$0xff]  ;;  %1138 = vst [vmem:[%s12654_s27 + $0x738] sm:$0xff] %v1137_v39  ;;  %v1143_v42 = vld [vmem:[%s12649_s26 + $0xe50] sm:$0xff] }
  0x89   : > { %1140 = vst [vmem:[%s12654_s27 + $0x740] sm:$0xff] %v1139_v40  ;;  %1142 = vst [vmem:[%s12654_s27 + $0x748] sm:$0xff] %v1141_v41  ;;  %v1145_v43 = vld [vmem:[%s12649_s26 + $0xe58] sm:$0xff]  ;;  %v1147_v44 = vld [vmem:[%s12649_s26 + $0xe60] sm:$0xff] }
  0x8a   : > { %1144 = vst [vmem:[%s12654_s27 + $0x750] sm:$0xff] %v1143_v42  ;;  %1146 = vst [vmem:[%s12654_s27 + $0x758] sm:$0xff] %v1145_v43  ;;  %v1149_v45 = vld [vmem:[%s12649_s26 + $0xe68] sm:$0xff]  ;;  %v1151_v46 = vld [vmem:[%s12649_s26 + $0xe70] sm:$0xff] }
  0x8b   : > { %1148 = vst [vmem:[%s12654_s27 + $0x760] sm:$0xff] %v1147_v44  ;;  %v1153_v47 = vld [vmem:[%s12649_s26 + $0xe78] sm:$0xff]  ;;  %1150 = vst [vmem:[%s12654_s27 + $0x768] sm:$0xff] %v1149_v45  ;;  %v1155_v48 = vld [vmem:[%s12649_s26 + $0xe80] sm:$0xff] }
  0x8c   : > { %1152 = vst [vmem:[%s12654_s27 + $0x770] sm:$0xff] %v1151_v46  ;;  %1154 = vst [vmem:[%s12654_s27 + $0x778] sm:$0xff] %v1153_v47  ;;  %v1157_v49 = vld [vmem:[%s12649_s26 + $0xe88] sm:$0xff]  ;;  %v1159_v50 = vld [vmem:[%s12649_s26 + $0xe90] sm:$0xff] }
  0x8d   : > { %1156 = vst [vmem:[%s12654_s27 + $0x780] sm:$0xff] %v1155_v48  ;;  %1158 = vst [vmem:[%s12654_s27 + $0x788] sm:$0xff] %v1157_v49  ;;  %v1161_v51 = vld [vmem:[%s12649_s26 + $0xe98] sm:$0xff]  ;;  %v1163_v52 = vld [vmem:[%s12649_s26 + $0xea0] sm:$0xff] }
  0x8e   : > { %1160 = vst [vmem:[%s12654_s27 + $0x790] sm:$0xff] %v1159_v50  ;;  %v1165_v53 = vld [vmem:[%s12649_s26 + $0xea8] sm:$0xff]  ;;  %1162 = vst [vmem:[%s12654_s27 + $0x798] sm:$0xff] %v1161_v51  ;;  %v1167_v54 = vld [vmem:[%s12649_s26 + $0xeb0] sm:$0xff] }
  0x8f   : > { %1164 = vst [vmem:[%s12654_s27 + $0x7a0] sm:$0xff] %v1163_v52  ;;  %1166 = vst [vmem:[%s12654_s27 + $0x7a8] sm:$0xff] %v1165_v53  ;;  %v1169_v55 = vld [vmem:[%s12649_s26 + $0xeb8] sm:$0xff]  ;;  %v1171_v56 = vld [vmem:[%s12649_s26 + $0xec0] sm:$0xff] }
  0x90   : > { %1168 = vst [vmem:[%s12654_s27 + $0x7b0] sm:$0xff] %v1167_v54  ;;  %1170 = vst [vmem:[%s12654_s27 + $0x7b8] sm:$0xff] %v1169_v55  ;;  %v1173_v57 = vld [vmem:[%s12649_s26 + $0xec8] sm:$0xff]  ;;  %v1175_v58 = vld [vmem:[%s12649_s26 + $0xed0] sm:$0xff] }
  0x91   : > { %1172 = vst [vmem:[%s12654_s27 + $0x7c0] sm:$0xff] %v1171_v56  ;;  %v1177_v59 = vld [vmem:[%s12649_s26 + $0xed8] sm:$0xff]  ;;  %1174 = vst [vmem:[%s12654_s27 + $0x7c8] sm:$0xff] %v1173_v57  ;;  %v1179_v60 = vld [vmem:[%s12649_s26 + $0xee0] sm:$0xff] }
  0x92   : > { %1176 = vst [vmem:[%s12654_s27 + $0x7d0] sm:$0xff] %v1175_v58  ;;  %1178 = vst [vmem:[%s12654_s27 + $0x7d8] sm:$0xff] %v1177_v59  ;;  %v1181_v61 = vld [vmem:[%s12649_s26 + $0xee8] sm:$0xff]  ;;  %v1183_v62 = vld [vmem:[%s12649_s26 + $0xef0] sm:$0xff] }
  0x93   : > { %1180 = vst [vmem:[%s12654_s27 + $0x7e0] sm:$0xff] %v1179_v60  ;;  %1182 = vst [vmem:[%s12654_s27 + $0x7e8] sm:$0xff] %v1181_v61  ;;  %v1185_v63 = vld [vmem:[%s12649_s26 + $0xef8] sm:$0xff] }
  0x94   : > { %1184 = vst [vmem:[%s12654_s27 + $0x7f0] sm:$0xff] %v1183_v62  ;;  %1186 = vst [vmem:[%s12654_s27 + $0x7f8] sm:$0xff] %v1185_v63 }
  0x95 PF: > { %p8332_p7 = scmp.ge.s32.totalorder %s12587_s14, 1  ;;  %p1191_p8 = scmp.lt.s32.totalorder %s12587_s14, 3 }
  0x97   : > { %p1192_p9 = pnand %p8332_p7, %p1191_p8 }
  0x98   : > { %v1222_v0 = vld [vmem:[%s15695_s1] sm:$0xff] (!%p1192_p9)  ;;  %v1223_v1 = vld [vmem:[%s15695_s1 + $0x8] sm:$0xff] (!%p1192_p9)  ;;  %v1224_v2 = vld [vmem:[%s15695_s1 + $0x10] sm:$0xff] (!%p1192_p9)  ;;  %s1198_s7 = sand.u32 (!%p1192_p9), 1, %s12579_s12  }
  0x99   : > { %1195 = sbr.rel (%p1192_p9) target bundleno = 3419 (0xd5b), region = 66  ;;  %v13177_v3 = vpack.c.bf16 (!%p1192_p9), %v1223_v1, %v1222_v0  ;;  %v1225_v4 = vld [vmem:[%s15695_s1 + $0x18] sm:$0xff] (!%p1192_p9)  ;;  %s13182_s10 = sshll.u32 (!%p1192_p9), %s1198_s7, 11  ;;  %v1226_v6 = vld [vmem:[%s15695_s1 + $0x20] sm:$0xff] (!%p1192_p9)  ;;  %v1227_v7 = vld [vmem:[%s15695_s1 + $0x28] sm:$0xff] (!%p1192_p9) }
  0x9a   : > { %v13184_v5 = vpack.c.bf16 (!%p1192_p9), %v1225_v4, %v1224_v2  ;;  %v13198_v8 = vpack.c.bf16 (!%p1192_p9), %v1227_v7, %v1226_v6  ;;  %s13201_s12 = scalar_lea.vmem (!%p1192_p9), [#allocation2], %s13182_s10  ;;  %v1228_v11 = vld [vmem:[%s15695_s1 + $0x30] sm:$0xff] (!%p1192_p9)  ;;  %v1229_v12 = vld [vmem:[%s15695_s1 + $0x38] sm:$0xff] (!%p1192_p9)  ;;  %v1230_v14 = vld [vmem:[%s15695_s1 + $0x40] sm:$0xff] (!%p1192_p9)  ;;  %s13355_s25 = scalar_lea.vmem (!%p1192_p9), [#allocation3], %s13182_s10 }
  0x9b   : > { %11640 = vmatprep.subr.bf16.mxu0 (!%p1192_p9), %v13177_v3  ;;  %11672 = vmatprep.subr.bf16.mxu1 (!%p1192_p9), %v13177_v3  ;;  %v1303_v9 = vld [vmem:[%s13201_s12] sm:$0xff] (!%p1192_p9)  ;;  %v13215_v13 = vpack.c.bf16 (!%p1192_p9), %v1229_v12, %v1228_v11  ;;  %v1231_v15 = vld [vmem:[%s15695_s1 + $0x48] sm:$0xff] (!%p1192_p9)  ;;  %v1232_v17 = vld [vmem:[%s15695_s1 + $0x50] sm:$0xff] (!%p1192_p9) }
  0x9c   : > { %11642 = vmatpush3.bf16.msra.mxu0 (!%p1192_p9), %v13177_v3  ;;  %11674 = vmatpush3.bf16.msra.mxu1 (!%p1192_p9), %v13177_v3  ;;  %v1319_v10 = vld [vmem:[%s13201_s12 + $0x80] sm:$0xff] (!%p1192_p9)  ;;  %v13227_v16 = vpack.c.bf16 (!%p1192_p9), %v1231_v15, %v1230_v14  ;;  %v1233_v18 = vld [vmem:[%s15695_s1 + $0x58] sm:$0xff] (!%p1192_p9)  ;;  %v1235_v21 = vld [vmem:[%s15695_s1 + $0x68] sm:$0xff] (!%p1192_p9) }
  0x9d   : > { %11644 = vmatprep.subr.bf16.mxu0 (!%p1192_p9), %v13184_v5  ;;  %11676 = vmatprep.subr.bf16.mxu1 (!%p1192_p9), %v13184_v5  ;;  %v13239_v19 = vpack.c.bf16 (!%p1192_p9), %v1233_v18, %v1232_v17  ;;  %v1234_v20 = vld [vmem:[%s15695_s1 + $0x60] sm:$0xff] (!%p1192_p9)  ;;  %v1236_v23 = vld [vmem:[%s15695_s1 + $0x70] sm:$0xff] (!%p1192_p9)  ;;  %v1237_v24 = vld [vmem:[%s15695_s1 + $0x78] sm:$0xff] (!%p1192_p9) }
  0x9e   : > { %10103 = vmatprep.mubr.f32.mxu0 (!%p1192_p9), %v1303_v9  ;;  %10159 = vmatprep.mubr.f32.mxu1 (!%p1192_p9), %v1319_v10  ;;  %v13251_v22 = vpack.c.bf16 (!%p1192_p9), %v1235_v21, %v1234_v20  ;;  %v13263_v25 = vpack.c.bf16 (!%p1192_p9), %v1237_v24, %v1236_v23  ;;  %v1304_v26 = vld [vmem:[%s13201_s12 + $0x8] sm:$0xff] (!%p1192_p9)  ;;  %v1305_v28 = vld [vmem:[%s13201_s12 + $0x10] sm:$0xff] (!%p1192_p9)  ;;  %v1306_v30 = vld [vmem:[%s13201_s12 + $0x18] sm:$0xff] (!%p1192_p9) }
  0x9f   : > { %v1320_v27 = vld [vmem:[%s13201_s12 + $0x88] sm:$0xff] (!%p1192_p9)  ;;  %v1321_v29 = vld [vmem:[%s13201_s12 + $0x90] sm:$0xff] (!%p1192_p9)  ;;  %v1322_v31 = vld [vmem:[%s13201_s12 + $0x98] sm:$0xff] (!%p1192_p9) }
  0xa0   : > { %11646 = vmatpush3.bf16.msra.mxu0 %v13184_v5  ;;  %11678 = vmatpush3.bf16.msra.mxu1 %v13184_v5  ;;  %v1307_v32 = vld [vmem:[%s13201_s12 + $0x20] sm:$0xff]  ;;  %v1308_v34 = vld [vmem:[%s13201_s12 + $0x28] sm:$0xff]  ;;  %v1309_v36 = vld [vmem:[%s13201_s12 + $0x30] sm:$0xff] }
  0xa1   : > { %11648 = vmatprep.subr.bf16.mxu0 %v13198_v8  ;;  %11680 = vmatprep.subr.bf16.mxu1 %v13198_v8  ;;  %v1323_v33 = vld [vmem:[%s13201_s12 + $0xa0] sm:$0xff]  ;;  %v1324_v35 = vld [vmem:[%s13201_s12 + $0xa8] sm:$0xff]  ;;  %v1325_v37 = vld [vmem:[%s13201_s12 + $0xb0] sm:$0xff] }
  0xa2   : > { %v1310_v38 = vld [vmem:[%s13201_s12 + $0x38] sm:$0xff]  ;;  %v1311_v40 = vld [vmem:[%s13201_s12 + $0x40] sm:$0xff]  ;;  %v1312_v42 = vld [vmem:[%s13201_s12 + $0x48] sm:$0xff] }
  0xa3   : > { %v1326_v39 = vld [vmem:[%s13201_s12 + $0xb8] sm:$0xff]  ;;  %v1327_v41 = vld [vmem:[%s13201_s12 + $0xc0] sm:$0xff]  ;;  %v1328_v43 = vld [vmem:[%s13201_s12 + $0xc8] sm:$0xff] }
  0xa4   : > { %11650 = vmatpush3.bf16.msra.mxu0 %v13198_v8  ;;  %11682 = vmatpush3.bf16.msra.mxu1 %v13198_v8  ;;  %v1313_v44 = vld [vmem:[%s13201_s12 + $0x50] sm:$0xff]  ;;  %v1314_v46 = vld [vmem:[%s13201_s12 + $0x58] sm:$0xff]  ;;  %v1315_v48 = vld [vmem:[%s13201_s12 + $0x60] sm:$0xff] }
  0xa5   : > { %11652 = vmatprep.subr.bf16.mxu0 %v13215_v13  ;;  %11684 = vmatprep.subr.bf16.mxu1 %v13215_v13  ;;  %v1329_v45 = vld [vmem:[%s13201_s12 + $0xd0] sm:$0xff]  ;;  %v1330_v47 = vld [vmem:[%s13201_s12 + $0xd8] sm:$0xff]  ;;  %v1331_v49 = vld [vmem:[%s13201_s12 + $0xe0] sm:$0xff] }
  0xa6   : > { %v1316_v50 = vld [vmem:[%s13201_s12 + $0x68] sm:$0xff]  ;;  %v1317_v52 = vld [vmem:[%s13201_s12 + $0x70] sm:$0xff]  ;;  %v1318_v54 = vld [vmem:[%s13201_s12 + $0x78] sm:$0xff] }
  0xa7   : > { %v1332_v51 = vld [vmem:[%s13201_s12 + $0xe8] sm:$0xff]  ;;  %v1333_v53 = vld [vmem:[%s13201_s12 + $0xf0] sm:$0xff]  ;;  %v1334_v55 = vld [vmem:[%s13201_s12 + $0xf8] sm:$0xff] }
  0xa8   : > { %11654 = vmatpush3.bf16.msra.mxu0 %v13215_v13  ;;  %11686 = vmatpush3.bf16.msra.mxu1 %v13215_v13  ;;  %v13338_v56 = vld [vmem:[%s15696_s2] ss:$0 sm:$0xff]  ;;  %v8337_v63 = vld [vmem:[%s13201_s12 + $0x108] sm:$0xff] }
  0xa9   : > { %11656 = vmatprep.subr.bf16.mxu0 %v13227_v16  ;;  %11688 = vmatprep.subr.bf16.mxu1 %v13227_v16  ;;  %v8369_v0 = vld [vmem:[%s13201_s12 + $0x188] sm:$0xff]  ;;  %v8336_v7 = vld [vmem:[%s13201_s12 + $0x100] sm:$0xff] }
  0xaa   : > { %v8368_v9 = vld [vmem:[%s13201_s12 + $0x180] sm:$0xff] }
  0xac   : > { %11658 = vmatpush3.bf16.msra.mxu0 %v13227_v16  ;;  %11690 = vmatpush3.bf16.msra.mxu1 %v13227_v16 }
  0xad   : > { %11660 = vmatprep.subr.bf16.mxu0 %v13239_v19  ;;  %11692 = vmatprep.subr.bf16.mxu1 %v13239_v19 }
  0xb0   : > { %11662 = vmatpush3.bf16.msra.mxu0 %v13239_v19  ;;  %11694 = vmatpush3.bf16.msra.mxu1 %v13239_v19 }
  0xb1   : > { %11664 = vmatprep.subr.bf16.mxu0 %v13251_v22  ;;  %11696 = vmatprep.subr.bf16.mxu1 %v13251_v22 }
  0xb4   : > { %11666 = vmatpush3.bf16.msra.mxu0 %v13251_v22  ;;  %11698 = vmatpush3.bf16.msra.mxu1 %v13251_v22 }
  0xb5   : > { %11668 = vmatprep.subr.bf16.mxu0 %v13263_v25  ;;  %11700 = vmatprep.subr.bf16.mxu1 %v13263_v25 }
  0xb8   : > { %11670 = vmatpush3.bf16.msra.mxu0 %v13263_v25  ;;  %11702 = vmatpush3.bf16.msra.mxu1 %v13263_v25 }
  0xb9   : > { %11704 = vmatprep.subr.bf16.mxu0 %v13177_v3  ;;  %11736 = vmatprep.subr.bf16.mxu1 %v13177_v3 }
  0xbb   : > { %10104 = vmatmul.mubr.f32.vlgmr.msra.gmra.mrb[0].mxu0 %v1304_v26  ;;  %10160 = vmatmul.mubr.f32.vlgmr.msra.gmra.mrb[0].mxu1 %v1320_v27  ;;  %v8339_v27 = vld [vmem:[%s13201_s12 + $0x118] sm:$0xff] }
  0xbc   : > { %10106 = vmatprep.mubr.f32.mxu0 %v1305_v28  ;;  %10162 = vmatprep.mubr.f32.mxu1 %v1321_v29  ;;  %v8371_v28 = vld [vmem:[%s13201_s12 + $0x198] sm:$0xff] }
  0xbd   : > { %11706 = vmatpush3.bf16.msra.mxu0 %v13177_v3  ;;  %11738 = vmatpush3.bf16.msra.mxu1 %v13177_v3 }
  0xbe   : > { %11708 = vmatprep.subr.bf16.mxu0 %v13184_v5  ;;  %11740 = vmatprep.subr.bf16.mxu1 %v13184_v5 }
  0xbf   : > { %10107 = vmatmul.mubr.f32.gmra.mrb[2].mxu0 %v1306_v30  ;;  %10163 = vmatmul.mubr.f32.gmra.mrb[2].mxu1 %v1322_v31 }
  0xc0   : > { %10109 = vmatprep.mubr.f32.mxu0 %v1307_v32  ;;  %10165 = vmatprep.mubr.f32.mxu1 %v1323_v33  ;;  %v8338_v33 = vld [vmem:[%s13201_s12 + $0x110] sm:$0xff] }
  0xc1   : > { %11710 = vmatpush3.bf16.msra.mxu0 %v13184_v5  ;;  %11742 = vmatpush3.bf16.msra.mxu1 %v13184_v5 }
  0xc2   : > { %11712 = vmatprep.subr.bf16.mxu0 %v13198_v8  ;;  %11744 = vmatprep.subr.bf16.mxu1 %v13198_v8 }
  0xc3   : > { %10110 = vmatmul.mubr.f32.gmra.mrb[4].mxu0 %v1308_v34  ;;  %10166 = vmatmul.mubr.f32.gmra.mrb[4].mxu1 %v1324_v35  ;;  %v8370_v34 = vld [vmem:[%s13201_s12 + $0x190] sm:$0xff] }
  0xc4   : > { %10112 = vmatprep.mubr.f32.mxu0 %v1309_v36  ;;  %10168 = vmatprep.mubr.f32.mxu1 %v1325_v37 }
  0xc5   : > { %11714 = vmatpush3.bf16.msra.mxu0 %v13198_v8  ;;  %11746 = vmatpush3.bf16.msra.mxu1 %v13198_v8 }
  0xc6   : > { %11716 = vmatprep.subr.bf16.mxu0 %v13215_v13  ;;  %11748 = vmatprep.subr.bf16.mxu1 %v13215_v13 }
  0xc7   : > { %10113 = vmatmul.mubr.f32.gmra.mrb[6].mxu0 %v1310_v38  ;;  %10169 = vmatmul.mubr.f32.gmra.mrb[6].mxu1 %v1326_v39 }
  0xc8   : > { %10115 = vmatprep.mubr.f32.mxu0 %v1311_v40  ;;  %10171 = vmatprep.mubr.f32.mxu1 %v1327_v41 }
  0xc9   : > { %11718 = vmatpush3.bf16.msra.mxu0 %v13215_v13  ;;  %11750 = vmatpush3.bf16.msra.mxu1 %v13215_v13 }
  0xca   : > { %11720 = vmatprep.subr.bf16.mxu0 %v13227_v16  ;;  %11752 = vmatprep.subr.bf16.mxu1 %v13227_v16 }
  0xcb   : > { %10116 = vmatmul.mubr.f32.gmra.mrb[8].mxu0 %v1312_v42  ;;  %10172 = vmatmul.mubr.f32.gmra.mrb[8].mxu1 %v1328_v43 }
  0xcc   : > { %10118 = vmatprep.mubr.f32.mxu0 %v1313_v44  ;;  %10174 = vmatprep.mubr.f32.mxu1 %v1329_v45 }
  0xcd   : > { %11722 = vmatpush3.bf16.msra.mxu0 %v13227_v16  ;;  %11754 = vmatpush3.bf16.msra.mxu1 %v13227_v16 }
  0xce   : > { %11724 = vmatprep.subr.bf16.mxu0 %v13239_v19  ;;  %11756 = vmatprep.subr.bf16.mxu1 %v13239_v19 }
  0xcf   : > { %10119 = vmatmul.mubr.f32.gmra.mrb[10].mxu0 %v1314_v46  ;;  %10175 = vmatmul.mubr.f32.gmra.mrb[10].mxu1 %v1330_v47  ;;  %v8341_v47 = vld [vmem:[%s13201_s12 + $0x128] sm:$0xff] }
  0xd0   : > { %10121 = vmatprep.mubr.f32.mxu0 %v1315_v48  ;;  %10177 = vmatprep.mubr.f32.mxu1 %v1331_v49  ;;  %v8373_v48 = vld [vmem:[%s13201_s12 + $0x1a8] sm:$0xff] }
  0xd1   : > { %11726 = vmatpush3.bf16.msra.mxu0 %v13239_v19  ;;  %11758 = vmatpush3.bf16.msra.mxu1 %v13239_v19 }
  0xd2   : > { %11728 = vmatprep.subr.bf16.mxu0 %v13251_v22  ;;  %11760 = vmatprep.subr.bf16.mxu1 %v13251_v22 }
  0xd3   : > { %10122 = vmatmul.mubr.f32.gmra.mrb[12].mxu0 %v1316_v50  ;;  %10178 = vmatmul.mubr.f32.gmra.mrb[12].mxu1 %v1332_v51 }
  0xd4   : > { %10124 = vmatprep.mubr.f32.mxu0 %v1317_v52  ;;  %10180 = vmatprep.mubr.f32.mxu1 %v1333_v53  ;;  %v8340_v53 = vld [vmem:[%s13201_s12 + $0x120] sm:$0xff] }
  0xd5   : > { %11730 = vmatpush3.bf16.msra.mxu0 %v13251_v22  ;;  %11762 = vmatpush3.bf16.msra.mxu1 %v13251_v22 }
  0xd6   : > { %11732 = vmatprep.subr.bf16.mxu0 %v13263_v25  ;;  %11764 = vmatprep.subr.bf16.mxu1 %v13263_v25 }
  0xd7   : > { %10125 = vmatmul.mubr.f32.gmra.mrb[14].mxu0 %v1318_v54  ;;  %10181 = vmatmul.mubr.f32.gmra.mrb[14].mxu1 %v1334_v55  ;;  %v8372_v54 = vld [vmem:[%s13201_s12 + $0x1a0] sm:$0xff] }
  0xd9   : > { %11734 = vmatpush3.bf16.msra.mxu0 %v13263_v25  ;;  %11766 = vmatpush3.bf16.msra.mxu1 %v13263_v25 }
  0xda   : > { %11768 = vmatprep.subr.bf16.mxu0 %v13177_v3  ;;  %11800 = vmatprep.subr.bf16.mxu1 %v13177_v3 }
 0x18e   : > { %v10105_v57 = vpop.f32.mrb[0].mxu0  ;;  %v10161_v58 = vpop.f32.mrb[0].mxu1 }
 0x18f   : > { %v1413_v59 = vadd.f32 %v10105_v57, %v13338_v56  ;;  %v1624_v60 = vadd.f32 %v10161_v58, %v13338_v56  ;;  %v1407_v61 = vpop.f32.mrb[1].mxu0  ;;  %v1618_v62 = vpop.f32.mrb[1].mxu1 }
 0x190   : > { %v1408_v1 = vadd.f32 %v13338_v56, %v1407_v61  ;;  %v1619_v2 = vadd.f32 %v13338_v56, %v1618_v62 }
 0x191   : > { %v1487_v4 = vmax.f32 %v1413_v59, 0.0  ;;  %v1698_v6 = vmax.f32 %v1624_v60, 0.0 }
 0x192   : > { %v1486_v10 = vmax.f32 %v1408_v1, 0.0  ;;  %v1697_v11 = vmax.f32 %v1619_v2, 0.0  ;;  %v10108_v12 = vpop.f32.mrb[2].mxu0  ;;  %v10164_v14 = vpop.f32.mrb[2].mxu1 }
 0x193   : > { %v1520_v15 = vadd.f32 %v8337_v63, %v1487_v4  ;;  %v1730_v17 = vadd.f32 %v8369_v0, %v1698_v6  ;;  %v1423_v18 = vadd.f32 %v10108_v12, %v13338_v56  ;;  %v1634_v20 = vadd.f32 %v10164_v14, %v13338_v56  ;;  %v1417_v21 = vpop.f32.mrb[3].mxu0  ;;  %v1628_v23 = vpop.f32.mrb[3].mxu1  ;;  %v8343_v6 = vld [vmem:[%s13201_s12 + $0x138] sm:$0xff]  ;;  %v8342_v14 = vld [vmem:[%s13201_s12 + $0x130] sm:$0xff] }
 0x194   : > { %v1519_v24 = vadd.f32 %v8336_v7, %v1486_v10  ;;  %v1729_v26 = vadd.f32 %v8368_v9, %v1697_v11  ;;  %v1418_v29 = vadd.f32 %v13338_v56, %v1417_v21  ;;  %v1629_v30 = vadd.f32 %v13338_v56, %v1628_v23  ;;  %v8375_v7 = vld [vmem:[%s13201_s12 + $0x1b8] sm:$0xff] }
 0x195   : > { %8353 = vst [vmem:[%s13355_s25 + $0x108] sm:$0xff] %v1520_v15  ;;  %8385 = vst [vmem:[%s13355_s25 + $0x188] sm:$0xff] %v1730_v17  ;;  %v1489_v31 = vmax.f32 %v1423_v18, 0.0  ;;  %v1700_v32 = vmax.f32 %v1634_v20, 0.0 }
 0x196   : > { %8352 = vst [vmem:[%s13355_s25 + $0x100] sm:$0xff] %v1519_v24  ;;  %8384 = vst [vmem:[%s13355_s25 + $0x180] sm:$0xff] %v1729_v26  ;;  %v1488_v35 = vmax.f32 %v1418_v29, 0.0  ;;  %v1699_v36 = vmax.f32 %v1629_v30, 0.0  ;;  %v10111_v37 = vpop.f32.mrb[4].mxu0  ;;  %v10167_v38 = vpop.f32.mrb[4].mxu1  ;;  %10215 = vmatprep.mubr.f32.mxu0 %v1519_v24  ;;  %10271 = vmatprep.mubr.f32.mxu1 %v1729_v26 }
 0x197   : > { %v1522_v39 = vadd.f32 %v8339_v27, %v1489_v31  ;;  %v1732_v40 = vadd.f32 %v8371_v28, %v1700_v32  ;;  %v1433_v41 = vadd.f32 %v10111_v37, %v13338_v56  ;;  %v1644_v42 = vadd.f32 %v10167_v38, %v13338_v56  ;;  %v1427_v43 = vpop.f32.mrb[5].mxu0  ;;  %v1638_v44 = vpop.f32.mrb[5].mxu1  ;;  %10216 = vmatmul.mubr.f32.vlgmr.msra.gmra.mrb[16].mxu0 %v1520_v15  ;;  %v8374_v15 = vld [vmem:[%s13201_s12 + $0x1b0] sm:$0xff]  ;;  %v8345_v32 = vld [vmem:[%s13201_s12 + $0x148] sm:$0xff]  ;;  %v8344_v38 = vld [vmem:[%s13201_s12 + $0x140] sm:$0xff] }
 0x198   : > { %v1521_v45 = vadd.f32 %v8338_v33, %v1488_v35  ;;  %v1731_v46 = vadd.f32 %v8370_v34, %v1699_v36  ;;  %v1428_v49 = vadd.f32 %v13338_v56, %v1427_v43  ;;  %v1639_v50 = vadd.f32 %v13338_v56, %v1638_v44  ;;  %10272 = vmatmul.mubr.f32.vlgmr.msra.gmra.mrb[16].mxu1 %v1730_v17  ;;  %v8377_v33 = vld [vmem:[%s13201_s12 + $0x1c8] sm:$0xff] }
 0x199   : > { %8355 = vst [vmem:[%s13355_s25 + $0x118] sm:$0xff] %v1522_v39  ;;  %8387 = vst [vmem:[%s13355_s25 + $0x198] sm:$0xff] %v1732_v40  ;;  %v1491_v51 = vmax.f32 %v1433_v41, 0.0  ;;  %v1702_v52 = vmax.f32 %v1644_v42, 0.0  ;;  %11770 = vmatpush3.bf16.msra.mxu0 %v13177_v3  ;;  %11802 = vmatpush3.bf16.msra.mxu1 %v13177_v3 }
 0x19a   : > { %8354 = vst [vmem:[%s13355_s25 + $0x110] sm:$0xff] %v1521_v45  ;;  %8386 = vst [vmem:[%s13355_s25 + $0x190] sm:$0xff] %v1731_v46  ;;  %v1490_v55 = vmax.f32 %v1428_v49, 0.0  ;;  %v1701_v57 = vmax.f32 %v1639_v50, 0.0  ;;  %v10114_v58 = vpop.f32.mrb[6].mxu0  ;;  %v10170_v59 = vpop.f32.mrb[6].mxu1  ;;  %10218 = vmatprep.mubr.f32.mxu0 %v1521_v45  ;;  %10274 = vmatprep.mubr.f32.mxu1 %v1731_v46 }
 0x19b   : > { %v1524_v60 = vadd.f32 %v8341_v47, %v1491_v51  ;;  %v1734_v61 = vadd.f32 %v8373_v48, %v1702_v52  ;;  %v1443_v62 = vadd.f32 %v10114_v58, %v13338_v56  ;;  %v1654_v63 = vadd.f32 %v10170_v59, %v13338_v56  ;;  %v1437_v0 = vpop.f32.mrb[7].mxu0  ;;  %v1648_v1 = vpop.f32.mrb[7].mxu1  ;;  %10219 = vmatmul.mubr.f32.gmra.mrb[18].mxu0 %v1522_v39  ;;  %v8376_v39 = vld [vmem:[%s13201_s12 + $0x1c0] sm:$0xff]  ;;  %v8347_v52 = vld [vmem:[%s13201_s12 + $0x158] sm:$0xff]  ;;  %v8346_v59 = vld [vmem:[%s13201_s12 + $0x150] sm:$0xff] }
 0x19c   : > { %v1523_v2 = vadd.f32 %v8340_v53, %v1490_v55  ;;  %v1733_v4 = vadd.f32 %v8372_v54, %v1701_v57  ;;  %v1438_v9 = vadd.f32 %v13338_v56, %v1437_v0  ;;  %v1649_v10 = vadd.f32 %v13338_v56, %v1648_v1  ;;  %10275 = vmatmul.mubr.f32.gmra.mrb[18].mxu1 %v1732_v40  ;;  %v8379_v53 = vld [vmem:[%s13201_s12 + $0x1d8] sm:$0xff] }
 0x19d   : > { %8357 = vst [vmem:[%s13355_s25 + $0x128] sm:$0xff] %v1524_v60  ;;  %8389 = vst [vmem:[%s13355_s25 + $0x1a8] sm:$0xff] %v1734_v61  ;;  %v1493_v11 = vmax.f32 %v1443_v62, 0.0  ;;  %v1704_v12 = vmax.f32 %v1654_v63, 0.0  ;;  %11772 = vmatprep.subr.bf16.mxu0 %v13184_v5  ;;  %11804 = vmatprep.subr.bf16.mxu1 %v13184_v5 }
 0x19e   : > { %8356 = vst [vmem:[%s13355_s25 + $0x120] sm:$0xff] %v1523_v2  ;;  %8388 = vst [vmem:[%s13355_s25 + $0x1a0] sm:$0xff] %v1733_v4  ;;  %v1492_v17 = vmax.f32 %v1438_v9, 0.0  ;;  %v1703_v18 = vmax.f32 %v1649_v10, 0.0  ;;  %v10117_v20 = vpop.f32.mrb[8].mxu0  ;;  %v10173_v21 = vpop.f32.mrb[8].mxu1  ;;  %10221 = vmatprep.mubr.f32.mxu0 %v1523_v2  ;;  %10277 = vmatprep.mubr.f32.mxu1 %v1733_v4 }
 0x19f   : > { %v1526_v23 = vadd.f32 %v8343_v6, %v1493_v11  ;;  %v1736_v24 = vadd.f32 %v8375_v7, %v1704_v12  ;;  %v1453_v26 = vadd.f32 %v10117_v20, %v13338_v56  ;;  %v1664_v27 = vadd.f32 %v10173_v21, %v13338_v56  ;;  %v1447_v28 = vpop.f32.mrb[9].mxu0  ;;  %v1658_v29 = vpop.f32.mrb[9].mxu1  ;;  %10222 = vmatmul.mubr.f32.gmra.mrb[20].mxu0 %v1524_v60  ;;  %v8378_v60 = vld [vmem:[%s13201_s12 + $0x1d0] sm:$0xff]  ;;  %v8349_v12 = vld [vmem:[%s13201_s12 + $0x168] sm:$0xff]  ;;  %v8348_v21 = vld [vmem:[%s13201_s12 + $0x160] sm:$0xff] }
 0x1a0   : > { %v1525_v30 = vadd.f32 %v8342_v14, %v1492_v17  ;;  %v1735_v31 = vadd.f32 %v8374_v15, %v1703_v18  ;;  %v1448_v34 = vadd.f32 %v13338_v56, %v1447_v28  ;;  %v1659_v35 = vadd.f32 %v13338_v56, %v1658_v29  ;;  %10278 = vmatmul.mubr.f32.gmra.mrb[20].mxu1 %v1734_v61  ;;  %v8381_v14 = vld [vmem:[%s13201_s12 + $0x1e8] sm:$0xff] }
 0x1a1   : > { %8359 = vst [vmem:[%s13355_s25 + $0x138] sm:$0xff] %v1526_v23  ;;  %8391 = vst [vmem:[%s13355_s25 + $0x1b8] sm:$0xff] %v1736_v24  ;;  %v1495_v36 = vmax.f32 %v1453_v26, 0.0  ;;  %v1706_v37 = vmax.f32 %v1664_v27, 0.0  ;;  %11774 = vmatpush3.bf16.msra.mxu0 %v13184_v5  ;;  %11806 = vmatpush3.bf16.msra.mxu1 %v13184_v5 }
 0x1a2   : > { %8358 = vst [vmem:[%s13355_s25 + $0x130] sm:$0xff] %v1525_v30  ;;  %8390 = vst [vmem:[%s13355_s25 + $0x1b0] sm:$0xff] %v1735_v31  ;;  %v1494_v40 = vmax.f32 %v1448_v34, 0.0  ;;  %v1705_v41 = vmax.f32 %v1659_v35, 0.0  ;;  %v10120_v42 = vpop.f32.mrb[10].mxu0  ;;  %v10176_v43 = vpop.f32.mrb[10].mxu1  ;;  %10224 = vmatprep.mubr.f32.mxu0 %v1525_v30  ;;  %10280 = vmatprep.mubr.f32.mxu1 %v1735_v31 }
 0x1a3   : > { %v1528_v44 = vadd.f32 %v8345_v32, %v1495_v36  ;;  %v1738_v45 = vadd.f32 %v8377_v33, %v1706_v37  ;;  %v1463_v46 = vadd.f32 %v10120_v42, %v13338_v56  ;;  %v1674_v47 = vadd.f32 %v10176_v43, %v13338_v56  ;;  %v1457_v48 = vpop.f32.mrb[11].mxu0  ;;  %v1668_v49 = vpop.f32.mrb[11].mxu1  ;;  %10225 = vmatmul.mubr.f32.gmra.mrb[22].mxu0 %v1526_v23  ;;  %v8380_v23 = vld [vmem:[%s13201_s12 + $0x1e0] sm:$0xff]  ;;  %v8351_v37 = vld [vmem:[%s13201_s12 + $0x178] sm:$0xff]  ;;  %v8350_v43 = vld [vmem:[%s13201_s12 + $0x170] sm:$0xff] }
 0x1a4   : > { %v1527_v50 = vadd.f32 %v8344_v38, %v1494_v40  ;;  %v1737_v51 = vadd.f32 %v8376_v39, %v1705_v41  ;;  %v1458_v54 = vadd.f32 %v13338_v56, %v1457_v48  ;;  %v1669_v55 = vadd.f32 %v13338_v56, %v1668_v49  ;;  %10281 = vmatmul.mubr.f32.gmra.mrb[22].mxu1 %v1736_v24  ;;  %v8383_v38 = vld [vmem:[%s13201_s12 + $0x1f8] sm:$0xff] }
 0x1a5   : > { %8361 = vst [vmem:[%s13355_s25 + $0x148] sm:$0xff] %v1528_v44  ;;  %8393 = vst [vmem:[%s13355_s25 + $0x1c8] sm:$0xff] %v1738_v45  ;;  %v1497_v57 = vmax.f32 %v1463_v46, 0.0  ;;  %v1708_v58 = vmax.f32 %v1674_v47, 0.0  ;;  %11776 = vmatprep.subr.bf16.mxu0 %v13198_v8  ;;  %11808 = vmatprep.subr.bf16.mxu1 %v13198_v8 }
 0x1a6   : > { %8360 = vst [vmem:[%s13355_s25 + $0x140] sm:$0xff] %v1527_v50  ;;  %8392 = vst [vmem:[%s13355_s25 + $0x1c0] sm:$0xff] %v1737_v51  ;;  %v1496_v61 = vmax.f32 %v1458_v54, 0.0  ;;  %v1707_v62 = vmax.f32 %v1669_v55, 0.0  ;;  %v10123_v63 = vpop.f32.mrb[12].mxu0  ;;  %v10179_v0 = vpop.f32.mrb[12].mxu1  ;;  %10227 = vmatprep.mubr.f32.mxu0 %v1527_v50  ;;  %10283 = vmatprep.mubr.f32.mxu1 %v1737_v51 }
 0x1a7   : > { %v1530_v1 = vadd.f32 %v8347_v52, %v1497_v57  ;;  %v1740_v2 = vadd.f32 %v8379_v53, %v1708_v58  ;;  %v1473_v4 = vadd.f32 %v10123_v63, %v13338_v56  ;;  %v1684_v6 = vadd.f32 %v10179_v0, %v13338_v56  ;;  %v1467_v7 = vpop.f32.mrb[13].mxu0  ;;  %v1678_v9 = vpop.f32.mrb[13].mxu1  ;;  %10228 = vmatmul.mubr.f32.gmra.mrb[24].mxu0 %v1528_v44  ;;  %v8382_v44 = vld [vmem:[%s13201_s12 + $0x1f0] sm:$0xff]  ;;  %v8401_v55 = vld [vmem:[%s13201_s12 + $0x208] sm:$0xff] }
 0x1a8   : > { %v1529_v10 = vadd.f32 %v8346_v59, %v1496_v61  ;;  %v1739_v11 = vadd.f32 %v8378_v60, %v1707_v62  ;;  %v1468_v15 = vadd.f32 %v13338_v56, %v1467_v7  ;;  %v1679_v17 = vadd.f32 %v13338_v56, %v1678_v9  ;;  %10284 = vmatmul.mubr.f32.gmra.mrb[24].mxu1 %v1738_v45  ;;  %v8433_v61 = vld [vmem:[%s13201_s12 + $0x288] sm:$0xff]  ;;  %v8400_v62 = vld [vmem:[%s13201_s12 + $0x200] sm:$0xff] }
 0x1a9   : > { %8363 = vst [vmem:[%s13355_s25 + $0x158] sm:$0xff] %v1530_v1  ;;  %8395 = vst [vmem:[%s13355_s25 + $0x1d8] sm:$0xff] %v1740_v2  ;;  %v1499_v18 = vmax.f32 %v1473_v4, 0.0  ;;  %v1710_v20 = vmax.f32 %v1684_v6, 0.0  ;;  %11778 = vmatpush3.bf16.msra.mxu0 %v13198_v8  ;;  %11810 = vmatpush3.bf16.msra.mxu1 %v13198_v8 }
 0x1aa   : > { %8362 = vst [vmem:[%s13355_s25 + $0x150] sm:$0xff] %v1529_v10  ;;  %8394 = vst [vmem:[%s13355_s25 + $0x1d0] sm:$0xff] %v1739_v11  ;;  %v1498_v24 = vmax.f32 %v1468_v15, 0.0  ;;  %v1709_v26 = vmax.f32 %v1679_v17, 0.0  ;;  %v10126_v27 = vpop.f32.mrb[14].mxu0  ;;  %v10182_v28 = vpop.f32.mrb[14].mxu1  ;;  %10230 = vmatprep.mubr.f32.mxu0 %v1529_v10  ;;  %10286 = vmatprep.mubr.f32.mxu1 %v1739_v11 }
 0x1ab   : > { %v1532_v29 = vadd.f32 %v8349_v12, %v1499_v18  ;;  %v1742_v30 = vadd.f32 %v8381_v14, %v1710_v20  ;;  %v1483_v31 = vadd.f32 %v10126_v27, %v13338_v56  ;;  %v1694_v32 = vadd.f32 %v10182_v28, %v13338_v56  ;;  %v1477_v33 = vpop.f32.mrb[15].mxu0  ;;  %v1688_v34 = vpop.f32.mrb[15].mxu1  ;;  %10231 = vmatmul.mubr.f32.gmra.mrb[26].mxu0 %v1530_v1  ;;  %v8403_v15 = vld [vmem:[%s13201_s12 + $0x218] sm:$0xff] }
 0x1ac   : > { %v1531_v35 = vadd.f32 %v8348_v21, %v1498_v24  ;;  %v1741_v36 = vadd.f32 %v8380_v23, %v1709_v26  ;;  %v1478_v39 = vadd.f32 %v13338_v56, %v1477_v33  ;;  %v1689_v40 = vadd.f32 %v13338_v56, %v1688_v34  ;;  %10287 = vmatmul.mubr.f32.gmra.mrb[26].mxu1 %v1740_v2  ;;  %v8432_v2 = vld [vmem:[%s13201_s12 + $0x280] sm:$0xff]  ;;  %v8435_v24 = vld [vmem:[%s13201_s12 + $0x298] sm:$0xff]  ;;  %v8402_v26 = vld [vmem:[%s13201_s12 + $0x210] sm:$0xff] }
 0x1ad   : > { %8365 = vst [vmem:[%s13355_s25 + $0x168] sm:$0xff] %v1532_v29  ;;  %8397 = vst [vmem:[%s13355_s25 + $0x1e8] sm:$0xff] %v1742_v30  ;;  %v1501_v41 = vmax.f32 %v1483_v31, 0.0  ;;  %v1712_v42 = vmax.f32 %v1694_v32, 0.0  ;;  %11780 = vmatprep.subr.bf16.mxu0 %v13215_v13  ;;  %11812 = vmatprep.subr.bf16.mxu1 %v13215_v13 }
 0x1ae   : > { %8364 = vst [vmem:[%s13355_s25 + $0x160] sm:$0xff] %v1531_v35  ;;  %8396 = vst [vmem:[%s13355_s25 + $0x1e0] sm:$0xff] %v1741_v36  ;;  %v1500_v45 = vmax.f32 %v1478_v39, 0.0  ;;  %v1711_v46 = vmax.f32 %v1689_v40, 0.0  ;;  %10233 = vmatprep.mubr.f32.mxu0 %v1531_v35  ;;  %10289 = vmatprep.mubr.f32.mxu1 %v1741_v36  ;;  %v8405_v39 = vld [vmem:[%s13201_s12 + $0x228] sm:$0xff] }
 0x1af   : > { %v1534_v47 = vadd.f32 %v8351_v37, %v1501_v41  ;;  %v1744_v48 = vadd.f32 %v8383_v38, %v1712_v42  ;;  %10234 = vmatmul.mubr.f32.gmra.mrb[28].mxu0 %v1532_v29  ;;  %11814 = vmatpush3.bf16.msra.mxu1 %v13215_v13 }
 0x1b0   : > { %v1533_v49 = vadd.f32 %v8350_v43, %v1500_v45  ;;  %v1743_v50 = vadd.f32 %v8382_v44, %v1711_v46  ;;  %10290 = vmatmul.mubr.f32.gmra.mrb[28].mxu1 %v1742_v30  ;;  %11782 = vmatpush3.bf16.msra.mxu0 %v13215_v13  ;;  %v8434_v30 = vld [vmem:[%s13201_s12 + $0x290] sm:$0xff]  ;;  %v8437_v45 = vld [vmem:[%s13201_s12 + $0x2a8] sm:$0xff]  ;;  %v8404_v46 = vld [vmem:[%s13201_s12 + $0x220] sm:$0xff] }
 0x1b1   : > { %8367 = vst [vmem:[%s13355_s25 + $0x178] sm:$0xff] %v1534_v47  ;;  %8399 = vst [vmem:[%s13355_s25 + $0x1f8] sm:$0xff] %v1744_v48  ;;  %11784 = vmatprep.subr.bf16.mxu0 %v13227_v16  ;;  %11816 = vmatprep.subr.bf16.mxu1 %v13227_v16 }
 0x1b2   : > { %8366 = vst [vmem:[%s13355_s25 + $0x170] sm:$0xff] %v1533_v49  ;;  %8398 = vst [vmem:[%s13355_s25 + $0x1f0] sm:$0xff] %v1743_v50  ;;  %10236 = vmatprep.mubr.f32.mxu0 %v1533_v49  ;;  %10292 = vmatprep.mubr.f32.mxu1 %v1743_v50  ;;  %v8436_v50 = vld [vmem:[%s13201_s12 + $0x2a0] sm:$0xff] }
 0x1b3   : > { %10237 = vmatmul.mubr.f32.gmra.mrb[30].mxu0 %v1534_v47  ;;  %11818 = vmatpush3.bf16.msra.mxu1 %v13227_v16 }
 0x1b4   : > { %10293 = vmatmul.mubr.f32.gmra.mrb[30].mxu1 %v1744_v48  ;;  %11786 = vmatpush3.bf16.msra.mxu0 %v13227_v16 }
 0x1b5   : > { %11788 = vmatprep.subr.bf16.mxu0 %v13239_v19  ;;  %11820 = vmatprep.subr.bf16.mxu1 %v13239_v19 }
 0x1b7   : > { %11822 = vmatpush3.bf16.msra.mxu1 %v13239_v19 }
 0x1b8   : > { %11790 = vmatpush3.bf16.msra.mxu0 %v13239_v19  ;;  %11824 = vmatprep.subr.bf16.mxu1 %v13251_v22 }
 0x1b9   : > { %11792 = vmatprep.subr.bf16.mxu0 %v13251_v22 }
 0x1bb   : > { %11826 = vmatpush3.bf16.msra.mxu1 %v13251_v22 }
 0x1bc   : > { %11794 = vmatpush3.bf16.msra.mxu0 %v13251_v22  ;;  %11828 = vmatprep.subr.bf16.mxu1 %v13263_v25 }
 0x1bd   : > { %11796 = vmatprep.subr.bf16.mxu0 %v13263_v25 }
 0x1bf   : > { %11830 = vmatpush3.bf16.msra.mxu1 %v13263_v25 }
 0x1c0   : > { %11798 = vmatpush3.bf16.msra.mxu0 %v13263_v25  ;;  %11864 = vmatprep.subr.bf16.mxu1 %v13177_v3 }
 0x1c1   : > { %11832 = vmatprep.subr.bf16.mxu0 %v13177_v3 }
 0x26a   : > { %v10217_v51 = vpop.f32.mrb[16].mxu0 }
 0x26b   : > { %v1833_v52 = vadd.f32 %v10217_v51, %v13338_v56  ;;  %v10273_v53 = vpop.f32.mrb[16].mxu1  ;;  %v1827_v54 = vpop.f32.mrb[17].mxu0 }
 0x26c   : > { %v2044_v57 = vadd.f32 %v10273_v53, %v13338_v56  ;;  %v1828_v58 = vadd.f32 %v13338_v56, %v1827_v54  ;;  %v2038_v59 = vpop.f32.mrb[17].mxu1 }
 0x26d   : > { %v1907_v60 = vmax.f32 %v1833_v52, 0.0  ;;  %v2039_v63 = vadd.f32 %v13338_v56, %v2038_v59 }
 0x26e   : > { %v2118_v0 = vmax.f32 %v2044_v57, 0.0  ;;  %v1906_v1 = vmax.f32 %v1828_v58, 0.0  ;;  %v10220_v4 = vpop.f32.mrb[18].mxu0 }
 0x26f   : > { %v1940_v6 = vadd.f32 %v8401_v55, %v1907_v60  ;;  %v2117_v7 = vmax.f32 %v2039_v63, 0.0  ;;  %v1843_v9 = vadd.f32 %v10220_v4, %v13338_v56  ;;  %v10276_v10 = vpop.f32.mrb[18].mxu1  ;;  %v1837_v11 = vpop.f32.mrb[19].mxu0  ;;  %v8407_v60 = vld [vmem:[%s13201_s12 + $0x238] sm:$0xff]  ;;  %v8406_v4 = vld [vmem:[%s13201_s12 + $0x230] sm:$0xff] }
 0x270   : > { %v2150_v12 = vadd.f32 %v8433_v61, %v2118_v0  ;;  %v1939_v14 = vadd.f32 %v8400_v62, %v1906_v1  ;;  %v2054_v17 = vadd.f32 %v10276_v10, %v13338_v56  ;;  %v1838_v18 = vadd.f32 %v13338_v56, %v1837_v11  ;;  %v2048_v20 = vpop.f32.mrb[19].mxu1  ;;  %v8438_v10 = vld [vmem:[%s13201_s12 + $0x2b0] sm:$0xff] }
 0x271   : > { %8417 = vst [vmem:[%s13355_s25 + $0x208] sm:$0xff] %v1940_v6  ;;  %v2149_v21 = vadd.f32 %v8432_v2, %v2117_v7  ;;  %v1909_v23 = vmax.f32 %v1843_v9, 0.0  ;;  %v2049_v27 = vadd.f32 %v13338_v56, %v2048_v20  ;;  %v8439_v2 = vld [vmem:[%s13201_s12 + $0x2b8] sm:$0xff] }
 0x272   : > { %8449 = vst [vmem:[%s13355_s25 + $0x288] sm:$0xff] %v2150_v12  ;;  %8416 = vst [vmem:[%s13355_s25 + $0x200] sm:$0xff] %v1939_v14  ;;  %v2120_v28 = vmax.f32 %v2054_v17, 0.0  ;;  %v1908_v29 = vmax.f32 %v1838_v18, 0.0  ;;  %v10223_v31 = vpop.f32.mrb[20].mxu0  ;;  %10327 = vmatprep.mubr.f32.mxu0 %v1939_v14 }
 0x273   : > { %8448 = vst [vmem:[%s13355_s25 + $0x280] sm:$0xff] %v2149_v21  ;;  %v1942_v32 = vadd.f32 %v8403_v15, %v1909_v23  ;;  %v2119_v33 = vmax.f32 %v2049_v27, 0.0  ;;  %v1853_v34 = vadd.f32 %v10223_v31, %v13338_v56  ;;  %v10279_v35 = vpop.f32.mrb[20].mxu1  ;;  %10383 = vmatprep.mubr.f32.mxu1 %v2149_v21  ;;  %v1847_v36 = vpop.f32.mrb[21].mxu0  ;;  %10328 = vmatmul.mubr.f32.vlgmr.msra.gmra.mrb[32].mxu0 %v1940_v6  ;;  %v8409_v23 = vld [vmem:[%s13201_s12 + $0x248] sm:$0xff]  ;;  %v8408_v31 = vld [vmem:[%s13201_s12 + $0x240] sm:$0xff] }
 0x274   : > { %v2152_v37 = vadd.f32 %v8435_v24, %v2120_v28  ;;  %v1941_v38 = vadd.f32 %v8402_v26, %v1908_v29  ;;  %v2064_v40 = vadd.f32 %v10279_v35, %v13338_v56  ;;  %v1848_v41 = vadd.f32 %v13338_v56, %v1847_v36  ;;  %v2058_v42 = vpop.f32.mrb[21].mxu1  ;;  %10384 = vmatmul.mubr.f32.vlgmr.msra.gmra.mrb[32].mxu1 %v2150_v12  ;;  %v8440_v35 = vld [vmem:[%s13201_s12 + $0x2c0] sm:$0xff] }
 0x275   : > { %8419 = vst [vmem:[%s13355_s25 + $0x218] sm:$0xff] %v1942_v32  ;;  %v2151_v43 = vadd.f32 %v8434_v30, %v2119_v33  ;;  %v1911_v44 = vmax.f32 %v1853_v34, 0.0  ;;  %v2059_v47 = vadd.f32 %v13338_v56, %v2058_v42  ;;  %11834 = vmatpush3.bf16.msra.mxu0 %v13177_v3  ;;  %11866 = vmatpush3.bf16.msra.mxu1 %v13177_v3  ;;  %v8441_v30 = vld [vmem:[%s13201_s12 + $0x2c8] sm:$0xff] }
 0x276   : > { %8451 = vst [vmem:[%s13355_s25 + $0x298] sm:$0xff] %v2152_v37  ;;  %8418 = vst [vmem:[%s13355_s25 + $0x210] sm:$0xff] %v1941_v38  ;;  %v2122_v48 = vmax.f32 %v2064_v40, 0.0  ;;  %v1910_v49 = vmax.f32 %v1848_v41, 0.0  ;;  %v10226_v51 = vpop.f32.mrb[22].mxu0  ;;  %10330 = vmatprep.mubr.f32.mxu0 %v1941_v38  ;;  %11836 = vmatprep.subr.bf16.mxu0 %v13184_v5 }
 0x277   : > { %8450 = vst [vmem:[%s13355_s25 + $0x290] sm:$0xff] %v2151_v43  ;;  %v1944_v52 = vadd.f32 %v8405_v39, %v1911_v44  ;;  %v2121_v53 = vmax.f32 %v2059_v47, 0.0  ;;  %v1863_v54 = vadd.f32 %v10226_v51, %v13338_v56  ;;  %v10282_v55 = vpop.f32.mrb[22].mxu1  ;;  %10386 = vmatprep.mubr.f32.mxu1 %v2151_v43  ;;  %v1857_v57 = vpop.f32.mrb[23].mxu0  ;;  %10331 = vmatmul.mubr.f32.gmra.mrb[34].mxu0 %v1942_v32  ;;  %v8411_v44 = vld [vmem:[%s13201_s12 + $0x258] sm:$0xff]  ;;  %v8410_v51 = vld [vmem:[%s13201_s12 + $0x250] sm:$0xff] }
 0x278   : > { %v2154_v58 = vadd.f32 %v8437_v45, %v2122_v48  ;;  %v1943_v59 = vadd.f32 %v8404_v46, %v1910_v49  ;;  %v2074_v61 = vadd.f32 %v10282_v55, %v13338_v56  ;;  %v1858_v62 = vadd.f32 %v13338_v56, %v1857_v57  ;;  %v2068_v63 = vpop.f32.mrb[23].mxu1  ;;  %10387 = vmatmul.mubr.f32.gmra.mrb[34].mxu1 %v2152_v37  ;;  %v8442_v55 = vld [vmem:[%s13201_s12 + $0x2d0] sm:$0xff] }
 0x279   : > { %8421 = vst [vmem:[%s13355_s25 + $0x228] sm:$0xff] %v1944_v52  ;;  %v2153_v0 = vadd.f32 %v8436_v50, %v2121_v53  ;;  %v1913_v1 = vmax.f32 %v1863_v54, 0.0  ;;  %v2069_v6 = vadd.f32 %v13338_v56, %v2068_v63  ;;  %11868 = vmatprep.subr.bf16.mxu1 %v13184_v5  ;;  %11838 = vmatpush3.bf16.msra.mxu0 %v13184_v5  ;;  %v8443_v50 = vld [vmem:[%s13201_s12 + $0x2d8] sm:$0xff] }
 0x27a   : > { %8453 = vst [vmem:[%s13355_s25 + $0x2a8] sm:$0xff] %v2154_v58  ;;  %8420 = vst [vmem:[%s13355_s25 + $0x220] sm:$0xff] %v1943_v59  ;;  %v2124_v7 = vmax.f32 %v2074_v61, 0.0  ;;  %v1912_v9 = vmax.f32 %v1858_v62, 0.0  ;;  %v10229_v11 = vpop.f32.mrb[24].mxu0  ;;  %10333 = vmatprep.mubr.f32.mxu0 %v1943_v59  ;;  %11870 = vmatpush3.bf16.msra.mxu1 %v13184_v5 }
 0x27b   : > { %8452 = vst [vmem:[%s13355_s25 + $0x2a0] sm:$0xff] %v2153_v0  ;;  %v1946_v12 = vadd.f32 %v8407_v60, %v1913_v1  ;;  %v2123_v14 = vmax.f32 %v2069_v6, 0.0  ;;  %v1873_v15 = vadd.f32 %v10229_v11, %v13338_v56  ;;  %v10285_v17 = vpop.f32.mrb[24].mxu1  ;;  %10389 = vmatprep.mubr.f32.mxu1 %v2153_v0  ;;  %v1867_v18 = vpop.f32.mrb[25].mxu0  ;;  %10334 = vmatmul.mubr.f32.gmra.mrb[36].mxu0 %v1944_v52  ;;  %v8413_v1 = vld [vmem:[%s13201_s12 + $0x268] sm:$0xff]  ;;  %v8412_v11 = vld [vmem:[%s13201_s12 + $0x260] sm:$0xff] }
 0x27c   : > { %v2156_v20 = vadd.f32 %v8439_v2, %v2124_v7  ;;  %v1945_v21 = vadd.f32 %v8406_v4, %v1912_v9  ;;  %v2084_v24 = vadd.f32 %v10285_v17, %v13338_v56  ;;  %v1868_v26 = vadd.f32 %v13338_v56, %v1867_v18  ;;  %v2078_v27 = vpop.f32.mrb[25].mxu1  ;;  %10390 = vmatmul.mubr.f32.gmra.mrb[36].mxu1 %v2154_v58  ;;  %v8444_v17 = vld [vmem:[%s13201_s12 + $0x2e0] sm:$0xff] }
 0x27d   : > { %8423 = vst [vmem:[%s13355_s25 + $0x238] sm:$0xff] %v1946_v12  ;;  %v2155_v28 = vadd.f32 %v8438_v10, %v2123_v14  ;;  %v1915_v29 = vmax.f32 %v1873_v15, 0.0  ;;  %v2079_v32 = vadd.f32 %v13338_v56, %v2078_v27  ;;  %11840 = vmatprep.subr.bf16.mxu0 %v13198_v8  ;;  %11872 = vmatprep.subr.bf16.mxu1 %v13198_v8  ;;  %v8445_v10 = vld [vmem:[%s13201_s12 + $0x2e8] sm:$0xff] }
 0x27e   : > { %8455 = vst [vmem:[%s13355_s25 + $0x2b8] sm:$0xff] %v2156_v20  ;;  %8422 = vst [vmem:[%s13355_s25 + $0x230] sm:$0xff] %v1945_v21  ;;  %v2126_v33 = vmax.f32 %v2084_v24, 0.0  ;;  %v1914_v34 = vmax.f32 %v1868_v26, 0.0  ;;  %v10232_v36 = vpop.f32.mrb[26].mxu0  ;;  %10336 = vmatprep.mubr.f32.mxu0 %v1945_v21  ;;  %11842 = vmatpush3.bf16.msra.mxu0 %v13198_v8 }
 0x27f   : > { %8454 = vst [vmem:[%s13355_s25 + $0x2b0] sm:$0xff] %v2155_v28  ;;  %v1948_v37 = vadd.f32 %v8409_v23, %v1915_v29  ;;  %v2125_v38 = vmax.f32 %v2079_v32, 0.0  ;;  %v1883_v39 = vadd.f32 %v10232_v36, %v13338_v56  ;;  %v10288_v40 = vpop.f32.mrb[26].mxu1  ;;  %10392 = vmatprep.mubr.f32.mxu1 %v2155_v28  ;;  %v1877_v41 = vpop.f32.mrb[27].mxu0  ;;  %10337 = vmatmul.mubr.f32.gmra.mrb[38].mxu0 %v1946_v12  ;;  %v8415_v29 = vld [vmem:[%s13201_s12 + $0x278] sm:$0xff]  ;;  %v8414_v36 = vld [vmem:[%s13201_s12 + $0x270] sm:$0xff] }
 0x280   : > { %v2158_v42 = vadd.f32 %v8441_v30, %v2126_v33  ;;  %v1947_v43 = vadd.f32 %v8408_v31, %v1914_v34  ;;  %v2094_v45 = vadd.f32 %v10288_v40, %v13338_v56  ;;  %v1878_v46 = vadd.f32 %v13338_v56, %v1877_v41  ;;  %v2088_v47 = vpop.f32.mrb[27].mxu1  ;;  %10393 = vmatmul.mubr.f32.gmra.mrb[38].mxu1 %v2156_v20  ;;  %v8446_v40 = vld [vmem:[%s13201_s12 + $0x2f0] sm:$0xff] }
 0x281   : > { %8425 = vst [vmem:[%s13355_s25 + $0x248] sm:$0xff] %v1948_v37  ;;  %v2157_v48 = vadd.f32 %v8440_v35, %v2125_v38  ;;  %v1917_v49 = vmax.f32 %v1883_v39, 0.0  ;;  %v2089_v52 = vadd.f32 %v13338_v56, %v2088_v47  ;;  %11874 = vmatpush3.bf16.msra.mxu1 %v13198_v8  ;;  %11844 = vmatprep.subr.bf16.mxu0 %v13215_v13  ;;  %v8447_v35 = vld [vmem:[%s13201_s12 + $0x2f8] sm:$0xff] }
 0x282   : > { %8457 = vst [vmem:[%s13355_s25 + $0x2c8] sm:$0xff] %v2158_v42  ;;  %8424 = vst [vmem:[%s13355_s25 + $0x240] sm:$0xff] %v1947_v43  ;;  %v2128_v53 = vmax.f32 %v2094_v45, 0.0  ;;  %v1916_v54 = vmax.f32 %v1878_v46, 0.0  ;;  %v10235_v57 = vpop.f32.mrb[28].mxu0  ;;  %10339 = vmatprep.mubr.f32.mxu0 %v1947_v43  ;;  %11876 = vmatprep.subr.bf16.mxu1 %v13215_v13 }
 0x283   : > { %8456 = vst [vmem:[%s13355_s25 + $0x2c0] sm:$0xff] %v2157_v48  ;;  %v1950_v58 = vadd.f32 %v8411_v44, %v1917_v49  ;;  %v2127_v59 = vmax.f32 %v2089_v52, 0.0  ;;  %v1893_v60 = vadd.f32 %v10235_v57, %v13338_v56  ;;  %v10291_v61 = vpop.f32.mrb[28].mxu1  ;;  %10395 = vmatprep.mubr.f32.mxu1 %v2157_v48  ;;  %v1887_v62 = vpop.f32.mrb[29].mxu0  ;;  %10340 = vmatmul.mubr.f32.gmra.mrb[40].mxu0 %v1948_v37  ;;  %v13602_v46 = vld [vmem:[%s15696_s2] ss:$0 sm:$0xff] }
 0x284   : > { %v2160_v63 = vadd.f32 %v8443_v50, %v2128_v53  ;;  %v1949_v0 = vadd.f32 %v8410_v51, %v1916_v54  ;;  %v2104_v2 = vadd.f32 %v10291_v61, %v13338_v56  ;;  %v1888_v4 = vadd.f32 %v13338_v56, %v1887_v62  ;;  %v2098_v6 = vpop.f32.mrb[29].mxu1  ;;  %10396 = vmatmul.mubr.f32.gmra.mrb[40].mxu1 %v2158_v42  ;;  %v8465_v50 = vld [vmem:[%s13201_s12 + $0x308] sm:$0xff]  ;;  %v8464_v57 = vld [vmem:[%s13201_s12 + $0x300] sm:$0xff] }
 0x285   : > { %8427 = vst [vmem:[%s13355_s25 + $0x258] sm:$0xff] %v1950_v58  ;;  %v2159_v7 = vadd.f32 %v8442_v55, %v2127_v59  ;;  %v1919_v9 = vmax.f32 %v1893_v60, 0.0  ;;  %v2099_v12 = vadd.f32 %v13338_v56, %v2098_v6  ;;  %11846 = vmatpush3.bf16.msra.mxu0 %v13215_v13  ;;  %11878 = vmatpush3.bf16.msra.mxu1 %v13215_v13  ;;  %v8497_v55 = vld [vmem:[%s13201_s12 + $0x388] sm:$0xff]  ;;  %v8496_v61 = vld [vmem:[%s13201_s12 + $0x380] sm:$0xff] }
 0x286   : > { %8459 = vst [vmem:[%s13355_s25 + $0x2d8] sm:$0xff] %v2160_v63  ;;  %8426 = vst [vmem:[%s13355_s25 + $0x250] sm:$0xff] %v1949_v0  ;;  %v2130_v14 = vmax.f32 %v2104_v2, 0.0  ;;  %v1918_v15 = vmax.f32 %v1888_v4, 0.0  ;;  %v10238_v18 = vpop.f32.mrb[30].mxu0  ;;  %10342 = vmatprep.mubr.f32.mxu0 %v1949_v0  ;;  %11848 = vmatprep.subr.bf16.mxu0 %v13227_v16 }
 0x287   : > { %8458 = vst [vmem:[%s13355_s25 + $0x2d0] sm:$0xff] %v2159_v7  ;;  %v1952_v20 = vadd.f32 %v8413_v1, %v1919_v9  ;;  %v2129_v21 = vmax.f32 %v2099_v12, 0.0  ;;  %v1903_v23 = vadd.f32 %v10238_v18, %v13338_v56  ;;  %v10294_v24 = vpop.f32.mrb[30].mxu1  ;;  %10398 = vmatprep.mubr.f32.mxu1 %v2159_v7  ;;  %v1897_v26 = vpop.f32.mrb[31].mxu0  ;;  %10343 = vmatmul.mubr.f32.gmra.mrb[42].mxu0 %v1950_v58  ;;  %v8467_v9 = vld [vmem:[%s13201_s12 + $0x318] sm:$0xff]  ;;  %v8466_v18 = vld [vmem:[%s13201_s12 + $0x310] sm:$0xff] }
 0x288   : > { %v2162_v27 = vadd.f32 %v8445_v10, %v2130_v14  ;;  %v1951_v28 = vadd.f32 %v8412_v11, %v1918_v15  ;;  %v2114_v30 = vadd.f32 %v10294_v24, %v13338_v56  ;;  %v1898_v31 = vadd.f32 %v13338_v56, %v1897_v26  ;;  %v2108_v32 = vpop.f32.mrb[31].mxu1  ;;  %10399 = vmatmul.mubr.f32.gmra.mrb[42].mxu1 %v2160_v63  ;;  %v8498_v24 = vld [vmem:[%s13201_s12 + $0x390] sm:$0xff] }
 0x289   : > { %8429 = vst [vmem:[%s13355_s25 + $0x268] sm:$0xff] %v1952_v20  ;;  %v2161_v33 = vadd.f32 %v8444_v17, %v2129_v21  ;;  %v1921_v34 = vmax.f32 %v1903_v23, 0.0  ;;  %v2109_v37 = vadd.f32 %v13338_v56, %v2108_v32  ;;  %11880 = vmatprep.subr.bf16.mxu1 %v13227_v16  ;;  %11850 = vmatpush3.bf16.msra.mxu0 %v13227_v16  ;;  %v8499_v17 = vld [vmem:[%s13201_s12 + $0x398] sm:$0xff] }
 0x28a   : > { %8461 = vst [vmem:[%s13355_s25 + $0x2e8] sm:$0xff] %v2162_v27  ;;  %8428 = vst [vmem:[%s13355_s25 + $0x260] sm:$0xff] %v1951_v28  ;;  %v2132_v38 = vmax.f32 %v2114_v30, 0.0  ;;  %v1920_v39 = vmax.f32 %v1898_v31, 0.0  ;;  %10345 = vmatprep.mubr.f32.mxu0 %v1951_v28  ;;  %11882 = vmatpush3.bf16.msra.mxu1 %v13227_v16 }
 0x28b   : > { %8460 = vst [vmem:[%s13355_s25 + $0x2e0] sm:$0xff] %v2161_v33  ;;  %v1954_v41 = vadd.f32 %v8415_v29, %v1921_v34  ;;  %v2131_v42 = vmax.f32 %v2109_v37, 0.0  ;;  %10401 = vmatprep.mubr.f32.mxu1 %v2161_v33  ;;  %10346 = vmatmul.mubr.f32.gmra.mrb[44].mxu0 %v1952_v20  ;;  %v8469_v34 = vld [vmem:[%s13201_s12 + $0x328] sm:$0xff] }
 0x28c   : > { %v2164_v56 = vadd.f32 %v8447_v35, %v2132_v38  ;;  %v1953_v43 = vadd.f32 %v8414_v36, %v1920_v39  ;;  %10402 = vmatmul.mubr.f32.gmra.mrb[44].mxu1 %v2162_v27  ;;  %11852 = vmatprep.subr.bf16.mxu0 %v13239_v19 }
 0x28d   : > { %8431 = vst [vmem:[%s13355_s25 + $0x278] sm:$0xff] %v1954_v41  ;;  %v2163_v44 = vadd.f32 %v8446_v40, %v2131_v42  ;;  %11884 = vmatprep.subr.bf16.mxu1 %v13239_v19  ;;  %11854 = vmatpush3.bf16.msra.mxu0 %v13239_v19  ;;  %v8501_v40 = vld [vmem:[%s13201_s12 + $0x3a8] sm:$0xff] }
 0x28e   : > { %8463 = vst [vmem:[%s13355_s25 + $0x2f8] sm:$0xff] %v2164_v56  ;;  %8430 = vst [vmem:[%s13355_s25 + $0x270] sm:$0xff] %v1953_v43  ;;  %10348 = vmatprep.mubr.f32.mxu0 %v1953_v43  ;;  %11886 = vmatpush3.bf16.msra.mxu1 %v13239_v19 }
 0x28f   : > { %8462 = vst [vmem:[%s13355_s25 + $0x2f0] sm:$0xff] %v2163_v44  ;;  %10404 = vmatprep.mubr.f32.mxu1 %v2163_v44  ;;  %10349 = vmatmul.mubr.f32.gmra.mrb[46].mxu0 %v1954_v41  ;;  %v8468_v41 = vld [vmem:[%s13201_s12 + $0x320] sm:$0xff] }
 0x290   : > { %10405 = vmatmul.mubr.f32.gmra.mrb[46].mxu1 %v2164_v56  ;;  %11856 = vmatprep.subr.bf16.mxu0 %v13251_v22  ;;  %v8500_v44 = vld [vmem:[%s13201_s12 + $0x3a0] sm:$0xff] }
 0x291   : > { %11888 = vmatprep.subr.bf16.mxu1 %v13251_v22  ;;  %11858 = vmatpush3.bf16.msra.mxu0 %v13251_v22 }
 0x292   : > { %11890 = vmatpush3.bf16.msra.mxu1 %v13251_v22  ;;  %11860 = vmatprep.subr.bf16.mxu0 %v13263_v25 }
 0x293   : > { %11892 = vmatprep.subr.bf16.mxu1 %v13263_v25 }
 0x295   : > { %11862 = vmatpush3.bf16.msra.mxu0 %v13263_v25 }
 0x296   : > { %11894 = vmatpush3.bf16.msra.mxu1 %v13263_v25  ;;  %11896 = vmatprep.subr.bf16.mxu0 %v13177_v3 }
 0x297   : > { %11928 = vmatprep.subr.bf16.mxu1 %v13177_v3 }
 0x346   : > { %v10329_v45 = vpop.f32.mrb[32].mxu0 }
 0x347   : > { %v2253_v47 = vadd.f32 %v13602_v46, %v10329_v45  ;;  %v10385_v48 = vpop.f32.mrb[32].mxu1  ;;  %v2247_v49 = vpop.f32.mrb[33].mxu0 }
 0x348   : > { %v2464_v51 = vadd.f32 %v13602_v46, %v10385_v48  ;;  %v2248_v52 = vadd.f32 %v13602_v46, %v2247_v49  ;;  %v2458_v53 = vpop.f32.mrb[33].mxu1 }
 0x349   : > { %v2327_v54 = vmax.f32 %v2253_v47, 0.0  ;;  %v2459_v58 = vadd.f32 %v13602_v46, %v2458_v53 }
 0x34a   : > { %v2538_v59 = vmax.f32 %v2464_v51, 0.0  ;;  %v2326_v60 = vmax.f32 %v2248_v52, 0.0  ;;  %v10332_v62 = vpop.f32.mrb[34].mxu0 }
 0x34b   : > { %v2360_v63 = vadd.f32 %v8465_v50, %v2327_v54  ;;  %v2537_v0 = vmax.f32 %v2459_v58, 0.0  ;;  %v2263_v1 = vadd.f32 %v13602_v46, %v10332_v62  ;;  %v10388_v2 = vpop.f32.mrb[34].mxu1  ;;  %v2257_v4 = vpop.f32.mrb[35].mxu0  ;;  %v8471_v54 = vld [vmem:[%s13201_s12 + $0x338] sm:$0xff]  ;;  %v8470_v62 = vld [vmem:[%s13201_s12 + $0x330] sm:$0xff] }
 0x34c   : > { %v2570_v6 = vadd.f32 %v8497_v55, %v2538_v59  ;;  %v2359_v7 = vadd.f32 %v8464_v57, %v2326_v60  ;;  %v2474_v10 = vadd.f32 %v13602_v46, %v10388_v2  ;;  %v2258_v11 = vadd.f32 %v13602_v46, %v2257_v4  ;;  %v2468_v12 = vpop.f32.mrb[35].mxu1  ;;  %v8502_v2 = vld [vmem:[%s13201_s12 + $0x3b0] sm:$0xff] }
 0x34d   : > { %8481 = vst [vmem:[%s13355_s25 + $0x308] sm:$0xff] %v2360_v63  ;;  %v2569_v14 = vadd.f32 %v8496_v61, %v2537_v0  ;;  %v2329_v15 = vmax.f32 %v2263_v1, 0.0  ;;  %v2469_v20 = vadd.f32 %v13602_v46, %v2468_v12  ;;  %v8503_v61 = vld [vmem:[%s13201_s12 + $0x3b8] sm:$0xff] }
 0x34e   : > { %8513 = vst [vmem:[%s13355_s25 + $0x388] sm:$0xff] %v2570_v6  ;;  %8480 = vst [vmem:[%s13355_s25 + $0x300] sm:$0xff] %v2359_v7  ;;  %v2540_v21 = vmax.f32 %v2474_v10, 0.0  ;;  %v2328_v23 = vmax.f32 %v2258_v11, 0.0  ;;  %v10335_v26 = vpop.f32.mrb[36].mxu0  ;;  %10439 = vmatprep.mubr.f32.mxu0 %v2359_v7 }
 0x34f   : > { %8512 = vst [vmem:[%s13355_s25 + $0x380] sm:$0xff] %v2569_v14  ;;  %v2362_v27 = vadd.f32 %v8467_v9, %v2329_v15  ;;  %v2539_v28 = vmax.f32 %v2469_v20, 0.0  ;;  %v2273_v29 = vadd.f32 %v13602_v46, %v10335_v26  ;;  %v10391_v30 = vpop.f32.mrb[36].mxu1  ;;  %10495 = vmatprep.mubr.f32.mxu1 %v2569_v14  ;;  %v2267_v31 = vpop.f32.mrb[37].mxu0  ;;  %10440 = vmatmul.mubr.f32.vlgmr.msra.gmra.mrb[48].mxu0 %v2360_v63  ;;  %v8473_v15 = vld [vmem:[%s13201_s12 + $0x348] sm:$0xff]  ;;  %v8472_v26 = vld [vmem:[%s13201_s12 + $0x340] sm:$0xff] }
 0x350   : > { %v2572_v32 = vadd.f32 %v8499_v17, %v2540_v21  ;;  %v2361_v33 = vadd.f32 %v8466_v18, %v2328_v23  ;;  %v2484_v35 = vadd.f32 %v13602_v46, %v10391_v30  ;;  %v2268_v36 = vadd.f32 %v13602_v46, %v2267_v31  ;;  %v2478_v37 = vpop.f32.mrb[37].mxu1  ;;  %10496 = vmatmul.mubr.f32.vlgmr.msra.gmra.mrb[48].mxu1 %v2570_v6  ;;  %v8504_v30 = vld [vmem:[%s13201_s12 + $0x3c0] sm:$0xff] }
 0x351   : > { %8483 = vst [vmem:[%s13355_s25 + $0x318] sm:$0xff] %v2362_v27  ;;  %v2571_v38 = vadd.f32 %v8498_v24, %v2539_v28  ;;  %v2331_v39 = vmax.f32 %v2273_v29, 0.0  ;;  %v2479_v42 = vadd.f32 %v13602_v46, %v2478_v37  ;;  %11898 = vmatpush3.bf16.msra.mxu0 %v13177_v3  ;;  %11930 = vmatpush3.bf16.msra.mxu1 %v13177_v3  ;;  %v8505_v24 = vld [vmem:[%s13201_s12 + $0x3c8] sm:$0xff] }
 0x352   : > { %8515 = vst [vmem:[%s13355_s25 + $0x398] sm:$0xff] %v2572_v32  ;;  %8482 = vst [vmem:[%s13355_s25 + $0x310] sm:$0xff] %v2361_v33  ;;  %v2542_v56 = vmax.f32 %v2484_v35, 0.0  ;;  %v2330_v43 = vmax.f32 %v2268_v36, 0.0  ;;  %v10338_v45 = vpop.f32.mrb[38].mxu0  ;;  %10442 = vmatprep.mubr.f32.mxu0 %v2361_v33  ;;  %11900 = vmatprep.subr.bf16.mxu0 %v13184_v5 }
 0x353   : > { %8514 = vst [vmem:[%s13355_s25 + $0x390] sm:$0xff] %v2571_v38  ;;  %v2364_v47 = vadd.f32 %v8469_v34, %v2331_v39  ;;  %v2541_v48 = vmax.f32 %v2479_v42, 0.0  ;;  %v2283_v49 = vadd.f32 %v13602_v46, %v10338_v45  ;;  %v10394_v50 = vpop.f32.mrb[38].mxu1  ;;  %10498 = vmatprep.mubr.f32.mxu1 %v2571_v38  ;;  %v2277_v51 = vpop.f32.mrb[39].mxu0  ;;  %10443 = vmatmul.mubr.f32.gmra.mrb[50].mxu0 %v2362_v27  ;;  %v8475_v39 = vld [vmem:[%s13201_s12 + $0x358] sm:$0xff]  ;;  %v8474_v45 = vld [vmem:[%s13201_s12 + $0x350] sm:$0xff] }
 0x354   : > { %v2574_v52 = vadd.f32 %v8501_v40, %v2542_v56  ;;  %v2363_v53 = vadd.f32 %v8468_v41, %v2330_v43  ;;  %v2494_v55 = vadd.f32 %v13602_v46, %v10394_v50  ;;  %v2278_v57 = vadd.f32 %v13602_v46, %v2277_v51  ;;  %v2488_v58 = vpop.f32.mrb[39].mxu1  ;;  %10499 = vmatmul.mubr.f32.gmra.mrb[50].mxu1 %v2572_v32  ;;  %v8506_v50 = vld [vmem:[%s13201_s12 + $0x3d0] sm:$0xff] }
 0x355   : > { %8485 = vst [vmem:[%s13355_s25 + $0x328] sm:$0xff] %v2364_v47  ;;  %v2573_v59 = vadd.f32 %v8500_v44, %v2541_v48  ;;  %v2333_v60 = vmax.f32 %v2283_v49, 0.0  ;;  %v2489_v63 = vadd.f32 %v13602_v46, %v2488_v58  ;;  %11932 = vmatprep.subr.bf16.mxu1 %v13184_v5  ;;  %11902 = vmatpush3.bf16.msra.mxu0 %v13184_v5  ;;  %v8507_v44 = vld [vmem:[%s13201_s12 + $0x3d8] sm:$0xff] }
 0x356   : > { %8517 = vst [vmem:[%s13355_s25 + $0x3a8] sm:$0xff] %v2574_v52  ;;  %8484 = vst [vmem:[%s13355_s25 + $0x320] sm:$0xff] %v2363_v53  ;;  %v2544_v0 = vmax.f32 %v2494_v55, 0.0  ;;  %v2332_v1 = vmax.f32 %v2278_v57, 0.0  ;;  %v10341_v4 = vpop.f32.mrb[40].mxu0  ;;  %10445 = vmatprep.mubr.f32.mxu0 %v2363_v53  ;;  %11934 = vmatpush3.bf16.msra.mxu1 %v13184_v5 }
 0x357   : > { %8516 = vst [vmem:[%s13355_s25 + $0x3a0] sm:$0xff] %v2573_v59  ;;  %v2366_v6 = vadd.f32 %v8471_v54, %v2333_v60  ;;  %v2543_v7 = vmax.f32 %v2489_v63, 0.0  ;;  %v2293_v9 = vadd.f32 %v13602_v46, %v10341_v4  ;;  %v10397_v10 = vpop.f32.mrb[40].mxu1  ;;  %10501 = vmatprep.mubr.f32.mxu1 %v2573_v59  ;;  %v2287_v11 = vpop.f32.mrb[41].mxu0  ;;  %10446 = vmatmul.mubr.f32.gmra.mrb[52].mxu0 %v2364_v47  ;;  %v8477_v60 = vld [vmem:[%s13201_s12 + $0x368] sm:$0xff]  ;;  %v8476_v4 = vld [vmem:[%s13201_s12 + $0x360] sm:$0xff] }
 0x358   : > { %v2576_v12 = vadd.f32 %v8503_v61, %v2544_v0  ;;  %v2365_v14 = vadd.f32 %v8470_v62, %v2332_v1  ;;  %v2504_v17 = vadd.f32 %v13602_v46, %v10397_v10  ;;  %v2288_v18 = vadd.f32 %v13602_v46, %v2287_v11  ;;  %v2498_v20 = vpop.f32.mrb[41].mxu1  ;;  %10502 = vmatmul.mubr.f32.gmra.mrb[52].mxu1 %v2574_v52  ;;  %v8508_v10 = vld [vmem:[%s13201_s12 + $0x3e0] sm:$0xff] }
 0x359   : > { %8487 = vst [vmem:[%s13355_s25 + $0x338] sm:$0xff] %v2366_v6  ;;  %v2575_v21 = vadd.f32 %v8502_v2, %v2543_v7  ;;  %v2335_v23 = vmax.f32 %v2293_v9, 0.0  ;;  %v2499_v27 = vadd.f32 %v13602_v46, %v2498_v20  ;;  %11904 = vmatprep.subr.bf16.mxu0 %v13198_v8  ;;  %11936 = vmatprep.subr.bf16.mxu1 %v13198_v8  ;;  %v8509_v2 = vld [vmem:[%s13201_s12 + $0x3e8] sm:$0xff] }
 0x35a   : > { %8519 = vst [vmem:[%s13355_s25 + $0x3b8] sm:$0xff] %v2576_v12  ;;  %8486 = vst [vmem:[%s13355_s25 + $0x330] sm:$0xff] %v2365_v14  ;;  %v2546_v28 = vmax.f32 %v2504_v17, 0.0  ;;  %v2334_v29 = vmax.f32 %v2288_v18, 0.0  ;;  %v10344_v31 = vpop.f32.mrb[42].mxu0  ;;  %10448 = vmatprep.mubr.f32.mxu0 %v2365_v14  ;;  %11906 = vmatpush3.bf16.msra.mxu0 %v13198_v8 }
 0x35b   : > { %8518 = vst [vmem:[%s13355_s25 + $0x3b0] sm:$0xff] %v2575_v21  ;;  %v2368_v32 = vadd.f32 %v8473_v15, %v2335_v23  ;;  %v2545_v33 = vmax.f32 %v2499_v27, 0.0  ;;  %v2303_v34 = vadd.f32 %v13602_v46, %v10344_v31  ;;  %v10400_v35 = vpop.f32.mrb[42].mxu1  ;;  %10504 = vmatprep.mubr.f32.mxu1 %v2575_v21  ;;  %v2297_v36 = vpop.f32.mrb[43].mxu0  ;;  %10449 = vmatmul.mubr.f32.gmra.mrb[54].mxu0 %v2366_v6  ;;  %v8479_v23 = vld [vmem:[%s13201_s12 + $0x378] sm:$0xff]  ;;  %v8478_v31 = vld [vmem:[%s13201_s12 + $0x370] sm:$0xff] }
 0x35c   : > { %v2578_v37 = vadd.f32 %v8505_v24, %v2546_v28  ;;  %v2367_v38 = vadd.f32 %v8472_v26, %v2334_v29  ;;  %v2514_v40 = vadd.f32 %v13602_v46, %v10400_v35  ;;  %v2298_v41 = vadd.f32 %v13602_v46, %v2297_v36  ;;  %v2508_v42 = vpop.f32.mrb[43].mxu1  ;;  %10505 = vmatmul.mubr.f32.gmra.mrb[54].mxu1 %v2576_v12  ;;  %v8510_v35 = vld [vmem:[%s13201_s12 + $0x3f0] sm:$0xff] }
 0x35d   : > { %8489 = vst [vmem:[%s13355_s25 + $0x348] sm:$0xff] %v2368_v32  ;;  %v2577_v56 = vadd.f32 %v8504_v30, %v2545_v33  ;;  %v2337_v43 = vmax.f32 %v2303_v34, 0.0  ;;  %v2509_v47 = vadd.f32 %v13602_v46, %v2508_v42  ;;  %11938 = vmatpush3.bf16.msra.mxu1 %v13198_v8  ;;  %11908 = vmatprep.subr.bf16.mxu0 %v13215_v13  ;;  %v8511_v30 = vld [vmem:[%s13201_s12 + $0x3f8] sm:$0xff] }
 0x35e   : > { %8521 = vst [vmem:[%s13355_s25 + $0x3c8] sm:$0xff] %v2578_v37  ;;  %8488 = vst [vmem:[%s13355_s25 + $0x340] sm:$0xff] %v2367_v38  ;;  %v2548_v48 = vmax.f32 %v2514_v40, 0.0  ;;  %v2336_v49 = vmax.f32 %v2298_v41, 0.0  ;;  %v10347_v51 = vpop.f32.mrb[44].mxu0  ;;  %10451 = vmatprep.mubr.f32.mxu0 %v2367_v38  ;;  %11940 = vmatprep.subr.bf16.mxu1 %v13215_v13 }
 0x35f   : > { %8520 = vst [vmem:[%s13355_s25 + $0x3c0] sm:$0xff] %v2577_v56  ;;  %v2370_v52 = vadd.f32 %v8475_v39, %v2337_v43  ;;  %v2547_v53 = vmax.f32 %v2509_v47, 0.0  ;;  %v2313_v54 = vadd.f32 %v13602_v46, %v10347_v51  ;;  %v10403_v55 = vpop.f32.mrb[44].mxu1  ;;  %10507 = vmatprep.mubr.f32.mxu1 %v2577_v56  ;;  %v2307_v57 = vpop.f32.mrb[45].mxu0  ;;  %10452 = vmatmul.mubr.f32.gmra.mrb[56].mxu0 %v2368_v32  ;;  %v8528_v51 = vld [vmem:[%s13201_s12 + $0x400] sm:$0xff] }
 0x360   : > { %v2580_v58 = vadd.f32 %v8507_v44, %v2548_v48  ;;  %v2369_v59 = vadd.f32 %v8474_v45, %v2336_v49  ;;  %v2524_v61 = vadd.f32 %v13602_v46, %v10403_v55  ;;  %v2308_v62 = vadd.f32 %v13602_v46, %v2307_v57  ;;  %v2518_v63 = vpop.f32.mrb[45].mxu1  ;;  %10508 = vmatmul.mubr.f32.gmra.mrb[56].mxu1 %v2578_v37  ;;  %v8529_v44 = vld [vmem:[%s13201_s12 + $0x408] sm:$0xff]  ;;  %v8560_v55 = vld [vmem:[%s13201_s12 + $0x480] sm:$0xff] }
 0x361   : > { %8491 = vst [vmem:[%s13355_s25 + $0x358] sm:$0xff] %v2370_v52  ;;  %v2579_v0 = vadd.f32 %v8506_v50, %v2547_v53  ;;  %v2339_v1 = vmax.f32 %v2313_v54, 0.0  ;;  %v2519_v6 = vadd.f32 %v13602_v46, %v2518_v63  ;;  %11910 = vmatpush3.bf16.msra.mxu0 %v13215_v13  ;;  %11942 = vmatpush3.bf16.msra.mxu1 %v13215_v13  ;;  %v8561_v50 = vld [vmem:[%s13201_s12 + $0x488] sm:$0xff] }
 0x362   : > { %8523 = vst [vmem:[%s13355_s25 + $0x3d8] sm:$0xff] %v2580_v58  ;;  %8490 = vst [vmem:[%s13355_s25 + $0x350] sm:$0xff] %v2369_v59  ;;  %v2550_v7 = vmax.f32 %v2524_v61, 0.0  ;;  %v2338_v9 = vmax.f32 %v2308_v62, 0.0  ;;  %v10350_v11 = vpop.f32.mrb[46].mxu0  ;;  %10454 = vmatprep.mubr.f32.mxu0 %v2369_v59  ;;  %11912 = vmatprep.subr.bf16.mxu0 %v13227_v16 }
 0x363   : > { %8522 = vst [vmem:[%s13355_s25 + $0x3d0] sm:$0xff] %v2579_v0  ;;  %v2372_v12 = vadd.f32 %v8477_v60, %v2339_v1  ;;  %v2549_v14 = vmax.f32 %v2519_v6, 0.0  ;;  %v2323_v15 = vadd.f32 %v13602_v46, %v10350_v11  ;;  %v10406_v17 = vpop.f32.mrb[46].mxu1  ;;  %10510 = vmatprep.mubr.f32.mxu1 %v2579_v0  ;;  %v2317_v18 = vpop.f32.mrb[47].mxu0  ;;  %10455 = vmatmul.mubr.f32.gmra.mrb[58].mxu0 %v2370_v52  ;;  %v8531_v1 = vld [vmem:[%s13201_s12 + $0x418] sm:$0xff]  ;;  %v8530_v11 = vld [vmem:[%s13201_s12 + $0x410] sm:$0xff] }
 0x364   : > { %v2582_v20 = vadd.f32 %v8509_v2, %v2550_v7  ;;  %v2371_v21 = vadd.f32 %v8476_v4, %v2338_v9  ;;  %v2534_v24 = vadd.f32 %v13602_v46, %v10406_v17  ;;  %v2318_v26 = vadd.f32 %v13602_v46, %v2317_v18  ;;  %v2528_v27 = vpop.f32.mrb[47].mxu1  ;;  %10511 = vmatmul.mubr.f32.gmra.mrb[58].mxu1 %v2580_v58  ;;  %v8562_v17 = vld [vmem:[%s13201_s12 + $0x490] sm:$0xff] }
 0x365   : > { %8493 = vst [vmem:[%s13355_s25 + $0x368] sm:$0xff] %v2372_v12  ;;  %v2581_v28 = vadd.f32 %v8508_v10, %v2549_v14  ;;  %v2341_v29 = vmax.f32 %v2323_v15, 0.0  ;;  %v2529_v32 = vadd.f32 %v13602_v46, %v2528_v27  ;;  %11944 = vmatprep.subr.bf16.mxu1 %v13227_v16  ;;  %11914 = vmatpush3.bf16.msra.mxu0 %v13227_v16  ;;  %v8563_v10 = vld [vmem:[%s13201_s12 + $0x498] sm:$0xff] }
 0x366   : > { %8525 = vst [vmem:[%s13355_s25 + $0x3e8] sm:$0xff] %v2582_v20  ;;  %8492 = vst [vmem:[%s13355_s25 + $0x360] sm:$0xff] %v2371_v21  ;;  %v2552_v33 = vmax.f32 %v2534_v24, 0.0  ;;  %v2340_v34 = vmax.f32 %v2318_v26, 0.0  ;;  %10457 = vmatprep.mubr.f32.mxu0 %v2371_v21  ;;  %11946 = vmatpush3.bf16.msra.mxu1 %v13227_v16 }
 0x367   : > { %8524 = vst [vmem:[%s13355_s25 + $0x3e0] sm:$0xff] %v2581_v28  ;;  %v2374_v36 = vadd.f32 %v8479_v23, %v2341_v29  ;;  %v2551_v37 = vmax.f32 %v2529_v32, 0.0  ;;  %10513 = vmatprep.mubr.f32.mxu1 %v2581_v28  ;;  %10458 = vmatmul.mubr.f32.gmra.mrb[60].mxu0 %v2372_v12  ;;  %v8533_v29 = vld [vmem:[%s13201_s12 + $0x428] sm:$0xff] }
 0x368   : > { %v2584_v38 = vadd.f32 %v8511_v30, %v2552_v33  ;;  %v2373_v39 = vadd.f32 %v8478_v31, %v2340_v34  ;;  %10514 = vmatmul.mubr.f32.gmra.mrb[60].mxu1 %v2582_v20  ;;  %11916 = vmatprep.subr.bf16.mxu0 %v13239_v19 }
 0x369   : > { %8495 = vst [vmem:[%s13355_s25 + $0x378] sm:$0xff] %v2374_v36  ;;  %v2583_v40 = vadd.f32 %v8510_v35, %v2551_v37  ;;  %11948 = vmatprep.subr.bf16.mxu1 %v13239_v19  ;;  %11918 = vmatpush3.bf16.msra.mxu0 %v13239_v19  ;;  %v8565_v35 = vld [vmem:[%s13201_s12 + $0x4a8] sm:$0xff] }
 0x36a   : > { %8527 = vst [vmem:[%s13355_s25 + $0x3f8] sm:$0xff] %v2584_v38  ;;  %8494 = vst [vmem:[%s13355_s25 + $0x370] sm:$0xff] %v2373_v39  ;;  %10460 = vmatprep.mubr.f32.mxu0 %v2373_v39  ;;  %11950 = vmatpush3.bf16.msra.mxu1 %v13239_v19 }
 0x36b   : > { %8526 = vst [vmem:[%s13355_s25 + $0x3f0] sm:$0xff] %v2583_v40  ;;  %10516 = vmatprep.mubr.f32.mxu1 %v2583_v40  ;;  %10461 = vmatmul.mubr.f32.gmra.mrb[62].mxu0 %v2374_v36  ;;  %v8532_v36 = vld [vmem:[%s13201_s12 + $0x420] sm:$0xff] }
 0x36c   : > { %10517 = vmatmul.mubr.f32.gmra.mrb[62].mxu1 %v2584_v38  ;;  %11920 = vmatprep.subr.bf16.mxu0 %v13251_v22  ;;  %v8564_v40 = vld [vmem:[%s13201_s12 + $0x4a0] sm:$0xff] }
 0x36d   : > { %11952 = vmatprep.subr.bf16.mxu1 %v13251_v22  ;;  %11922 = vmatpush3.bf16.msra.mxu0 %v13251_v22 }
 0x36e   : > { %11954 = vmatpush3.bf16.msra.mxu1 %v13251_v22  ;;  %11924 = vmatprep.subr.bf16.mxu0 %v13263_v25 }
 0x36f   : > { %11956 = vmatprep.subr.bf16.mxu1 %v13263_v25 }
 0x371   : > { %11926 = vmatpush3.bf16.msra.mxu0 %v13263_v25 }
 0x372   : > { %11958 = vmatpush3.bf16.msra.mxu1 %v13263_v25  ;;  %11960 = vmatprep.subr.bf16.mxu0 %v13177_v3 }
 0x373   : > { %11992 = vmatprep.subr.bf16.mxu1 %v13177_v3 }
 0x422   : > { %v10441_v41 = vpop.f32.mrb[48].mxu0 }
 0x423   : > { %v2673_v42 = vadd.f32 %v13602_v46, %v10441_v41  ;;  %v10497_v56 = vpop.f32.mrb[48].mxu1  ;;  %v2667_v43 = vpop.f32.mrb[49].mxu0 }
 0x424   : > { %v2884_v45 = vadd.f32 %v13602_v46, %v10497_v56  ;;  %v2668_v47 = vadd.f32 %v13602_v46, %v2667_v43  ;;  %v2878_v48 = vpop.f32.mrb[49].mxu1 }
 0x425   : > { %v2747_v49 = vmax.f32 %v2673_v42, 0.0  ;;  %v2879_v52 = vadd.f32 %v13602_v46, %v2878_v48 }
 0x426   : > { %v2958_v53 = vmax.f32 %v2884_v45, 0.0  ;;  %v2746_v54 = vmax.f32 %v2668_v47, 0.0  ;;  %v10444_v57 = vpop.f32.mrb[50].mxu0 }
 0x427   : > { %v2780_v58 = vadd.f32 %v8529_v44, %v2747_v49  ;;  %v2957_v59 = vmax.f32 %v2879_v52, 0.0  ;;  %v2683_v60 = vadd.f32 %v13602_v46, %v10444_v57  ;;  %v10500_v61 = vpop.f32.mrb[50].mxu1  ;;  %v2677_v62 = vpop.f32.mrb[51].mxu0  ;;  %v8535_v49 = vld [vmem:[%s13201_s12 + $0x438] sm:$0xff]  ;;  %v8534_v57 = vld [vmem:[%s13201_s12 + $0x430] sm:$0xff] }
 0x428   : > { %v2990_v63 = vadd.f32 %v8561_v50, %v2958_v53  ;;  %v2779_v0 = vadd.f32 %v8528_v51, %v2746_v54  ;;  %v2894_v2 = vadd.f32 %v13602_v46, %v10500_v61  ;;  %v2678_v4 = vadd.f32 %v13602_v46, %v2677_v62  ;;  %v2888_v6 = vpop.f32.mrb[51].mxu1  ;;  %v8566_v61 = vld [vmem:[%s13201_s12 + $0x4b0] sm:$0xff] }
 0x429   : > { %8545 = vst [vmem:[%s13355_s25 + $0x408] sm:$0xff] %v2780_v58  ;;  %v2989_v7 = vadd.f32 %v8560_v55, %v2957_v59  ;;  %v2749_v9 = vmax.f32 %v2683_v60, 0.0  ;;  %v2889_v12 = vadd.f32 %v13602_v46, %v2888_v6  ;;  %v8567_v55 = vld [vmem:[%s13201_s12 + $0x4b8] sm:$0xff] }
 0x42a   : > { %8577 = vst [vmem:[%s13355_s25 + $0x488] sm:$0xff] %v2990_v63  ;;  %8544 = vst [vmem:[%s13355_s25 + $0x400] sm:$0xff] %v2779_v0  ;;  %v2960_v14 = vmax.f32 %v2894_v2, 0.0  ;;  %v2748_v15 = vmax.f32 %v2678_v4, 0.0  ;;  %v10447_v18 = vpop.f32.mrb[52].mxu0  ;;  %10551 = vmatprep.mubr.f32.mxu0 %v2779_v0 }
 0x42b   : > { %8576 = vst [vmem:[%s13355_s25 + $0x480] sm:$0xff] %v2989_v7  ;;  %v2782_v20 = vadd.f32 %v8531_v1, %v2749_v9  ;;  %v2959_v21 = vmax.f32 %v2889_v12, 0.0  ;;  %v2693_v23 = vadd.f32 %v13602_v46, %v10447_v18  ;;  %v10503_v24 = vpop.f32.mrb[52].mxu1  ;;  %10607 = vmatprep.mubr.f32.mxu1 %v2989_v7  ;;  %v2687_v26 = vpop.f32.mrb[53].mxu0  ;;  %10552 = vmatmul.mubr.f32.vlgmr.msra.gmra.mrb[64].mxu0 %v2780_v58  ;;  %v8537_v9 = vld [vmem:[%s13201_s12 + $0x448] sm:$0xff]  ;;  %v8536_v18 = vld [vmem:[%s13201_s12 + $0x440] sm:$0xff] }
 0x42c   : > { %v2992_v27 = vadd.f32 %v8563_v10, %v2960_v14  ;;  %v2781_v28 = vadd.f32 %v8530_v11, %v2748_v15  ;;  %v2904_v30 = vadd.f32 %v13602_v46, %v10503_v24  ;;  %v2688_v31 = vadd.f32 %v13602_v46, %v2687_v26  ;;  %v2898_v32 = vpop.f32.mrb[53].mxu1  ;;  %10608 = vmatmul.mubr.f32.vlgmr.msra.gmra.mrb[64].mxu1 %v2990_v63  ;;  %v8568_v24 = vld [vmem:[%s13201_s12 + $0x4c0] sm:$0xff] }
 0x42d   : > { %8547 = vst [vmem:[%s13355_s25 + $0x418] sm:$0xff] %v2782_v20  ;;  %v2991_v33 = vadd.f32 %v8562_v17, %v2959_v21  ;;  %v2751_v34 = vmax.f32 %v2693_v23, 0.0  ;;  %v2899_v37 = vadd.f32 %v13602_v46, %v2898_v32  ;;  %11962 = vmatpush3.bf16.msra.mxu0 %v13177_v3  ;;  %11994 = vmatpush3.bf16.msra.mxu1 %v13177_v3  ;;  %v8569_v17 = vld [vmem:[%s13201_s12 + $0x4c8] sm:$0xff] }
 0x42e   : > { %8579 = vst [vmem:[%s13355_s25 + $0x498] sm:$0xff] %v2992_v27  ;;  %8546 = vst [vmem:[%s13355_s25 + $0x410] sm:$0xff] %v2781_v28  ;;  %v2962_v38 = vmax.f32 %v2904_v30, 0.0  ;;  %v2750_v39 = vmax.f32 %v2688_v31, 0.0  ;;  %v10450_v41 = vpop.f32.mrb[54].mxu0  ;;  %10554 = vmatprep.mubr.f32.mxu0 %v2781_v28  ;;  %11964 = vmatprep.subr.bf16.mxu0 %v13184_v5 }
 0x42f   : > { %8578 = vst [vmem:[%s13355_s25 + $0x490] sm:$0xff] %v2991_v33  ;;  %v2784_v42 = vadd.f32 %v8533_v29, %v2751_v34  ;;  %v2961_v56 = vmax.f32 %v2899_v37, 0.0  ;;  %v2703_v43 = vadd.f32 %v13602_v46, %v10450_v41  ;;  %v10506_v44 = vpop.f32.mrb[54].mxu1  ;;  %10610 = vmatprep.mubr.f32.mxu1 %v2991_v33  ;;  %v2697_v45 = vpop.f32.mrb[55].mxu0  ;;  %10555 = vmatmul.mubr.f32.gmra.mrb[66].mxu0 %v2782_v20  ;;  %v8539_v34 = vld [vmem:[%s13201_s12 + $0x458] sm:$0xff]  ;;  %v8538_v41 = vld [vmem:[%s13201_s12 + $0x450] sm:$0xff] }
 0x430   : > { %v2994_v47 = vadd.f32 %v8565_v35, %v2962_v38  ;;  %v2783_v48 = vadd.f32 %v8532_v36, %v2750_v39  ;;  %v2914_v50 = vadd.f32 %v13602_v46, %v10506_v44  ;;  %v2698_v51 = vadd.f32 %v13602_v46, %v2697_v45  ;;  %v2908_v52 = vpop.f32.mrb[55].mxu1  ;;  %10611 = vmatmul.mubr.f32.gmra.mrb[66].mxu1 %v2992_v27  ;;  %v8570_v44 = vld [vmem:[%s13201_s12 + $0x4d0] sm:$0xff] }
 0x431   : > { %8549 = vst [vmem:[%s13355_s25 + $0x428] sm:$0xff] %v2784_v42  ;;  %v2993_v53 = vadd.f32 %v8564_v40, %v2961_v56  ;;  %v2753_v54 = vmax.f32 %v2703_v43, 0.0  ;;  %v2909_v58 = vadd.f32 %v13602_v46, %v2908_v52  ;;  %11996 = vmatprep.subr.bf16.mxu1 %v13184_v5  ;;  %11966 = vmatpush3.bf16.msra.mxu0 %v13184_v5  ;;  %v8571_v40 = vld [vmem:[%s13201_s12 + $0x4d8] sm:$0xff] }
 0x432   : > { %8581 = vst [vmem:[%s13355_s25 + $0x4a8] sm:$0xff] %v2994_v47  ;;  %8548 = vst [vmem:[%s13355_s25 + $0x420] sm:$0xff] %v2783_v48  ;;  %v2964_v59 = vmax.f32 %v2914_v50, 0.0  ;;  %v2752_v60 = vmax.f32 %v2698_v51, 0.0  ;;  %v10453_v62 = vpop.f32.mrb[56].mxu0  ;;  %10557 = vmatprep.mubr.f32.mxu0 %v2783_v48  ;;  %11998 = vmatpush3.bf16.msra.mxu1 %v13184_v5 }
 0x433   : > { %8580 = vst [vmem:[%s13355_s25 + $0x4a0] sm:$0xff] %v2993_v53  ;;  %v2786_v63 = vadd.f32 %v8535_v49, %v2753_v54  ;;  %v2963_v0 = vmax.f32 %v2909_v58, 0.0  ;;  %v2713_v1 = vadd.f32 %v13602_v46, %v10453_v62  ;;  %v10509_v2 = vpop.f32.mrb[56].mxu1  ;;  %10613 = vmatprep.mubr.f32.mxu1 %v2993_v53  ;;  %v2707_v4 = vpop.f32.mrb[57].mxu0  ;;  %10558 = vmatmul.mubr.f32.gmra.mrb[68].mxu0 %v2784_v42  ;;  %v8541_v54 = vld [vmem:[%s13201_s12 + $0x468] sm:$0xff]  ;;  %v8540_v62 = vld [vmem:[%s13201_s12 + $0x460] sm:$0xff] }
 0x434   : > { %v2996_v6 = vadd.f32 %v8567_v55, %v2964_v59  ;;  %v2785_v7 = vadd.f32 %v8534_v57, %v2752_v60  ;;  %v2924_v10 = vadd.f32 %v13602_v46, %v10509_v2  ;;  %v2708_v11 = vadd.f32 %v13602_v46, %v2707_v4  ;;  %v2918_v12 = vpop.f32.mrb[57].mxu1  ;;  %10614 = vmatmul.mubr.f32.gmra.mrb[68].mxu1 %v2994_v47  ;;  %v8572_v2 = vld [vmem:[%s13201_s12 + $0x4e0] sm:$0xff] }
 0x435   : > { %8551 = vst [vmem:[%s13355_s25 + $0x438] sm:$0xff] %v2786_v63  ;;  %v2995_v14 = vadd.f32 %v8566_v61, %v2963_v0  ;;  %v2755_v15 = vmax.f32 %v2713_v1, 0.0  ;;  %v2919_v20 = vadd.f32 %v13602_v46, %v2918_v12  ;;  %11968 = vmatprep.subr.bf16.mxu0 %v13198_v8  ;;  %12000 = vmatprep.subr.bf16.mxu1 %v13198_v8  ;;  %v8573_v61 = vld [vmem:[%s13201_s12 + $0x4e8] sm:$0xff] }
 0x436   : > { %8583 = vst [vmem:[%s13355_s25 + $0x4b8] sm:$0xff] %v2996_v6  ;;  %8550 = vst [vmem:[%s13355_s25 + $0x430] sm:$0xff] %v2785_v7  ;;  %v2966_v21 = vmax.f32 %v2924_v10, 0.0  ;;  %v2754_v23 = vmax.f32 %v2708_v11, 0.0  ;;  %v10456_v26 = vpop.f32.mrb[58].mxu0  ;;  %10560 = vmatprep.mubr.f32.mxu0 %v2785_v7  ;;  %11970 = vmatpush3.bf16.msra.mxu0 %v13198_v8 }
 0x437   : > { %8582 = vst [vmem:[%s13355_s25 + $0x4b0] sm:$0xff] %v2995_v14  ;;  %v2788_v27 = vadd.f32 %v8537_v9, %v2755_v15  ;;  %v2965_v28 = vmax.f32 %v2919_v20, 0.0  ;;  %v2723_v29 = vadd.f32 %v13602_v46, %v10456_v26  ;;  %v10512_v30 = vpop.f32.mrb[58].mxu1  ;;  %10616 = vmatprep.mubr.f32.mxu1 %v2995_v14  ;;  %v2717_v31 = vpop.f32.mrb[59].mxu0  ;;  %10561 = vmatmul.mubr.f32.gmra.mrb[70].mxu0 %v2786_v63  ;;  %v8543_v15 = vld [vmem:[%s13201_s12 + $0x478] sm:$0xff]  ;;  %v8542_v26 = vld [vmem:[%s13201_s12 + $0x470] sm:$0xff] }
 0x438   : > { %v2998_v32 = vadd.f32 %v8569_v17, %v2966_v21  ;;  %v2787_v33 = vadd.f32 %v8536_v18, %v2754_v23  ;;  %v2934_v35 = vadd.f32 %v13602_v46, %v10512_v30  ;;  %v2718_v36 = vadd.f32 %v13602_v46, %v2717_v31  ;;  %v2928_v37 = vpop.f32.mrb[59].mxu1  ;;  %10617 = vmatmul.mubr.f32.gmra.mrb[70].mxu1 %v2996_v6  ;;  %v8574_v30 = vld [vmem:[%s13201_s12 + $0x4f0] sm:$0xff] }
 0x439   : > { %8553 = vst [vmem:[%s13355_s25 + $0x448] sm:$0xff] %v2788_v27  ;;  %v2997_v38 = vadd.f32 %v8568_v24, %v2965_v28  ;;  %v2757_v39 = vmax.f32 %v2723_v29, 0.0  ;;  %v2929_v42 = vadd.f32 %v13602_v46, %v2928_v37  ;;  %12002 = vmatpush3.bf16.msra.mxu1 %v13198_v8  ;;  %11972 = vmatprep.subr.bf16.mxu0 %v13215_v13  ;;  %v8575_v24 = vld [vmem:[%s13201_s12 + $0x4f8] sm:$0xff] }
 0x43a   : > { %8585 = vst [vmem:[%s13355_s25 + $0x4c8] sm:$0xff] %v2998_v32  ;;  %8552 = vst [vmem:[%s13355_s25 + $0x440] sm:$0xff] %v2787_v33  ;;  %v2968_v56 = vmax.f32 %v2934_v35, 0.0  ;;  %v2756_v43 = vmax.f32 %v2718_v36, 0.0  ;;  %v10459_v45 = vpop.f32.mrb[60].mxu0  ;;  %10563 = vmatprep.mubr.f32.mxu0 %v2787_v33  ;;  %12004 = vmatprep.subr.bf16.mxu1 %v13215_v13 }
 0x43b   : > { %8584 = vst [vmem:[%s13355_s25 + $0x4c0] sm:$0xff] %v2997_v38  ;;  %v2790_v47 = vadd.f32 %v8539_v34, %v2757_v39  ;;  %v2967_v48 = vmax.f32 %v2929_v42, 0.0  ;;  %v2733_v49 = vadd.f32 %v13602_v46, %v10459_v45  ;;  %v10515_v50 = vpop.f32.mrb[60].mxu1  ;;  %10619 = vmatprep.mubr.f32.mxu1 %v2997_v38  ;;  %v2727_v51 = vpop.f32.mrb[61].mxu0  ;;  %10564 = vmatmul.mubr.f32.gmra.mrb[72].mxu0 %v2788_v27  ;;  %v13863_v36 = vld [vmem:[%s15696_s2] ss:$0 sm:$0xff] }
 0x43c   : > { %v3000_v52 = vadd.f32 %v8571_v40, %v2968_v56  ;;  %v2789_v53 = vadd.f32 %v8538_v41, %v2756_v43  ;;  %v2944_v55 = vadd.f32 %v13602_v46, %v10515_v50  ;;  %v2728_v57 = vadd.f32 %v13602_v46, %v2727_v51  ;;  %v2938_v58 = vpop.f32.mrb[61].mxu1  ;;  %10620 = vmatmul.mubr.f32.gmra.mrb[72].mxu1 %v2998_v32  ;;  %v8593_v40 = vld [vmem:[%s13201_s12 + $0x508] sm:$0xff]  ;;  %v8592_v45 = vld [vmem:[%s13201_s12 + $0x500] sm:$0xff] }
 0x43d   : > { %8555 = vst [vmem:[%s13355_s25 + $0x458] sm:$0xff] %v2790_v47  ;;  %v2999_v59 = vadd.f32 %v8570_v44, %v2967_v48  ;;  %v2759_v60 = vmax.f32 %v2733_v49, 0.0  ;;  %v2939_v63 = vadd.f32 %v13602_v46, %v2938_v58  ;;  %11974 = vmatpush3.bf16.msra.mxu0 %v13215_v13  ;;  %12006 = vmatpush3.bf16.msra.mxu1 %v13215_v13  ;;  %v8625_v44 = vld [vmem:[%s13201_s12 + $0x588] sm:$0xff]  ;;  %v8624_v50 = vld [vmem:[%s13201_s12 + $0x580] sm:$0xff] }
 0x43e   : > { %8587 = vst [vmem:[%s13355_s25 + $0x4d8] sm:$0xff] %v3000_v52  ;;  %8554 = vst [vmem:[%s13355_s25 + $0x450] sm:$0xff] %v2789_v53  ;;  %v2970_v0 = vmax.f32 %v2944_v55, 0.0  ;;  %v2758_v1 = vmax.f32 %v2728_v57, 0.0  ;;  %v10462_v4 = vpop.f32.mrb[62].mxu0  ;;  %10566 = vmatprep.mubr.f32.mxu0 %v2789_v53  ;;  %11976 = vmatprep.subr.bf16.mxu0 %v13227_v16 }
 0x43f   : > { %8586 = vst [vmem:[%s13355_s25 + $0x4d0] sm:$0xff] %v2999_v59  ;;  %v2792_v6 = vadd.f32 %v8541_v54, %v2759_v60  ;;  %v2969_v7 = vmax.f32 %v2939_v63, 0.0  ;;  %v2743_v9 = vadd.f32 %v13602_v46, %v10462_v4  ;;  %v10518_v10 = vpop.f32.mrb[62].mxu1  ;;  %10622 = vmatprep.mubr.f32.mxu1 %v2999_v59  ;;  %v2737_v11 = vpop.f32.mrb[63].mxu0  ;;  %10567 = vmatmul.mubr.f32.gmra.mrb[74].mxu0 %v2790_v47  ;;  %v8595_v60 = vld [vmem:[%s13201_s12 + $0x518] sm:$0xff]  ;;  %v8594_v4 = vld [vmem:[%s13201_s12 + $0x510] sm:$0xff] }
 0x440   : > { %v3002_v12 = vadd.f32 %v8573_v61, %v2970_v0  ;;  %v2791_v14 = vadd.f32 %v8540_v62, %v2758_v1  ;;  %v2954_v17 = vadd.f32 %v13602_v46, %v10518_v10  ;;  %v2738_v18 = vadd.f32 %v13602_v46, %v2737_v11  ;;  %v2948_v20 = vpop.f32.mrb[63].mxu1  ;;  %10623 = vmatmul.mubr.f32.gmra.mrb[74].mxu1 %v3000_v52  ;;  %v8626_v10 = vld [vmem:[%s13201_s12 + $0x590] sm:$0xff] }
 0x441   : > { %8557 = vst [vmem:[%s13355_s25 + $0x468] sm:$0xff] %v2792_v6  ;;  %v3001_v21 = vadd.f32 %v8572_v2, %v2969_v7  ;;  %v2761_v23 = vmax.f32 %v2743_v9, 0.0  ;;  %v2949_v27 = vadd.f32 %v13602_v46, %v2948_v20  ;;  %12008 = vmatprep.subr.bf16.mxu1 %v13227_v16  ;;  %11978 = vmatpush3.bf16.msra.mxu0 %v13227_v16  ;;  %v8627_v2 = vld [vmem:[%s13201_s12 + $0x598] sm:$0xff] }
 0x442   : > { %8589 = vst [vmem:[%s13355_s25 + $0x4e8] sm:$0xff] %v3002_v12  ;;  %8556 = vst [vmem:[%s13355_s25 + $0x460] sm:$0xff] %v2791_v14  ;;  %v2972_v28 = vmax.f32 %v2954_v17, 0.0  ;;  %v2760_v29 = vmax.f32 %v2738_v18, 0.0  ;;  %10569 = vmatprep.mubr.f32.mxu0 %v2791_v14  ;;  %12010 = vmatpush3.bf16.msra.mxu1 %v13227_v16 }
 0x443   : > { %8588 = vst [vmem:[%s13355_s25 + $0x4e0] sm:$0xff] %v3001_v21  ;;  %v2794_v31 = vadd.f32 %v8543_v15, %v2761_v23  ;;  %v2971_v32 = vmax.f32 %v2949_v27, 0.0  ;;  %10625 = vmatprep.mubr.f32.mxu1 %v3001_v21  ;;  %10570 = vmatmul.mubr.f32.gmra.mrb[76].mxu0 %v2792_v6  ;;  %v8597_v23 = vld [vmem:[%s13201_s12 + $0x528] sm:$0xff] }
 0x444   : > { %v3004_v46 = vadd.f32 %v8575_v24, %v2972_v28  ;;  %v2793_v33 = vadd.f32 %v8542_v26, %v2760_v29  ;;  %10626 = vmatmul.mubr.f32.gmra.mrb[76].mxu1 %v3002_v12  ;;  %11980 = vmatprep.subr.bf16.mxu0 %v13239_v19 }
 0x445   : > { %8559 = vst [vmem:[%s13355_s25 + $0x478] sm:$0xff] %v2794_v31  ;;  %v3003_v34 = vadd.f32 %v8574_v30, %v2971_v32  ;;  %12012 = vmatprep.subr.bf16.mxu1 %v13239_v19  ;;  %11982 = vmatpush3.bf16.msra.mxu0 %v13239_v19  ;;  %v8629_v30 = vld [vmem:[%s13201_s12 + $0x5a8] sm:$0xff] }
 0x446   : > { %8591 = vst [vmem:[%s13355_s25 + $0x4f8] sm:$0xff] %v3004_v46  ;;  %8558 = vst [vmem:[%s13355_s25 + $0x470] sm:$0xff] %v2793_v33  ;;  %10572 = vmatprep.mubr.f32.mxu0 %v2793_v33  ;;  %12014 = vmatpush3.bf16.msra.mxu1 %v13239_v19 }
 0x447   : > { %8590 = vst [vmem:[%s13355_s25 + $0x4f0] sm:$0xff] %v3003_v34  ;;  %10628 = vmatprep.mubr.f32.mxu1 %v3003_v34  ;;  %10573 = vmatmul.mubr.f32.gmra.mrb[78].mxu0 %v2794_v31  ;;  %v8596_v31 = vld [vmem:[%s13201_s12 + $0x520] sm:$0xff] }
 0x448   : > { %10629 = vmatmul.mubr.f32.gmra.mrb[78].mxu1 %v3004_v46  ;;  %11984 = vmatprep.subr.bf16.mxu0 %v13251_v22  ;;  %v8628_v34 = vld [vmem:[%s13201_s12 + $0x5a0] sm:$0xff] }
 0x449   : > { %12016 = vmatprep.subr.bf16.mxu1 %v13251_v22  ;;  %11986 = vmatpush3.bf16.msra.mxu0 %v13251_v22 }
 0x44a   : > { %12018 = vmatpush3.bf16.msra.mxu1 %v13251_v22  ;;  %11988 = vmatprep.subr.bf16.mxu0 %v13263_v25 }
 0x44b   : > { %12020 = vmatprep.subr.bf16.mxu1 %v13263_v25 }
 0x44d   : > { %11990 = vmatpush3.bf16.msra.mxu0 %v13263_v25 }
 0x44e   : > { %12022 = vmatpush3.bf16.msra.mxu1 %v13263_v25  ;;  %12024 = vmatprep.subr.bf16.mxu0 %v13177_v3 }
 0x44f   : > { %12056 = vmatprep.subr.bf16.mxu1 %v13177_v3 }
 0x4fe   : > { %v10553_v35 = vpop.f32.mrb[64].mxu0 }
 0x4ff   : > { %v3093_v37 = vadd.f32 %v13863_v36, %v10553_v35  ;;  %v10609_v38 = vpop.f32.mrb[64].mxu1  ;;  %v3087_v39 = vpop.f32.mrb[65].mxu0 }
 0x500   : > { %v3304_v41 = vadd.f32 %v13863_v36, %v10609_v38  ;;  %v3088_v42 = vadd.f32 %v13863_v36, %v3087_v39  ;;  %v3298_v56 = vpop.f32.mrb[65].mxu1 }
 0x501   : > { %v3167_v43 = vmax.f32 %v3093_v37, 0.0  ;;  %v3299_v47 = vadd.f32 %v13863_v36, %v3298_v56 }
 0x502   : > { %v3378_v48 = vmax.f32 %v3304_v41, 0.0  ;;  %v3166_v49 = vmax.f32 %v3088_v42, 0.0  ;;  %v10556_v51 = vpop.f32.mrb[66].mxu0 }
 0x503   : > { %v3200_v52 = vadd.f32 %v8593_v40, %v3167_v43  ;;  %v3377_v53 = vmax.f32 %v3299_v47, 0.0  ;;  %v3103_v54 = vadd.f32 %v13863_v36, %v10556_v51  ;;  %v10612_v55 = vpop.f32.mrb[66].mxu1  ;;  %v3097_v57 = vpop.f32.mrb[67].mxu0  ;;  %v8599_v43 = vld [vmem:[%s13201_s12 + $0x538] sm:$0xff]  ;;  %v8598_v51 = vld [vmem:[%s13201_s12 + $0x530] sm:$0xff] }
 0x504   : > { %v3410_v58 = vadd.f32 %v8625_v44, %v3378_v48  ;;  %v3199_v59 = vadd.f32 %v8592_v45, %v3166_v49  ;;  %v3314_v61 = vadd.f32 %v13863_v36, %v10612_v55  ;;  %v3098_v62 = vadd.f32 %v13863_v36, %v3097_v57  ;;  %v3308_v63 = vpop.f32.mrb[67].mxu1  ;;  %v8630_v55 = vld [vmem:[%s13201_s12 + $0x5b0] sm:$0xff] }
 0x505   : > { %8609 = vst [vmem:[%s13355_s25 + $0x508] sm:$0xff] %v3200_v52  ;;  %v3409_v0 = vadd.f32 %v8624_v50, %v3377_v53  ;;  %v3169_v1 = vmax.f32 %v3103_v54, 0.0  ;;  %v3309_v6 = vadd.f32 %v13863_v36, %v3308_v63  ;;  %v8631_v50 = vld [vmem:[%s13201_s12 + $0x5b8] sm:$0xff] }
 0x506   : > { %8641 = vst [vmem:[%s13355_s25 + $0x588] sm:$0xff] %v3410_v58  ;;  %8608 = vst [vmem:[%s13355_s25 + $0x500] sm:$0xff] %v3199_v59  ;;  %v3380_v7 = vmax.f32 %v3314_v61, 0.0  ;;  %v3168_v9 = vmax.f32 %v3098_v62, 0.0  ;;  %v10559_v11 = vpop.f32.mrb[68].mxu0  ;;  %10663 = vmatprep.mubr.f32.mxu0 %v3199_v59 }
 0x507   : > { %8640 = vst [vmem:[%s13355_s25 + $0x580] sm:$0xff] %v3409_v0  ;;  %v3202_v12 = vadd.f32 %v8595_v60, %v3169_v1  ;;  %v3379_v14 = vmax.f32 %v3309_v6, 0.0  ;;  %v3113_v15 = vadd.f32 %v13863_v36, %v10559_v11  ;;  %v10615_v17 = vpop.f32.mrb[68].mxu1  ;;  %10719 = vmatprep.mubr.f32.mxu1 %v3409_v0  ;;  %v3107_v18 = vpop.f32.mrb[69].mxu0  ;;  %10664 = vmatmul.mubr.f32.vlgmr.msra.gmra.mrb[80].mxu0 %v3200_v52  ;;  %v8601_v1 = vld [vmem:[%s13201_s12 + $0x548] sm:$0xff]  ;;  %v8600_v11 = vld [vmem:[%s13201_s12 + $0x540] sm:$0xff] }
 0x508   : > { %v3412_v20 = vadd.f32 %v8627_v2, %v3380_v7  ;;  %v3201_v21 = vadd.f32 %v8594_v4, %v3168_v9  ;;  %v3324_v24 = vadd.f32 %v13863_v36, %v10615_v17  ;;  %v3108_v26 = vadd.f32 %v13863_v36, %v3107_v18  ;;  %v3318_v27 = vpop.f32.mrb[69].mxu1  ;;  %10720 = vmatmul.mubr.f32.vlgmr.msra.gmra.mrb[80].mxu1 %v3410_v58  ;;  %v8632_v17 = vld [vmem:[%s13201_s12 + $0x5c0] sm:$0xff] }
 0x509   : > { %8611 = vst [vmem:[%s13355_s25 + $0x518] sm:$0xff] %v3202_v12  ;;  %v3411_v28 = vadd.f32 %v8626_v10, %v3379_v14  ;;  %v3171_v29 = vmax.f32 %v3113_v15, 0.0  ;;  %v3319_v32 = vadd.f32 %v13863_v36, %v3318_v27  ;;  %12026 = vmatpush3.bf16.msra.mxu0 %v13177_v3  ;;  %12058 = vmatpush3.bf16.msra.mxu1 %v13177_v3  ;;  %v8633_v10 = vld [vmem:[%s13201_s12 + $0x5c8] sm:$0xff] }
 0x50a   : > { %8643 = vst [vmem:[%s13355_s25 + $0x598] sm:$0xff] %v3412_v20  ;;  %8610 = vst [vmem:[%s13355_s25 + $0x510] sm:$0xff] %v3201_v21  ;;  %v3382_v46 = vmax.f32 %v3324_v24, 0.0  ;;  %v3170_v33 = vmax.f32 %v3108_v26, 0.0  ;;  %v10562_v35 = vpop.f32.mrb[70].mxu0  ;;  %10666 = vmatprep.mubr.f32.mxu0 %v3201_v21  ;;  %12028 = vmatprep.subr.bf16.mxu0 %v13184_v5 }
 0x50b   : > { %8642 = vst [vmem:[%s13355_s25 + $0x590] sm:$0xff] %v3411_v28  ;;  %v3204_v37 = vadd.f32 %v8597_v23, %v3171_v29  ;;  %v3381_v38 = vmax.f32 %v3319_v32, 0.0  ;;  %v3123_v39 = vadd.f32 %v13863_v36, %v10562_v35  ;;  %v10618_v40 = vpop.f32.mrb[70].mxu1  ;;  %10722 = vmatprep.mubr.f32.mxu1 %v3411_v28  ;;  %v3117_v41 = vpop.f32.mrb[71].mxu0  ;;  %10667 = vmatmul.mubr.f32.gmra.mrb[82].mxu0 %v3202_v12  ;;  %v8603_v29 = vld [vmem:[%s13201_s12 + $0x558] sm:$0xff]  ;;  %v8602_v35 = vld [vmem:[%s13201_s12 + $0x550] sm:$0xff] }
 0x50c   : > { %v3414_v42 = vadd.f32 %v8629_v30, %v3382_v46  ;;  %v3203_v56 = vadd.f32 %v8596_v31, %v3170_v33  ;;  %v3334_v44 = vadd.f32 %v13863_v36, %v10618_v40  ;;  %v3118_v45 = vadd.f32 %v13863_v36, %v3117_v41  ;;  %v3328_v47 = vpop.f32.mrb[71].mxu1  ;;  %10723 = vmatmul.mubr.f32.gmra.mrb[82].mxu1 %v3412_v20  ;;  %v8634_v40 = vld [vmem:[%s13201_s12 + $0x5d0] sm:$0xff] }
 0x50d   : > { %8613 = vst [vmem:[%s13355_s25 + $0x528] sm:$0xff] %v3204_v37  ;;  %v3413_v48 = vadd.f32 %v8628_v34, %v3381_v38  ;;  %v3173_v49 = vmax.f32 %v3123_v39, 0.0  ;;  %v3329_v52 = vadd.f32 %v13863_v36, %v3328_v47  ;;  %12060 = vmatprep.subr.bf16.mxu1 %v13184_v5  ;;  %12030 = vmatpush3.bf16.msra.mxu0 %v13184_v5  ;;  %v8635_v34 = vld [vmem:[%s13201_s12 + $0x5d8] sm:$0xff] }
 0x50e   : > { %8645 = vst [vmem:[%s13355_s25 + $0x5a8] sm:$0xff] %v3414_v42  ;;  %8612 = vst [vmem:[%s13355_s25 + $0x520] sm:$0xff] %v3203_v56  ;;  %v3384_v53 = vmax.f32 %v3334_v44, 0.0  ;;  %v3172_v54 = vmax.f32 %v3118_v45, 0.0  ;;  %v10565_v57 = vpop.f32.mrb[72].mxu0  ;;  %10669 = vmatprep.mubr.f32.mxu0 %v3203_v56  ;;  %12062 = vmatpush3.bf16.msra.mxu1 %v13184_v5 }
 0x50f   : > { %8644 = vst [vmem:[%s13355_s25 + $0x5a0] sm:$0xff] %v3413_v48  ;;  %v3206_v58 = vadd.f32 %v8599_v43, %v3173_v49  ;;  %v3383_v59 = vmax.f32 %v3329_v52, 0.0  ;;  %v3133_v60 = vadd.f32 %v13863_v36, %v10565_v57  ;;  %v10621_v61 = vpop.f32.mrb[72].mxu1  ;;  %10725 = vmatprep.mubr.f32.mxu1 %v3413_v48  ;;  %v3127_v62 = vpop.f32.mrb[73].mxu0  ;;  %10670 = vmatmul.mubr.f32.gmra.mrb[84].mxu0 %v3204_v37  ;;  %v8605_v49 = vld [vmem:[%s13201_s12 + $0x568] sm:$0xff]  ;;  %v8604_v57 = vld [vmem:[%s13201_s12 + $0x560] sm:$0xff] }
 0x510   : > { %v3416_v63 = vadd.f32 %v8631_v50, %v3384_v53  ;;  %v3205_v0 = vadd.f32 %v8598_v51, %v3172_v54  ;;  %v3344_v2 = vadd.f32 %v13863_v36, %v10621_v61  ;;  %v3128_v4 = vadd.f32 %v13863_v36, %v3127_v62  ;;  %v3338_v6 = vpop.f32.mrb[73].mxu1  ;;  %10726 = vmatmul.mubr.f32.gmra.mrb[84].mxu1 %v3414_v42  ;;  %v8636_v61 = vld [vmem:[%s13201_s12 + $0x5e0] sm:$0xff] }
 0x511   : > { %8615 = vst [vmem:[%s13355_s25 + $0x538] sm:$0xff] %v3206_v58  ;;  %v3415_v7 = vadd.f32 %v8630_v55, %v3383_v59  ;;  %v3175_v9 = vmax.f32 %v3133_v60, 0.0  ;;  %v3339_v12 = vadd.f32 %v13863_v36, %v3338_v6  ;;  %12032 = vmatprep.subr.bf16.mxu0 %v13198_v8  ;;  %12064 = vmatprep.subr.bf16.mxu1 %v13198_v8  ;;  %v8637_v55 = vld [vmem:[%s13201_s12 + $0x5e8] sm:$0xff] }
 0x512   : > { %8647 = vst [vmem:[%s13355_s25 + $0x5b8] sm:$0xff] %v3416_v63  ;;  %8614 = vst [vmem:[%s13355_s25 + $0x530] sm:$0xff] %v3205_v0  ;;  %v3386_v14 = vmax.f32 %v3344_v2, 0.0  ;;  %v3174_v15 = vmax.f32 %v3128_v4, 0.0  ;;  %v10568_v18 = vpop.f32.mrb[74].mxu0  ;;  %10672 = vmatprep.mubr.f32.mxu0 %v3205_v0  ;;  %12034 = vmatpush3.bf16.msra.mxu0 %v13198_v8 }
 0x513   : > { %8646 = vst [vmem:[%s13355_s25 + $0x5b0] sm:$0xff] %v3415_v7  ;;  %v3208_v20 = vadd.f32 %v8601_v1, %v3175_v9  ;;  %v3385_v21 = vmax.f32 %v3339_v12, 0.0  ;;  %v3143_v23 = vadd.f32 %v13863_v36, %v10568_v18  ;;  %v10624_v24 = vpop.f32.mrb[74].mxu1  ;;  %10728 = vmatprep.mubr.f32.mxu1 %v3415_v7  ;;  %v3137_v26 = vpop.f32.mrb[75].mxu0  ;;  %10673 = vmatmul.mubr.f32.gmra.mrb[86].mxu0 %v3206_v58  ;;  %v8607_v9 = vld [vmem:[%s13201_s12 + $0x578] sm:$0xff]  ;;  %v8606_v18 = vld [vmem:[%s13201_s12 + $0x570] sm:$0xff] }
 0x514   : > { %v3418_v27 = vadd.f32 %v8633_v10, %v3386_v14  ;;  %v3207_v28 = vadd.f32 %v8600_v11, %v3174_v15  ;;  %v3354_v30 = vadd.f32 %v13863_v36, %v10624_v24  ;;  %v3138_v31 = vadd.f32 %v13863_v36, %v3137_v26  ;;  %v3348_v32 = vpop.f32.mrb[75].mxu1  ;;  %10729 = vmatmul.mubr.f32.gmra.mrb[86].mxu1 %v3416_v63  ;;  %v8638_v24 = vld [vmem:[%s13201_s12 + $0x5f0] sm:$0xff] }
 0x515   : > { %8617 = vst [vmem:[%s13355_s25 + $0x548] sm:$0xff] %v3208_v20  ;;  %v3417_v46 = vadd.f32 %v8632_v17, %v3385_v21  ;;  %v3177_v33 = vmax.f32 %v3143_v23, 0.0  ;;  %v3349_v37 = vadd.f32 %v13863_v36, %v3348_v32  ;;  %12066 = vmatpush3.bf16.msra.mxu1 %v13198_v8  ;;  %12036 = vmatprep.subr.bf16.mxu0 %v13215_v13  ;;  %v8639_v17 = vld [vmem:[%s13201_s12 + $0x5f8] sm:$0xff] }
 0x516   : > { %8649 = vst [vmem:[%s13355_s25 + $0x5c8] sm:$0xff] %v3418_v27  ;;  %8616 = vst [vmem:[%s13355_s25 + $0x540] sm:$0xff] %v3207_v28  ;;  %v3388_v38 = vmax.f32 %v3354_v30, 0.0  ;;  %v3176_v39 = vmax.f32 %v3138_v31, 0.0  ;;  %v10571_v41 = vpop.f32.mrb[76].mxu0  ;;  %10675 = vmatprep.mubr.f32.mxu0 %v3207_v28  ;;  %12068 = vmatprep.subr.bf16.mxu1 %v13215_v13 }
 0x517   : > { %8648 = vst [vmem:[%s13355_s25 + $0x5c0] sm:$0xff] %v3417_v46  ;;  %v3210_v42 = vadd.f32 %v8603_v29, %v3177_v33  ;;  %v3387_v56 = vmax.f32 %v3349_v37, 0.0  ;;  %v3153_v43 = vadd.f32 %v13863_v36, %v10571_v41  ;;  %v10627_v44 = vpop.f32.mrb[76].mxu1  ;;  %10731 = vmatprep.mubr.f32.mxu1 %v3417_v46  ;;  %v3147_v45 = vpop.f32.mrb[77].mxu0  ;;  %10676 = vmatmul.mubr.f32.gmra.mrb[88].mxu0 %v3208_v20  ;;  %v8657_v41 = vld [vmem:[%s13201_s12 + $0x608] sm:$0xff] }
 0x518   : > { %v3420_v47 = vadd.f32 %v8635_v34, %v3388_v38  ;;  %v3209_v48 = vadd.f32 %v8602_v35, %v3176_v39  ;;  %v3364_v50 = vadd.f32 %v13863_v36, %v10627_v44  ;;  %v3148_v51 = vadd.f32 %v13863_v36, %v3147_v45  ;;  %v3358_v52 = vpop.f32.mrb[77].mxu1  ;;  %10732 = vmatmul.mubr.f32.gmra.mrb[88].mxu1 %v3418_v27  ;;  %v8656_v39 = vld [vmem:[%s13201_s12 + $0x600] sm:$0xff]  ;;  %v8689_v45 = vld [vmem:[%s13201_s12 + $0x688] sm:$0xff] }
 0x519   : > { %8619 = vst [vmem:[%s13355_s25 + $0x558] sm:$0xff] %v3210_v42  ;;  %v3419_v53 = vadd.f32 %v8634_v40, %v3387_v56  ;;  %v3179_v54 = vmax.f32 %v3153_v43, 0.0  ;;  %v3359_v58 = vadd.f32 %v13863_v36, %v3358_v52  ;;  %12038 = vmatpush3.bf16.msra.mxu0 %v13215_v13  ;;  %12070 = vmatpush3.bf16.msra.mxu1 %v13215_v13  ;;  %v8688_v43 = vld [vmem:[%s13201_s12 + $0x680] sm:$0xff] }
 0x51a   : > { %8651 = vst [vmem:[%s13355_s25 + $0x5d8] sm:$0xff] %v3420_v47  ;;  %8618 = vst [vmem:[%s13355_s25 + $0x550] sm:$0xff] %v3209_v48  ;;  %v3390_v59 = vmax.f32 %v3364_v50, 0.0  ;;  %v3178_v60 = vmax.f32 %v3148_v51, 0.0  ;;  %v10574_v62 = vpop.f32.mrb[78].mxu0  ;;  %10678 = vmatprep.mubr.f32.mxu0 %v3209_v48  ;;  %12040 = vmatprep.subr.bf16.mxu0 %v13227_v16 }
 0x51b   : > { %8650 = vst [vmem:[%s13355_s25 + $0x5d0] sm:$0xff] %v3419_v53  ;;  %v3212_v63 = vadd.f32 %v8605_v49, %v3179_v54  ;;  %v3389_v0 = vmax.f32 %v3359_v58, 0.0  ;;  %v3163_v1 = vadd.f32 %v13863_v36, %v10574_v62  ;;  %v10630_v2 = vpop.f32.mrb[78].mxu1  ;;  %10734 = vmatprep.mubr.f32.mxu1 %v3419_v53  ;;  %v3157_v4 = vpop.f32.mrb[79].mxu0  ;;  %10679 = vmatmul.mubr.f32.gmra.mrb[90].mxu0 %v3210_v42  ;;  %v8659_v62 = vld [vmem:[%s13201_s12 + $0x618] sm:$0xff] }
 0x51c   : > { %v3422_v6 = vadd.f32 %v8637_v55, %v3390_v59  ;;  %v3211_v7 = vadd.f32 %v8604_v57, %v3178_v60  ;;  %v3374_v10 = vadd.f32 %v13863_v36, %v10630_v2  ;;  %v3158_v11 = vadd.f32 %v13863_v36, %v3157_v4  ;;  %v3368_v12 = vpop.f32.mrb[79].mxu1  ;;  %10735 = vmatmul.mubr.f32.gmra.mrb[90].mxu1 %v3420_v47  ;;  %v8658_v59 = vld [vmem:[%s13201_s12 + $0x610] sm:$0xff]  ;;  %v8691_v4 = vld [vmem:[%s13201_s12 + $0x698] sm:$0xff] }
 0x51d   : > { %8621 = vst [vmem:[%s13355_s25 + $0x568] sm:$0xff] %v3212_v63  ;;  %v3421_v14 = vadd.f32 %v8636_v61, %v3389_v0  ;;  %v3181_v15 = vmax.f32 %v3163_v1, 0.0  ;;  %v3369_v20 = vadd.f32 %v13863_v36, %v3368_v12  ;;  %12072 = vmatprep.subr.bf16.mxu1 %v13227_v16  ;;  %12042 = vmatpush3.bf16.msra.mxu0 %v13227_v16  ;;  %v8690_v1 = vld [vmem:[%s13201_s12 + $0x690] sm:$0xff] }
 0x51e   : > { %8653 = vst [vmem:[%s13355_s25 + $0x5e8] sm:$0xff] %v3422_v6  ;;  %8620 = vst [vmem:[%s13355_s25 + $0x560] sm:$0xff] %v3211_v7  ;;  %v3392_v21 = vmax.f32 %v3374_v10, 0.0  ;;  %v3180_v23 = vmax.f32 %v3158_v11, 0.0  ;;  %10681 = vmatprep.mubr.f32.mxu0 %v3211_v7  ;;  %12074 = vmatpush3.bf16.msra.mxu1 %v13227_v16 }
 0x51f   : > { %8652 = vst [vmem:[%s13355_s25 + $0x5e0] sm:$0xff] %v3421_v14  ;;  %v3214_v26 = vadd.f32 %v8607_v9, %v3181_v15  ;;  %v3391_v27 = vmax.f32 %v3369_v20, 0.0  ;;  %10737 = vmatprep.mubr.f32.mxu1 %v3421_v14  ;;  %10682 = vmatmul.mubr.f32.gmra.mrb[92].mxu0 %v3212_v63 }
 0x520   : > { %v3424_v28 = vadd.f32 %v8639_v17, %v3392_v21  ;;  %v3213_v29 = vadd.f32 %v8606_v18, %v3180_v23  ;;  %10738 = vmatmul.mubr.f32.gmra.mrb[92].mxu1 %v3422_v6  ;;  %12044 = vmatprep.subr.bf16.mxu0 %v13239_v19  ;;  %v8660_v21 = vld [vmem:[%s13201_s12 + $0x620] sm:$0xff] }
 0x521   : > { %8623 = vst [vmem:[%s13355_s25 + $0x578] sm:$0xff] %v3214_v26  ;;  %v3423_v30 = vadd.f32 %v8638_v24, %v3391_v27  ;;  %12076 = vmatprep.subr.bf16.mxu1 %v13239_v19  ;;  %12046 = vmatpush3.bf16.msra.mxu0 %v13239_v19 }
 0x522   : > { %8655 = vst [vmem:[%s13355_s25 + $0x5f8] sm:$0xff] %v3424_v28  ;;  %8622 = vst [vmem:[%s13355_s25 + $0x570] sm:$0xff] %v3213_v29  ;;  %10684 = vmatprep.mubr.f32.mxu0 %v3213_v29  ;;  %12078 = vmatpush3.bf16.msra.mxu1 %v13239_v19  ;;  %v8692_v29 = vld [vmem:[%s13201_s12 + $0x6a0] sm:$0xff] }
 0x523   : > { %8654 = vst [vmem:[%s13355_s25 + $0x5f0] sm:$0xff] %v3423_v30  ;;  %10740 = vmatprep.mubr.f32.mxu1 %v3423_v30  ;;  %10685 = vmatmul.mubr.f32.gmra.mrb[94].mxu0 %v3214_v26  ;;  %v8661_v26 = vld [vmem:[%s13201_s12 + $0x628] sm:$0xff] }
 0x524   : > { %10741 = vmatmul.mubr.f32.gmra.mrb[94].mxu1 %v3424_v28  ;;  %12048 = vmatprep.subr.bf16.mxu0 %v13251_v22 }
 0x525   : > { %12080 = vmatprep.subr.bf16.mxu1 %v13251_v22  ;;  %12050 = vmatpush3.bf16.msra.mxu0 %v13251_v22 }
 0x526   : > { %12082 = vmatpush3.bf16.msra.mxu1 %v13251_v22  ;;  %12052 = vmatprep.subr.bf16.mxu0 %v13263_v25 }
 0x527   : > { %12084 = vmatprep.subr.bf16.mxu1 %v13263_v25 }
 0x529   : > { %12054 = vmatpush3.bf16.msra.mxu0 %v13263_v25 }
 0x52a   : > { %12086 = vmatpush3.bf16.msra.mxu1 %v13263_v25  ;;  %12088 = vmatprep.subr.bf16.mxu0 %v13177_v3 }
 0x52b   : > { %12120 = vmatprep.subr.bf16.mxu1 %v13177_v3 }
 0x5da   : > { %v10665_v31 = vpop.f32.mrb[80].mxu0 }
 0x5db   : > { %v3513_v32 = vadd.f32 %v13863_v36, %v10665_v31  ;;  %v10721_v46 = vpop.f32.mrb[80].mxu1  ;;  %v3507_v33 = vpop.f32.mrb[81].mxu0  ;;  %v8693_v31 = vld [vmem:[%s13201_s12 + $0x6a8] sm:$0xff] }
 0x5dc   : > { %v3724_v34 = vadd.f32 %v13863_v36, %v10721_v46  ;;  %v3508_v35 = vadd.f32 %v13863_v36, %v3507_v33  ;;  %v3718_v37 = vpop.f32.mrb[81].mxu1 }
 0x5dd   : > { %v3587_v38 = vmax.f32 %v3513_v32, 0.0  ;;  %v3719_v40 = vadd.f32 %v13863_v36, %v3718_v37 }
 0x5de   : > { %v3798_v42 = vmax.f32 %v3724_v34, 0.0  ;;  %v3586_v56 = vmax.f32 %v3508_v35, 0.0  ;;  %v10668_v44 = vpop.f32.mrb[82].mxu0 }
 0x5df   : > { %v3797_v47 = vmax.f32 %v3719_v40, 0.0  ;;  %v3523_v48 = vadd.f32 %v13863_v36, %v10668_v44  ;;  %v10724_v49 = vpop.f32.mrb[82].mxu1  ;;  %v3517_v50 = vpop.f32.mrb[83].mxu0  ;;  %v14006_v55 = vadd.f32 %v8657_v41, %v3587_v38 }
 0x5e0   : > { %v14002_v51 = vadd.f32 %v8656_v39, %v3586_v56  ;;  %v3734_v52 = vadd.f32 %v13863_v36, %v10724_v49  ;;  %v3518_v53 = vadd.f32 %v13863_v36, %v3517_v50  ;;  %v3728_v54 = vpop.f32.mrb[83].mxu1  ;;  %v14012_v61 = vadd.f32 %v8689_v45, %v3798_v42  ;;  %v8662_v56 = vld [vmem:[%s13201_s12 + $0x630] sm:$0xff]  ;;  %v8663_v45 = vld [vmem:[%s13201_s12 + $0x638] sm:$0xff] }
 0x5e1   : > { %v14008_v57 = vadd.f32 %v8688_v43, %v3797_v47  ;;  %v3589_v58 = vmax.f32 %v3523_v48, 0.0  ;;  %v3729_v60 = vadd.f32 %v13863_v36, %v3728_v54  ;;  %v8694_v49 = vld [vmem:[%s13201_s12 + $0x6b0] sm:$0xff] }
 0x5e2   : > { %v3800_v63 = vmax.f32 %v3734_v52, 0.0  ;;  %v3588_v0 = vmax.f32 %v3518_v53, 0.0  ;;  %v10671_v2 = vpop.f32.mrb[84].mxu0  ;;  %10775 = vmatprep.mubr.f32.mxu0 %v14002_v51  ;;  %v8695_v52 = vld [vmem:[%s13201_s12 + $0x6b8] sm:$0xff] }
 0x5e3   : > { %v3799_v6 = vmax.f32 %v3729_v60, 0.0  ;;  %v3533_v7 = vadd.f32 %v13863_v36, %v10671_v2  ;;  %v10727_v9 = vpop.f32.mrb[84].mxu1  ;;  %10831 = vmatprep.mubr.f32.mxu1 %v14008_v57  ;;  %v3527_v10 = vpop.f32.mrb[85].mxu0  ;;  %10776 = vmatmul.mubr.f32.vlgmr.msra.gmra.mrb[96].mxu0 %v14006_v55  ;;  %v14026_v17 = vadd.f32 %v8659_v62, %v3589_v58 }
 0x5e4   : > { %v14021_v11 = vadd.f32 %v8658_v59, %v3588_v0  ;;  %v3744_v12 = vadd.f32 %v13863_v36, %v10727_v9  ;;  %v3528_v14 = vadd.f32 %v13863_v36, %v3527_v10  ;;  %v3738_v15 = vpop.f32.mrb[85].mxu1  ;;  %10832 = vmatmul.mubr.f32.vlgmr.msra.gmra.mrb[96].mxu1 %v14012_v61  ;;  %12090 = vmatpush3.bf16.msra.mxu0 %v13177_v3  ;;  %v8665_v10 = vld [vmem:[%s13201_s12 + $0x648] sm:$0xff] }
 0x5e5   : > { %v14028_v18 = vadd.f32 %v8690_v1, %v3799_v6  ;;  %v3591_v20 = vmax.f32 %v3533_v7, 0.0  ;;  %v3739_v23 = vadd.f32 %v13863_v36, %v3738_v15  ;;  %12122 = vmatpush3.bf16.msra.mxu1 %v13177_v3  ;;  %v14034_v24 = vadd.f32 %v8691_v4, %v3800_v63  ;;  %12092 = vmatprep.subr.bf16.mxu0 %v13184_v5  ;;  %v8664_v6 = vld [vmem:[%s13201_s12 + $0x640] sm:$0xff] }
 0x5e6   : > { %v3802_v27 = vmax.f32 %v3744_v12, 0.0  ;;  %v3590_v28 = vmax.f32 %v3528_v14, 0.0  ;;  %v10674_v30 = vpop.f32.mrb[86].mxu0  ;;  %10778 = vmatprep.mubr.f32.mxu0 %v14021_v11  ;;  %12124 = vmatprep.subr.bf16.mxu1 %v13184_v5  ;;  %v8696_v15 = vld [vmem:[%s13201_s12 + $0x6c0] sm:$0xff] }
 0x5e7   : > { %v3801_v32 = vmax.f32 %v3739_v23, 0.0  ;;  %v3543_v46 = vadd.f32 %v13863_v36, %v10674_v30  ;;  %v10730_v33 = vpop.f32.mrb[86].mxu1  ;;  %10834 = vmatprep.mubr.f32.mxu1 %v14028_v18  ;;  %v3537_v34 = vpop.f32.mrb[87].mxu0  ;;  %10779 = vmatmul.mubr.f32.gmra.mrb[98].mxu0 %v14026_v17  ;;  %v14049_v40 = vadd.f32 %v8661_v26, %v3591_v20 }
 0x5e8   : > { %v14044_v35 = vadd.f32 %v8660_v21, %v3590_v28  ;;  %v3754_v37 = vadd.f32 %v13863_v36, %v10730_v33  ;;  %v3538_v38 = vadd.f32 %v13863_v36, %v3537_v34  ;;  %v3748_v39 = vpop.f32.mrb[87].mxu1  ;;  %10835 = vmatmul.mubr.f32.gmra.mrb[98].mxu1 %v14034_v24  ;;  %12094 = vmatpush3.bf16.msra.mxu0 %v13184_v5  ;;  %v8697_v21 = vld [vmem:[%s13201_s12 + $0x6c8] sm:$0xff] }
 0x5e9   : > { %v14051_v41 = vadd.f32 %v8692_v29, %v3801_v32  ;;  %v3593_v42 = vmax.f32 %v3543_v46, 0.0  ;;  %v3749_v43 = vadd.f32 %v13863_v36, %v3748_v39  ;;  %v14057_v44 = vadd.f32 %v8693_v31, %v3802_v27  ;;  %12126 = vmatpush3.bf16.msra.mxu1 %v13184_v5  ;;  %12096 = vmatprep.subr.bf16.mxu0 %v13198_v8 }
 0x5ea   : > { %v3804_v47 = vmax.f32 %v3754_v37, 0.0  ;;  %v3592_v48 = vmax.f32 %v3538_v38, 0.0  ;;  %v10677_v50 = vpop.f32.mrb[88].mxu0  ;;  %10781 = vmatprep.mubr.f32.mxu0 %v14044_v35  ;;  %12128 = vmatprep.subr.bf16.mxu1 %v13198_v8  ;;  %v8666_v37 = vld [vmem:[%s13201_s12 + $0x650] sm:$0xff] }
 0x5eb   : > { %v3803_v53 = vmax.f32 %v3749_v43, 0.0  ;;  %v3553_v54 = vadd.f32 %v13863_v36, %v10677_v50  ;;  %v10733_v58 = vpop.f32.mrb[88].mxu1  ;;  %10837 = vmatprep.mubr.f32.mxu1 %v14051_v41  ;;  %v3547_v59 = vpop.f32.mrb[89].mxu0  ;;  %10782 = vmatmul.mubr.f32.gmra.mrb[100].mxu0 %v14049_v40  ;;  %v14072_v1 = vadd.f32 %v8663_v45, %v3593_v42  ;;  %v8667_v42 = vld [vmem:[%s13201_s12 + $0x658] sm:$0xff]  ;;  %v8698_v45 = vld [vmem:[%s13201_s12 + $0x6d0] sm:$0xff] }
 0x5ec   : > { %v14067_v60 = vadd.f32 %v8662_v56, %v3592_v48  ;;  %v3764_v62 = vadd.f32 %v13863_v36, %v10733_v58  ;;  %v3548_v63 = vadd.f32 %v13863_v36, %v3547_v59  ;;  %v3758_v0 = vpop.f32.mrb[89].mxu1  ;;  %10838 = vmatmul.mubr.f32.gmra.mrb[100].mxu1 %v14057_v44  ;;  %v14080_v9 = vadd.f32 %v8695_v52, %v3804_v47  ;;  %v8699_v48 = vld [vmem:[%s13201_s12 + $0x6d8] sm:$0xff] }
 0x5ed   : > { %v14074_v2 = vadd.f32 %v8694_v49, %v3803_v53  ;;  %v3595_v4 = vmax.f32 %v3553_v54, 0.0  ;;  %v3759_v7 = vadd.f32 %v13863_v36, %v3758_v0  ;;  %12098 = vmatpush3.bf16.msra.mxu0 %v13198_v8  ;;  %12130 = vmatpush3.bf16.msra.mxu1 %v13198_v8 }
 0x5ee   : > { %v3806_v12 = vmax.f32 %v3764_v62, 0.0  ;;  %v3594_v14 = vmax.f32 %v3548_v63, 0.0  ;;  %v10680_v20 = vpop.f32.mrb[90].mxu0  ;;  %10784 = vmatprep.mubr.f32.mxu0 %v14067_v60  ;;  %12100 = vmatprep.subr.bf16.mxu0 %v13215_v13 }
 0x5ef   : > { %v3805_v23 = vmax.f32 %v3759_v7, 0.0  ;;  %v3563_v26 = vadd.f32 %v13863_v36, %v10680_v20  ;;  %v10736_v27 = vpop.f32.mrb[90].mxu1  ;;  %10840 = vmatprep.mubr.f32.mxu1 %v14074_v2  ;;  %v3557_v28 = vpop.f32.mrb[91].mxu0  ;;  %10785 = vmatmul.mubr.f32.gmra.mrb[102].mxu0 %v14072_v1  ;;  %v14095_v46 = vadd.f32 %v8665_v10, %v3595_v4  ;;  %v8700_v20 = vld [vmem:[%s13201_s12 + $0x6e0] sm:$0xff] }
 0x5f0   : > { %v14090_v29 = vadd.f32 %v8664_v6, %v3594_v14  ;;  %v3774_v30 = vadd.f32 %v13863_v36, %v10736_v27  ;;  %v3558_v31 = vadd.f32 %v13863_v36, %v3557_v28  ;;  %v3768_v32 = vpop.f32.mrb[91].mxu1  ;;  %10841 = vmatmul.mubr.f32.gmra.mrb[102].mxu1 %v14080_v9  ;;  %v14103_v39 = vadd.f32 %v8697_v21, %v3806_v12  ;;  %v8668_v6 = vld [vmem:[%s13201_s12 + $0x660] sm:$0xff]  ;;  %v8669_v12 = vld [vmem:[%s13201_s12 + $0x668] sm:$0xff] }
 0x5f1   : > { %v14097_v33 = vadd.f32 %v8696_v15, %v3805_v23  ;;  %v3597_v34 = vmax.f32 %v3563_v26, 0.0  ;;  %v3769_v38 = vadd.f32 %v13863_v36, %v3768_v32  ;;  %12132 = vmatprep.subr.bf16.mxu1 %v13215_v13  ;;  %12102 = vmatpush3.bf16.msra.mxu0 %v13215_v13  ;;  %v8701_v23 = vld [vmem:[%s13201_s12 + $0x6e8] sm:$0xff] }
 0x5f2   : > { %v3808_v56 = vmax.f32 %v3774_v30, 0.0  ;;  %v3596_v43 = vmax.f32 %v3558_v31, 0.0  ;;  %v10683_v47 = vpop.f32.mrb[92].mxu0  ;;  %10787 = vmatprep.mubr.f32.mxu0 %v14090_v29  ;;  %12134 = vmatpush3.bf16.msra.mxu1 %v13215_v13 }
 0x5f3   : > { %v3807_v49 = vmax.f32 %v3769_v38, 0.0  ;;  %v3573_v50 = vadd.f32 %v13863_v36, %v10683_v47  ;;  %v10739_v52 = vpop.f32.mrb[92].mxu1  ;;  %10843 = vmatprep.mubr.f32.mxu1 %v14097_v33  ;;  %v3567_v53 = vpop.f32.mrb[93].mxu0  ;;  %10788 = vmatmul.mubr.f32.gmra.mrb[104].mxu0 %v14095_v46  ;;  %v14118_v63 = vadd.f32 %v8667_v42, %v3597_v34 }
 0x5f4   : > { %v14113_v54 = vadd.f32 %v8666_v37, %v3596_v43  ;;  %v3784_v58 = vadd.f32 %v13863_v36, %v10739_v52  ;;  %v3568_v59 = vadd.f32 %v13863_v36, %v3567_v53  ;;  %v3778_v62 = vpop.f32.mrb[93].mxu1  ;;  %10844 = vmatmul.mubr.f32.gmra.mrb[104].mxu1 %v14103_v39  ;;  %v14126_v10 = vadd.f32 %v8699_v48, %v3808_v56  ;;  %v8670_v43 = vld [vmem:[%s13201_s12 + $0x670] sm:$0xff]  ;;  %v8671_v48 = vld [vmem:[%s13201_s12 + $0x678] sm:$0xff] }
 0x5f5   : > { %v14120_v0 = vadd.f32 %v8698_v45, %v3807_v49  ;;  %v3599_v4 = vmax.f32 %v3573_v50, 0.0  ;;  %v3779_v7 = vadd.f32 %v13863_v36, %v3778_v62  ;;  %12104 = vmatprep.subr.bf16.mxu0 %v13227_v16  ;;  %12136 = vmatprep.subr.bf16.mxu1 %v13227_v16  ;;  %v8702_v52 = vld [vmem:[%s13201_s12 + $0x6f0] sm:$0xff]  ;;  %v8703_v53 = vld [vmem:[%s13201_s12 + $0x6f8] sm:$0xff] }
 0x5f6   : > { %v3810_v14 = vmax.f32 %v3784_v58, 0.0  ;;  %v3598_v15 = vmax.f32 %v3568_v59, 0.0  ;;  %v10686_v21 = vpop.f32.mrb[94].mxu0  ;;  %10790 = vmatprep.mubr.f32.mxu0 %v14113_v54  ;;  %12106 = vmatpush3.bf16.msra.mxu0 %v13227_v16 }
 0x5f7   : > { %v3809_v26 = vmax.f32 %v3779_v7, 0.0  ;;  %v3583_v27 = vadd.f32 %v13863_v36, %v10686_v21  ;;  %v10742_v28 = vpop.f32.mrb[94].mxu1  ;;  %10846 = vmatprep.mubr.f32.mxu1 %v14120_v0  ;;  %v3577_v30 = vpop.f32.mrb[95].mxu0  ;;  %10791 = vmatmul.mubr.f32.gmra.mrb[106].mxu0 %v14118_v63  ;;  %v14141_v38 = vadd.f32 %v8669_v12, %v3599_v4 }
 0x5f8   : > { %v14136_v31 = vadd.f32 %v8668_v6, %v3598_v15  ;;  %v3794_v32 = vadd.f32 %v13863_v36, %v10742_v28  ;;  %v3578_v34 = vadd.f32 %v13863_v36, %v3577_v30  ;;  %v3788_v37 = vpop.f32.mrb[95].mxu1  ;;  %10847 = vmatmul.mubr.f32.gmra.mrb[106].mxu1 %v14126_v10  ;;  %v14149_v47 = vadd.f32 %v8701_v23, %v3810_v14  ;;  %v8753_v28 = vld [vmem:[%s13201_s12 + $0x788] sm:$0xff]  ;;  %v8720_v30 = vld [vmem:[%s13201_s12 + $0x700] sm:$0xff] }
 0x5f9   : > { %v14143_v42 = vadd.f32 %v8700_v20, %v3809_v26  ;;  %v3601_v56 = vmax.f32 %v3583_v27, 0.0  ;;  %v3789_v45 = vadd.f32 %v13863_v36, %v3788_v37  ;;  %12138 = vmatpush3.bf16.msra.mxu1 %v13227_v16  ;;  %12108 = vmatprep.subr.bf16.mxu0 %v13239_v19  ;;  %v8721_v20 = vld [vmem:[%s13201_s12 + $0x708] sm:$0xff] }
 0x5fa   : > { %v3812_v49 = vmax.f32 %v3794_v32, 0.0  ;;  %v3600_v50 = vmax.f32 %v3578_v34, 0.0  ;;  %10793 = vmatprep.mubr.f32.mxu0 %v14136_v31  ;;  %12140 = vmatprep.subr.bf16.mxu1 %v13239_v19 }
 0x5fb   : > { %v3811_v58 = vmax.f32 %v3789_v45, 0.0  ;;  %10849 = vmatprep.mubr.f32.mxu1 %v14143_v42  ;;  %10794 = vmatmul.mubr.f32.gmra.mrb[108].mxu0 %v14141_v38  ;;  %v14162_v62 = vadd.f32 %v8671_v48, %v3601_v56  ;;  %v8752_v56 = vld [vmem:[%s13201_s12 + $0x780] sm:$0xff] }
 0x5fc   : > { %v14158_v59 = vadd.f32 %v8670_v43, %v3600_v50  ;;  %10850 = vmatmul.mubr.f32.gmra.mrb[108].mxu1 %v14149_v47  ;;  %12110 = vmatpush3.bf16.msra.mxu0 %v13239_v19  ;;  %v14168_v6 = vadd.f32 %v8703_v53, %v3812_v49 }
 0x5fd   : > { %v14164_v4 = vadd.f32 %v8702_v52, %v3811_v58  ;;  %12142 = vmatpush3.bf16.msra.mxu1 %v13239_v19  ;;  %12112 = vmatprep.subr.bf16.mxu0 %v13251_v22 }
 0x5fe   : > { %10796 = vmatprep.mubr.f32.mxu0 %v14158_v59  ;;  %12144 = vmatprep.subr.bf16.mxu1 %v13251_v22 }
 0x5ff   : > { %10852 = vmatprep.mubr.f32.mxu1 %v14164_v4  ;;  %10797 = vmatmul.mubr.f32.gmra.mrb[110].mxu0 %v14162_v62 }
 0x600   : > { %10853 = vmatmul.mubr.f32.gmra.mrb[110].mxu1 %v14168_v6  ;;  %12114 = vmatpush3.bf16.msra.mxu0 %v13251_v22 }
 0x601   : > { %12146 = vmatpush3.bf16.msra.mxu1 %v13251_v22  ;;  %12116 = vmatprep.subr.bf16.mxu0 %v13263_v25 }
 0x602   : > { %12148 = vmatprep.subr.bf16.mxu1 %v13263_v25 }
 0x604   : > { %12118 = vmatpush3.bf16.msra.mxu0 %v13263_v25 }
 0x605   : > { %12150 = vmatpush3.bf16.msra.mxu1 %v13263_v25  ;;  %12152 = vmatprep.subr.bf16.mxu0 %v13177_v3 }
 0x606   : > { %12184 = vmatprep.subr.bf16.mxu1 %v13177_v3 }
 0x6b6   : > { %v10777_v7 = vpop.f32.mrb[96].mxu0 }
 0x6b7   : > { %v3933_v12 = vadd.f32 %v13863_v36, %v10777_v7  ;;  %v10833_v14 = vpop.f32.mrb[96].mxu1  ;;  %v3927_v15 = vpop.f32.mrb[97].mxu0  ;;  %v8723_v7 = vld [vmem:[%s13201_s12 + $0x718] sm:$0xff] }
 0x6b8   : > { %v4144_v21 = vadd.f32 %v13863_v36, %v10833_v14  ;;  %v3928_v23 = vadd.f32 %v13863_v36, %v3927_v15  ;;  %v4138_v26 = vpop.f32.mrb[97].mxu1 }
 0x6b9   : > { %v4007_v27 = vmax.f32 %v3933_v12, 0.0  ;;  %v4139_v32 = vadd.f32 %v13863_v36, %v4138_v26  ;;  %v8722_v26 = vld [vmem:[%s13201_s12 + $0x710] sm:$0xff] }
 0x6ba   : > { %v4218_v34 = vmax.f32 %v4144_v21, 0.0  ;;  %v4006_v37 = vmax.f32 %v3928_v23, 0.0  ;;  %v10780_v43 = vpop.f32.mrb[98].mxu0  ;;  %v8755_v23 = vld [vmem:[%s13201_s12 + $0x798] sm:$0xff] }
 0x6bb   : > { %v4040_v45 = vadd.f32 %v8721_v20, %v4007_v27  ;;  %v4217_v48 = vmax.f32 %v4139_v32, 0.0  ;;  %v3943_v49 = vadd.f32 %v13863_v36, %v10780_v43  ;;  %v10836_v50 = vpop.f32.mrb[98].mxu1  ;;  %v3937_v52 = vpop.f32.mrb[99].mxu0 }
 0x6bc   : > { %v4250_v53 = vadd.f32 %v8753_v28, %v4218_v34  ;;  %v4039_v58 = vadd.f32 %v8720_v30, %v4006_v37  ;;  %v4154_v12 = vadd.f32 %v13863_v36, %v10836_v50  ;;  %v3938_v14 = vadd.f32 %v13863_v36, %v3937_v52  ;;  %v4148_v15 = vpop.f32.mrb[99].mxu1  ;;  %v8754_v30 = vld [vmem:[%s13201_s12 + $0x790] sm:$0xff] }
 0x6bd   : > { %8737 = vst [vmem:[%s13355_s25 + $0x708] sm:$0xff] %v4040_v45  ;;  %v4249_v21 = vadd.f32 %v8752_v56, %v4217_v48  ;;  %v4009_v20 = vmax.f32 %v3943_v49, 0.0  ;;  %v4149_v27 = vadd.f32 %v13863_v36, %v4148_v15  ;;  %v14208_v56 = vld [vmem:[%s15696_s2] ss:$0 sm:$0xff] }
 0x6be   : > { %8769 = vst [vmem:[%s13355_s25 + $0x788] sm:$0xff] %v4250_v53  ;;  %8736 = vst [vmem:[%s13355_s25 + $0x700] sm:$0xff] %v4039_v58  ;;  %v4220_v32 = vmax.f32 %v4154_v12, 0.0  ;;  %v4008_v28 = vmax.f32 %v3938_v14, 0.0  ;;  %v10783_v34 = vpop.f32.mrb[100].mxu0  ;;  %10887 = vmatprep.mubr.f32.mxu0 %v4039_v58  ;;  %v8725_v58 = vld [vmem:[%s13201_s12 + $0x728] sm:$0xff] }
 0x6bf   : > { %8768 = vst [vmem:[%s13355_s25 + $0x780] sm:$0xff] %v4249_v21  ;;  %v4042_v37 = vadd.f32 %v8723_v7, %v4009_v20  ;;  %v4219_v43 = vmax.f32 %v4149_v27, 0.0  ;;  %v3953_v36 = vadd.f32 %v14208_v56, %v10783_v34  ;;  %v10839_v48 = vpop.f32.mrb[100].mxu1  ;;  %10943 = vmatprep.mubr.f32.mxu1 %v4249_v21  ;;  %v3947_v49 = vpop.f32.mrb[101].mxu0  ;;  %10888 = vmatmul.mubr.f32.vlgmr.msra.gmra.mrb[112].mxu0 %v4040_v45  ;;  %v8757_v27 = vld [vmem:[%s13201_s12 + $0x7a8] sm:$0xff]  ;;  %v8724_v21 = vld [vmem:[%s13201_s12 + $0x720] sm:$0xff] }
 0x6c0   : > { %v4252_v50 = vadd.f32 %v8755_v23, %v4220_v32  ;;  %v4041_v52 = vadd.f32 %v8722_v26, %v4008_v28  ;;  %v4164_v7 = vadd.f32 %v14208_v56, %v10839_v48  ;;  %v3948_v12 = vadd.f32 %v14208_v56, %v3947_v49  ;;  %v4158_v14 = vpop.f32.mrb[101].mxu1  ;;  %10944 = vmatmul.mubr.f32.vlgmr.msra.gmra.mrb[112].mxu1 %v4250_v53  ;;  %v8756_v32 = vld [vmem:[%s13201_s12 + $0x7a0] sm:$0xff] }
 0x6c1   : > { %8739 = vst [vmem:[%s13355_s25 + $0x718] sm:$0xff] %v4042_v37  ;;  %v4251_v15 = vadd.f32 %v8754_v30, %v4219_v43  ;;  %v4011_v20 = vmax.f32 %v3953_v36, 0.0  ;;  %v4159_v45 = vadd.f32 %v14208_v56, %v4158_v14  ;;  %12154 = vmatpush3.bf16.msra.mxu0 %v13177_v3  ;;  %12186 = vmatpush3.bf16.msra.mxu1 %v13177_v3 }
 0x6c2   : > { %8771 = vst [vmem:[%s13355_s25 + $0x798] sm:$0xff] %v4252_v50  ;;  %8738 = vst [vmem:[%s13355_s25 + $0x710] sm:$0xff] %v4041_v52  ;;  %v4222_v23 = vmax.f32 %v4164_v7, 0.0  ;;  %v4010_v26 = vmax.f32 %v3948_v12, 0.0  ;;  %v10786_v28 = vpop.f32.mrb[102].mxu0  ;;  %10890 = vmatprep.mubr.f32.mxu0 %v4041_v52  ;;  %12156 = vmatprep.subr.bf16.mxu0 %v13184_v5  ;;  %v8727_v7 = vld [vmem:[%s13201_s12 + $0x738] sm:$0xff] }
 0x6c3   : > { %8770 = vst [vmem:[%s13355_s25 + $0x790] sm:$0xff] %v4251_v15  ;;  %v4044_v53 = vadd.f32 %v8725_v58, %v4011_v20  ;;  %v4221_v30 = vmax.f32 %v4159_v45, 0.0  ;;  %v3963_v34 = vadd.f32 %v14208_v56, %v10786_v28  ;;  %v10842_v43 = vpop.f32.mrb[102].mxu1  ;;  %10946 = vmatprep.mubr.f32.mxu1 %v4251_v15  ;;  %v3957_v36 = vpop.f32.mrb[103].mxu0  ;;  %10891 = vmatmul.mubr.f32.gmra.mrb[114].mxu0 %v4042_v37  ;;  %v8759_v45 = vld [vmem:[%s13201_s12 + $0x7b8] sm:$0xff]  ;;  %v8726_v15 = vld [vmem:[%s13201_s12 + $0x730] sm:$0xff] }
 0x6c4   : > { %v4254_v48 = vadd.f32 %v8757_v27, %v4222_v23  ;;  %v4043_v49 = vadd.f32 %v8724_v21, %v4010_v26  ;;  %v4174_v52 = vadd.f32 %v14208_v56, %v10842_v43  ;;  %v3958_v12 = vadd.f32 %v14208_v56, %v3957_v36  ;;  %v4168_v58 = vpop.f32.mrb[103].mxu1  ;;  %10947 = vmatmul.mubr.f32.gmra.mrb[114].mxu1 %v4252_v50  ;;  %v8758_v23 = vld [vmem:[%s13201_s12 + $0x7b0] sm:$0xff] }
 0x6c5   : > { %8741 = vst [vmem:[%s13355_s25 + $0x728] sm:$0xff] %v4044_v53  ;;  %v4253_v14 = vadd.f32 %v8756_v32, %v4221_v30  ;;  %v4013_v20 = vmax.f32 %v3963_v34, 0.0  ;;  %v4169_v37 = vadd.f32 %v14208_v56, %v4168_v58  ;;  %12188 = vmatprep.subr.bf16.mxu1 %v13184_v5  ;;  %12158 = vmatpush3.bf16.msra.mxu0 %v13184_v5 }
 0x6c6   : > { %8773 = vst [vmem:[%s13355_s25 + $0x7a8] sm:$0xff] %v4254_v48  ;;  %8740 = vst [vmem:[%s13355_s25 + $0x720] sm:$0xff] %v4043_v49  ;;  %v4224_v27 = vmax.f32 %v4174_v52, 0.0  ;;  %v4012_v21 = vmax.f32 %v3958_v12, 0.0  ;;  %v10789_v26 = vpop.f32.mrb[104].mxu0  ;;  %10893 = vmatprep.mubr.f32.mxu0 %v4043_v49  ;;  %12190 = vmatpush3.bf16.msra.mxu1 %v13184_v5  ;;  %v8729_v52 = vld [vmem:[%s13201_s12 + $0x748] sm:$0xff] }
 0x6c7   : > { %8772 = vst [vmem:[%s13355_s25 + $0x7a0] sm:$0xff] %v4253_v14  ;;  %v4046_v50 = vadd.f32 %v8727_v7, %v4013_v20  ;;  %v4223_v32 = vmax.f32 %v4169_v37, 0.0  ;;  %v3973_v28 = vadd.f32 %v14208_v56, %v10789_v26  ;;  %v10845_v30 = vpop.f32.mrb[104].mxu1  ;;  %10949 = vmatprep.mubr.f32.mxu1 %v4253_v14  ;;  %v3967_v34 = vpop.f32.mrb[105].mxu0  ;;  %10894 = vmatmul.mubr.f32.gmra.mrb[116].mxu0 %v4044_v53  ;;  %v8761_v37 = vld [vmem:[%s13201_s12 + $0x7c8] sm:$0xff]  ;;  %v8728_v14 = vld [vmem:[%s13201_s12 + $0x740] sm:$0xff] }
 0x6c8   : > { %v4256_v43 = vadd.f32 %v8759_v45, %v4224_v27  ;;  %v4045_v36 = vadd.f32 %v8726_v15, %v4012_v21  ;;  %v4184_v49 = vadd.f32 %v14208_v56, %v10845_v30  ;;  %v3968_v12 = vadd.f32 %v14208_v56, %v3967_v34  ;;  %v4178_v7 = vpop.f32.mrb[105].mxu1  ;;  %10950 = vmatmul.mubr.f32.gmra.mrb[116].mxu1 %v4254_v48  ;;  %v8760_v27 = vld [vmem:[%s13201_s12 + $0x7c0] sm:$0xff] }
 0x6c9   : > { %8743 = vst [vmem:[%s13355_s25 + $0x738] sm:$0xff] %v4046_v50  ;;  %v4255_v58 = vadd.f32 %v8758_v23, %v4223_v32  ;;  %v4015_v20 = vmax.f32 %v3973_v28, 0.0  ;;  %v4179_v53 = vadd.f32 %v14208_v56, %v4178_v7  ;;  %12160 = vmatprep.subr.bf16.mxu0 %v13198_v8  ;;  %12192 = vmatprep.subr.bf16.mxu1 %v13198_v8 }
 0x6ca   : > { %8775 = vst [vmem:[%s13355_s25 + $0x7b8] sm:$0xff] %v4256_v43  ;;  %8742 = vst [vmem:[%s13355_s25 + $0x730] sm:$0xff] %v4045_v36  ;;  %v4226_v45 = vmax.f32 %v4184_v49, 0.0  ;;  %v4014_v15 = vmax.f32 %v3968_v12, 0.0  ;;  %v10792_v21 = vpop.f32.mrb[106].mxu0  ;;  %10896 = vmatprep.mubr.f32.mxu0 %v4045_v36  ;;  %12162 = vmatpush3.bf16.msra.mxu0 %v13198_v8  ;;  %v8731_v49 = vld [vmem:[%s13201_s12 + $0x758] sm:$0xff] }
 0x6cb   : > { %8774 = vst [vmem:[%s13355_s25 + $0x7b0] sm:$0xff] %v4255_v58  ;;  %v4048_v48 = vadd.f32 %v8729_v52, %v4015_v20  ;;  %v4225_v23 = vmax.f32 %v4179_v53, 0.0  ;;  %v3983_v26 = vadd.f32 %v14208_v56, %v10792_v21  ;;  %v10848_v32 = vpop.f32.mrb[106].mxu1  ;;  %10952 = vmatprep.mubr.f32.mxu1 %v4255_v58  ;;  %v3977_v28 = vpop.f32.mrb[107].mxu0  ;;  %10897 = vmatmul.mubr.f32.gmra.mrb[118].mxu0 %v4046_v50  ;;  %v8763_v53 = vld [vmem:[%s13201_s12 + $0x7d8] sm:$0xff]  ;;  %v8730_v58 = vld [vmem:[%s13201_s12 + $0x750] sm:$0xff] }
 0x6cc   : > { %v4258_v30 = vadd.f32 %v8761_v37, %v4226_v45  ;;  %v4047_v34 = vadd.f32 %v8728_v14, %v4014_v15  ;;  %v4194_v36 = vadd.f32 %v14208_v56, %v10848_v32  ;;  %v3978_v12 = vadd.f32 %v14208_v56, %v3977_v28  ;;  %v4188_v52 = vpop.f32.mrb[107].mxu1  ;;  %10953 = vmatmul.mubr.f32.gmra.mrb[118].mxu1 %v4256_v43  ;;  %v8762_v45 = vld [vmem:[%s13201_s12 + $0x7d0] sm:$0xff] }
 0x6cd   : > { %8745 = vst [vmem:[%s13355_s25 + $0x748] sm:$0xff] %v4048_v48  ;;  %v4257_v7 = vadd.f32 %v8760_v27, %v4225_v23  ;;  %v4017_v20 = vmax.f32 %v3983_v26, 0.0  ;;  %v4189_v50 = vadd.f32 %v14208_v56, %v4188_v52  ;;  %12194 = vmatpush3.bf16.msra.mxu1 %v13198_v8  ;;  %12164 = vmatprep.subr.bf16.mxu0 %v13215_v13 }
 0x6ce   : > { %8777 = vst [vmem:[%s13355_s25 + $0x7c8] sm:$0xff] %v4258_v30  ;;  %8744 = vst [vmem:[%s13355_s25 + $0x740] sm:$0xff] %v4047_v34  ;;  %v4228_v37 = vmax.f32 %v4194_v36, 0.0  ;;  %v4016_v14 = vmax.f32 %v3978_v12, 0.0  ;;  %v10795_v15 = vpop.f32.mrb[108].mxu0  ;;  %10899 = vmatprep.mubr.f32.mxu0 %v4047_v34  ;;  %12196 = vmatprep.subr.bf16.mxu1 %v13215_v13  ;;  %v8733_v36 = vld [vmem:[%s13201_s12 + $0x768] sm:$0xff] }
 0x6cf   : > { %8776 = vst [vmem:[%s13355_s25 + $0x7c0] sm:$0xff] %v4257_v7  ;;  %v4050_v43 = vadd.f32 %v8731_v49, %v4017_v20  ;;  %v4227_v27 = vmax.f32 %v4189_v50, 0.0  ;;  %v3993_v21 = vadd.f32 %v14208_v56, %v10795_v15  ;;  %v10851_v23 = vpop.f32.mrb[108].mxu1  ;;  %10955 = vmatprep.mubr.f32.mxu1 %v4257_v7  ;;  %v3987_v26 = vpop.f32.mrb[109].mxu0  ;;  %10900 = vmatmul.mubr.f32.gmra.mrb[120].mxu0 %v4048_v48  ;;  %v8765_v50 = vld [vmem:[%s13201_s12 + $0x7e8] sm:$0xff]  ;;  %v8732_v7 = vld [vmem:[%s13201_s12 + $0x760] sm:$0xff] }
 0x6d0   : > { %v4260_v32 = vadd.f32 %v8763_v53, %v4228_v37  ;;  %v4049_v28 = vadd.f32 %v8730_v58, %v4016_v14  ;;  %v4204_v34 = vadd.f32 %v14208_v56, %v10851_v23  ;;  %v3988_v12 = vadd.f32 %v14208_v56, %v3987_v26  ;;  %v4198_v49 = vpop.f32.mrb[109].mxu1  ;;  %10956 = vmatmul.mubr.f32.gmra.mrb[120].mxu1 %v4258_v30  ;;  %v8764_v37 = vld [vmem:[%s13201_s12 + $0x7e0] sm:$0xff] }
 0x6d1   : > { %8747 = vst [vmem:[%s13355_s25 + $0x758] sm:$0xff] %v4050_v43  ;;  %v4259_v52 = vadd.f32 %v8762_v45, %v4227_v27  ;;  %v4019_v20 = vmax.f32 %v3993_v21, 0.0  ;;  %v4199_v48 = vadd.f32 %v14208_v56, %v4198_v49  ;;  %12166 = vmatpush3.bf16.msra.mxu0 %v13215_v13  ;;  %12198 = vmatpush3.bf16.msra.mxu1 %v13215_v13 }
 0x6d2   : > { %8779 = vst [vmem:[%s13355_s25 + $0x7d8] sm:$0xff] %v4260_v32  ;;  %8746 = vst [vmem:[%s13355_s25 + $0x750] sm:$0xff] %v4049_v28  ;;  %v4230_v53 = vmax.f32 %v4204_v34, 0.0  ;;  %v4018_v58 = vmax.f32 %v3988_v12, 0.0  ;;  %v10798_v14 = vpop.f32.mrb[110].mxu0  ;;  %10902 = vmatprep.mubr.f32.mxu0 %v4049_v28  ;;  %12168 = vmatprep.subr.bf16.mxu0 %v13227_v16  ;;  %v8735_v34 = vld [vmem:[%s13201_s12 + $0x778] sm:$0xff] }
 0x6d3   : > { %8778 = vst [vmem:[%s13355_s25 + $0x7d0] sm:$0xff] %v4259_v52  ;;  %v4052_v30 = vadd.f32 %v8733_v36, %v4019_v20  ;;  %v4229_v45 = vmax.f32 %v4199_v48, 0.0  ;;  %v4003_v15 = vadd.f32 %v14208_v56, %v10798_v14  ;;  %v10854_v27 = vpop.f32.mrb[110].mxu1  ;;  %10958 = vmatprep.mubr.f32.mxu1 %v4259_v52  ;;  %v3997_v21 = vpop.f32.mrb[111].mxu0  ;;  %10903 = vmatmul.mubr.f32.gmra.mrb[122].mxu0 %v4050_v43  ;;  %v8767_v48 = vld [vmem:[%s13201_s12 + $0x7f8] sm:$0xff]  ;;  %v8734_v52 = vld [vmem:[%s13201_s12 + $0x770] sm:$0xff] }
 0x6d4   : > { %v4262_v23 = vadd.f32 %v8765_v50, %v4230_v53  ;;  %v4051_v26 = vadd.f32 %v8732_v7, %v4018_v58  ;;  %v4214_v28 = vadd.f32 %v14208_v56, %v10854_v27  ;;  %v3998_v12 = vadd.f32 %v14208_v56, %v3997_v21  ;;  %v4208_v36 = vpop.f32.mrb[111].mxu1  ;;  %10959 = vmatmul.mubr.f32.gmra.mrb[122].mxu1 %v4260_v32  ;;  %v8766_v53 = vld [vmem:[%s13201_s12 + $0x7f0] sm:$0xff] }
 0x6d5   : > { %8749 = vst [vmem:[%s13355_s25 + $0x768] sm:$0xff] %v4052_v30  ;;  %v4261_v49 = vadd.f32 %v8764_v37, %v4229_v45  ;;  %v4021_v20 = vmax.f32 %v4003_v15, 0.0  ;;  %v4209_v43 = vadd.f32 %v14208_v56, %v4208_v36  ;;  %12200 = vmatprep.subr.bf16.mxu1 %v13227_v16  ;;  %12170 = vmatpush3.bf16.msra.mxu0 %v13227_v16 }
 0x6d6   : > { %8781 = vst [vmem:[%s13355_s25 + $0x7e8] sm:$0xff] %v4262_v23  ;;  %8748 = vst [vmem:[%s13355_s25 + $0x760] sm:$0xff] %v4051_v26  ;;  %v4232_v50 = vmax.f32 %v4214_v28, 0.0  ;;  %v4020_v7 = vmax.f32 %v3998_v12, 0.0  ;;  %10905 = vmatprep.mubr.f32.mxu0 %v4051_v26  ;;  %12202 = vmatpush3.bf16.msra.mxu1 %v13227_v16 }
 0x6d7   : > { %8780 = vst [vmem:[%s13355_s25 + $0x7e0] sm:$0xff] %v4261_v49  ;;  %v4054_v32 = vadd.f32 %v8735_v34, %v4021_v20  ;;  %v4231_v58 = vmax.f32 %v4209_v43, 0.0  ;;  %10961 = vmatprep.mubr.f32.mxu1 %v4261_v49  ;;  %10906 = vmatmul.mubr.f32.gmra.mrb[124].mxu0 %v4052_v30 }
 0x6d8   : > { %v4264_v37 = vadd.f32 %v8767_v48, %v4232_v50  ;;  %v4053_v14 = vadd.f32 %v8734_v52, %v4020_v7  ;;  %10962 = vmatmul.mubr.f32.gmra.mrb[124].mxu1 %v4262_v23  ;;  %12172 = vmatprep.subr.bf16.mxu0 %v13239_v19 }
 0x6d9   : > { %8751 = vst [vmem:[%s13355_s25 + $0x778] sm:$0xff] %v4054_v32  ;;  %v4263_v45 = vadd.f32 %v8766_v53, %v4231_v58  ;;  %12204 = vmatprep.subr.bf16.mxu1 %v13239_v19  ;;  %12174 = vmatpush3.bf16.msra.mxu0 %v13239_v19 }
 0x6da   : > { %8783 = vst [vmem:[%s13355_s25 + $0x7f8] sm:$0xff] %v4264_v37  ;;  %8750 = vst [vmem:[%s13355_s25 + $0x770] sm:$0xff] %v4053_v14  ;;  %10908 = vmatprep.mubr.f32.mxu0 %v4053_v14  ;;  %12206 = vmatpush3.bf16.msra.mxu1 %v13239_v19 }
 0x6db   : > { %8782 = vst [vmem:[%s13355_s25 + $0x7f0] sm:$0xff] %v4263_v45  ;;  %10964 = vmatprep.mubr.f32.mxu1 %v4263_v45  ;;  %10909 = vmatmul.mubr.f32.gmra.mrb[126].mxu0 %v4054_v32 }
 0x6dc   : > { %10965 = vmatmul.mubr.f32.gmra.mrb[126].mxu1 %v4264_v37  ;;  %12176 = vmatprep.subr.bf16.mxu0 %v13251_v22 }
 0x6dd   : > { %12208 = vmatprep.subr.bf16.mxu1 %v13251_v22  ;;  %12178 = vmatpush3.bf16.msra.mxu0 %v13251_v22 }
 0x6de   : > { %12210 = vmatpush3.bf16.msra.mxu1 %v13251_v22  ;;  %12180 = vmatprep.subr.bf16.mxu0 %v13263_v25 }
 0x6df   : > { %12212 = vmatprep.subr.bf16.mxu1 %v13263_v25 }
 0x6e1   : > { %12182 = vmatpush3.bf16.msra.mxu0 %v13263_v25 }
 0x6e2   : > { %12214 = vmatpush3.bf16.msra.mxu1 %v13263_v25  ;;  %12216 = vmatprep.subr.bf16.mxu0 %v13177_v3 }
 0x6e3   : > { %12248 = vmatprep.subr.bf16.mxu1 %v13177_v3 }
 0x792   : > { %v10889_v30 = vpop.f32.mrb[112].mxu0 }
 0x793   : > { %v4353_v15 = vadd.f32 %v14208_v56, %v10889_v30  ;;  %v10945_v27 = vpop.f32.mrb[112].mxu1  ;;  %v4347_v21 = vpop.f32.mrb[113].mxu0 }
 0x794   : > { %v4562_v23 = vadd.f32 %v14208_v56, %v10945_v27  ;;  %v4348_v26 = vadd.f32 %v14208_v56, %v4347_v21  ;;  %v4556_v34 = vpop.f32.mrb[113].mxu1 }
 0x795   : > { %v4427_v28 = vmax.f32 %v4353_v15, 0.0  ;;  %v4557_v12 = vadd.f32 %v14208_v56, %v4556_v34 }
 0x796   : > { %v4636_v36 = vmax.f32 %v4562_v23, 0.0  ;;  %v4426_v49 = vmax.f32 %v4348_v26, 0.0  ;;  %v10892_v20 = vpop.f32.mrb[114].mxu0 }
 0x797   : > { %v4459_v48 = vadd.f32 %v4427_v28, %v14006_v55  ;;  %v4635_v52 = vmax.f32 %v4557_v12, 0.0  ;;  %v4363_v43 = vadd.f32 %v14208_v56, %v10892_v20  ;;  %v10948_v50 = vpop.f32.mrb[114].mxu1  ;;  %v4357_v7 = vpop.f32.mrb[115].mxu0 }
 0x798   : > { %v4668_v53 = vadd.f32 %v4636_v36, %v14012_v61  ;;  %v4458_v32 = vadd.f32 %v4426_v49, %v14002_v51  ;;  %v4572_v58 = vadd.f32 %v14208_v56, %v10948_v50  ;;  %v4358_v37 = vadd.f32 %v14208_v56, %v4357_v7  ;;  %v4566_v14 = vpop.f32.mrb[115].mxu1 }
 0x799   : > { %8801 = vst [vmem:[%s13355_s25 + $0x608] sm:$0xff] %v4459_v48  ;;  %v4667_v45 = vadd.f32 %v4635_v52, %v14008_v57  ;;  %v4429_v30 = vmax.f32 %v4363_v43, 0.0  ;;  %v4567_v55 = vadd.f32 %v14208_v56, %v4566_v14 }
 0x79a   : > { %8833 = vst [vmem:[%s13355_s25 + $0x688] sm:$0xff] %v4668_v53  ;;  %8800 = vst [vmem:[%s13355_s25 + $0x600] sm:$0xff] %v4458_v32  ;;  %v4638_v15 = vmax.f32 %v4572_v58, 0.0  ;;  %v4428_v27 = vmax.f32 %v4358_v37, 0.0  ;;  %v10895_v21 = vpop.f32.mrb[116].mxu0  ;;  %10999 = vmatprep.mubr.f32.mxu0 %v4458_v32 }
 0x79b   : > { %8832 = vst [vmem:[%s13355_s25 + $0x680] sm:$0xff] %v4667_v45  ;;  %v4461_v51 = vadd.f32 %v4429_v30, %v14026_v17  ;;  %v4637_v61 = vmax.f32 %v4567_v55, 0.0  ;;  %v4373_v23 = vadd.f32 %v14208_v56, %v10895_v21  ;;  %v10951_v26 = vpop.f32.mrb[116].mxu1  ;;  %11055 = vmatprep.mubr.f32.mxu1 %v4667_v45  ;;  %v4367_v57 = vpop.f32.mrb[117].mxu0  ;;  %11000 = vmatmul.mubr.f32.vlgmr.msra.gmra.mrb[128].mxu0 %v4459_v48 }
 0x79c   : > { %v4670_v34 = vadd.f32 %v4638_v15, %v14034_v24  ;;  %v4460_v28 = vadd.f32 %v4428_v27, %v14021_v11  ;;  %v4582_v12 = vadd.f32 %v14208_v56, %v10951_v26  ;;  %v4368_v36 = vadd.f32 %v14208_v56, %v4367_v57  ;;  %v4576_v49 = vpop.f32.mrb[117].mxu1  ;;  %11056 = vmatmul.mubr.f32.vlgmr.msra.gmra.mrb[128].mxu1 %v4668_v53 }
 0x79d   : > { %8803 = vst [vmem:[%s13355_s25 + $0x618] sm:$0xff] %v4461_v51  ;;  %v4669_v17 = vadd.f32 %v4637_v61, %v14028_v18  ;;  %v4431_v20 = vmax.f32 %v4373_v23, 0.0  ;;  %v4577_v52 = vadd.f32 %v14208_v56, %v4576_v49  ;;  %12218 = vmatpush3.bf16.msra.mxu0 %v13177_v3  ;;  %12250 = vmatpush3.bf16.msra.mxu1 %v13177_v3 }
 0x79e   : > { %8835 = vst [vmem:[%s13355_s25 + $0x698] sm:$0xff] %v4670_v34  ;;  %8802 = vst [vmem:[%s13355_s25 + $0x610] sm:$0xff] %v4460_v28  ;;  %v4640_v11 = vmax.f32 %v4582_v12, 0.0  ;;  %v4430_v24 = vmax.f32 %v4368_v36, 0.0  ;;  %v10898_v48 = vpop.f32.mrb[118].mxu0  ;;  %11002 = vmatprep.mubr.f32.mxu0 %v4460_v28  ;;  %12220 = vmatprep.subr.bf16.mxu0 %v13184_v5 }
 0x79f   : > { %8834 = vst [vmem:[%s13355_s25 + $0x690] sm:$0xff] %v4669_v17  ;;  %v4463_v43 = vadd.f32 %v4431_v20, %v14049_v40  ;;  %v4639_v18 = vmax.f32 %v4577_v52, 0.0  ;;  %v4383_v50 = vadd.f32 %v14208_v56, %v10898_v48  ;;  %v10954_v7 = vpop.f32.mrb[118].mxu1  ;;  %11058 = vmatprep.mubr.f32.mxu1 %v4669_v17  ;;  %v4377_v53 = vpop.f32.mrb[119].mxu0  ;;  %11003 = vmatmul.mubr.f32.gmra.mrb[130].mxu0 %v4461_v51 }
 0x7a0   : > { %v4672_v32 = vadd.f32 %v4640_v11, %v14057_v44  ;;  %v4462_v58 = vadd.f32 %v4430_v24, %v14044_v35  ;;  %v4592_v37 = vadd.f32 %v14208_v56, %v10954_v7  ;;  %v4378_v14 = vadd.f32 %v14208_v56, %v4377_v53  ;;  %v4586_v45 = vpop.f32.mrb[119].mxu1  ;;  %11059 = vmatmul.mubr.f32.gmra.mrb[130].mxu1 %v4670_v34 }
 0x7a1   : > { %8805 = vst [vmem:[%s13355_s25 + $0x628] sm:$0xff] %v4463_v43  ;;  %v4671_v40 = vadd.f32 %v4639_v18, %v14051_v41  ;;  %v4433_v30 = vmax.f32 %v4383_v50, 0.0  ;;  %v4587_v55 = vadd.f32 %v14208_v56, %v4586_v45  ;;  %12252 = vmatprep.subr.bf16.mxu1 %v13184_v5  ;;  %12222 = vmatpush3.bf16.msra.mxu0 %v13184_v5 }
 0x7a2   : > { %8837 = vst [vmem:[%s13355_s25 + $0x6a8] sm:$0xff] %v4672_v32  ;;  %8804 = vst [vmem:[%s13355_s25 + $0x620] sm:$0xff] %v4462_v58  ;;  %v4642_v35 = vmax.f32 %v4592_v37, 0.0  ;;  %v4432_v44 = vmax.f32 %v4378_v14, 0.0  ;;  %v10901_v15 = vpop.f32.mrb[120].mxu0  ;;  %11005 = vmatprep.mubr.f32.mxu0 %v4462_v58  ;;  %12254 = vmatpush3.bf16.msra.mxu1 %v13184_v5 }
 0x7a3   : > { %8836 = vst [vmem:[%s13355_s25 + $0x6a0] sm:$0xff] %v4671_v40  ;;  %v4465_v27 = vadd.f32 %v4433_v30, %v14072_v1  ;;  %v4641_v41 = vmax.f32 %v4587_v55, 0.0  ;;  %v4393_v21 = vadd.f32 %v14208_v56, %v10901_v15  ;;  %v10957_v51 = vpop.f32.mrb[120].mxu1  ;;  %11061 = vmatprep.mubr.f32.mxu1 %v4671_v40  ;;  %v4387_v61 = vpop.f32.mrb[121].mxu0  ;;  %11006 = vmatmul.mubr.f32.gmra.mrb[132].mxu0 %v4463_v43 }
 0x7a4   : > { %v4674_v23 = vadd.f32 %v4642_v35, %v14080_v9  ;;  %v4464_v26 = vadd.f32 %v4432_v44, %v14067_v60  ;;  %v4602_v57 = vadd.f32 %v14208_v56, %v10957_v51  ;;  %v4388_v34 = vadd.f32 %v14208_v56, %v4387_v61  ;;  %v4596_v28 = vpop.f32.mrb[121].mxu1  ;;  %11062 = vmatmul.mubr.f32.gmra.mrb[132].mxu1 %v4672_v32 }
 0x7a5   : > { %8807 = vst [vmem:[%s13355_s25 + $0x638] sm:$0xff] %v4465_v27  ;;  %v4673_v1 = vadd.f32 %v4641_v41, %v14074_v2  ;;  %v4435_v12 = vmax.f32 %v4393_v21, 0.0  ;;  %v4597_v36 = vadd.f32 %v14208_v56, %v4596_v28  ;;  %12224 = vmatprep.subr.bf16.mxu0 %v13198_v8  ;;  %12256 = vmatprep.subr.bf16.mxu1 %v13198_v8 }
 0x7a6   : > { %8839 = vst [vmem:[%s13355_s25 + $0x6b8] sm:$0xff] %v4674_v23  ;;  %8806 = vst [vmem:[%s13355_s25 + $0x630] sm:$0xff] %v4464_v26  ;;  %v4644_v60 = vmax.f32 %v4602_v57, 0.0  ;;  %v4434_v9 = vmax.f32 %v4388_v34, 0.0  ;;  %v10904_v49 = vpop.f32.mrb[122].mxu0  ;;  %11008 = vmatprep.mubr.f32.mxu0 %v4464_v26  ;;  %12226 = vmatpush3.bf16.msra.mxu0 %v13198_v8 }
 0x7a7   : > { %8838 = vst [vmem:[%s13355_s25 + $0x6b0] sm:$0xff] %v4673_v1  ;;  %v4467_v17 = vadd.f32 %v4435_v12, %v14095_v46  ;;  %v4643_v2 = vmax.f32 %v4597_v36, 0.0  ;;  %v4403_v20 = vadd.f32 %v14208_v56, %v10904_v49  ;;  %v10960_v52 = vpop.f32.mrb[122].mxu1  ;;  %11064 = vmatprep.mubr.f32.mxu1 %v4673_v1  ;;  %v4397_v11 = vpop.f32.mrb[123].mxu0  ;;  %11009 = vmatmul.mubr.f32.gmra.mrb[134].mxu0 %v4465_v27 }
 0x7a8   : > { %v4676_v24 = vadd.f32 %v4644_v60, %v14103_v39  ;;  %v4466_v48 = vadd.f32 %v4434_v9, %v14090_v29  ;;  %v4612_v43 = vadd.f32 %v14208_v56, %v10960_v52  ;;  %v4398_v18 = vadd.f32 %v14208_v56, %v4397_v11  ;;  %v4606_v50 = vpop.f32.mrb[123].mxu1  ;;  %11065 = vmatmul.mubr.f32.gmra.mrb[134].mxu1 %v4674_v23 }
 0x7a9   : > { %8809 = vst [vmem:[%s13355_s25 + $0x648] sm:$0xff] %v4467_v17  ;;  %v4675_v46 = vadd.f32 %v4643_v2, %v14097_v33  ;;  %v4437_v7 = vmax.f32 %v4403_v20, 0.0  ;;  %v4607_v53 = vadd.f32 %v14208_v56, %v4606_v50  ;;  %12258 = vmatpush3.bf16.msra.mxu1 %v13198_v8  ;;  %12228 = vmatprep.subr.bf16.mxu0 %v13215_v13 }
 0x7aa   : > { %8841 = vst [vmem:[%s13355_s25 + $0x6c8] sm:$0xff] %v4676_v24  ;;  %8808 = vst [vmem:[%s13355_s25 + $0x640] sm:$0xff] %v4466_v48  ;;  %v4646_v29 = vmax.f32 %v4612_v43, 0.0  ;;  %v4436_v39 = vmax.f32 %v4398_v18, 0.0  ;;  %v10907_v32 = vpop.f32.mrb[124].mxu0  ;;  %11011 = vmatprep.mubr.f32.mxu0 %v4466_v48  ;;  %12260 = vmatprep.subr.bf16.mxu1 %v13215_v13  ;;  %v8849_v48 = vld [vmem:[%s13355_s25 + $0x508] sm:$0xff] }
 0x7ab   : > { %8840 = vst [vmem:[%s13355_s25 + $0x6c0] sm:$0xff] %v4675_v46  ;;  %v4469_v58 = vadd.f32 %v4437_v7, %v14118_v63  ;;  %v4645_v33 = vmax.f32 %v4607_v53, 0.0  ;;  %v4413_v37 = vadd.f32 %v14208_v56, %v10907_v32  ;;  %v10963_v14 = vpop.f32.mrb[124].mxu1  ;;  %11067 = vmatprep.mubr.f32.mxu1 %v4675_v46  ;;  %v4407_v45 = vpop.f32.mrb[125].mxu0  ;;  %11012 = vmatmul.mubr.f32.gmra.mrb[136].mxu0 %v4467_v17  ;;  %v8881_v7 = vld [vmem:[%s13355_s25 + $0x588] sm:$0xff]  ;;  %v8848_v53 = vld [vmem:[%s13355_s25 + $0x500] sm:$0xff] }
 0x7ac   : > { %v4678_v40 = vadd.f32 %v4646_v29, %v14126_v10  ;;  %v4468_v30 = vadd.f32 %v4436_v39, %v14113_v54  ;;  %v4622_v55 = vadd.f32 %v14208_v56, %v10963_v14  ;;  %v4408_v35 = vadd.f32 %v14208_v56, %v4407_v45  ;;  %v4616_v44 = vpop.f32.mrb[125].mxu1  ;;  %11068 = vmatmul.mubr.f32.gmra.mrb[136].mxu1 %v4676_v24  ;;  %v8880_v14 = vld [vmem:[%s13355_s25 + $0x580] sm:$0xff] }
 0x7ad   : > { %8811 = vst [vmem:[%s13355_s25 + $0x658] sm:$0xff] %v4469_v58  ;;  %v4677_v63 = vadd.f32 %v4645_v33, %v14120_v0  ;;  %v4439_v15 = vmax.f32 %v4413_v37, 0.0  ;;  %v4617_v27 = vadd.f32 %v14208_v56, %v4616_v44  ;;  %12230 = vmatpush3.bf16.msra.mxu0 %v13215_v13  ;;  %12262 = vmatpush3.bf16.msra.mxu1 %v13215_v13 }
 0x7ae   : > { %8843 = vst [vmem:[%s13355_s25 + $0x6d8] sm:$0xff] %v4678_v40  ;;  %8810 = vst [vmem:[%s13355_s25 + $0x650] sm:$0xff] %v4468_v30  ;;  %v4648_v54 = vmax.f32 %v4622_v55, 0.0  ;;  %v4438_v10 = vmax.f32 %v4408_v35, 0.0  ;;  %v10910_v41 = vpop.f32.mrb[126].mxu0  ;;  %11014 = vmatprep.mubr.f32.mxu0 %v4468_v30  ;;  %12232 = vmatprep.subr.bf16.mxu0 %v13227_v16 }
 0x7af   : > { %8842 = vst [vmem:[%s13355_s25 + $0x6d0] sm:$0xff] %v4677_v63  ;;  %v4471_v21 = vadd.f32 %v4439_v15, %v14141_v38  ;;  %v4647_v0 = vmax.f32 %v4617_v27, 0.0  ;;  %v4423_v51 = vadd.f32 %v14208_v56, %v10910_v41  ;;  %v10966_v61 = vpop.f32.mrb[126].mxu1  ;;  %11070 = vmatprep.mubr.f32.mxu1 %v4677_v63  ;;  %v4417_v23 = vpop.f32.mrb[127].mxu0  ;;  %11015 = vmatmul.mubr.f32.gmra.mrb[138].mxu0 %v4469_v58  ;;  %v8851_v63 = vld [vmem:[%s13355_s25 + $0x518] sm:$0xff] }
 0x7b0   : > { %v4680_v26 = vadd.f32 %v4648_v54, %v14149_v47  ;;  %v4470_v57 = vadd.f32 %v4438_v10, %v14136_v31  ;;  %v4632_v34 = vadd.f32 %v14208_v56, %v10966_v61  ;;  %v4418_v28 = vadd.f32 %v14208_v56, %v4417_v23  ;;  %v4626_v1 = vpop.f32.mrb[127].mxu1  ;;  %11071 = vmatmul.mubr.f32.gmra.mrb[138].mxu1 %v4678_v40  ;;  %v8883_v41 = vld [vmem:[%s13355_s25 + $0x598] sm:$0xff] }
 0x7b1   : > { %8813 = vst [vmem:[%s13355_s25 + $0x668] sm:$0xff] %v4471_v21  ;;  %v4679_v38 = vadd.f32 %v4647_v0, %v14143_v42  ;;  %v4441_v12 = vmax.f32 %v4423_v51, 0.0  ;;  %v4627_v36 = vadd.f32 %v14208_v56, %v4626_v1  ;;  %12264 = vmatprep.subr.bf16.mxu1 %v13227_v16  ;;  %12234 = vmatpush3.bf16.msra.mxu0 %v13227_v16 }
 0x7b2   : > { %8845 = vst [vmem:[%s13355_s25 + $0x6e8] sm:$0xff] %v4680_v26  ;;  %8812 = vst [vmem:[%s13355_s25 + $0x660] sm:$0xff] %v4470_v57  ;;  %v4650_v31 = vmax.f32 %v4632_v34, 0.0  ;;  %v4440_v47 = vmax.f32 %v4418_v28, 0.0  ;;  %11017 = vmatprep.mubr.f32.mxu0 %v4470_v57  ;;  %12266 = vmatpush3.bf16.msra.mxu1 %v13227_v16  ;;  %v8882_v34 = vld [vmem:[%s13355_s25 + $0x590] sm:$0xff] }
 0x7b3   : > { %8844 = vst [vmem:[%s13355_s25 + $0x6e0] sm:$0xff] %v4679_v38  ;;  %v4473_v42 = vadd.f32 %v4441_v12, %v14162_v62  ;;  %v4649_v60 = vmax.f32 %v4627_v36, 0.0  ;;  %11073 = vmatprep.mubr.f32.mxu1 %v4679_v38  ;;  %11018 = vmatmul.mubr.f32.gmra.mrb[140].mxu0 %v4471_v21  ;;  %v8850_v21 = vld [vmem:[%s13355_s25 + $0x510] sm:$0xff] }
 0x7b4   : > { %v4682_v9 = vadd.f32 %v4650_v31, %v14168_v6  ;;  %v4472_v49 = vadd.f32 %v4440_v47, %v14158_v59  ;;  %11074 = vmatmul.mubr.f32.gmra.mrb[140].mxu1 %v4680_v26  ;;  %12236 = vmatprep.subr.bf16.mxu0 %v13239_v19  ;;  %v8853_v47 = vld [vmem:[%s13355_s25 + $0x528] sm:$0xff] }
 0x7b5   : > { %8815 = vst [vmem:[%s13355_s25 + $0x678] sm:$0xff] %v4473_v42  ;;  %v4681_v17 = vadd.f32 %v4649_v60, %v14164_v4  ;;  %12268 = vmatprep.subr.bf16.mxu1 %v13239_v19  ;;  %12238 = vmatpush3.bf16.msra.mxu0 %v13239_v19 }
 0x7b6   : > { %8847 = vst [vmem:[%s13355_s25 + $0x6f8] sm:$0xff] %v4682_v9  ;;  %8814 = vst [vmem:[%s13355_s25 + $0x670] sm:$0xff] %v4472_v49  ;;  %11020 = vmatprep.mubr.f32.mxu0 %v4472_v49  ;;  %12270 = vmatpush3.bf16.msra.mxu1 %v13239_v19 }
 0x7b7   : > { %8846 = vst [vmem:[%s13355_s25 + $0x6f0] sm:$0xff] %v4681_v17  ;;  %11076 = vmatprep.mubr.f32.mxu1 %v4681_v17  ;;  %11021 = vmatmul.mubr.f32.gmra.mrb[142].mxu0 %v4473_v42  ;;  %v8885_v17 = vld [vmem:[%s13355_s25 + $0x5a8] sm:$0xff] }
 0x7b8   : > { %11077 = vmatmul.mubr.f32.gmra.mrb[142].mxu1 %v4682_v9  ;;  %12240 = vmatprep.subr.bf16.mxu0 %v13251_v22 }
 0x7b9   : > { %12272 = vmatprep.subr.bf16.mxu1 %v13251_v22  ;;  %12242 = vmatpush3.bf16.msra.mxu0 %v13251_v22 }
 0x7ba   : > { %12274 = vmatpush3.bf16.msra.mxu1 %v13251_v22  ;;  %12244 = vmatprep.subr.bf16.mxu0 %v13263_v25 }
 0x7bb   : > { %12276 = vmatprep.subr.bf16.mxu1 %v13263_v25 }
 0x7bd   : > { %12246 = vmatpush3.bf16.msra.mxu0 %v13263_v25 }
 0x7be   : > { %12278 = vmatpush3.bf16.msra.mxu1 %v13263_v25  ;;  %12280 = vmatprep.subr.bf16.mxu0 %v13177_v3 }
 0x7bf   : > { %12312 = vmatprep.subr.bf16.mxu1 %v13177_v3 }
 0x86e   : > { %v11001_v59 = vpop.f32.mrb[128].mxu0 }
 0x86f   : > { %v4771_v62 = vadd.f32 %v14208_v56, %v11001_v59  ;;  %v11057_v4 = vpop.f32.mrb[128].mxu1  ;;  %v4765_v6 = vpop.f32.mrb[129].mxu0  ;;  %v8852_v59 = vld [vmem:[%s13355_s25 + $0x520] sm:$0xff] }
 0x870   : > { %v4980_v2 = vadd.f32 %v14208_v56, %v11057_v4  ;;  %v4766_v20 = vadd.f32 %v14208_v56, %v4765_v6  ;;  %v4974_v52 = vpop.f32.mrb[129].mxu1 }
 0x871   : > { %v4845_v11 = vmax.f32 %v4771_v62, 0.0  ;;  %v4975_v24 = vadd.f32 %v14208_v56, %v4974_v52 }
 0x872   : > { %v5054_v43 = vmax.f32 %v4980_v2, 0.0  ;;  %v4844_v18 = vmax.f32 %v4766_v20, 0.0  ;;  %v11004_v50 = vpop.f32.mrb[130].mxu0 }
 0x873   : > { %v4877_v46 = vadd.f32 %v8849_v48, %v4845_v11  ;;  %v5053_v29 = vmax.f32 %v4975_v24, 0.0  ;;  %v4781_v39 = vadd.f32 %v14208_v56, %v11004_v50  ;;  %v11060_v32 = vpop.f32.mrb[130].mxu1  ;;  %v4775_v58 = vpop.f32.mrb[131].mxu0  ;;  %v8884_v11 = vld [vmem:[%s13355_s25 + $0x5a0] sm:$0xff] }
 0x874   : > { %v5086_v33 = vadd.f32 %v8881_v7, %v5054_v43  ;;  %v4876_v37 = vadd.f32 %v8848_v53, %v4844_v18  ;;  %v4990_v45 = vadd.f32 %v14208_v56, %v11060_v32  ;;  %v4776_v40 = vadd.f32 %v14208_v56, %v4775_v58  ;;  %v4984_v30 = vpop.f32.mrb[131].mxu1  ;;  %v14485_v24 = vld [vmem:[%s15696_s2] ss:$0 sm:$0xff]  ;;  %v8855_v7 = vld [vmem:[%s13355_s25 + $0x538] sm:$0xff] }
 0x875   : > { %8865 = vst [vmem:[%s13355_s25 + $0x508] sm:$0xff] %v4877_v46  ;;  %v5085_v55 = vadd.f32 %v8880_v14, %v5053_v29  ;;  %v4847_v35 = vmax.f32 %v4781_v39, 0.0  ;;  %v4985_v44 = vadd.f32 %v14208_v56, %v4984_v30  ;;  %v8887_v58 = vld [vmem:[%s13355_s25 + $0x5b8] sm:$0xff] }
 0x876   : > { %8897 = vst [vmem:[%s13355_s25 + $0x588] sm:$0xff] %v5086_v33  ;;  %8864 = vst [vmem:[%s13355_s25 + $0x500] sm:$0xff] %v4876_v37  ;;  %v5056_v15 = vmax.f32 %v4990_v45, 0.0  ;;  %v4846_v27 = vmax.f32 %v4776_v40, 0.0  ;;  %v11007_v54 = vpop.f32.mrb[132].mxu0  ;;  %11111 = vmatprep.mubr.f32.mxu0 %v4876_v37 }
 0x877   : > { %8896 = vst [vmem:[%s13355_s25 + $0x580] sm:$0xff] %v5085_v55  ;;  %v4879_v10 = vadd.f32 %v8851_v63, %v4847_v35  ;;  %v5055_v0 = vmax.f32 %v4985_v44, 0.0  ;;  %v4791_v51 = vadd.f32 %v14208_v56, %v11007_v54  ;;  %v11063_v61 = vpop.f32.mrb[132].mxu1  ;;  %11167 = vmatprep.mubr.f32.mxu1 %v5085_v55  ;;  %v4785_v23 = vpop.f32.mrb[133].mxu0  ;;  %11112 = vmatmul.mubr.f32.vlgmr.msra.gmra.mrb[144].mxu0 %v4877_v46  ;;  %v8886_v35 = vld [vmem:[%s13355_s25 + $0x5b0] sm:$0xff] }
 0x878   : > { %v5088_v26 = vadd.f32 %v8883_v41, %v5056_v15  ;;  %v4878_v57 = vadd.f32 %v8850_v21, %v4846_v27  ;;  %v5000_v28 = vadd.f32 %v14208_v56, %v11063_v61  ;;  %v4786_v1 = vadd.f32 %v14208_v56, %v4785_v23  ;;  %v4994_v38 = vpop.f32.mrb[133].mxu1  ;;  %11168 = vmatmul.mubr.f32.vlgmr.msra.gmra.mrb[144].mxu1 %v5086_v33  ;;  %v8854_v33 = vld [vmem:[%s13355_s25 + $0x530] sm:$0xff]  ;;  %v8857_v41 = vld [vmem:[%s13355_s25 + $0x548] sm:$0xff] }
 0x879   : > { %8867 = vst [vmem:[%s13355_s25 + $0x518] sm:$0xff] %v4879_v10  ;;  %v5087_v12 = vadd.f32 %v8882_v34, %v5055_v0  ;;  %v4849_v36 = vmax.f32 %v4791_v51, 0.0  ;;  %v4995_v31 = vadd.f32 %v14208_v56, %v4994_v38  ;;  %12282 = vmatpush3.bf16.msra.mxu0 %v13177_v3  ;;  %12314 = vmatpush3.bf16.msra.mxu1 %v13177_v3  ;;  %v8889_v23 = vld [vmem:[%s13355_s25 + $0x5c8] sm:$0xff] }
 0x87a   : > { %8899 = vst [vmem:[%s13355_s25 + $0x598] sm:$0xff] %v5088_v26  ;;  %8866 = vst [vmem:[%s13355_s25 + $0x510] sm:$0xff] %v4878_v57  ;;  %v5058_v42 = vmax.f32 %v5000_v28, 0.0  ;;  %v4848_v60 = vmax.f32 %v4786_v1, 0.0  ;;  %v11010_v9 = vpop.f32.mrb[134].mxu0  ;;  %11114 = vmatprep.mubr.f32.mxu0 %v4878_v57  ;;  %12284 = vmatprep.subr.bf16.mxu0 %v13184_v5 }
 0x87b   : > { %8898 = vst [vmem:[%s13355_s25 + $0x590] sm:$0xff] %v5087_v12  ;;  %v4881_v49 = vadd.f32 %v8853_v47, %v4849_v36  ;;  %v5057_v62 = vmax.f32 %v4995_v31, 0.0  ;;  %v4801_v4 = vadd.f32 %v14208_v56, %v11010_v9  ;;  %v11066_v6 = vpop.f32.mrb[134].mxu1  ;;  %11170 = vmatprep.mubr.f32.mxu1 %v5087_v12  ;;  %v4795_v2 = vpop.f32.mrb[135].mxu0  ;;  %11115 = vmatmul.mubr.f32.gmra.mrb[146].mxu0 %v4879_v10  ;;  %v8888_v36 = vld [vmem:[%s13355_s25 + $0x5c0] sm:$0xff] }
 0x87c   : > { %v5090_v20 = vadd.f32 %v8885_v17, %v5058_v42  ;;  %v4880_v52 = vadd.f32 %v8852_v59, %v4848_v60  ;;  %v5010_v48 = vadd.f32 %v14485_v24, %v11066_v6  ;;  %v4796_v43 = vadd.f32 %v14485_v24, %v4795_v2  ;;  %v5004_v56 = vpop.f32.mrb[135].mxu1  ;;  %11171 = vmatmul.mubr.f32.gmra.mrb[146].mxu1 %v5088_v26  ;;  %v8856_v26 = vld [vmem:[%s13355_s25 + $0x540] sm:$0xff]  ;;  %v8859_v17 = vld [vmem:[%s13355_s25 + $0x558] sm:$0xff] }
 0x87d   : > { %8869 = vst [vmem:[%s13355_s25 + $0x528] sm:$0xff] %v4881_v49  ;;  %v5089_v18 = vadd.f32 %v8884_v11, %v5057_v62  ;;  %v4851_v50 = vmax.f32 %v4801_v4, 0.0  ;;  %v5005_v46 = vadd.f32 %v14485_v24, %v5004_v56  ;;  %12316 = vmatprep.subr.bf16.mxu1 %v13184_v5  ;;  %12286 = vmatpush3.bf16.msra.mxu0 %v13184_v5  ;;  %v8891_v2 = vld [vmem:[%s13355_s25 + $0x5d8] sm:$0xff] }
 0x87e   : > { %8901 = vst [vmem:[%s13355_s25 + $0x5a8] sm:$0xff] %v5090_v20  ;;  %8868 = vst [vmem:[%s13355_s25 + $0x520] sm:$0xff] %v4880_v52  ;;  %v5060_v53 = vmax.f32 %v5010_v48, 0.0  ;;  %v4850_v29 = vmax.f32 %v4796_v43, 0.0  ;;  %v11013_v39 = vpop.f32.mrb[136].mxu0  ;;  %11117 = vmatprep.mubr.f32.mxu0 %v4880_v52  ;;  %12318 = vmatpush3.bf16.msra.mxu1 %v13184_v5 }
 0x87f   : > { %8900 = vst [vmem:[%s13355_s25 + $0x5a0] sm:$0xff] %v5089_v18  ;;  %v4883_v32 = vadd.f32 %v8855_v7, %v4851_v50  ;;  %v5059_v37 = vmax.f32 %v5005_v46, 0.0  ;;  %v4811_v14 = vadd.f32 %v14485_v24, %v11013_v39  ;;  %v11069_v45 = vpop.f32.mrb[136].mxu1  ;;  %11173 = vmatprep.mubr.f32.mxu1 %v5089_v18  ;;  %v4805_v40 = vpop.f32.mrb[137].mxu0  ;;  %11118 = vmatmul.mubr.f32.gmra.mrb[148].mxu0 %v4881_v49  ;;  %v8890_v50 = vld [vmem:[%s13355_s25 + $0x5d0] sm:$0xff] }
 0x880   : > { %v5092_v30 = vadd.f32 %v8887_v58, %v5060_v53  ;;  %v4882_v55 = vadd.f32 %v8854_v33, %v4850_v29  ;;  %v5020_v44 = vadd.f32 %v14485_v24, %v11069_v45  ;;  %v4806_v63 = vadd.f32 %v14485_v24, %v4805_v40  ;;  %v5014_v15 = vpop.f32.mrb[137].mxu1  ;;  %11174 = vmatmul.mubr.f32.gmra.mrb[148].mxu1 %v5090_v20  ;;  %v8858_v20 = vld [vmem:[%s13355_s25 + $0x550] sm:$0xff]  ;;  %v8861_v58 = vld [vmem:[%s13355_s25 + $0x568] sm:$0xff] }
 0x881   : > { %8871 = vst [vmem:[%s13355_s25 + $0x538] sm:$0xff] %v4883_v32  ;;  %v5091_v27 = vadd.f32 %v8886_v35, %v5059_v37  ;;  %v4853_v54 = vmax.f32 %v4811_v14, 0.0  ;;  %v5015_v10 = vadd.f32 %v14485_v24, %v5014_v15  ;;  %12288 = vmatprep.subr.bf16.mxu0 %v13198_v8  ;;  %12320 = vmatprep.subr.bf16.mxu1 %v13198_v8  ;;  %v8893_v40 = vld [vmem:[%s13355_s25 + $0x5e8] sm:$0xff] }
 0x882   : > { %8903 = vst [vmem:[%s13355_s25 + $0x5b8] sm:$0xff] %v5092_v30  ;;  %8870 = vst [vmem:[%s13355_s25 + $0x530] sm:$0xff] %v4882_v55  ;;  %v5062_v21 = vmax.f32 %v5020_v44, 0.0  ;;  %v4852_v0 = vmax.f32 %v4806_v63, 0.0  ;;  %v11016_v51 = vpop.f32.mrb[138].mxu0  ;;  %11120 = vmatprep.mubr.f32.mxu0 %v4882_v55  ;;  %12290 = vmatpush3.bf16.msra.mxu0 %v13198_v8 }
 0x883   : > { %8902 = vst [vmem:[%s13355_s25 + $0x5b0] sm:$0xff] %v5091_v27  ;;  %v4885_v61 = vadd.f32 %v8857_v41, %v4853_v54  ;;  %v5061_v57 = vmax.f32 %v5015_v10, 0.0  ;;  %v4821_v34 = vadd.f32 %v14485_v24, %v11016_v51  ;;  %v11072_v28 = vpop.f32.mrb[138].mxu1  ;;  %11176 = vmatprep.mubr.f32.mxu1 %v5091_v27  ;;  %v4815_v1 = vpop.f32.mrb[139].mxu0  ;;  %11121 = vmatmul.mubr.f32.gmra.mrb[150].mxu0 %v4883_v32  ;;  %v8892_v54 = vld [vmem:[%s13355_s25 + $0x5e0] sm:$0xff] }
 0x884   : > { %v5094_v38 = vadd.f32 %v8889_v23, %v5062_v21  ;;  %v4884_v12 = vadd.f32 %v8856_v26, %v4852_v0  ;;  %v5030_v31 = vadd.f32 %v14485_v24, %v11072_v28  ;;  %v4816_v47 = vadd.f32 %v14485_v24, %v4815_v1  ;;  %v5024_v42 = vpop.f32.mrb[139].mxu1  ;;  %11177 = vmatmul.mubr.f32.gmra.mrb[150].mxu1 %v5092_v30  ;;  %v8860_v30 = vld [vmem:[%s13355_s25 + $0x560] sm:$0xff]  ;;  %v8863_v23 = vld [vmem:[%s13355_s25 + $0x578] sm:$0xff]  ;;  %v8862_v1 = vld [vmem:[%s13355_s25 + $0x570] sm:$0xff] }
 0x885   : > { %8873 = vst [vmem:[%s13355_s25 + $0x548] sm:$0xff] %v4885_v61  ;;  %v5093_v60 = vadd.f32 %v8888_v36, %v5061_v57  ;;  %v4855_v9 = vmax.f32 %v4821_v34, 0.0  ;;  %v5025_v49 = vadd.f32 %v14485_v24, %v5024_v42  ;;  %12322 = vmatpush3.bf16.msra.mxu1 %v13198_v8  ;;  %12292 = vmatprep.subr.bf16.mxu0 %v13215_v13  ;;  %v8895_v28 = vld [vmem:[%s13355_s25 + $0x5f8] sm:$0xff] }
 0x886   : > { %8905 = vst [vmem:[%s13355_s25 + $0x5c8] sm:$0xff] %v5094_v38  ;;  %8872 = vst [vmem:[%s13355_s25 + $0x540] sm:$0xff] %v4884_v12  ;;  %v5064_v59 = vmax.f32 %v5030_v31, 0.0  ;;  %v4854_v62 = vmax.f32 %v4816_v47, 0.0  ;;  %v11019_v4 = vpop.f32.mrb[140].mxu0  ;;  %11123 = vmatprep.mubr.f32.mxu0 %v4884_v12  ;;  %12324 = vmatprep.subr.bf16.mxu1 %v13215_v13  ;;  %v8894_v31 = vld [vmem:[%s13355_s25 + $0x5f0] sm:$0xff] }
 0x887   : > { %8904 = vst [vmem:[%s13355_s25 + $0x5c0] sm:$0xff] %v5093_v60  ;;  %v4887_v6 = vadd.f32 %v8859_v17, %v4855_v9  ;;  %v5063_v52 = vmax.f32 %v5025_v49, 0.0  ;;  %v4831_v11 = vadd.f32 %v14485_v24, %v11019_v4  ;;  %v11075_v48 = vpop.f32.mrb[140].mxu1  ;;  %11179 = vmatprep.mubr.f32.mxu1 %v5093_v60  ;;  %v4825_v43 = vpop.f32.mrb[141].mxu0  ;;  %11124 = vmatmul.mubr.f32.gmra.mrb[152].mxu0 %v4885_v61 }
 0x888   : > { %v5096_v56 = vadd.f32 %v8891_v2, %v5064_v59  ;;  %v4886_v18 = vadd.f32 %v8858_v20, %v4854_v62  ;;  %v5040_v46 = vadd.f32 %v14485_v24, %v11075_v48  ;;  %v4826_v7 = vadd.f32 %v14485_v24, %v4825_v43  ;;  %v5034_v53 = vpop.f32.mrb[141].mxu1  ;;  %11180 = vmatmul.mubr.f32.gmra.mrb[152].mxu1 %v5094_v38  ;;  %v8913_v2 = vld [vmem:[%s13355_s25 + $0x408] sm:$0xff] }
 0x889   : > { %8875 = vst [vmem:[%s13355_s25 + $0x558] sm:$0xff] %v4887_v6  ;;  %v5095_v29 = vadd.f32 %v8890_v50, %v5063_v52  ;;  %v4857_v39 = vmax.f32 %v4831_v11, 0.0  ;;  %v5035_v32 = vadd.f32 %v14485_v24, %v5034_v53  ;;  %12294 = vmatpush3.bf16.msra.mxu0 %v13215_v13  ;;  %12326 = vmatpush3.bf16.msra.mxu1 %v13215_v13  ;;  %v8945_v43 = vld [vmem:[%s13355_s25 + $0x488] sm:$0xff] }
 0x88a   : > { %8907 = vst [vmem:[%s13355_s25 + $0x5d8] sm:$0xff] %v5096_v56  ;;  %8874 = vst [vmem:[%s13355_s25 + $0x550] sm:$0xff] %v4886_v18  ;;  %v5066_v33 = vmax.f32 %v5040_v46, 0.0  ;;  %v4856_v37 = vmax.f32 %v4826_v7, 0.0  ;;  %v11022_v14 = vpop.f32.mrb[142].mxu0  ;;  %11126 = vmatprep.mubr.f32.mxu0 %v4886_v18  ;;  %12296 = vmatprep.subr.bf16.mxu0 %v13227_v16 }
 0x88b   : > { %8906 = vst [vmem:[%s13355_s25 + $0x5d0] sm:$0xff] %v5095_v29  ;;  %v4889_v45 = vadd.f32 %v8861_v58, %v4857_v39  ;;  %v5065_v55 = vmax.f32 %v5035_v32, 0.0  ;;  %v4841_v35 = vadd.f32 %v14485_v24, %v11022_v14  ;;  %v11078_v44 = vpop.f32.mrb[142].mxu1  ;;  %11182 = vmatprep.mubr.f32.mxu1 %v5095_v29  ;;  %v4835_v63 = vpop.f32.mrb[143].mxu0  ;;  %11127 = vmatmul.mubr.f32.gmra.mrb[154].mxu0 %v4887_v6  ;;  %v8944_v39 = vld [vmem:[%s13355_s25 + $0x480] sm:$0xff] }
 0x88c   : > { %v5098_v15 = vadd.f32 %v8893_v40, %v5066_v33  ;;  %v4888_v27 = vadd.f32 %v8860_v30, %v4856_v37  ;;  %v5050_v10 = vadd.f32 %v14485_v24, %v11078_v44  ;;  %v4836_v41 = vadd.f32 %v14485_v24, %v4835_v63  ;;  %v5044_v21 = vpop.f32.mrb[143].mxu1  ;;  %11183 = vmatmul.mubr.f32.gmra.mrb[154].mxu1 %v5096_v56  ;;  %v8912_v56 = vld [vmem:[%s13355_s25 + $0x400] sm:$0xff]  ;;  %v8915_v40 = vld [vmem:[%s13355_s25 + $0x418] sm:$0xff] }
 0x88d   : > { %8877 = vst [vmem:[%s13355_s25 + $0x568] sm:$0xff] %v4889_v45  ;;  %v5097_v0 = vadd.f32 %v8892_v54, %v5065_v55  ;;  %v4859_v51 = vmax.f32 %v4841_v35, 0.0  ;;  %v5045_v61 = vadd.f32 %v14485_v24, %v5044_v21  ;;  %12328 = vmatprep.subr.bf16.mxu1 %v13227_v16  ;;  %12298 = vmatpush3.bf16.msra.mxu0 %v13227_v16  ;;  %v8947_v63 = vld [vmem:[%s13355_s25 + $0x498] sm:$0xff] }
 0x88e   : > { %8909 = vst [vmem:[%s13355_s25 + $0x5e8] sm:$0xff] %v5098_v15  ;;  %8876 = vst [vmem:[%s13355_s25 + $0x560] sm:$0xff] %v4888_v27  ;;  %v5068_v26 = vmax.f32 %v5050_v10, 0.0  ;;  %v4858_v57 = vmax.f32 %v4836_v41, 0.0  ;;  %11129 = vmatprep.mubr.f32.mxu0 %v4888_v27  ;;  %12330 = vmatpush3.bf16.msra.mxu1 %v13227_v16 }
 0x88f   : > { %8908 = vst [vmem:[%s13355_s25 + $0x5e0] sm:$0xff] %v5097_v0  ;;  %v4891_v34 = vadd.f32 %v8863_v23, %v4859_v51  ;;  %v5067_v38 = vmax.f32 %v5045_v61, 0.0  ;;  %11185 = vmatprep.mubr.f32.mxu1 %v5097_v0  ;;  %11130 = vmatmul.mubr.f32.gmra.mrb[156].mxu0 %v4889_v45  ;;  %v8946_v51 = vld [vmem:[%s13355_s25 + $0x490] sm:$0xff] }
 0x890   : > { %v5100_v12 = vadd.f32 %v8895_v28, %v5068_v26  ;;  %v4890_v36 = vadd.f32 %v8862_v1, %v4858_v57  ;;  %11186 = vmatmul.mubr.f32.gmra.mrb[156].mxu1 %v5098_v15  ;;  %12300 = vmatprep.subr.bf16.mxu0 %v13239_v19  ;;  %v8914_v15 = vld [vmem:[%s13355_s25 + $0x410] sm:$0xff]  ;;  %v8917_v1 = vld [vmem:[%s13355_s25 + $0x428] sm:$0xff] }
 0x891   : > { %8879 = vst [vmem:[%s13355_s25 + $0x578] sm:$0xff] %v4891_v34  ;;  %v5099_v47 = vadd.f32 %v8894_v31, %v5067_v38  ;;  %12332 = vmatprep.subr.bf16.mxu1 %v13239_v19  ;;  %12302 = vmatpush3.bf16.msra.mxu0 %v13239_v19 }
 0x892   : > { %8911 = vst [vmem:[%s13355_s25 + $0x5f8] sm:$0xff] %v5100_v12  ;;  %8878 = vst [vmem:[%s13355_s25 + $0x570] sm:$0xff] %v4890_v36  ;;  %11132 = vmatprep.mubr.f32.mxu0 %v4890_v36  ;;  %12334 = vmatpush3.bf16.msra.mxu1 %v13239_v19 }
 0x893   : > { %8910 = vst [vmem:[%s13355_s25 + $0x5f0] sm:$0xff] %v5099_v47  ;;  %11188 = vmatprep.mubr.f32.mxu1 %v5099_v47  ;;  %11133 = vmatmul.mubr.f32.gmra.mrb[158].mxu0 %v4891_v34  ;;  %v8949_v47 = vld [vmem:[%s13355_s25 + $0x4a8] sm:$0xff] }
 0x894   : > { %11189 = vmatmul.mubr.f32.gmra.mrb[158].mxu1 %v5100_v12  ;;  %12304 = vmatprep.subr.bf16.mxu0 %v13251_v22 }
 0x895   : > { %12336 = vmatprep.subr.bf16.mxu1 %v13251_v22  ;;  %12306 = vmatpush3.bf16.msra.mxu0 %v13251_v22 }
 0x896   : > { %12338 = vmatpush3.bf16.msra.mxu1 %v13251_v22  ;;  %12308 = vmatprep.subr.bf16.mxu0 %v13263_v25 }
 0x897   : > { %12340 = vmatprep.subr.bf16.mxu1 %v13263_v25 }
 0x899   : > { %12310 = vmatpush3.bf16.msra.mxu0 %v13263_v25 }
 0x89a   : > { %12342 = vmatpush3.bf16.msra.mxu1 %v13263_v25  ;;  %12344 = vmatprep.subr.bf16.mxu0 %v13177_v3 }
 0x89b   : > { %12376 = vmatprep.subr.bf16.mxu1 %v13177_v3 }
 0x94a   : > { %v11113_v42 = vpop.f32.mrb[144].mxu0 }
 0x94b   : > { %v5189_v60 = vadd.f32 %v14485_v24, %v11113_v42  ;;  %v11169_v9 = vpop.f32.mrb[144].mxu1  ;;  %v5183_v49 = vpop.f32.mrb[145].mxu0  ;;  %v8916_v42 = vld [vmem:[%s13355_s25 + $0x420] sm:$0xff] }
 0x94c   : > { %v5398_v17 = vadd.f32 %v14485_v24, %v11169_v9  ;;  %v5184_v59 = vadd.f32 %v14485_v24, %v5183_v49  ;;  %v5392_v62 = vpop.f32.mrb[145].mxu1 }
 0x94d   : > { %v5263_v4 = vmax.f32 %v5189_v60, 0.0  ;;  %v5393_v6 = vadd.f32 %v14485_v24, %v5392_v62 }
 0x94e   : > { %v5472_v20 = vmax.f32 %v5398_v17, 0.0  ;;  %v5262_v52 = vmax.f32 %v5184_v59, 0.0  ;;  %v11116_v11 = vpop.f32.mrb[146].mxu0 }
 0x94f   : > { %v5295_v48 = vadd.f32 %v8913_v2, %v5263_v4  ;;  %v5471_v18 = vmax.f32 %v5393_v6, 0.0  ;;  %v5199_v50 = vadd.f32 %v14485_v24, %v11116_v11  ;;  %v11172_v46 = vpop.f32.mrb[146].mxu1  ;;  %v5193_v7 = vpop.f32.mrb[147].mxu0  ;;  %v8948_v4 = vld [vmem:[%s13355_s25 + $0x4a0] sm:$0xff] }
 0x950   : > { %v5504_v53 = vadd.f32 %v8945_v43, %v5472_v20  ;;  %v5294_v29 = vadd.f32 %v8912_v56, %v5262_v52  ;;  %v5408_v32 = vadd.f32 %v14485_v24, %v11172_v46  ;;  %v5194_v58 = vadd.f32 %v14485_v24, %v5193_v7  ;;  %v5402_v33 = vpop.f32.mrb[147].mxu1  ;;  %v8919_v43 = vld [vmem:[%s13355_s25 + $0x438] sm:$0xff] }
 0x951   : > { %8929 = vst [vmem:[%s13355_s25 + $0x408] sm:$0xff] %v5295_v48  ;;  %v5503_v37 = vadd.f32 %v8944_v39, %v5471_v18  ;;  %v5265_v14 = vmax.f32 %v5199_v50, 0.0  ;;  %v5403_v45 = vadd.f32 %v14485_v24, %v5402_v33  ;;  %v8951_v7 = vld [vmem:[%s13355_s25 + $0x4b8] sm:$0xff] }
 0x952   : > { %8961 = vst [vmem:[%s13355_s25 + $0x488] sm:$0xff] %v5504_v53  ;;  %8928 = vst [vmem:[%s13355_s25 + $0x400] sm:$0xff] %v5294_v29  ;;  %v5474_v30 = vmax.f32 %v5408_v32, 0.0  ;;  %v5264_v55 = vmax.f32 %v5194_v58, 0.0  ;;  %v11119_v35 = vpop.f32.mrb[148].mxu0  ;;  %11223 = vmatprep.mubr.f32.mxu0 %v5294_v29 }
 0x953   : > { %8960 = vst [vmem:[%s13355_s25 + $0x480] sm:$0xff] %v5503_v37  ;;  %v5297_v44 = vadd.f32 %v8915_v40, %v5265_v14  ;;  %v5473_v27 = vmax.f32 %v5403_v45, 0.0  ;;  %v5209_v54 = vadd.f32 %v14485_v24, %v11119_v35  ;;  %v11175_v10 = vpop.f32.mrb[148].mxu1  ;;  %11279 = vmatprep.mubr.f32.mxu1 %v5503_v37  ;;  %v5203_v41 = vpop.f32.mrb[149].mxu0  ;;  %11224 = vmatmul.mubr.f32.vlgmr.msra.gmra.mrb[160].mxu0 %v5295_v48  ;;  %v8950_v14 = vld [vmem:[%s13355_s25 + $0x4b0] sm:$0xff] }
 0x954   : > { %v5506_v21 = vadd.f32 %v8947_v63, %v5474_v30  ;;  %v5296_v0 = vadd.f32 %v8914_v15, %v5264_v55  ;;  %v5418_v61 = vadd.f32 %v14485_v24, %v11175_v10  ;;  %v5204_v23 = vadd.f32 %v14485_v24, %v5203_v41  ;;  %v5412_v26 = vpop.f32.mrb[149].mxu1  ;;  %11280 = vmatmul.mubr.f32.vlgmr.msra.gmra.mrb[160].mxu1 %v5504_v53  ;;  %v8918_v53 = vld [vmem:[%s13355_s25 + $0x430] sm:$0xff]  ;;  %v8921_v63 = vld [vmem:[%s13355_s25 + $0x448] sm:$0xff] }
 0x955   : > { %8931 = vst [vmem:[%s13355_s25 + $0x418] sm:$0xff] %v5297_v44  ;;  %v5505_v57 = vadd.f32 %v8946_v51, %v5473_v27  ;;  %v5267_v34 = vmax.f32 %v5209_v54, 0.0  ;;  %v5413_v28 = vadd.f32 %v14485_v24, %v5412_v26  ;;  %12346 = vmatpush3.bf16.msra.mxu0 %v13177_v3  ;;  %12378 = vmatpush3.bf16.msra.mxu1 %v13177_v3  ;;  %v8953_v41 = vld [vmem:[%s13355_s25 + $0x4c8] sm:$0xff] }
 0x956   : > { %8963 = vst [vmem:[%s13355_s25 + $0x498] sm:$0xff] %v5506_v21  ;;  %8930 = vst [vmem:[%s13355_s25 + $0x410] sm:$0xff] %v5296_v0  ;;  %v5476_v38 = vmax.f32 %v5418_v61, 0.0  ;;  %v5266_v12 = vmax.f32 %v5204_v23, 0.0  ;;  %v11122_v36 = vpop.f32.mrb[150].mxu0  ;;  %11226 = vmatprep.mubr.f32.mxu0 %v5296_v0  ;;  %12348 = vmatprep.subr.bf16.mxu0 %v13184_v5 }
 0x957   : > { %8962 = vst [vmem:[%s13355_s25 + $0x490] sm:$0xff] %v5505_v57  ;;  %v5299_v31 = vadd.f32 %v8917_v1, %v5267_v34  ;;  %v5475_v60 = vmax.f32 %v5413_v28, 0.0  ;;  %v5219_v9 = vadd.f32 %v14485_v24, %v11122_v36  ;;  %v11178_v49 = vpop.f32.mrb[150].mxu1  ;;  %11282 = vmatprep.mubr.f32.mxu1 %v5505_v57  ;;  %v5213_v17 = vpop.f32.mrb[151].mxu0  ;;  %11227 = vmatmul.mubr.f32.gmra.mrb[162].mxu0 %v5297_v44  ;;  %v8952_v34 = vld [vmem:[%s13355_s25 + $0x4c0] sm:$0xff] }
 0x958   : > { %v5508_v59 = vadd.f32 %v8949_v47, %v5476_v38  ;;  %v5298_v62 = vadd.f32 %v8916_v42, %v5266_v12  ;;  %v5428_v6 = vadd.f32 %v14485_v24, %v11178_v49  ;;  %v5214_v2 = vadd.f32 %v14485_v24, %v5213_v17  ;;  %v5422_v20 = vpop.f32.mrb[151].mxu1  ;;  %11283 = vmatmul.mubr.f32.gmra.mrb[162].mxu1 %v5506_v21  ;;  %v8920_v21 = vld [vmem:[%s13355_s25 + $0x440] sm:$0xff]  ;;  %v8923_v47 = vld [vmem:[%s13355_s25 + $0x458] sm:$0xff] }
 0x959   : > { %8933 = vst [vmem:[%s13355_s25 + $0x428] sm:$0xff] %v5299_v31  ;;  %v5507_v52 = vadd.f32 %v8948_v4, %v5475_v60  ;;  %v5269_v11 = vmax.f32 %v5219_v9, 0.0  ;;  %v5423_v48 = vadd.f32 %v14485_v24, %v5422_v20  ;;  %12380 = vmatprep.subr.bf16.mxu1 %v13184_v5  ;;  %12350 = vmatpush3.bf16.msra.mxu0 %v13184_v5  ;;  %v8955_v17 = vld [vmem:[%s13355_s25 + $0x4d8] sm:$0xff] }
 0x95a   : > { %8965 = vst [vmem:[%s13355_s25 + $0x4a8] sm:$0xff] %v5508_v59  ;;  %8932 = vst [vmem:[%s13355_s25 + $0x420] sm:$0xff] %v5298_v62  ;;  %v5478_v56 = vmax.f32 %v5428_v6, 0.0  ;;  %v5268_v18 = vmax.f32 %v5214_v2, 0.0  ;;  %v11125_v50 = vpop.f32.mrb[152].mxu0  ;;  %11229 = vmatprep.mubr.f32.mxu0 %v5298_v62  ;;  %12382 = vmatpush3.bf16.msra.mxu1 %v13184_v5 }
 0x95b   : > { %8964 = vst [vmem:[%s13355_s25 + $0x4a0] sm:$0xff] %v5507_v52  ;;  %v5301_v46 = vadd.f32 %v8919_v43, %v5269_v11  ;;  %v5477_v29 = vmax.f32 %v5423_v48, 0.0  ;;  %v5229_v39 = vadd.f32 %v14485_v24, %v11125_v50  ;;  %v11181_v32 = vpop.f32.mrb[152].mxu1  ;;  %11285 = vmatprep.mubr.f32.mxu1 %v5507_v52  ;;  %v5223_v58 = vpop.f32.mrb[153].mxu0  ;;  %11230 = vmatmul.mubr.f32.gmra.mrb[164].mxu0 %v5299_v31  ;;  %v8954_v11 = vld [vmem:[%s13355_s25 + $0x4d0] sm:$0xff] }
 0x95c   : > { %v5510_v33 = vadd.f32 %v8951_v7, %v5478_v56  ;;  %v5300_v37 = vadd.f32 %v8918_v53, %v5268_v18  ;;  %v5438_v45 = vadd.f32 %v14485_v24, %v11181_v32  ;;  %v5224_v40 = vadd.f32 %v14485_v24, %v5223_v58  ;;  %v5432_v30 = vpop.f32.mrb[153].mxu1  ;;  %11286 = vmatmul.mubr.f32.gmra.mrb[164].mxu1 %v5508_v59  ;;  %v8922_v59 = vld [vmem:[%s13355_s25 + $0x450] sm:$0xff]  ;;  %v8925_v7 = vld [vmem:[%s13355_s25 + $0x468] sm:$0xff] }
 0x95d   : > { %8935 = vst [vmem:[%s13355_s25 + $0x438] sm:$0xff] %v5301_v46  ;;  %v5509_v55 = vadd.f32 %v8950_v14, %v5477_v29  ;;  %v5271_v35 = vmax.f32 %v5229_v39, 0.0  ;;  %v5433_v44 = vadd.f32 %v14485_v24, %v5432_v30  ;;  %12352 = vmatprep.subr.bf16.mxu0 %v13198_v8  ;;  %12384 = vmatprep.subr.bf16.mxu1 %v13198_v8  ;;  %v8957_v58 = vld [vmem:[%s13355_s25 + $0x4e8] sm:$0xff] }
 0x95e   : > { %8967 = vst [vmem:[%s13355_s25 + $0x4b8] sm:$0xff] %v5510_v33  ;;  %8934 = vst [vmem:[%s13355_s25 + $0x430] sm:$0xff] %v5300_v37  ;;  %v5480_v15 = vmax.f32 %v5438_v45, 0.0  ;;  %v5270_v27 = vmax.f32 %v5224_v40, 0.0  ;;  %v11128_v54 = vpop.f32.mrb[154].mxu0  ;;  %11232 = vmatprep.mubr.f32.mxu0 %v5300_v37  ;;  %12354 = vmatpush3.bf16.msra.mxu0 %v13198_v8 }
 0x95f   : > { %8966 = vst [vmem:[%s13355_s25 + $0x4b0] sm:$0xff] %v5509_v55  ;;  %v5303_v10 = vadd.f32 %v8921_v63, %v5271_v35  ;;  %v5479_v0 = vmax.f32 %v5433_v44, 0.0  ;;  %v5239_v51 = vadd.f32 %v14485_v24, %v11128_v54  ;;  %v11184_v61 = vpop.f32.mrb[154].mxu1  ;;  %11288 = vmatprep.mubr.f32.mxu1 %v5509_v55  ;;  %v5233_v23 = vpop.f32.mrb[155].mxu0  ;;  %11233 = vmatmul.mubr.f32.gmra.mrb[166].mxu0 %v5301_v46  ;;  %v8956_v35 = vld [vmem:[%s13355_s25 + $0x4e0] sm:$0xff] }
 0x960   : > { %v5512_v26 = vadd.f32 %v8953_v41, %v5480_v15  ;;  %v5302_v57 = vadd.f32 %v8920_v21, %v5270_v27  ;;  %v5448_v28 = vadd.f32 %v14485_v24, %v11184_v61  ;;  %v5234_v1 = vadd.f32 %v14485_v24, %v5233_v23  ;;  %v5442_v38 = vpop.f32.mrb[155].mxu1  ;;  %11289 = vmatmul.mubr.f32.gmra.mrb[166].mxu1 %v5510_v33  ;;  %v8924_v33 = vld [vmem:[%s13355_s25 + $0x460] sm:$0xff]  ;;  %v8927_v41 = vld [vmem:[%s13355_s25 + $0x478] sm:$0xff]  ;;  %v8926_v23 = vld [vmem:[%s13355_s25 + $0x470] sm:$0xff] }
 0x961   : > { %8937 = vst [vmem:[%s13355_s25 + $0x448] sm:$0xff] %v5303_v10  ;;  %v5511_v12 = vadd.f32 %v8952_v34, %v5479_v0  ;;  %v5273_v36 = vmax.f32 %v5239_v51, 0.0  ;;  %v5443_v31 = vadd.f32 %v14485_v24, %v5442_v38  ;;  %12386 = vmatpush3.bf16.msra.mxu1 %v13198_v8  ;;  %12356 = vmatprep.subr.bf16.mxu0 %v13215_v13  ;;  %v8959_v61 = vld [vmem:[%s13355_s25 + $0x4f8] sm:$0xff] }
 0x962   : > { %8969 = vst [vmem:[%s13355_s25 + $0x4c8] sm:$0xff] %v5512_v26  ;;  %8936 = vst [vmem:[%s13355_s25 + $0x440] sm:$0xff] %v5302_v57  ;;  %v5482_v42 = vmax.f32 %v5448_v28, 0.0  ;;  %v5272_v60 = vmax.f32 %v5234_v1, 0.0  ;;  %v11131_v9 = vpop.f32.mrb[156].mxu0  ;;  %11235 = vmatprep.mubr.f32.mxu0 %v5302_v57  ;;  %12388 = vmatprep.subr.bf16.mxu1 %v13215_v13  ;;  %v8958_v28 = vld [vmem:[%s13355_s25 + $0x4f0] sm:$0xff] }
 0x963   : > { %8968 = vst [vmem:[%s13355_s25 + $0x4c0] sm:$0xff] %v5511_v12  ;;  %v5305_v49 = vadd.f32 %v8923_v47, %v5273_v36  ;;  %v5481_v62 = vmax.f32 %v5443_v31, 0.0  ;;  %v5249_v4 = vadd.f32 %v14485_v24, %v11131_v9  ;;  %v11187_v6 = vpop.f32.mrb[156].mxu1  ;;  %11291 = vmatprep.mubr.f32.mxu1 %v5511_v12  ;;  %v5243_v2 = vpop.f32.mrb[157].mxu0  ;;  %11236 = vmatmul.mubr.f32.gmra.mrb[168].mxu0 %v5303_v10 }
 0x964   : > { %v5514_v20 = vadd.f32 %v8955_v17, %v5482_v42  ;;  %v5304_v52 = vadd.f32 %v8922_v59, %v5272_v60  ;;  %v5458_v48 = vadd.f32 %v14485_v24, %v11187_v6  ;;  %v5244_v43 = vadd.f32 %v14485_v24, %v5243_v2  ;;  %v5452_v56 = vpop.f32.mrb[157].mxu1  ;;  %11292 = vmatmul.mubr.f32.gmra.mrb[168].mxu1 %v5512_v26  ;;  %v8977_v17 = vld [vmem:[%s13355_s25 + $0x308] sm:$0xff] }
 0x965   : > { %8939 = vst [vmem:[%s13355_s25 + $0x458] sm:$0xff] %v5305_v49  ;;  %v5513_v18 = vadd.f32 %v8954_v11, %v5481_v62  ;;  %v5275_v50 = vmax.f32 %v5249_v4, 0.0  ;;  %v5453_v46 = vadd.f32 %v14485_v24, %v5452_v56  ;;  %12358 = vmatpush3.bf16.msra.mxu0 %v13215_v13  ;;  %12390 = vmatpush3.bf16.msra.mxu1 %v13215_v13  ;;  %v9009_v2 = vld [vmem:[%s13355_s25 + $0x388] sm:$0xff] }
 0x966   : > { %8971 = vst [vmem:[%s13355_s25 + $0x4d8] sm:$0xff] %v5514_v20  ;;  %8938 = vst [vmem:[%s13355_s25 + $0x450] sm:$0xff] %v5304_v52  ;;  %v5484_v53 = vmax.f32 %v5458_v48, 0.0  ;;  %v5274_v29 = vmax.f32 %v5244_v43, 0.0  ;;  %v11134_v39 = vpop.f32.mrb[158].mxu0  ;;  %11238 = vmatprep.mubr.f32.mxu0 %v5304_v52  ;;  %12360 = vmatprep.subr.bf16.mxu0 %v13227_v16 }
 0x967   : > { %8970 = vst [vmem:[%s13355_s25 + $0x4d0] sm:$0xff] %v5513_v18  ;;  %v5307_v32 = vadd.f32 %v8925_v7, %v5275_v50  ;;  %v5483_v37 = vmax.f32 %v5453_v46, 0.0  ;;  %v5259_v14 = vadd.f32 %v14485_v24, %v11134_v39  ;;  %v11190_v45 = vpop.f32.mrb[158].mxu1  ;;  %11294 = vmatprep.mubr.f32.mxu1 %v5513_v18  ;;  %v5253_v40 = vpop.f32.mrb[159].mxu0  ;;  %11239 = vmatmul.mubr.f32.gmra.mrb[170].mxu0 %v5305_v49  ;;  %v9008_v50 = vld [vmem:[%s13355_s25 + $0x380] sm:$0xff] }
 0x968   : > { %v5516_v30 = vadd.f32 %v8957_v58, %v5484_v53  ;;  %v5306_v55 = vadd.f32 %v8924_v33, %v5274_v29  ;;  %v5468_v44 = vadd.f32 %v14485_v24, %v11190_v45  ;;  %v5254_v63 = vadd.f32 %v14485_v24, %v5253_v40  ;;  %v5462_v15 = vpop.f32.mrb[159].mxu1  ;;  %11295 = vmatmul.mubr.f32.gmra.mrb[170].mxu1 %v5514_v20  ;;  %v8976_v20 = vld [vmem:[%s13355_s25 + $0x300] sm:$0xff]  ;;  %v8979_v58 = vld [vmem:[%s13355_s25 + $0x318] sm:$0xff] }
 0x969   : > { %8941 = vst [vmem:[%s13355_s25 + $0x468] sm:$0xff] %v5307_v32  ;;  %v5515_v27 = vadd.f32 %v8956_v35, %v5483_v37  ;;  %v5277_v54 = vmax.f32 %v5259_v14, 0.0  ;;  %v5463_v10 = vadd.f32 %v14485_v24, %v5462_v15  ;;  %12392 = vmatprep.subr.bf16.mxu1 %v13227_v16  ;;  %12362 = vmatpush3.bf16.msra.mxu0 %v13227_v16  ;;  %v9011_v40 = vld [vmem:[%s13355_s25 + $0x398] sm:$0xff] }
 0x96a   : > { %8973 = vst [vmem:[%s13355_s25 + $0x4e8] sm:$0xff] %v5516_v30  ;;  %8940 = vst [vmem:[%s13355_s25 + $0x460] sm:$0xff] %v5306_v55  ;;  %v5486_v21 = vmax.f32 %v5468_v44, 0.0  ;;  %v5276_v0 = vmax.f32 %v5254_v63, 0.0  ;;  %11241 = vmatprep.mubr.f32.mxu0 %v5306_v55  ;;  %12394 = vmatpush3.bf16.msra.mxu1 %v13227_v16 }
 0x96b   : > { %8972 = vst [vmem:[%s13355_s25 + $0x4e0] sm:$0xff] %v5515_v27  ;;  %v5309_v51 = vadd.f32 %v8927_v41, %v5277_v54  ;;  %v5485_v26 = vmax.f32 %v5463_v10, 0.0  ;;  %11297 = vmatprep.mubr.f32.mxu1 %v5515_v27  ;;  %11242 = vmatmul.mubr.f32.gmra.mrb[172].mxu0 %v5307_v32  ;;  %v9010_v54 = vld [vmem:[%s13355_s25 + $0x390] sm:$0xff] }
 0x96c   : > { %v5518_v57 = vadd.f32 %v8959_v61, %v5486_v21  ;;  %v5308_v34 = vadd.f32 %v8926_v23, %v5276_v0  ;;  %11298 = vmatmul.mubr.f32.gmra.mrb[172].mxu1 %v5516_v30  ;;  %12364 = vmatprep.subr.bf16.mxu0 %v13239_v19  ;;  %v8978_v30 = vld [vmem:[%s13355_s25 + $0x310] sm:$0xff]  ;;  %v8981_v23 = vld [vmem:[%s13355_s25 + $0x328] sm:$0xff] }
 0x96d   : > { %8943 = vst [vmem:[%s13355_s25 + $0x478] sm:$0xff] %v5309_v51  ;;  %v5517_v1 = vadd.f32 %v8958_v28, %v5485_v26  ;;  %12396 = vmatprep.subr.bf16.mxu1 %v13239_v19  ;;  %12366 = vmatpush3.bf16.msra.mxu0 %v13239_v19 }
 0x96e   : > { %8975 = vst [vmem:[%s13355_s25 + $0x4f8] sm:$0xff] %v5518_v57  ;;  %8942 = vst [vmem:[%s13355_s25 + $0x470] sm:$0xff] %v5308_v34  ;;  %11244 = vmatprep.mubr.f32.mxu0 %v5308_v34  ;;  %12398 = vmatpush3.bf16.msra.mxu1 %v13239_v19 }
 0x96f   : > { %8974 = vst [vmem:[%s13355_s25 + $0x4f0] sm:$0xff] %v5517_v1  ;;  %11300 = vmatprep.mubr.f32.mxu1 %v5517_v1  ;;  %11245 = vmatmul.mubr.f32.gmra.mrb[174].mxu0 %v5309_v51  ;;  %v9013_v1 = vld [vmem:[%s13355_s25 + $0x3a8] sm:$0xff] }
 0x970   : > { %11301 = vmatmul.mubr.f32.gmra.mrb[174].mxu1 %v5518_v57  ;;  %12368 = vmatprep.subr.bf16.mxu0 %v13251_v22 }
 0x971   : > { %12400 = vmatprep.subr.bf16.mxu1 %v13251_v22  ;;  %12370 = vmatpush3.bf16.msra.mxu0 %v13251_v22 }
 0x972   : > { %12402 = vmatpush3.bf16.msra.mxu1 %v13251_v22  ;;  %12372 = vmatprep.subr.bf16.mxu0 %v13263_v25 }
 0x973   : > { %12404 = vmatprep.subr.bf16.mxu1 %v13263_v25 }
 0x975   : > { %12374 = vmatpush3.bf16.msra.mxu0 %v13263_v25 }
 0x976   : > { %12406 = vmatpush3.bf16.msra.mxu1 %v13263_v25  ;;  %12408 = vmatprep.subr.bf16.mxu0 %v13177_v3 }
 0x977   : > { %12440 = vmatprep.subr.bf16.mxu1 %v13177_v3 }
 0xa26   : > { %v11225_v38 = vpop.f32.mrb[160].mxu0 }
 0xa27   : > { %v5607_v12 = vadd.f32 %v14485_v24, %v11225_v38  ;;  %v11281_v36 = vpop.f32.mrb[160].mxu1  ;;  %v5601_v31 = vpop.f32.mrb[161].mxu0  ;;  %v8980_v38 = vld [vmem:[%s13355_s25 + $0x320] sm:$0xff] }
 0xa28   : > { %v5816_v47 = vadd.f32 %v14485_v24, %v11281_v36  ;;  %v5602_v42 = vadd.f32 %v14485_v24, %v5601_v31  ;;  %v5810_v60 = vpop.f32.mrb[161].mxu1 }
 0xa29   : > { %v5681_v9 = vmax.f32 %v5607_v12, 0.0  ;;  %v5811_v49 = vadd.f32 %v14485_v24, %v5810_v60 }
 0xa2a   : > { %v5890_v59 = vmax.f32 %v5816_v47, 0.0  ;;  %v5680_v62 = vmax.f32 %v5602_v42, 0.0  ;;  %v11228_v4 = vpop.f32.mrb[162].mxu0 }
 0xa2b   : > { %v5713_v6 = vadd.f32 %v8977_v17, %v5681_v9  ;;  %v5889_v52 = vmax.f32 %v5811_v49, 0.0  ;;  %v5617_v11 = vadd.f32 %v14485_v24, %v11228_v4  ;;  %v11284_v48 = vpop.f32.mrb[162].mxu1  ;;  %v5611_v43 = vpop.f32.mrb[163].mxu0  ;;  %v9012_v9 = vld [vmem:[%s13355_s25 + $0x3a0] sm:$0xff] }
 0xa2c   : > { %v5922_v56 = vadd.f32 %v9009_v2, %v5890_v59  ;;  %v5712_v18 = vadd.f32 %v8976_v20, %v5680_v62  ;;  %v5826_v46 = vadd.f32 %v14485_v24, %v11284_v48  ;;  %v5612_v7 = vadd.f32 %v14485_v24, %v5611_v43  ;;  %v5820_v53 = vpop.f32.mrb[163].mxu1  ;;  %v14746_v49 = vld [vmem:[%s15696_s2] ss:$0 sm:$0xff]  ;;  %v8983_v2 = vld [vmem:[%s13355_s25 + $0x338] sm:$0xff] }
 0xa2d   : > { %8993 = vst [vmem:[%s13355_s25 + $0x308] sm:$0xff] %v5713_v6  ;;  %v5921_v29 = vadd.f32 %v9008_v50, %v5889_v52  ;;  %v5683_v39 = vmax.f32 %v5617_v11, 0.0  ;;  %v5821_v32 = vadd.f32 %v14485_v24, %v5820_v53  ;;  %v9015_v43 = vld [vmem:[%s13355_s25 + $0x3b8] sm:$0xff] }
 0xa2e   : > { %9025 = vst [vmem:[%s13355_s25 + $0x388] sm:$0xff] %v5922_v56  ;;  %8992 = vst [vmem:[%s13355_s25 + $0x300] sm:$0xff] %v5712_v18  ;;  %v5892_v33 = vmax.f32 %v5826_v46, 0.0  ;;  %v5682_v37 = vmax.f32 %v5612_v7, 0.0  ;;  %v11231_v14 = vpop.f32.mrb[164].mxu0  ;;  %11335 = vmatprep.mubr.f32.mxu0 %v5712_v18 }
 0xa2f   : > { %9024 = vst [vmem:[%s13355_s25 + $0x380] sm:$0xff] %v5921_v29  ;;  %v5715_v45 = vadd.f32 %v8979_v58, %v5683_v39  ;;  %v5891_v55 = vmax.f32 %v5821_v32, 0.0  ;;  %v5627_v35 = vadd.f32 %v14485_v24, %v11231_v14  ;;  %v11287_v44 = vpop.f32.mrb[164].mxu1  ;;  %11391 = vmatprep.mubr.f32.mxu1 %v5921_v29  ;;  %v5621_v63 = vpop.f32.mrb[165].mxu0  ;;  %11336 = vmatmul.mubr.f32.vlgmr.msra.gmra.mrb[176].mxu0 %v5713_v6  ;;  %v9014_v39 = vld [vmem:[%s13355_s25 + $0x3b0] sm:$0xff] }
 0xa30   : > { %v5924_v15 = vadd.f32 %v9011_v40, %v5892_v33  ;;  %v5714_v27 = vadd.f32 %v8978_v30, %v5682_v37  ;;  %v5836_v10 = vadd.f32 %v14485_v24, %v11287_v44  ;;  %v5622_v41 = vadd.f32 %v14485_v24, %v5621_v63  ;;  %v5830_v21 = vpop.f32.mrb[165].mxu1  ;;  %11392 = vmatmul.mubr.f32.vlgmr.msra.gmra.mrb[176].mxu1 %v5922_v56  ;;  %v8982_v56 = vld [vmem:[%s13355_s25 + $0x330] sm:$0xff]  ;;  %v8985_v40 = vld [vmem:[%s13355_s25 + $0x348] sm:$0xff] }
 0xa31   : > { %8995 = vst [vmem:[%s13355_s25 + $0x318] sm:$0xff] %v5715_v45  ;;  %v5923_v0 = vadd.f32 %v9010_v54, %v5891_v55  ;;  %v5685_v51 = vmax.f32 %v5627_v35, 0.0  ;;  %v5831_v61 = vadd.f32 %v14485_v24, %v5830_v21  ;;  %12410 = vmatpush3.bf16.msra.mxu0 %v13177_v3  ;;  %12442 = vmatpush3.bf16.msra.mxu1 %v13177_v3  ;;  %v9017_v63 = vld [vmem:[%s13355_s25 + $0x3c8] sm:$0xff] }
 0xa32   : > { %9027 = vst [vmem:[%s13355_s25 + $0x398] sm:$0xff] %v5924_v15  ;;  %8994 = vst [vmem:[%s13355_s25 + $0x310] sm:$0xff] %v5714_v27  ;;  %v5894_v26 = vmax.f32 %v5836_v10, 0.0  ;;  %v5684_v57 = vmax.f32 %v5622_v41, 0.0  ;;  %v11234_v34 = vpop.f32.mrb[166].mxu0  ;;  %11338 = vmatprep.mubr.f32.mxu0 %v5714_v27  ;;  %12412 = vmatprep.subr.bf16.mxu0 %v13184_v5 }
 0xa33   : > { %9026 = vst [vmem:[%s13355_s25 + $0x390] sm:$0xff] %v5923_v0  ;;  %v5717_v28 = vadd.f32 %v8981_v23, %v5685_v51  ;;  %v5893_v12 = vmax.f32 %v5831_v61, 0.0  ;;  %v5637_v36 = vadd.f32 %v14485_v24, %v11234_v34  ;;  %v11290_v31 = vpop.f32.mrb[166].mxu1  ;;  %11394 = vmatprep.mubr.f32.mxu1 %v5923_v0  ;;  %v5631_v47 = vpop.f32.mrb[167].mxu0  ;;  %11339 = vmatmul.mubr.f32.gmra.mrb[178].mxu0 %v5715_v45  ;;  %v9016_v51 = vld [vmem:[%s13355_s25 + $0x3c0] sm:$0xff] }
 0xa34   : > { %v5926_v42 = vadd.f32 %v9013_v1, %v5894_v26  ;;  %v5716_v60 = vadd.f32 %v8980_v38, %v5684_v57  ;;  %v5846_v17 = vadd.f32 %v14746_v49, %v11290_v31  ;;  %v5632_v59 = vadd.f32 %v14746_v49, %v5631_v47  ;;  %v5840_v24 = vpop.f32.mrb[167].mxu1  ;;  %11395 = vmatmul.mubr.f32.gmra.mrb[178].mxu1 %v5924_v15  ;;  %v8984_v15 = vld [vmem:[%s13355_s25 + $0x340] sm:$0xff]  ;;  %v8987_v1 = vld [vmem:[%s13355_s25 + $0x358] sm:$0xff] }
 0xa35   : > { %8997 = vst [vmem:[%s13355_s25 + $0x328] sm:$0xff] %v5717_v28  ;;  %v5925_v62 = vadd.f32 %v9012_v9, %v5893_v12  ;;  %v5687_v4 = vmax.f32 %v5637_v36, 0.0  ;;  %v5841_v6 = vadd.f32 %v14746_v49, %v5840_v24  ;;  %12444 = vmatprep.subr.bf16.mxu1 %v13184_v5  ;;  %12414 = vmatpush3.bf16.msra.mxu0 %v13184_v5  ;;  %v9019_v47 = vld [vmem:[%s13355_s25 + $0x3d8] sm:$0xff] }
 0xa36   : > { %9029 = vst [vmem:[%s13355_s25 + $0x3a8] sm:$0xff] %v5926_v42  ;;  %8996 = vst [vmem:[%s13355_s25 + $0x320] sm:$0xff] %v5716_v60  ;;  %v5896_v20 = vmax.f32 %v5846_v17, 0.0  ;;  %v5686_v52 = vmax.f32 %v5632_v59, 0.0  ;;  %v11237_v11 = vpop.f32.mrb[168].mxu0  ;;  %11341 = vmatprep.mubr.f32.mxu0 %v5716_v60  ;;  %12446 = vmatpush3.bf16.msra.mxu1 %v13184_v5 }
 0xa37   : > { %9028 = vst [vmem:[%s13355_s25 + $0x3a0] sm:$0xff] %v5925_v62  ;;  %v5719_v48 = vadd.f32 %v8983_v2, %v5687_v4  ;;  %v5895_v18 = vmax.f32 %v5841_v6, 0.0  ;;  %v5647_v50 = vadd.f32 %v14746_v49, %v11237_v11  ;;  %v11293_v46 = vpop.f32.mrb[168].mxu1  ;;  %11397 = vmatprep.mubr.f32.mxu1 %v5925_v62  ;;  %v5641_v7 = vpop.f32.mrb[169].mxu0  ;;  %11342 = vmatmul.mubr.f32.gmra.mrb[180].mxu0 %v5717_v28  ;;  %v9018_v4 = vld [vmem:[%s13355_s25 + $0x3d0] sm:$0xff] }
 0xa38   : > { %v5928_v53 = vadd.f32 %v9015_v43, %v5896_v20  ;;  %v5718_v29 = vadd.f32 %v8982_v56, %v5686_v52  ;;  %v5856_v32 = vadd.f32 %v14746_v49, %v11293_v46  ;;  %v5642_v58 = vadd.f32 %v14746_v49, %v5641_v7  ;;  %v5850_v33 = vpop.f32.mrb[169].mxu1  ;;  %11398 = vmatmul.mubr.f32.gmra.mrb[180].mxu1 %v5926_v42  ;;  %v8986_v42 = vld [vmem:[%s13355_s25 + $0x350] sm:$0xff]  ;;  %v8989_v43 = vld [vmem:[%s13355_s25 + $0x368] sm:$0xff] }
 0xa39   : > { %8999 = vst [vmem:[%s13355_s25 + $0x338] sm:$0xff] %v5719_v48  ;;  %v5927_v37 = vadd.f32 %v9014_v39, %v5895_v18  ;;  %v5689_v14 = vmax.f32 %v5647_v50, 0.0  ;;  %v5851_v45 = vadd.f32 %v14746_v49, %v5850_v33  ;;  %12416 = vmatprep.subr.bf16.mxu0 %v13198_v8  ;;  %12448 = vmatprep.subr.bf16.mxu1 %v13198_v8  ;;  %v9021_v7 = vld [vmem:[%s13355_s25 + $0x3e8] sm:$0xff] }
 0xa3a   : > { %9031 = vst [vmem:[%s13355_s25 + $0x3b8] sm:$0xff] %v5928_v53  ;;  %8998 = vst [vmem:[%s13355_s25 + $0x330] sm:$0xff] %v5718_v29  ;;  %v5898_v30 = vmax.f32 %v5856_v32, 0.0  ;;  %v5688_v55 = vmax.f32 %v5642_v58, 0.0  ;;  %v11240_v35 = vpop.f32.mrb[170].mxu0  ;;  %11344 = vmatprep.mubr.f32.mxu0 %v5718_v29  ;;  %12418 = vmatpush3.bf16.msra.mxu0 %v13198_v8 }
 0xa3b   : > { %9030 = vst [vmem:[%s13355_s25 + $0x3b0] sm:$0xff] %v5927_v37  ;;  %v5721_v44 = vadd.f32 %v8985_v40, %v5689_v14  ;;  %v5897_v27 = vmax.f32 %v5851_v45, 0.0  ;;  %v5657_v54 = vadd.f32 %v14746_v49, %v11240_v35  ;;  %v11296_v10 = vpop.f32.mrb[170].mxu1  ;;  %11400 = vmatprep.mubr.f32.mxu1 %v5927_v37  ;;  %v5651_v41 = vpop.f32.mrb[171].mxu0  ;;  %11345 = vmatmul.mubr.f32.gmra.mrb[182].mxu0 %v5719_v48  ;;  %v9020_v14 = vld [vmem:[%s13355_s25 + $0x3e0] sm:$0xff] }
 0xa3c   : > { %v5930_v21 = vadd.f32 %v9017_v63, %v5898_v30  ;;  %v5720_v0 = vadd.f32 %v8984_v15, %v5688_v55  ;;  %v5866_v61 = vadd.f32 %v14746_v49, %v11296_v10  ;;  %v5652_v23 = vadd.f32 %v14746_v49, %v5651_v41  ;;  %v5860_v26 = vpop.f32.mrb[171].mxu1  ;;  %11401 = vmatmul.mubr.f32.gmra.mrb[182].mxu1 %v5928_v53  ;;  %v8988_v53 = vld [vmem:[%s13355_s25 + $0x360] sm:$0xff]  ;;  %v8991_v63 = vld [vmem:[%s13355_s25 + $0x378] sm:$0xff]  ;;  %v8990_v41 = vld [vmem:[%s13355_s25 + $0x370] sm:$0xff] }
 0xa3d   : > { %9001 = vst [vmem:[%s13355_s25 + $0x348] sm:$0xff] %v5721_v44  ;;  %v5929_v57 = vadd.f32 %v9016_v51, %v5897_v27  ;;  %v5691_v34 = vmax.f32 %v5657_v54, 0.0  ;;  %v5861_v28 = vadd.f32 %v14746_v49, %v5860_v26  ;;  %12450 = vmatpush3.bf16.msra.mxu1 %v13198_v8  ;;  %12420 = vmatprep.subr.bf16.mxu0 %v13215_v13  ;;  %v9023_v10 = vld [vmem:[%s13355_s25 + $0x3f8] sm:$0xff] }
 0xa3e   : > { %9033 = vst [vmem:[%s13355_s25 + $0x3c8] sm:$0xff] %v5930_v21  ;;  %9000 = vst [vmem:[%s13355_s25 + $0x340] sm:$0xff] %v5720_v0  ;;  %v5900_v38 = vmax.f32 %v5866_v61, 0.0  ;;  %v5690_v12 = vmax.f32 %v5652_v23, 0.0  ;;  %v11243_v36 = vpop.f32.mrb[172].mxu0  ;;  %11347 = vmatprep.mubr.f32.mxu0 %v5720_v0  ;;  %12452 = vmatprep.subr.bf16.mxu1 %v13215_v13  ;;  %v9022_v61 = vld [vmem:[%s13355_s25 + $0x3f0] sm:$0xff] }
 0xa3f   : > { %9032 = vst [vmem:[%s13355_s25 + $0x3c0] sm:$0xff] %v5929_v57  ;;  %v5723_v31 = vadd.f32 %v8987_v1, %v5691_v34  ;;  %v5899_v60 = vmax.f32 %v5861_v28, 0.0  ;;  %v5667_v9 = vadd.f32 %v14746_v49, %v11243_v36  ;;  %v11299_v17 = vpop.f32.mrb[172].mxu1  ;;  %11403 = vmatprep.mubr.f32.mxu1 %v5929_v57  ;;  %v5661_v59 = vpop.f32.mrb[173].mxu0  ;;  %11348 = vmatmul.mubr.f32.gmra.mrb[184].mxu0 %v5721_v44 }
 0xa40   : > { %v5932_v24 = vadd.f32 %v9019_v47, %v5900_v38  ;;  %v5722_v62 = vadd.f32 %v8986_v42, %v5690_v12  ;;  %v5876_v6 = vadd.f32 %v14746_v49, %v11299_v17  ;;  %v5662_v2 = vadd.f32 %v14746_v49, %v5661_v59  ;;  %v5870_v20 = vpop.f32.mrb[173].mxu1  ;;  %11404 = vmatmul.mubr.f32.gmra.mrb[184].mxu1 %v5930_v21  ;;  %v9041_v47 = vld [vmem:[%s13355_s25 + $0x208] sm:$0xff] }
 0xa41   : > { %9003 = vst [vmem:[%s13355_s25 + $0x358] sm:$0xff] %v5723_v31  ;;  %v5931_v52 = vadd.f32 %v9018_v4, %v5899_v60  ;;  %v5693_v11 = vmax.f32 %v5667_v9, 0.0  ;;  %v5871_v48 = vadd.f32 %v14746_v49, %v5870_v20  ;;  %12422 = vmatpush3.bf16.msra.mxu0 %v13215_v13  ;;  %12454 = vmatpush3.bf16.msra.mxu1 %v13215_v13  ;;  %v9073_v59 = vld [vmem:[%s13355_s25 + $0x288] sm:$0xff] }
 0xa42   : > { %9035 = vst [vmem:[%s13355_s25 + $0x3d8] sm:$0xff] %v5932_v24  ;;  %9002 = vst [vmem:[%s13355_s25 + $0x350] sm:$0xff] %v5722_v62  ;;  %v5902_v56 = vmax.f32 %v5876_v6, 0.0  ;;  %v5692_v18 = vmax.f32 %v5662_v2, 0.0  ;;  %v11246_v50 = vpop.f32.mrb[174].mxu0  ;;  %11350 = vmatprep.mubr.f32.mxu0 %v5722_v62  ;;  %12424 = vmatprep.subr.bf16.mxu0 %v13227_v16 }
 0xa43   : > { %9034 = vst [vmem:[%s13355_s25 + $0x3d0] sm:$0xff] %v5931_v52  ;;  %v5725_v46 = vadd.f32 %v8989_v43, %v5693_v11  ;;  %v5901_v29 = vmax.f32 %v5871_v48, 0.0  ;;  %v5677_v39 = vadd.f32 %v14746_v49, %v11246_v50  ;;  %v11302_v32 = vpop.f32.mrb[174].mxu1  ;;  %11406 = vmatprep.mubr.f32.mxu1 %v5931_v52  ;;  %v5671_v58 = vpop.f32.mrb[175].mxu0  ;;  %11351 = vmatmul.mubr.f32.gmra.mrb[186].mxu0 %v5723_v31  ;;  %v9072_v11 = vld [vmem:[%s13355_s25 + $0x280] sm:$0xff] }
 0xa44   : > { %v5934_v33 = vadd.f32 %v9021_v7, %v5902_v56  ;;  %v5724_v37 = vadd.f32 %v8988_v53, %v5692_v18  ;;  %v5886_v45 = vadd.f32 %v14746_v49, %v11302_v32  ;;  %v5672_v40 = vadd.f32 %v14746_v49, %v5671_v58  ;;  %v5880_v30 = vpop.f32.mrb[175].mxu1  ;;  %11407 = vmatmul.mubr.f32.gmra.mrb[186].mxu1 %v5932_v24  ;;  %v9040_v24 = vld [vmem:[%s13355_s25 + $0x200] sm:$0xff]  ;;  %v9043_v7 = vld [vmem:[%s13355_s25 + $0x218] sm:$0xff] }
 0xa45   : > { %9005 = vst [vmem:[%s13355_s25 + $0x368] sm:$0xff] %v5725_v46  ;;  %v5933_v55 = vadd.f32 %v9020_v14, %v5901_v29  ;;  %v5695_v35 = vmax.f32 %v5677_v39, 0.0  ;;  %v5881_v44 = vadd.f32 %v14746_v49, %v5880_v30  ;;  %12456 = vmatprep.subr.bf16.mxu1 %v13227_v16  ;;  %12426 = vmatpush3.bf16.msra.mxu0 %v13227_v16  ;;  %v9075_v58 = vld [vmem:[%s13355_s25 + $0x298] sm:$0xff] }
 0xa46   : > { %9037 = vst [vmem:[%s13355_s25 + $0x3e8] sm:$0xff] %v5934_v33  ;;  %9004 = vst [vmem:[%s13355_s25 + $0x360] sm:$0xff] %v5724_v37  ;;  %v5904_v15 = vmax.f32 %v5886_v45, 0.0  ;;  %v5694_v27 = vmax.f32 %v5672_v40, 0.0  ;;  %11353 = vmatprep.mubr.f32.mxu0 %v5724_v37  ;;  %12458 = vmatpush3.bf16.msra.mxu1 %v13227_v16 }
 0xa47   : > { %9036 = vst [vmem:[%s13355_s25 + $0x3e0] sm:$0xff] %v5933_v55  ;;  %v5727_v54 = vadd.f32 %v8991_v63, %v5695_v35  ;;  %v5903_v21 = vmax.f32 %v5881_v44, 0.0  ;;  %11409 = vmatprep.mubr.f32.mxu1 %v5933_v55  ;;  %11354 = vmatmul.mubr.f32.gmra.mrb[188].mxu0 %v5725_v46  ;;  %v9074_v35 = vld [vmem:[%s13355_s25 + $0x290] sm:$0xff] }
 0xa48   : > { %v5936_v0 = vadd.f32 %v9023_v10, %v5904_v15  ;;  %v5726_v51 = vadd.f32 %v8990_v41, %v5694_v27  ;;  %11410 = vmatmul.mubr.f32.gmra.mrb[188].mxu1 %v5934_v33  ;;  %12428 = vmatprep.subr.bf16.mxu0 %v13239_v19  ;;  %v9042_v33 = vld [vmem:[%s13355_s25 + $0x210] sm:$0xff]  ;;  %v9045_v41 = vld [vmem:[%s13355_s25 + $0x228] sm:$0xff] }
 0xa49   : > { %9007 = vst [vmem:[%s13355_s25 + $0x378] sm:$0xff] %v5727_v54  ;;  %v5935_v23 = vadd.f32 %v9022_v61, %v5903_v21  ;;  %12460 = vmatprep.subr.bf16.mxu1 %v13239_v19  ;;  %12430 = vmatpush3.bf16.msra.mxu0 %v13239_v19 }
 0xa4a   : > { %9039 = vst [vmem:[%s13355_s25 + $0x3f8] sm:$0xff] %v5936_v0  ;;  %9006 = vst [vmem:[%s13355_s25 + $0x370] sm:$0xff] %v5726_v51  ;;  %11356 = vmatprep.mubr.f32.mxu0 %v5726_v51  ;;  %12462 = vmatpush3.bf16.msra.mxu1 %v13239_v19 }
 0xa4b   : > { %9038 = vst [vmem:[%s13355_s25 + $0x3f0] sm:$0xff] %v5935_v23  ;;  %11412 = vmatprep.mubr.f32.mxu1 %v5935_v23  ;;  %11357 = vmatmul.mubr.f32.gmra.mrb[190].mxu0 %v5727_v54  ;;  %v9077_v23 = vld [vmem:[%s13355_s25 + $0x2a8] sm:$0xff] }
 0xa4c   : > { %11413 = vmatmul.mubr.f32.gmra.mrb[190].mxu1 %v5936_v0  ;;  %12432 = vmatprep.subr.bf16.mxu0 %v13251_v22 }
 0xa4d   : > { %12464 = vmatprep.subr.bf16.mxu1 %v13251_v22  ;;  %12434 = vmatpush3.bf16.msra.mxu0 %v13251_v22 }
 0xa4e   : > { %12466 = vmatpush3.bf16.msra.mxu1 %v13251_v22  ;;  %12436 = vmatprep.subr.bf16.mxu0 %v13263_v25 }
 0xa4f   : > { %12468 = vmatprep.subr.bf16.mxu1 %v13263_v25 }
 0xa51   : > { %12438 = vmatpush3.bf16.msra.mxu0 %v13263_v25 }
 0xa52   : > { %12470 = vmatpush3.bf16.msra.mxu1 %v13263_v25  ;;  %12472 = vmatprep.subr.bf16.mxu0 %v13177_v3 }
 0xa53   : > { %12504 = vmatprep.subr.bf16.mxu1 %v13177_v3 }
 0xb02   : > { %v11337_v26 = vpop.f32.mrb[176].mxu0 }
 0xb03   : > { %v6025_v57 = vadd.f32 %v14746_v49, %v11337_v26  ;;  %v11393_v34 = vpop.f32.mrb[176].mxu1  ;;  %v6019_v28 = vpop.f32.mrb[177].mxu0  ;;  %v9044_v26 = vld [vmem:[%s13355_s25 + $0x220] sm:$0xff] }
 0xb04   : > { %v6234_v1 = vadd.f32 %v14746_v49, %v11393_v34  ;;  %v6020_v38 = vadd.f32 %v14746_v49, %v6019_v28  ;;  %v6228_v12 = vpop.f32.mrb[177].mxu1 }
 0xb05   : > { %v6099_v36 = vmax.f32 %v6025_v57, 0.0  ;;  %v6229_v31 = vadd.f32 %v14746_v49, %v6228_v12  ;;  %v9076_v12 = vld [vmem:[%s13355_s25 + $0x2a0] sm:$0xff] }
 0xb06   : > { %v6308_v42 = vmax.f32 %v6234_v1, 0.0  ;;  %v6098_v60 = vmax.f32 %v6020_v38, 0.0  ;;  %v11340_v9 = vpop.f32.mrb[178].mxu0 }
 0xb07   : > { %v6131_v17 = vadd.f32 %v9041_v47, %v6099_v36  ;;  %v6307_v62 = vmax.f32 %v6229_v31, 0.0  ;;  %v6035_v4 = vadd.f32 %v14746_v49, %v11340_v9  ;;  %v11396_v6 = vpop.f32.mrb[178].mxu1  ;;  %v6029_v2 = vpop.f32.mrb[179].mxu0 }
 0xb08   : > { %v6340_v20 = vadd.f32 %v9073_v59, %v6308_v42  ;;  %v6130_v52 = vadd.f32 %v9040_v24, %v6098_v60  ;;  %v6244_v48 = vadd.f32 %v14746_v49, %v11396_v6  ;;  %v6030_v43 = vadd.f32 %v14746_v49, %v6029_v2  ;;  %v6238_v56 = vpop.f32.mrb[179].mxu1  ;;  %v9079_v6 = vld [vmem:[%s13355_s25 + $0x2b8] sm:$0xff]  ;;  %v9046_v2 = vld [vmem:[%s13355_s25 + $0x230] sm:$0xff] }
 0xb09   : > { %9057 = vst [vmem:[%s13355_s25 + $0x208] sm:$0xff] %v6131_v17  ;;  %v6339_v18 = vadd.f32 %v9072_v11, %v6307_v62  ;;  %v6101_v50 = vmax.f32 %v6035_v4, 0.0  ;;  %v6239_v46 = vadd.f32 %v14746_v49, %v6238_v56 }
 0xb0a   : > { %9089 = vst [vmem:[%s13355_s25 + $0x288] sm:$0xff] %v6340_v20  ;;  %9056 = vst [vmem:[%s13355_s25 + $0x200] sm:$0xff] %v6130_v52  ;;  %v6310_v53 = vmax.f32 %v6244_v48, 0.0  ;;  %v6100_v29 = vmax.f32 %v6030_v43, 0.0  ;;  %v11343_v39 = vpop.f32.mrb[180].mxu0  ;;  %11447 = vmatprep.mubr.f32.mxu0 %v6130_v52 }
 0xb0b   : > { %9088 = vst [vmem:[%s13355_s25 + $0x280] sm:$0xff] %v6339_v18  ;;  %v6133_v32 = vadd.f32 %v9043_v7, %v6101_v50  ;;  %v6309_v37 = vmax.f32 %v6239_v46, 0.0  ;;  %v6045_v14 = vadd.f32 %v14746_v49, %v11343_v39  ;;  %v11399_v45 = vpop.f32.mrb[180].mxu1  ;;  %11503 = vmatprep.mubr.f32.mxu1 %v6339_v18  ;;  %v6039_v40 = vpop.f32.mrb[181].mxu0  ;;  %11448 = vmatmul.mubr.f32.vlgmr.msra.gmra.mrb[192].mxu0 %v6131_v17  ;;  %v9047_v17 = vld [vmem:[%s13355_s25 + $0x238] sm:$0xff]  ;;  %v9078_v18 = vld [vmem:[%s13355_s25 + $0x2b0] sm:$0xff] }
 0xb0c   : > { %v6342_v30 = vadd.f32 %v9075_v58, %v6310_v53  ;;  %v6132_v55 = vadd.f32 %v9042_v33, %v6100_v29  ;;  %v6254_v44 = vadd.f32 %v14746_v49, %v11399_v45  ;;  %v6040_v63 = vadd.f32 %v14746_v49, %v6039_v40  ;;  %v6248_v15 = vpop.f32.mrb[181].mxu1  ;;  %11504 = vmatmul.mubr.f32.vlgmr.msra.gmra.mrb[192].mxu1 %v6340_v20  ;;  %v9049_v39 = vld [vmem:[%s13355_s25 + $0x248] sm:$0xff]  ;;  %v9048_v45 = vld [vmem:[%s13355_s25 + $0x240] sm:$0xff] }
 0xb0d   : > { %9059 = vst [vmem:[%s13355_s25 + $0x218] sm:$0xff] %v6133_v32  ;;  %v6341_v27 = vadd.f32 %v9074_v35, %v6309_v37  ;;  %v6103_v54 = vmax.f32 %v6045_v14, 0.0  ;;  %v6249_v10 = vadd.f32 %v14746_v49, %v6248_v15  ;;  %12474 = vmatpush3.bf16.msra.mxu0 %v13177_v3  ;;  %12506 = vmatpush3.bf16.msra.mxu1 %v13177_v3  ;;  %v9081_v14 = vld [vmem:[%s13355_s25 + $0x2c8] sm:$0xff]  ;;  %v9080_v15 = vld [vmem:[%s13355_s25 + $0x2c0] sm:$0xff] }
 0xb0e   : > { %9091 = vst [vmem:[%s13355_s25 + $0x298] sm:$0xff] %v6342_v30  ;;  %9058 = vst [vmem:[%s13355_s25 + $0x210] sm:$0xff] %v6132_v55  ;;  %v6312_v21 = vmax.f32 %v6254_v44, 0.0  ;;  %v6102_v0 = vmax.f32 %v6040_v63, 0.0  ;;  %v11346_v51 = vpop.f32.mrb[182].mxu0  ;;  %11450 = vmatprep.mubr.f32.mxu0 %v6132_v55  ;;  %12476 = vmatprep.subr.bf16.mxu0 %v13184_v5 }
 0xb0f   : > { %9090 = vst [vmem:[%s13355_s25 + $0x290] sm:$0xff] %v6341_v27  ;;  %v6135_v61 = vadd.f32 %v9045_v41, %v6103_v54  ;;  %v6311_v57 = vmax.f32 %v6249_v10, 0.0  ;;  %v6055_v34 = vadd.f32 %v14746_v49, %v11346_v51  ;;  %v11402_v28 = vpop.f32.mrb[182].mxu1  ;;  %11506 = vmatprep.mubr.f32.mxu1 %v6341_v27  ;;  %v6049_v3 = vpop.f32.mrb[183].mxu0  ;;  %11451 = vmatmul.mubr.f32.gmra.mrb[194].mxu0 %v6133_v32  ;;  %v9051_v51 = vld [vmem:[%s13355_s25 + $0x258] sm:$0xff] }
 0xb10   : > { %v6344_v1 = vadd.f32 %v9077_v23, %v6312_v21  ;;  %v6134_v38 = vadd.f32 %v9044_v26, %v6102_v0  ;;  %v6264_v36 = vadd.f32 %v14746_v49, %v11402_v28  ;;  %v6050_v31 = vadd.f32 %v14746_v49, %v6049_v3  ;;  %v6258_v47 = vpop.f32.mrb[183].mxu1  ;;  %11507 = vmatmul.mubr.f32.gmra.mrb[194].mxu1 %v6342_v30  ;;  %v9050_v28 = vld [vmem:[%s13355_s25 + $0x250] sm:$0xff] }
 0xb11   : > { %9061 = vst [vmem:[%s13355_s25 + $0x228] sm:$0xff] %v6135_v61  ;;  %v6343_v42 = vadd.f32 %v9076_v12, %v6311_v57  ;;  %v6105_v60 = vmax.f32 %v6055_v34, 0.0  ;;  %v6259_v9 = vadd.f32 %v14746_v49, %v6258_v47  ;;  %12508 = vmatprep.subr.bf16.mxu1 %v13184_v5  ;;  %12478 = vmatpush3.bf16.msra.mxu0 %v13184_v5  ;;  %v9083_v34 = vld [vmem:[%s13355_s25 + $0x2d8] sm:$0xff] }
 0xb12   : > { %9093 = vst [vmem:[%s13355_s25 + $0x2a8] sm:$0xff] %v6344_v1  ;;  %9060 = vst [vmem:[%s13355_s25 + $0x220] sm:$0xff] %v6134_v38  ;;  %v6314_v59 = vmax.f32 %v6264_v36, 0.0  ;;  %v6104_v24 = vmax.f32 %v6050_v31, 0.0  ;;  %v11349_v62 = vpop.f32.mrb[184].mxu0  ;;  %11453 = vmatprep.mubr.f32.mxu0 %v6134_v38  ;;  %12510 = vmatpush3.bf16.msra.mxu1 %v13184_v5  ;;  %v9082_v31 = vld [vmem:[%s13355_s25 + $0x2d0] sm:$0xff] }
 0xb13   : > { %9092 = vst [vmem:[%s13355_s25 + $0x2a0] sm:$0xff] %v6343_v42  ;;  %v6137_v4 = vadd.f32 %v9047_v17, %v6105_v60  ;;  %v6313_v20 = vmax.f32 %v6259_v9, 0.0  ;;  %v6065_v52 = vadd.f32 %v14746_v49, %v11349_v62  ;;  %v11405_v11 = vpop.f32.mrb[184].mxu1  ;;  %11509 = vmatprep.mubr.f32.mxu1 %v6343_v42  ;;  %v6059_v48 = vpop.f32.mrb[185].mxu0  ;;  %11454 = vmatmul.mubr.f32.gmra.mrb[196].mxu0 %v6135_v61 }
 0xb14   : > { %v6346_v43 = vadd.f32 %v9079_v6, %v6314_v59  ;;  %v6136_v56 = vadd.f32 %v9046_v2, %v6104_v24  ;;  %v6274_v5 = vadd.f32 %v14746_v49, %v11405_v11  ;;  %v6060_v50 = vadd.f32 %v14746_v49, %v6059_v48  ;;  %v6268_v46 = vpop.f32.mrb[185].mxu1  ;;  %11510 = vmatmul.mubr.f32.gmra.mrb[196].mxu1 %v6344_v1  ;;  %v9053_v24 = vld [vmem:[%s13355_s25 + $0x268] sm:$0xff] }
 0xb15   : > { %9063 = vst [vmem:[%s13355_s25 + $0x238] sm:$0xff] %v6137_v4  ;;  %v6345_v7 = vadd.f32 %v9078_v18, %v6313_v20  ;;  %v6107_v53 = vmax.f32 %v6065_v52, 0.0  ;;  %v6269_v29 = vadd.f32 %v14746_v49, %v6268_v46  ;;  %12480 = vmatprep.subr.bf16.mxu0 %v13198_v8  ;;  %12512 = vmatprep.subr.bf16.mxu1 %v13198_v8  ;;  %v9085_v20 = vld [vmem:[%s13355_s25 + $0x2e8] sm:$0xff]  ;;  %v9052_v52 = vld [vmem:[%s13355_s25 + $0x260] sm:$0xff] }
 0xb16   : > { %9095 = vst [vmem:[%s13355_s25 + $0x2b8] sm:$0xff] %v6346_v43  ;;  %9062 = vst [vmem:[%s13355_s25 + $0x230] sm:$0xff] %v6136_v56  ;;  %v6316_v32 = vmax.f32 %v6274_v5, 0.0  ;;  %v6106_v58 = vmax.f32 %v6060_v50, 0.0  ;;  %v11352_v33 = vpop.f32.mrb[186].mxu0  ;;  %11456 = vmatprep.mubr.f32.mxu0 %v6136_v56  ;;  %12482 = vmatpush3.bf16.msra.mxu0 %v13198_v8  ;;  %v9084_v5 = vld [vmem:[%s13355_s25 + $0x2e0] sm:$0xff] }
 0xb17   : > { %9094 = vst [vmem:[%s13355_s25 + $0x2b0] sm:$0xff] %v6345_v7  ;;  %v6139_v37 = vadd.f32 %v9049_v39, %v6107_v53  ;;  %v6315_v40 = vmax.f32 %v6269_v29, 0.0  ;;  %v6075_v30 = vadd.f32 %v14746_v49, %v11352_v33  ;;  %v11408_v55 = vpop.f32.mrb[186].mxu1  ;;  %11512 = vmatprep.mubr.f32.mxu1 %v6345_v7  ;;  %v6069_v35 = vpop.f32.mrb[187].mxu0  ;;  %11457 = vmatmul.mubr.f32.gmra.mrb[198].mxu0 %v6137_v4 }
 0xb18   : > { %v6348_v44 = vadd.f32 %v9081_v14, %v6316_v32  ;;  %v6138_v63 = vadd.f32 %v9048_v45, %v6106_v58  ;;  %v6284_v27 = vadd.f32 %v14746_v49, %v11408_v55  ;;  %v6070_v54 = vadd.f32 %v14746_v49, %v6069_v35  ;;  %v6278_v10 = vpop.f32.mrb[187].mxu1  ;;  %11513 = vmatmul.mubr.f32.gmra.mrb[198].mxu1 %v6346_v43  ;;  %v9055_v32 = vld [vmem:[%s13355_s25 + $0x278] sm:$0xff]  ;;  %v9054_v45 = vld [vmem:[%s13355_s25 + $0x270] sm:$0xff] }
 0xb19   : > { %9065 = vst [vmem:[%s13355_s25 + $0x248] sm:$0xff] %v6139_v37  ;;  %v6347_v41 = vadd.f32 %v9080_v15, %v6315_v40  ;;  %v6109_v21 = vmax.f32 %v6075_v30, 0.0  ;;  %v6279_v0 = vadd.f32 %v14746_v49, %v6278_v10  ;;  %12514 = vmatpush3.bf16.msra.mxu1 %v13198_v8  ;;  %12484 = vmatprep.subr.bf16.mxu0 %v13215_v13  ;;  %v9087_v14 = vld [vmem:[%s13355_s25 + $0x2f8] sm:$0xff]  ;;  %v9086_v35 = vld [vmem:[%s13355_s25 + $0x2f0] sm:$0xff] }
 0xb1a   : > { %9097 = vst [vmem:[%s13355_s25 + $0x2c8] sm:$0xff] %v6348_v44  ;;  %9064 = vst [vmem:[%s13355_s25 + $0x240] sm:$0xff] %v6138_v63  ;;  %v6318_v61 = vmax.f32 %v6284_v27, 0.0  ;;  %v6108_v23 = vmax.f32 %v6070_v54, 0.0  ;;  %v11355_v26 = vpop.f32.mrb[188].mxu0  ;;  %11459 = vmatprep.mubr.f32.mxu0 %v6138_v63  ;;  %12516 = vmatprep.subr.bf16.mxu1 %v13215_v13 }
 0xb1b   : > { %9096 = vst [vmem:[%s13355_s25 + $0x2c0] sm:$0xff] %v6347_v41  ;;  %v6141_v57 = vadd.f32 %v9051_v51, %v6109_v21  ;;  %v6317_v3 = vmax.f32 %v6279_v0, 0.0  ;;  %v6085_v8 = vadd.f32 %v14746_v49, %v11355_v26  ;;  %v11411_v1 = vpop.f32.mrb[188].mxu1  ;;  %11515 = vmatprep.mubr.f32.mxu1 %v6347_v41  ;;  %v6079_v38 = vpop.f32.mrb[189].mxu0  ;;  %11460 = vmatmul.mubr.f32.gmra.mrb[200].mxu0 %v6139_v37  ;;  %v9105_v21 = vld [vmem:[%s13355_s25 + $0x108] sm:$0xff]  ;;  %v9104_v26 = vld [vmem:[%s13355_s25 + $0x100] sm:$0xff] }
 0xb1c   : > { %v6350_v12 = vadd.f32 %v9083_v34, %v6318_v61  ;;  %v6140_v36 = vadd.f32 %v9050_v28, %v6108_v23  ;;  %v6294_v47 = vadd.f32 %v14746_v49, %v11411_v1  ;;  %v6080_v42 = vadd.f32 %v14746_v49, %v6079_v38  ;;  %v6288_v60 = vpop.f32.mrb[189].mxu1  ;;  %11516 = vmatmul.mubr.f32.gmra.mrb[200].mxu1 %v6348_v44  ;;  %v9137_v23 = vld [vmem:[%s13355_s25 + $0x188] sm:$0xff]  ;;  %v9136_v38 = vld [vmem:[%s13355_s25 + $0x180] sm:$0xff] }
 0xb1d   : > { %9067 = vst [vmem:[%s13355_s25 + $0x258] sm:$0xff] %v6141_v57  ;;  %v6349_v9 = vadd.f32 %v9082_v31, %v6317_v3  ;;  %v6111_v17 = vmax.f32 %v6085_v8, 0.0  ;;  %v6289_v59 = vadd.f32 %v14746_v49, %v6288_v60  ;;  %12486 = vmatpush3.bf16.msra.mxu0 %v13215_v13  ;;  %12518 = vmatpush3.bf16.msra.mxu1 %v13215_v13 }
 0xb1e   : > { %9099 = vst [vmem:[%s13355_s25 + $0x2d8] sm:$0xff] %v6350_v12  ;;  %9066 = vst [vmem:[%s13355_s25 + $0x250] sm:$0xff] %v6140_v36  ;;  %v6320_v62 = vmax.f32 %v6294_v47, 0.0  ;;  %v6110_v4 = vmax.f32 %v6080_v42, 0.0  ;;  %v11358_v6 = vpop.f32.mrb[190].mxu0  ;;  %11462 = vmatprep.mubr.f32.mxu0 %v6140_v36  ;;  %12488 = vmatprep.subr.bf16.mxu0 %v13227_v16 }
 0xb1f   : > { %9098 = vst [vmem:[%s13355_s25 + $0x2d0] sm:$0xff] %v6349_v9  ;;  %v6143_v2 = vadd.f32 %v9053_v24, %v6111_v17  ;;  %v6319_v11 = vmax.f32 %v6289_v59, 0.0  ;;  %v6095_v48 = vadd.f32 %v14746_v49, %v11358_v6  ;;  %v11414_v43 = vpop.f32.mrb[190].mxu1  ;;  %11518 = vmatprep.mubr.f32.mxu1 %v6349_v9  ;;  %v6089_v13 = vpop.f32.mrb[191].mxu0  ;;  %11463 = vmatmul.mubr.f32.gmra.mrb[202].mxu0 %v6141_v57  ;;  %v9107_v9 = vld [vmem:[%s13355_s25 + $0x118] sm:$0xff]  ;;  %v9106_v6 = vld [vmem:[%s13355_s25 + $0x110] sm:$0xff] }
 0xb20   : > { %v6352_v56 = vadd.f32 %v9085_v20, %v6320_v62  ;;  %v6142_v18 = vadd.f32 %v9052_v52, %v6110_v4  ;;  %v6304_v50 = vadd.f32 %v14746_v49, %v11414_v43  ;;  %v6090_v46 = vadd.f32 %v14746_v49, %v6089_v13  ;;  %v6298_v7 = vpop.f32.mrb[191].mxu1  ;;  %11519 = vmatmul.mubr.f32.gmra.mrb[202].mxu1 %v6350_v12  ;;  %v9139_v4 = vld [vmem:[%s13355_s25 + $0x198] sm:$0xff]  ;;  %v9138_v13 = vld [vmem:[%s13355_s25 + $0x190] sm:$0xff] }
 0xb21   : > { %9069 = vst [vmem:[%s13355_s25 + $0x268] sm:$0xff] %v6143_v2  ;;  %v6351_v53 = vadd.f32 %v9084_v5, %v6319_v11  ;;  %v6113_v29 = vmax.f32 %v6095_v48, 0.0  ;;  %v6299_v39 = vadd.f32 %v14746_v49, %v6298_v7  ;;  %12520 = vmatprep.subr.bf16.mxu1 %v13227_v16  ;;  %12490 = vmatpush3.bf16.msra.mxu0 %v13227_v16 }
 0xb22   : > { %9101 = vst [vmem:[%s13355_s25 + $0x2e8] sm:$0xff] %v6352_v56  ;;  %9068 = vst [vmem:[%s13355_s25 + $0x260] sm:$0xff] %v6142_v18  ;;  %v6322_v58 = vmax.f32 %v6304_v50, 0.0  ;;  %v6112_v33 = vmax.f32 %v6090_v46, 0.0  ;;  %11465 = vmatprep.mubr.f32.mxu0 %v6142_v18  ;;  %12522 = vmatpush3.bf16.msra.mxu1 %v13227_v16 }
 0xb23   : > { %9100 = vst [vmem:[%s13355_s25 + $0x2e0] sm:$0xff] %v6351_v53  ;;  %v6145_v37 = vadd.f32 %v9055_v32, %v6113_v29  ;;  %v6321_v40 = vmax.f32 %v6299_v39, 0.0  ;;  %11521 = vmatprep.mubr.f32.mxu1 %v6351_v53  ;;  %11466 = vmatmul.mubr.f32.gmra.mrb[204].mxu0 %v6143_v2  ;;  %v9109_v53 = vld [vmem:[%s13355_s25 + $0x128] sm:$0xff] }
 0xb24   : > { %v6354_v30 = vadd.f32 %v9087_v14, %v6322_v58  ;;  %v6144_v55 = vadd.f32 %v9054_v45, %v6112_v33  ;;  %11522 = vmatmul.mubr.f32.gmra.mrb[204].mxu1 %v6352_v56  ;;  %12492 = vmatprep.subr.bf16.mxu0 %v13239_v19  ;;  %v9141_v33 = vld [vmem:[%s13355_s25 + $0x1a8] sm:$0xff] }
 0xb25   : > { %9071 = vst [vmem:[%s13355_s25 + $0x278] sm:$0xff] %v6145_v37  ;;  %v6353_v44 = vadd.f32 %v9086_v35, %v6321_v40  ;;  %12524 = vmatprep.subr.bf16.mxu1 %v13239_v19  ;;  %12494 = vmatpush3.bf16.msra.mxu0 %v13239_v19 }
 0xb26   : > { %9103 = vst [vmem:[%s13355_s25 + $0x2f8] sm:$0xff] %v6354_v30  ;;  %9070 = vst [vmem:[%s13355_s25 + $0x270] sm:$0xff] %v6144_v55  ;;  %11468 = vmatprep.mubr.f32.mxu0 %v6144_v55  ;;  %12526 = vmatpush3.bf16.msra.mxu1 %v13239_v19 }
 0xb27   : > { %9102 = vst [vmem:[%s13355_s25 + $0x2f0] sm:$0xff] %v6353_v44  ;;  %11524 = vmatprep.mubr.f32.mxu1 %v6353_v44  ;;  %11469 = vmatmul.mubr.f32.gmra.mrb[206].mxu0 %v6145_v37  ;;  %v9108_v37 = vld [vmem:[%s13355_s25 + $0x120] sm:$0xff] }
 0xb28   : > { %11525 = vmatmul.mubr.f32.gmra.mrb[206].mxu1 %v6354_v30  ;;  %12496 = vmatprep.subr.bf16.mxu0 %v13251_v22  ;;  %v9140_v44 = vld [vmem:[%s13355_s25 + $0x1a0] sm:$0xff] }
 0xb29   : > { %12528 = vmatprep.subr.bf16.mxu1 %v13251_v22  ;;  %12498 = vmatpush3.bf16.msra.mxu0 %v13251_v22 }
 0xb2a   : > { %12530 = vmatpush3.bf16.msra.mxu1 %v13251_v22  ;;  %12500 = vmatprep.subr.bf16.mxu0 %v13263_v25 }
 0xb2b   : > { %12532 = vmatprep.subr.bf16.mxu1 %v13263_v25 }
 0xb2d   : > { %12502 = vmatpush3.bf16.msra.mxu0 %v13263_v25 }
 0xb2e   : > { %12534 = vmatpush3.bf16.msra.mxu1 %v13263_v25 }
 0xbde   : > { %v11449_v16 = vpop.f32.mrb[192].mxu0 }
 0xbdf   : > { %v6443_v19 = vadd.f32 %v14746_v49, %v11449_v16  ;;  %v11505_v63 = vpop.f32.mrb[192].mxu1  ;;  %v6437_v15 = vpop.f32.mrb[193].mxu0 }
 0xbe0   : > { %v6652_v27 = vadd.f32 %v14746_v49, %v11505_v63  ;;  %v6438_v54 = vadd.f32 %v14746_v49, %v6437_v15  ;;  %v6646_v22 = vpop.f32.mrb[193].mxu1 }
 0xbe1   : > { %v6517_v10 = vmax.f32 %v6443_v19, 0.0  ;;  %v6647_v41 = vadd.f32 %v14746_v49, %v6646_v22 }
 0xbe2   : > { %v6726_v0 = vmax.f32 %v6652_v27, 0.0  ;;  %v6516_v51 = vmax.f32 %v6438_v54, 0.0  ;;  %v11452_v25 = vpop.f32.mrb[194].mxu0  ;;  %v15005_v54 = vld [vmem:[%s15696_s2] ss:$0 sm:$0xff] }
 0xbe3   : > { %v6549_v61 = vadd.f32 %v9105_v21, %v6517_v10  ;;  %v6725_v57 = vmax.f32 %v6647_v41, 0.0  ;;  %v6453_v34 = vadd.f32 %v14746_v49, %v11452_v25  ;;  %v11508_v28 = vpop.f32.mrb[194].mxu1  ;;  %v6447_v3 = vpop.f32.mrb[195].mxu0  ;;  %v9111_v10 = vld [vmem:[%s13355_s25 + $0x138] sm:$0xff]  ;;  %v9110_v25 = vld [vmem:[%s13355_s25 + $0x130] sm:$0xff] }
 0xbe4   : > { %v6758_v8 = vadd.f32 %v9137_v23, %v6726_v0  ;;  %v6548_v1 = vadd.f32 %v9104_v26, %v6516_v51  ;;  %v6662_v12 = vadd.f32 %v14746_v49, %v11508_v28  ;;  %v6448_v36 = vadd.f32 %v14746_v49, %v6447_v3  ;;  %v6656_v31 = vpop.f32.mrb[195].mxu1  ;;  %v9143_v51 = vld [vmem:[%s13355_s25 + $0x1b8] sm:$0xff]  ;;  %v9142_v3 = vld [vmem:[%s13355_s25 + $0x1b0] sm:$0xff] }
 0xbe5   : > { %9121 = vst [vmem:[%s13355_s25 + $0x108] sm:$0xff] %v6549_v61  ;;  %v6757_v47 = vadd.f32 %v9136_v38, %v6725_v57  ;;  %v6519_v42 = vmax.f32 %v6453_v34, 0.0  ;;  %v6657_v60 = vadd.f32 %v14746_v49, %v6656_v31 }
 0xbe6   : > { %9153 = vst [vmem:[%s13355_s25 + $0x188] sm:$0xff] %v6758_v8  ;;  %9120 = vst [vmem:[%s13355_s25 + $0x100] sm:$0xff] %v6548_v1  ;;  %v6728_v17 = vmax.f32 %v6662_v12, 0.0  ;;  %v6518_v59 = vmax.f32 %v6448_v36, 0.0  ;;  %v11455_v24 = vpop.f32.mrb[196].mxu0  ;;  %11559 = vmatprep.mubr.f32.mxu0 %v6548_v1 }
 0xbe7   : > { %9152 = vst [vmem:[%s13355_s25 + $0x180] sm:$0xff] %v6757_v47  ;;  %v6551_v62 = vadd.f32 %v9107_v9, %v6519_v42  ;;  %v6727_v2 = vmax.f32 %v6657_v60, 0.0  ;;  %v6463_v20 = vadd.f32 %v14746_v49, %v11455_v24  ;;  %v11511_v52 = vpop.f32.mrb[196].mxu1  ;;  %11615 = vmatprep.mubr.f32.mxu1 %v6757_v47  ;;  %v6457_v11 = vpop.f32.mrb[197].mxu0  ;;  %11560 = vmatmul.mubr.f32.vlgmr.msra.gmra.mrb[208].mxu0 %v6549_v61  ;;  %v9113_v47 = vld [vmem:[%s13355_s25 + $0x148] sm:$0xff]  ;;  %v9112_v24 = vld [vmem:[%s13355_s25 + $0x140] sm:$0xff] }
 0xbe8   : > { %v6760_v48 = vadd.f32 %v9139_v4, %v6728_v17  ;;  %v6550_v43 = vadd.f32 %v9106_v6, %v6518_v59  ;;  %v6672_v56 = vadd.f32 %v14746_v49, %v11511_v52  ;;  %v6458_v18 = vadd.f32 %v14746_v49, %v6457_v11  ;;  %v6666_v5 = vpop.f32.mrb[197].mxu1  ;;  %11616 = vmatmul.mubr.f32.vlgmr.msra.gmra.mrb[208].mxu1 %v6758_v8  ;;  %v9145_v59 = vld [vmem:[%s13355_s25 + $0x1c8] sm:$0xff]  ;;  %v9144_v11 = vld [vmem:[%s13355_s25 + $0x1c0] sm:$0xff] }
 0xbe9   : > { %9123 = vst [vmem:[%s13355_s25 + $0x118] sm:$0xff] %v6551_v62  ;;  %v6759_v50 = vadd.f32 %v9138_v13, %v6727_v2  ;;  %v6521_v46 = vmax.f32 %v6463_v20, 0.0  ;;  %v6667_v7 = vadd.f32 %v14746_v49, %v6666_v5 }
 0xbea   : > { %9155 = vst [vmem:[%s13355_s25 + $0x198] sm:$0xff] %v6760_v48  ;;  %9122 = vst [vmem:[%s13355_s25 + $0x110] sm:$0xff] %v6550_v43  ;;  %v6730_v29 = vmax.f32 %v6672_v56, 0.0  ;;  %v6520_v39 = vmax.f32 %v6458_v18, 0.0  ;;  %v11458_v32 = vpop.f32.mrb[198].mxu0  ;;  %11562 = vmatprep.mubr.f32.mxu0 %v6550_v43 }
 0xbeb   : > { %9154 = vst [vmem:[%s13355_s25 + $0x190] sm:$0xff] %v6759_v50  ;;  %v6553_v58 = vadd.f32 %v9109_v53, %v6521_v46  ;;  %v6729_v14 = vmax.f32 %v6667_v7, 0.0  ;;  %v6473_v45 = vadd.f32 %v14746_v49, %v11458_v32  ;;  %v11514_v40 = vpop.f32.mrb[198].mxu1  ;;  %11618 = vmatprep.mubr.f32.mxu1 %v6759_v50  ;;  %v6467_v30 = vpop.f32.mrb[199].mxu0  ;;  %11563 = vmatmul.mubr.f32.gmra.mrb[210].mxu0 %v6551_v62  ;;  %v9115_v50 = vld [vmem:[%s13355_s25 + $0x158] sm:$0xff]  ;;  %v9114_v32 = vld [vmem:[%s13355_s25 + $0x150] sm:$0xff] }
 0xbec   : > { %v6762_v55 = vadd.f32 %v9141_v33, %v6730_v29  ;;  %v6552_v35 = vadd.f32 %v9108_v37, %v6520_v39  ;;  %v6682_v16 = vadd.f32 %v14746_v49, %v11514_v40  ;;  %v6468_v19 = vadd.f32 %v14746_v49, %v6467_v30  ;;  %v6676_v63 = vpop.f32.mrb[199].mxu1  ;;  %11619 = vmatmul.mubr.f32.gmra.mrb[210].mxu1 %v6760_v48  ;;  %v9147_v39 = vld [vmem:[%s13355_s25 + $0x1d8] sm:$0xff]  ;;  %v9146_v30 = vld [vmem:[%s13355_s25 + $0x1d0] sm:$0xff] }
 0xbed   : > { %9125 = vst [vmem:[%s13355_s25 + $0x128] sm:$0xff] %v6553_v58  ;;  %v6761_v15 = vadd.f32 %v9140_v44, %v6729_v14  ;;  %v6523_v27 = vmax.f32 %v6473_v45, 0.0  ;;  %v6677_v22 = vadd.f32 %v15005_v54, %v6676_v63 }
 0xbee   : > { %9157 = vst [vmem:[%s13355_s25 + $0x1a8] sm:$0xff] %v6762_v55  ;;  %9124 = vst [vmem:[%s13355_s25 + $0x120] sm:$0xff] %v6552_v35  ;;  %v6732_v41 = vmax.f32 %v6682_v16, 0.0  ;;  %v6522_v49 = vmax.f32 %v6468_v19, 0.0  ;;  %v11461_v21 = vpop.f32.mrb[200].mxu0  ;;  %11565 = vmatprep.mubr.f32.mxu0 %v6552_v35 }
 0xbef   : > { %9156 = vst [vmem:[%s13355_s25 + $0x1a0] sm:$0xff] %v6761_v15  ;;  %v6555_v0 = vadd.f32 %v9111_v10, %v6523_v27  ;;  %v6731_v61 = vmax.f32 %v6677_v22, 0.0  ;;  %v6483_v23 = vadd.f32 %v15005_v54, %v11461_v21  ;;  %v11517_v26 = vpop.f32.mrb[200].mxu1  ;;  %11621 = vmatprep.mubr.f32.mxu1 %v6761_v15  ;;  %v6477_v57 = vpop.f32.mrb[201].mxu0  ;;  %11566 = vmatmul.mubr.f32.gmra.mrb[212].mxu0 %v6553_v58  ;;  %v9117_v15 = vld [vmem:[%s13355_s25 + $0x168] sm:$0xff]  ;;  %v9116_v21 = vld [vmem:[%s13355_s25 + $0x160] sm:$0xff] }
 0xbf0   : > { %v6764_v34 = vadd.f32 %v9143_v51, %v6732_v41  ;;  %v6554_v28 = vadd.f32 %v9110_v25, %v6522_v49  ;;  %v6692_v8 = vadd.f32 %v15005_v54, %v11517_v26  ;;  %v6478_v1 = vadd.f32 %v15005_v54, %v6477_v57  ;;  %v6686_v38 = vpop.f32.mrb[201].mxu1  ;;  %11622 = vmatmul.mubr.f32.gmra.mrb[212].mxu1 %v6762_v55  ;;  %v9149_v49 = vld [vmem:[%s13355_s25 + $0x1e8] sm:$0xff]  ;;  %v9148_v57 = vld [vmem:[%s13355_s25 + $0x1e0] sm:$0xff] }
 0xbf1   : > { %9127 = vst [vmem:[%s13355_s25 + $0x138] sm:$0xff] %v6555_v0  ;;  %v6763_v12 = vadd.f32 %v9142_v3, %v6731_v61  ;;  %v6525_v36 = vmax.f32 %v6483_v23, 0.0  ;;  %v6687_v31 = vadd.f32 %v15005_v54, %v6686_v38 }
 0xbf2   : > { %9159 = vst [vmem:[%s13355_s25 + $0x1b8] sm:$0xff] %v6764_v34  ;;  %9126 = vst [vmem:[%s13355_s25 + $0x130] sm:$0xff] %v6554_v28  ;;  %v6734_v42 = vmax.f32 %v6692_v8, 0.0  ;;  %v6524_v60 = vmax.f32 %v6478_v1, 0.0  ;;  %v11464_v9 = vpop.f32.mrb[202].mxu0  ;;  %11568 = vmatprep.mubr.f32.mxu0 %v6554_v28 }
 0xbf3   : > { %9158 = vst [vmem:[%s13355_s25 + $0x1b0] sm:$0xff] %v6763_v12  ;;  %v6557_v17 = vadd.f32 %v9113_v47, %v6525_v36  ;;  %v6733_v62 = vmax.f32 %v6687_v31, 0.0  ;;  %v6493_v4 = vadd.f32 %v15005_v54, %v11464_v9  ;;  %v11520_v6 = vpop.f32.mrb[202].mxu1  ;;  %11624 = vmatprep.mubr.f32.mxu1 %v6763_v12  ;;  %v6487_v2 = vpop.f32.mrb[203].mxu0  ;;  %11569 = vmatmul.mubr.f32.gmra.mrb[214].mxu0 %v6555_v0  ;;  %v9119_v12 = vld [vmem:[%s13355_s25 + $0x178] sm:$0xff] }
 0xbf4   : > { %v6766_v20 = vadd.f32 %v9145_v59, %v6734_v42  ;;  %v6556_v52 = vadd.f32 %v9112_v24, %v6524_v60  ;;  %v6702_v48 = vadd.f32 %v15005_v54, %v11520_v6  ;;  %v6488_v43 = vadd.f32 %v15005_v54, %v6487_v2  ;;  %v6696_v13 = vpop.f32.mrb[203].mxu1  ;;  %11625 = vmatmul.mubr.f32.gmra.mrb[214].mxu1 %v6764_v34  ;;  %v9151_v42 = vld [vmem:[%s13355_s25 + $0x1f8] sm:$0xff]  ;;  %v9118_v60 = vld [vmem:[%s13355_s25 + $0x170] sm:$0xff] }
 0xbf5   : > { %9129 = vst [vmem:[%s13355_s25 + $0x148] sm:$0xff] %v6557_v17  ;;  %v6765_v56 = vadd.f32 %v9144_v11, %v6733_v62  ;;  %v6527_v18 = vmax.f32 %v6493_v4, 0.0  ;;  %v6697_v5 = vadd.f32 %v15005_v54, %v6696_v13  ;;  %v9150_v24 = vld [vmem:[%s13355_s25 + $0x1f0] sm:$0xff] }
 0xbf6   : > { %9161 = vst [vmem:[%s13355_s25 + $0x1c8] sm:$0xff] %v6766_v20  ;;  %9128 = vst [vmem:[%s13355_s25 + $0x140] sm:$0xff] %v6556_v52  ;;  %v6736_v46 = vmax.f32 %v6702_v48, 0.0  ;;  %v6526_v7 = vmax.f32 %v6488_v43, 0.0  ;;  %v11467_v53 = vpop.f32.mrb[204].mxu0  ;;  %11571 = vmatprep.mubr.f32.mxu0 %v6556_v52  ;;  %v1240_v52 = vld [vmem:[%s13201_s12 + $0x8] sm:$0xff] }
 0xbf7   : > { %9160 = vst [vmem:[%s13355_s25 + $0x1c0] sm:$0xff] %v6765_v56  ;;  %v6559_v29 = vadd.f32 %v9115_v50, %v6527_v18  ;;  %v6735_v58 = vmax.f32 %v6697_v5, 0.0  ;;  %v6503_v33 = vadd.f32 %v15005_v54, %v11467_v53  ;;  %v11523_v37 = vpop.f32.mrb[204].mxu1  ;;  %11627 = vmatprep.mubr.f32.mxu1 %v6765_v56  ;;  %v6497_v14 = vpop.f32.mrb[205].mxu0  ;;  %11572 = vmatmul.mubr.f32.gmra.mrb[216].mxu0 %v6557_v17  ;;  %v1256_v56 = vld [vmem:[%s13201_s12 + $0x88] sm:$0xff]  ;;  %v1239_v18 = vld [vmem:[%s13201_s12] sm:$0xff] }
 0xbf8   : > { %v6768_v45 = vadd.f32 %v9147_v39, %v6736_v46  ;;  %v6558_v40 = vadd.f32 %v9114_v32, %v6526_v7  ;;  %v6712_v55 = vadd.f32 %v15005_v54, %v11523_v37  ;;  %v6498_v35 = vadd.f32 %v15005_v54, %v6497_v14  ;;  %v6706_v44 = vpop.f32.mrb[205].mxu1  ;;  %11628 = vmatmul.mubr.f32.gmra.mrb[216].mxu1 %v6766_v20  ;;  %v1255_v7 = vld [vmem:[%s13201_s12 + $0x80] sm:$0xff] }
 0xbf9   : > { %9131 = vst [vmem:[%s13355_s25 + $0x158] sm:$0xff] %v6559_v29  ;;  %v6767_v16 = vadd.f32 %v9146_v30, %v6735_v58  ;;  %v6529_v19 = vmax.f32 %v6503_v33, 0.0  ;;  %v6707_v63 = vadd.f32 %v15005_v54, %v6706_v44 }
 0xbfa   : > { %9163 = vst [vmem:[%s13355_s25 + $0x1d8] sm:$0xff] %v6768_v45  ;;  %9130 = vst [vmem:[%s13355_s25 + $0x150] sm:$0xff] %v6558_v40  ;;  %v6738_v27 = vmax.f32 %v6712_v55, 0.0  ;;  %v6528_v22 = vmax.f32 %v6498_v35, 0.0  ;;  %v11470_v10 = vpop.f32.mrb[206].mxu0  ;;  %11574 = vmatprep.mubr.f32.mxu0 %v6558_v40 }
 0xbfb   : > { %9162 = vst [vmem:[%s13355_s25 + $0x1d0] sm:$0xff] %v6767_v16  ;;  %v6561_v41 = vadd.f32 %v9117_v15, %v6529_v19  ;;  %v6737_v0 = vmax.f32 %v6707_v63, 0.0  ;;  %v6513_v51 = vadd.f32 %v15005_v54, %v11470_v10  ;;  %v11526_v25 = vpop.f32.mrb[206].mxu1  ;;  %11630 = vmatprep.mubr.f32.mxu1 %v6767_v16  ;;  %v6507_v61 = vpop.f32.mrb[207].mxu0  ;;  %11575 = vmatmul.mubr.f32.gmra.mrb[218].mxu0 %v6559_v29  ;;  %v1258_v16 = vld [vmem:[%s13201_s12 + $0x98] sm:$0xff]  ;;  %v1241_v19 = vld [vmem:[%s13201_s12 + $0x10] sm:$0xff] }
 0xbfc   : > { %v6770_v23 = vadd.f32 %v9149_v49, %v6738_v27  ;;  %v6560_v26 = vadd.f32 %v9116_v21, %v6528_v22  ;;  %v6722_v34 = vadd.f32 %v15005_v54, %v11526_v25  ;;  %v6508_v28 = vadd.f32 %v15005_v54, %v6507_v61  ;;  %v6716_v3 = vpop.f32.mrb[207].mxu1  ;;  %11631 = vmatmul.mubr.f32.gmra.mrb[218].mxu1 %v6768_v45  ;;  %v1242_v45 = vld [vmem:[%s13201_s12 + $0x18] sm:$0xff]  ;;  %v1257_v22 = vld [vmem:[%s13201_s12 + $0x90] sm:$0xff] }
 0xbfd   : > { %9133 = vst [vmem:[%s13355_s25 + $0x168] sm:$0xff] %v6561_v41  ;;  %v6769_v8 = vadd.f32 %v9148_v57, %v6737_v0  ;;  %v6531_v1 = vmax.f32 %v6513_v51, 0.0  ;;  %v6717_v38 = vadd.f32 %v15005_v54, %v6716_v3 }
 0xbfe   : > { %9165 = vst [vmem:[%s13355_s25 + $0x1e8] sm:$0xff] %v6770_v23  ;;  %9132 = vst [vmem:[%s13355_s25 + $0x160] sm:$0xff] %v6560_v26  ;;  %v6740_v36 = vmax.f32 %v6722_v34, 0.0  ;;  %v6530_v31 = vmax.f32 %v6508_v28, 0.0  ;;  %11577 = vmatprep.mubr.f32.mxu0 %v6560_v26 }
 0xbff   : > { %9164 = vst [vmem:[%s13355_s25 + $0x1e0] sm:$0xff] %v6769_v8  ;;  %v6563_v47 = vadd.f32 %v9119_v12, %v6531_v1  ;;  %v6739_v9 = vmax.f32 %v6717_v38, 0.0  ;;  %11633 = vmatprep.mubr.f32.mxu1 %v6769_v8  ;;  %11578 = vmatmul.mubr.f32.gmra.mrb[220].mxu0 %v6561_v41  ;;  %v1260_v8 = vld [vmem:[%s13201_s12 + $0xa8] sm:$0xff]  ;;  %v1243_v1 = vld [vmem:[%s13201_s12 + $0x20] sm:$0xff] }
 0xc00   : > { %v6772_v17 = vadd.f32 %v9151_v42, %v6740_v36  ;;  %v6562_v59 = vadd.f32 %v9118_v60, %v6530_v31  ;;  %11634 = vmatmul.mubr.f32.gmra.mrb[220].mxu1 %v6770_v23  ;;  %v1244_v23 = vld [vmem:[%s13201_s12 + $0x28] sm:$0xff]  ;;  %v1259_v31 = vld [vmem:[%s13201_s12 + $0xa0] sm:$0xff] }
 0xc01   : > { %9135 = vst [vmem:[%s13355_s25 + $0x178] sm:$0xff] %v6563_v47  ;;  %v6771_v62 = vadd.f32 %v9150_v24, %v6739_v9 }
 0xc02   : > { %9167 = vst [vmem:[%s13355_s25 + $0x1f8] sm:$0xff] %v6772_v17  ;;  %9134 = vst [vmem:[%s13355_s25 + $0x170] sm:$0xff] %v6562_v59  ;;  %11580 = vmatprep.mubr.f32.mxu0 %v6562_v59 }
 0xc03   : > { %9166 = vst [vmem:[%s13355_s25 + $0x1f0] sm:$0xff] %v6771_v62  ;;  %11636 = vmatprep.mubr.f32.mxu1 %v6771_v62  ;;  %11581 = vmatmul.mubr.f32.gmra.mrb[222].mxu0 %v6563_v47 }
 0xc04   : > { %11637 = vmatmul.mubr.f32.gmra.mrb[222].mxu1 %v6772_v17 }
 0xcba   : > { %v11561_v4 = vpop.f32.mrb[208].mxu0 }
 0xcbb   : > { %v6861_v6 = vadd.f32 %v15005_v54, %v11561_v4  ;;  %v11617_v2 = vpop.f32.mrb[208].mxu1  ;;  %v6855_v20 = vpop.f32.mrb[209].mxu0  ;;  %v1246_v4 = vld [vmem:[%s13201_s12 + $0x38] sm:$0xff] }
 0xcbc   : > { %v7070_v11 = vadd.f32 %v15005_v54, %v11617_v2  ;;  %v6856_v48 = vadd.f32 %v15005_v54, %v6855_v20  ;;  %v7064_v43 = vpop.f32.mrb[209].mxu1 }
 0xcbd   : > { %v6935_v13 = vmax.f32 %v6861_v6, 0.0  ;;  %v7065_v5 = vadd.f32 %v15005_v54, %v7064_v43  ;;  %v1245_v43 = vld [vmem:[%s13201_s12 + $0x30] sm:$0xff] }
 0xcbe   : > { %v7144_v50 = vmax.f32 %v7070_v11, 0.0  ;;  %v6934_v46 = vmax.f32 %v6856_v48, 0.0  ;;  %v11564_v53 = vpop.f32.mrb[210].mxu0  ;;  %v1262_v48 = vld [vmem:[%s13201_s12 + $0xb8] sm:$0xff] }
 0xcbf   : > { %v6967_v29 = vadd.f32 %v6935_v13, %v1240_v52  ;;  %v7143_v39 = vmax.f32 %v7065_v5, 0.0  ;;  %v6871_v32 = vadd.f32 %v15005_v54, %v11564_v53  ;;  %v11620_v58 = vpop.f32.mrb[210].mxu1  ;;  %v6865_v33 = vpop.f32.mrb[211].mxu0  ;;  %v1261_v5 = vld [vmem:[%s13201_s12 + $0xb0] sm:$0xff] }
 0xcc0   : > { %v7176_v37 = vadd.f32 %v7144_v50, %v1256_v56  ;;  %v6966_v14 = vadd.f32 %v6934_v46, %v1239_v18  ;;  %v7080_v40 = vadd.f32 %v15005_v54, %v11620_v58  ;;  %v6866_v30 = vadd.f32 %v15005_v54, %v6865_v33  ;;  %v7074_v55 = vpop.f32.mrb[211].mxu1  ;;  %v1248_v33 = vld [vmem:[%s13201_s12 + $0x48] sm:$0xff] }
 0xcc1   : > { %6983 = vst [vmem:[%s13355_s25 + $0x8] sm:$0xff] %v6967_v29  ;;  %v7175_v35 = vadd.f32 %v7143_v39, %v1255_v7  ;;  %v6937_v44 = vmax.f32 %v6871_v32, 0.0  ;;  %v7075_v63 = vadd.f32 %v15005_v54, %v7074_v55  ;;  %v1264_v55 = vld [vmem:[%s13201_s12 + $0xc8] sm:$0xff] }
 0xcc2   : > { %7192 = vst [vmem:[%s13355_s25 + $0x88] sm:$0xff] %v7176_v37  ;;  %6982 = vst [vmem:[%s13355_s25] sm:$0xff] %v6966_v14  ;;  %v7146_v15 = vmax.f32 %v7080_v40, 0.0  ;;  %v6936_v27 = vmax.f32 %v6866_v30, 0.0  ;;  %v11567_v10 = vpop.f32.mrb[212].mxu0 }
 0xcc3   : > { %7191 = vst [vmem:[%s13355_s25 + $0x80] sm:$0xff] %v7175_v35  ;;  %v6969_v41 = vadd.f32 %v6937_v44, %v1242_v45  ;;  %v7145_v49 = vmax.f32 %v7075_v63, 0.0  ;;  %v6881_v21 = vadd.f32 %v15005_v54, %v11567_v10  ;;  %v11623_v0 = vpop.f32.mrb[212].mxu1  ;;  %v6875_v51 = vpop.f32.mrb[213].mxu0  ;;  %v1247_v35 = vld [vmem:[%s13201_s12 + $0x40] sm:$0xff] }
 0xcc4   : > { %v7178_v25 = vadd.f32 %v7146_v15, %v1258_v16  ;;  %v6968_v61 = vadd.f32 %v6936_v27, %v1241_v19  ;;  %v7090_v26 = vadd.f32 %v15005_v54, %v11623_v0  ;;  %v6876_v57 = vadd.f32 %v15005_v54, %v6875_v51  ;;  %v7084_v34 = vpop.f32.mrb[213].mxu1  ;;  %v1263_v63 = vld [vmem:[%s13201_s12 + $0xc0] sm:$0xff]  ;;  %v1250_v51 = vld [vmem:[%s13201_s12 + $0x58] sm:$0xff] }
 0xcc5   : > { %6985 = vst [vmem:[%s13355_s25 + $0x18] sm:$0xff] %v6969_v41  ;;  %v7177_v28 = vadd.f32 %v7145_v49, %v1257_v22  ;;  %v6939_v3 = vmax.f32 %v6881_v21, 0.0  ;;  %v7085_v38 = vadd.f32 %v15005_v54, %v7084_v34  ;;  %v1266_v34 = vld [vmem:[%s13201_s12 + $0xd8] sm:$0xff] }
 0xcc6   : > { %7194 = vst [vmem:[%s13355_s25 + $0x98] sm:$0xff] %v7178_v25  ;;  %6984 = vst [vmem:[%s13355_s25 + $0x10] sm:$0xff] %v6968_v61  ;;  %v7148_v12 = vmax.f32 %v7090_v26, 0.0  ;;  %v6938_v36 = vmax.f32 %v6876_v57, 0.0  ;;  %v11570_v47 = vpop.f32.mrb[214].mxu0 }
 0xcc7   : > { %7193 = vst [vmem:[%s13355_s25 + $0x90] sm:$0xff] %v7177_v28  ;;  %v6971_v42 = vadd.f32 %v6939_v3, %v1244_v23  ;;  %v7147_v60 = vmax.f32 %v7085_v38, 0.0  ;;  %v6891_v9 = vadd.f32 %v15005_v54, %v11570_v47  ;;  %v11626_v17 = vpop.f32.mrb[214].mxu1  ;;  %v6885_v59 = vpop.f32.mrb[215].mxu0  ;;  %v1249_v28 = vld [vmem:[%s13201_s12 + $0x50] sm:$0xff] }
 0xcc8   : > { %v7180_v24 = vadd.f32 %v7148_v12, %v1260_v8  ;;  %v6970_v62 = vadd.f32 %v6938_v36, %v1243_v1  ;;  %v7100_v6 = vadd.f32 %v15005_v54, %v11626_v17  ;;  %v6886_v2 = vadd.f32 %v15005_v54, %v6885_v59  ;;  %v7094_v20 = vpop.f32.mrb[215].mxu1  ;;  %v1265_v38 = vld [vmem:[%s13201_s12 + $0xd0] sm:$0xff]  ;;  %v1252_v59 = vld [vmem:[%s13201_s12 + $0x68] sm:$0xff] }
 0xcc9   : > { %6987 = vst [vmem:[%s13355_s25 + $0x28] sm:$0xff] %v6971_v42  ;;  %v7179_v52 = vadd.f32 %v7147_v60, %v1259_v31  ;;  %v6941_v11 = vmax.f32 %v6891_v9, 0.0  ;;  %v7095_v13 = vadd.f32 %v15005_v54, %v7094_v20  ;;  %v1268_v20 = vld [vmem:[%s13201_s12 + $0xe8] sm:$0xff] }
 0xcca   : > { %7196 = vst [vmem:[%s13355_s25 + $0xa8] sm:$0xff] %v7180_v24  ;;  %6986 = vst [vmem:[%s13355_s25 + $0x20] sm:$0xff] %v6970_v62  ;;  %v7150_v56 = vmax.f32 %v7100_v6, 0.0  ;;  %v6940_v18 = vmax.f32 %v6886_v2, 0.0  ;;  %v11573_v50 = vpop.f32.mrb[216].mxu0 }
 0xccb   : > { %7195 = vst [vmem:[%s13355_s25 + $0xa0] sm:$0xff] %v7179_v52  ;;  %v6973_v46 = vadd.f32 %v6941_v11, %v1246_v4  ;;  %v7149_v7 = vmax.f32 %v7095_v13, 0.0  ;;  %v6901_v53 = vadd.f32 %v15005_v54, %v11573_v50  ;;  %v11629_v29 = vpop.f32.mrb[216].mxu1  ;;  %v6895_v39 = vpop.f32.mrb[217].mxu0  ;;  %v1251_v52 = vld [vmem:[%s13201_s12 + $0x60] sm:$0xff] }
 0xccc   : > { %v7182_v32 = vadd.f32 %v7150_v56, %v1262_v48  ;;  %v6972_v58 = vadd.f32 %v6940_v18, %v1245_v43  ;;  %v7110_v37 = vadd.f32 %v15005_v54, %v11629_v29  ;;  %v6896_v14 = vadd.f32 %v15005_v54, %v6895_v39  ;;  %v7104_v45 = vpop.f32.mrb[217].mxu1  ;;  %v1267_v13 = vld [vmem:[%s13201_s12 + $0xe0] sm:$0xff]  ;;  %v1254_v39 = vld [vmem:[%s13201_s12 + $0x78] sm:$0xff] }
 0xccd   : > { %6989 = vst [vmem:[%s13355_s25 + $0x38] sm:$0xff] %v6973_v46  ;;  %v7181_v40 = vadd.f32 %v7149_v7, %v1261_v5  ;;  %v6943_v30 = vmax.f32 %v6901_v53, 0.0  ;;  %v7105_v44 = vadd.f32 %v15005_v54, %v7104_v45  ;;  %v1270_v45 = vld [vmem:[%s13201_s12 + $0xf8] sm:$0xff] }
 0xcce   : > { %7198 = vst [vmem:[%s13355_s25 + $0xb8] sm:$0xff] %v7182_v32  ;;  %6988 = vst [vmem:[%s13355_s25 + $0x30] sm:$0xff] %v6972_v58  ;;  %v7152_v16 = vmax.f32 %v7110_v37, 0.0  ;;  %v6942_v19 = vmax.f32 %v6896_v14, 0.0  ;;  %v11576_v15 = vpop.f32.mrb[218].mxu0 }
 0xccf   : > { %7197 = vst [vmem:[%s13355_s25 + $0xb0] sm:$0xff] %v7181_v40  ;;  %v6975_v27 = vadd.f32 %v6943_v30, %v1248_v33  ;;  %v7151_v22 = vmax.f32 %v7105_v44, 0.0  ;;  %v6911_v10 = vadd.f32 %v15005_v54, %v11576_v15  ;;  %v11632_v41 = vpop.f32.mrb[218].mxu1  ;;  %v6905_v49 = vpop.f32.mrb[219].mxu0  ;;  %v1253_v40 = vld [vmem:[%s13201_s12 + $0x70] sm:$0xff] }
 0xcd0   : > { %v7184_v21 = vadd.f32 %v7152_v16, %v1264_v55  ;;  %v6974_v0 = vadd.f32 %v6942_v19, %v1247_v35  ;;  %v7120_v25 = vadd.f32 %v15005_v54, %v11632_v41  ;;  %v6906_v61 = vadd.f32 %v15005_v54, %v6905_v49  ;;  %v7114_v23 = vpop.f32.mrb[219].mxu1  ;;  %v1269_v44 = vld [vmem:[%s13201_s12 + $0xf0] sm:$0xff]  ;;  %s9174_s12 = sshll.u32 (%p12639_p5), %s8325_s15, 8  ;;  %v7760_v41 = vld [vmem:[%s13355_s25 + $0x18] sm:$0xff] (%p12639_p5) }
 0xcd1   : > { %6991 = vst [vmem:[%s13355_s25 + $0x48] sm:$0xff] %v6975_v27  ;;  %v7183_v26 = vadd.f32 %v7151_v22, %v1263_v63  ;;  %v6945_v57 = vmax.f32 %v6911_v10, 0.0  ;;  %v7115_v3 = vadd.f32 %v15005_v54, %v7114_v23  ;;  %v7756_v22 = vld [vmem:[%s13355_s25 + $0x8] sm:$0xff] (%p12639_p5)  ;;  %v7758_v10 = vld [vmem:[%s13355_s25 + $0x10] sm:$0xff] (%p12639_p5)  ;;  %s15173_s20 = scalar_lea.vmem (%p12639_p5), %s15697_s3, %s9174_s12  ;;  %v7762_v49 = vld [vmem:[%s13355_s25 + $0x20] sm:$0xff] (%p12639_p5) }
 0xcd2   : > { %7200 = vst [vmem:[%s13355_s25 + $0xc8] sm:$0xff] %v7184_v21  ;;  %6990 = vst [vmem:[%s13355_s25 + $0x40] sm:$0xff] %v6974_v0  ;;  %v7154_v8 = vmax.f32 %v7120_v25, 0.0  ;;  %v6944_v1 = vmax.f32 %v6906_v61, 0.0  ;;  %v11579_v12 = vpop.f32.mrb[220].mxu0  ;;  %v7764_v21 = vld [vmem:[%s13355_s25 + $0x28] sm:$0xff] (%p12639_p5) }
 0xcd3   : > { %7199 = vst [vmem:[%s13355_s25 + $0xc0] sm:$0xff] %v7183_v26  ;;  %v6977_v36 = vadd.f32 %v6945_v57, %v1250_v51  ;;  %v7153_v31 = vmax.f32 %v7115_v3, 0.0  ;;  %v6921_v47 = vadd.f32 %v15005_v54, %v11579_v12  ;;  %v11635_v42 = vpop.f32.mrb[220].mxu1  ;;  %v6915_v60 = vpop.f32.mrb[221].mxu0  ;;  %7757 = vst [vmem:[%s15173_s20 + $0x8] sm:$0xff] (%p12639_p5), %v7756_v22  ;;  %v7792_v12 = vld [vmem:[%s13355_s25 + $0x98] sm:$0xff] (%p12639_p5) }
 0xcd4   : > { %v7186_v9 = vadd.f32 %v7154_v8, %v1266_v34  ;;  %v6976_v17 = vadd.f32 %v6944_v1, %v1249_v28  ;;  %v7130_v24 = vadd.f32 %v15005_v54, %v11635_v42  ;;  %v6916_v62 = vadd.f32 %v15005_v54, %v6915_v60  ;;  %v7124_v4 = vpop.f32.mrb[221].mxu1  ;;  %7759 = vst [vmem:[%s15173_s20 + $0x10] sm:$0xff] (%p12639_p5), %v7758_v10  ;;  %v7768_v51 = vld [vmem:[%s13355_s25 + $0x38] sm:$0xff] (%p12639_p5)  ;;  %v7786_v8 = vld [vmem:[%s13355_s25 + $0x80] sm:$0xff] (%p12639_p5)  ;;  %v7788_v1 = vld [vmem:[%s13355_s25 + $0x88] sm:$0xff] (%p12639_p5) }
 0xcd5   : > { %6993 = vst [vmem:[%s13355_s25 + $0x58] sm:$0xff] %v6977_v36  ;;  %v7185_v6 = vadd.f32 %v7153_v31, %v1265_v38  ;;  %v6947_v2 = vmax.f32 %v6921_v47, 0.0  ;;  %v7125_v11 = vadd.f32 %v15005_v54, %v7124_v4  ;;  %7761 = vst [vmem:[%s15173_s20 + $0x18] sm:$0xff] (%p12639_p5), %v7760_v41  ;;  %v7766_v0 = vld [vmem:[%s13355_s25 + $0x30] sm:$0xff] (%p12639_p5)  ;;  %v7794_v36 = vld [vmem:[%s13355_s25 + $0xa0] sm:$0xff] (%p12639_p5) }
 0xcd6   : > { %7202 = vst [vmem:[%s13355_s25 + $0xd8] sm:$0xff] %v7186_v9  ;;  %6992 = vst [vmem:[%s13355_s25 + $0x50] sm:$0xff] %v6976_v17  ;;  %v7156_v48 = vmax.f32 %v7130_v24, 0.0  ;;  %v6946_v43 = vmax.f32 %v6916_v62, 0.0  ;;  %v11582_v56 = vpop.f32.mrb[222].mxu0  ;;  %v7790_v38 = vld [vmem:[%s13355_s25 + $0x90] sm:$0xff] (%p12639_p5) }
 0xcd7   : > { %7201 = vst [vmem:[%s13355_s25 + $0xd0] sm:$0xff] %v7185_v6  ;;  %v6979_v18 = vadd.f32 %v6947_v2, %v1252_v59  ;;  %v7155_v5 = vmax.f32 %v7125_v11, 0.0  ;;  %v6931_v50 = vadd.f32 %v15005_v54, %v11582_v56  ;;  %v11638_v46 = vpop.f32.mrb[222].mxu1  ;;  %v6925_v7 = vpop.f32.mrb[223].mxu0  ;;  %7763 = vst [vmem:[%s15173_s20 + $0x20] sm:$0xff] (%p12639_p5), %v7762_v49  ;;  %v7796_v31 = vld [vmem:[%s13355_s25 + $0xa8] sm:$0xff] (%p12639_p5) }
 0xcd8   : > { %v7188_v53 = vadd.f32 %v7156_v48, %v1268_v20  ;;  %v6978_v29 = vadd.f32 %v6946_v43, %v1251_v52  ;;  %v7140_v32 = vadd.f32 %v15005_v54, %v11638_v46  ;;  %v6926_v58 = vadd.f32 %v15005_v54, %v6925_v7  ;;  %v7134_v33 = vpop.f32.mrb[223].mxu1  ;;  %7765 = vst [vmem:[%s15173_s20 + $0x28] sm:$0xff] (%p12639_p5), %v7764_v21  ;;  %v7772_v61 = vld [vmem:[%s13355_s25 + $0x48] sm:$0xff] (%p12639_p5)  ;;  %v7798_v47 = vld [vmem:[%s13355_s25 + $0xb0] sm:$0xff] (%p12639_p5)  ;;  %v7800_v42 = vld [vmem:[%s13355_s25 + $0xb8] sm:$0xff] (%p12639_p5) }
 0xcd9   : > { %6995 = vst [vmem:[%s13355_s25 + $0x68] sm:$0xff] %v6979_v18  ;;  %v7187_v37 = vadd.f32 %v7155_v5, %v1267_v13  ;;  %v6949_v14 = vmax.f32 %v6931_v50, 0.0  ;;  %v7135_v30 = vadd.f32 %v15005_v54, %v7134_v33  ;;  %7213 = sbr.rel (!%p12639_p5) target bundleno = 3419 (0xd5b), region = 74  ;;  %v7754_v54 = vld [vmem:[%s13355_s25] sm:$0xff] (%p12639_p5)  ;;  %7767 = vst [vmem:[%s15173_s20 + $0x30] sm:$0xff] (%p12639_p5), %v7766_v0  ;;  %v7804_v9 = vld [vmem:[%s13355_s25 + $0xc8] sm:$0xff] (%p12639_p5) }
 0xcda   : > { %7204 = vst [vmem:[%s13355_s25 + $0xe8] sm:$0xff] %v7188_v53  ;;  %6994 = vst [vmem:[%s13355_s25 + $0x60] sm:$0xff] %v6978_v29  ;;  %v7158_v55 = vmax.f32 %v7140_v32, 0.0  ;;  %v6948_v35 = vmax.f32 %v6926_v58, 0.0  ;;  %v7770_v25 = vld [vmem:[%s13355_s25 + $0x40] sm:$0xff] (%p12639_p5)  ;;  %v7820_v20 = vld [vmem:[%s13355_s25 + $0x108] sm:$0xff] (%p12639_p5) }
 0xcdb   : > { %7203 = vst [vmem:[%s13355_s25 + $0xe0] sm:$0xff] %v7187_v37  ;;  %v6981_v16 = vadd.f32 %v6949_v14, %v1254_v39  ;;  %v7157_v19 = vmax.f32 %v7135_v30, 0.0  ;;  %7755 = vst [vmem:[%s15173_s20] sm:$0xff] (%p12639_p5), %v7754_v54  ;;  %v7802_v60 = vld [vmem:[%s13355_s25 + $0xc0] sm:$0xff] (%p12639_p5)  ;;  %v7822_v52 = vld [vmem:[%s13355_s25 + $0x110] sm:$0xff] (%p12639_p5) }
 0xcdc   : > { %v7190_v63 = vadd.f32 %v7158_v55, %v1270_v45  ;;  %v6980_v15 = vadd.f32 %v6948_v35, %v1253_v40  ;;  %7769 = vst [vmem:[%s15173_s20 + $0x38] sm:$0xff] (%p12639_p5), %v7768_v51  ;;  %7771 = vst [vmem:[%s15173_s20 + $0x40] sm:$0xff] (%p12639_p5), %v7770_v25  ;;  %v7776_v26 = vld [vmem:[%s13355_s25 + $0x58] sm:$0xff] (%p12639_p5)  ;;  %v7818_v2 = vld [vmem:[%s13355_s25 + $0x100] sm:$0xff] (%p12639_p5) }
 0xcdd   : > { %6997 = vst [vmem:[%s13355_s25 + $0x78] sm:$0xff] %v6981_v16  ;;  %v7189_v27 = vadd.f32 %v7157_v19, %v1269_v44  ;;  %v7774_v23 = vld [vmem:[%s13355_s25 + $0x50] sm:$0xff] (%p12639_p5)  ;;  %7773 = vst [vmem:[%s15173_s20 + $0x48] sm:$0xff] (%p12639_p5), %v7772_v61  ;;  %v7808_v59 = vld [vmem:[%s13355_s25 + $0xd8] sm:$0xff] (%p12639_p5) }
 0xcde   : > { %7206 = vst [vmem:[%s13355_s25 + $0xf8] sm:$0xff] %v7190_v63  ;;  %6996 = vst [vmem:[%s13355_s25 + $0x70] sm:$0xff] %v6980_v15  ;;  %v7806_v17 = vld [vmem:[%s13355_s25 + $0xd0] sm:$0xff] (%p12639_p5)  ;;  %v7824_v11 = vld [vmem:[%s13355_s25 + $0x118] sm:$0xff] (%p12639_p5) }
 0xcdf   : > { %7205 = vst [vmem:[%s13355_s25 + $0xf0] sm:$0xff] %v7189_v27  ;;  %7775 = vst [vmem:[%s15173_s20 + $0x50] sm:$0xff] (%p12639_p5), %v7774_v23  ;;  %v7826_v48 = vld [vmem:[%s13355_s25 + $0x120] sm:$0xff] (%p12639_p5)  ;;  %v7828_v43 = vld [vmem:[%s13355_s25 + $0x128] sm:$0xff] (%p12639_p5) }
 0xce0   : > { %7777 = vst [vmem:[%s15173_s20 + $0x58] sm:$0xff] %v7776_v26  ;;  %v7780_v34 = vld [vmem:[%s13355_s25 + $0x68] sm:$0xff]  ;;  %7787 = vst [vmem:[%s15173_s20 + $0x80] sm:$0xff] %v7786_v8  ;;  %v7830_v13 = vld [vmem:[%s13355_s25 + $0x130] sm:$0xff] }
 0xce1   : > { %v7778_v57 = vld [vmem:[%s13355_s25 + $0x60] sm:$0xff]  ;;  %7781 = vst [vmem:[%s15173_s20 + $0x68] sm:$0xff] %v7780_v34  ;;  %7789 = vst [vmem:[%s15173_s20 + $0x88] sm:$0xff] %v7788_v1  ;;  %v7812_v62 = vld [vmem:[%s13355_s25 + $0xe8] sm:$0xff] }
 0xce2   : > { %7779 = vst [vmem:[%s15173_s20 + $0x60] sm:$0xff] %v7778_v57  ;;  %7791 = vst [vmem:[%s15173_s20 + $0x90] sm:$0xff] %v7790_v38  ;;  %v7810_v24 = vld [vmem:[%s13355_s25 + $0xe0] sm:$0xff]  ;;  %v7832_v56 = vld [vmem:[%s13355_s25 + $0x138] sm:$0xff] }
 0xce3   : > { %7793 = vst [vmem:[%s15173_s20 + $0x98] sm:$0xff] %v7792_v12  ;;  %7795 = vst [vmem:[%s15173_s20 + $0xa0] sm:$0xff] %v7794_v36  ;;  %v7834_v18 = vld [vmem:[%s13355_s25 + $0x140] sm:$0xff]  ;;  %v7836_v5 = vld [vmem:[%s13355_s25 + $0x148] sm:$0xff] }
 0xce4   : > { %v7784_v3 = vld [vmem:[%s13355_s25 + $0x78] sm:$0xff]  ;;  %7797 = vst [vmem:[%s15173_s20 + $0xa8] sm:$0xff] %v7796_v31  ;;  %7799 = vst [vmem:[%s15173_s20 + $0xb0] sm:$0xff] %v7798_v47  ;;  %v7838_v50 = vld [vmem:[%s13355_s25 + $0x150] sm:$0xff] }
 0xce5   : > { %v7782_v28 = vld [vmem:[%s13355_s25 + $0x70] sm:$0xff]  ;;  %7785 = vst [vmem:[%s15173_s20 + $0x78] sm:$0xff] %v7784_v3  ;;  %7801 = vst [vmem:[%s15173_s20 + $0xb8] sm:$0xff] %v7800_v42  ;;  %v7816_v6 = vld [vmem:[%s13355_s25 + $0xf8] sm:$0xff] }
 0xce6   : > { %7783 = vst [vmem:[%s15173_s20 + $0x70] sm:$0xff] %v7782_v28  ;;  %7803 = vst [vmem:[%s15173_s20 + $0xc0] sm:$0xff] %v7802_v60  ;;  %v7814_v4 = vld [vmem:[%s13355_s25 + $0xf0] sm:$0xff]  ;;  %v7840_v46 = vld [vmem:[%s13355_s25 + $0x158] sm:$0xff] }
 0xce7   : > { %7805 = vst [vmem:[%s15173_s20 + $0xc8] sm:$0xff] %v7804_v9  ;;  %7807 = vst [vmem:[%s15173_s20 + $0xd0] sm:$0xff] %v7806_v17  ;;  %v7842_v7 = vld [vmem:[%s13355_s25 + $0x160] sm:$0xff]  ;;  %v7844_v53 = vld [vmem:[%s13355_s25 + $0x168] sm:$0xff] }
 0xce8   : > { %7809 = vst [vmem:[%s15173_s20 + $0xd8] sm:$0xff] %v7808_v59  ;;  %7811 = vst [vmem:[%s15173_s20 + $0xe0] sm:$0xff] %v7810_v24  ;;  %v7846_v29 = vld [vmem:[%s13355_s25 + $0x170] sm:$0xff]  ;;  %v7848_v39 = vld [vmem:[%s13355_s25 + $0x178] sm:$0xff] }
 0xce9   : > { %7813 = vst [vmem:[%s15173_s20 + $0xe8] sm:$0xff] %v7812_v62  ;;  %7815 = vst [vmem:[%s15173_s20 + $0xf0] sm:$0xff] %v7814_v4  ;;  %v7850_v32 = vld [vmem:[%s13355_s25 + $0x180] sm:$0xff]  ;;  %v7852_v58 = vld [vmem:[%s13355_s25 + $0x188] sm:$0xff] }
 0xcea   : > { %7817 = vst [vmem:[%s15173_s20 + $0xf8] sm:$0xff] %v7816_v6  ;;  %7819 = vst [vmem:[%s15173_s20 + $0x200] sm:$0xff] %v7818_v2  ;;  %v7854_v33 = vld [vmem:[%s13355_s25 + $0x190] sm:$0xff]  ;;  %v7856_v37 = vld [vmem:[%s13355_s25 + $0x198] sm:$0xff] }
 0xceb   : > { %7821 = vst [vmem:[%s15173_s20 + $0x208] sm:$0xff] %v7820_v20  ;;  %7823 = vst [vmem:[%s15173_s20 + $0x210] sm:$0xff] %v7822_v52  ;;  %v7858_v14 = vld [vmem:[%s13355_s25 + $0x1a0] sm:$0xff]  ;;  %v7860_v45 = vld [vmem:[%s13355_s25 + $0x1a8] sm:$0xff] }
 0xcec   : > { %7825 = vst [vmem:[%s15173_s20 + $0x218] sm:$0xff] %v7824_v11  ;;  %7827 = vst [vmem:[%s15173_s20 + $0x220] sm:$0xff] %v7826_v48  ;;  %v7862_v40 = vld [vmem:[%s13355_s25 + $0x1b0] sm:$0xff]  ;;  %v7864_v30 = vld [vmem:[%s13355_s25 + $0x1b8] sm:$0xff] }
 0xced   : > { %7829 = vst [vmem:[%s15173_s20 + $0x228] sm:$0xff] %v7828_v43  ;;  %7831 = vst [vmem:[%s15173_s20 + $0x230] sm:$0xff] %v7830_v13  ;;  %v7866_v55 = vld [vmem:[%s13355_s25 + $0x1c0] sm:$0xff]  ;;  %v7868_v35 = vld [vmem:[%s13355_s25 + $0x1c8] sm:$0xff] }
 0xcee   : > { %7833 = vst [vmem:[%s15173_s20 + $0x238] sm:$0xff] %v7832_v56  ;;  %7835 = vst [vmem:[%s15173_s20 + $0x240] sm:$0xff] %v7834_v18  ;;  %v7870_v44 = vld [vmem:[%s13355_s25 + $0x1d0] sm:$0xff]  ;;  %v7872_v16 = vld [vmem:[%s13355_s25 + $0x1d8] sm:$0xff] }
 0xcef   : > { %7837 = vst [vmem:[%s15173_s20 + $0x248] sm:$0xff] %v7836_v5  ;;  %7839 = vst [vmem:[%s15173_s20 + $0x250] sm:$0xff] %v7838_v50  ;;  %v7874_v19 = vld [vmem:[%s13355_s25 + $0x1e0] sm:$0xff]  ;;  %v7876_v63 = vld [vmem:[%s13355_s25 + $0x1e8] sm:$0xff] }
 0xcf0   : > { %7841 = vst [vmem:[%s15173_s20 + $0x258] sm:$0xff] %v7840_v46  ;;  %7843 = vst [vmem:[%s15173_s20 + $0x260] sm:$0xff] %v7842_v7  ;;  %v7878_v15 = vld [vmem:[%s13355_s25 + $0x1f0] sm:$0xff]  ;;  %v7880_v27 = vld [vmem:[%s13355_s25 + $0x1f8] sm:$0xff] }
 0xcf1   : > { %7845 = vst [vmem:[%s15173_s20 + $0x268] sm:$0xff] %v7844_v53  ;;  %7847 = vst [vmem:[%s15173_s20 + $0x270] sm:$0xff] %v7846_v29  ;;  %v7882_v54 = vld [vmem:[%s13355_s25 + $0x200] sm:$0xff]  ;;  %v7884_v22 = vld [vmem:[%s13355_s25 + $0x208] sm:$0xff] }
 0xcf2   : > { %7849 = vst [vmem:[%s15173_s20 + $0x278] sm:$0xff] %v7848_v39  ;;  %7851 = vst [vmem:[%s15173_s20 + $0x280] sm:$0xff] %v7850_v32  ;;  %v7886_v10 = vld [vmem:[%s13355_s25 + $0x210] sm:$0xff]  ;;  %v7888_v41 = vld [vmem:[%s13355_s25 + $0x218] sm:$0xff] }
 0xcf3   : > { %7853 = vst [vmem:[%s15173_s20 + $0x288] sm:$0xff] %v7852_v58  ;;  %7855 = vst [vmem:[%s15173_s20 + $0x290] sm:$0xff] %v7854_v33  ;;  %v7890_v49 = vld [vmem:[%s13355_s25 + $0x220] sm:$0xff]  ;;  %v7892_v21 = vld [vmem:[%s13355_s25 + $0x228] sm:$0xff] }
 0xcf4   : > { %7857 = vst [vmem:[%s15173_s20 + $0x298] sm:$0xff] %v7856_v37  ;;  %7859 = vst [vmem:[%s15173_s20 + $0x2a0] sm:$0xff] %v7858_v14  ;;  %v7894_v0 = vld [vmem:[%s13355_s25 + $0x230] sm:$0xff]  ;;  %v7896_v51 = vld [vmem:[%s13355_s25 + $0x238] sm:$0xff] }
 0xcf5   : > { %7861 = vst [vmem:[%s15173_s20 + $0x2a8] sm:$0xff] %v7860_v45  ;;  %7863 = vst [vmem:[%s15173_s20 + $0x2b0] sm:$0xff] %v7862_v40  ;;  %v7898_v25 = vld [vmem:[%s13355_s25 + $0x240] sm:$0xff]  ;;  %v7900_v61 = vld [vmem:[%s13355_s25 + $0x248] sm:$0xff] }
 0xcf6   : > { %7865 = vst [vmem:[%s15173_s20 + $0x2b8] sm:$0xff] %v7864_v30  ;;  %7867 = vst [vmem:[%s15173_s20 + $0x2c0] sm:$0xff] %v7866_v55  ;;  %v7902_v23 = vld [vmem:[%s13355_s25 + $0x250] sm:$0xff]  ;;  %v7904_v26 = vld [vmem:[%s13355_s25 + $0x258] sm:$0xff] }
 0xcf7   : > { %7869 = vst [vmem:[%s15173_s20 + $0x2c8] sm:$0xff] %v7868_v35  ;;  %7871 = vst [vmem:[%s15173_s20 + $0x2d0] sm:$0xff] %v7870_v44  ;;  %v7906_v57 = vld [vmem:[%s13355_s25 + $0x260] sm:$0xff]  ;;  %v7908_v34 = vld [vmem:[%s13355_s25 + $0x268] sm:$0xff] }
 0xcf8   : > { %7873 = vst [vmem:[%s15173_s20 + $0x2d8] sm:$0xff] %v7872_v16  ;;  %7875 = vst [vmem:[%s15173_s20 + $0x2e0] sm:$0xff] %v7874_v19  ;;  %v7910_v28 = vld [vmem:[%s13355_s25 + $0x270] sm:$0xff]  ;;  %v7912_v3 = vld [vmem:[%s13355_s25 + $0x278] sm:$0xff] }
 0xcf9   : > { %7877 = vst [vmem:[%s15173_s20 + $0x2e8] sm:$0xff] %v7876_v63  ;;  %7879 = vst [vmem:[%s15173_s20 + $0x2f0] sm:$0xff] %v7878_v15  ;;  %v7914_v8 = vld [vmem:[%s13355_s25 + $0x280] sm:$0xff]  ;;  %v7916_v1 = vld [vmem:[%s13355_s25 + $0x288] sm:$0xff] }
 0xcfa   : > { %7881 = vst [vmem:[%s15173_s20 + $0x2f8] sm:$0xff] %v7880_v27  ;;  %7883 = vst [vmem:[%s15173_s20 + $0x400] sm:$0xff] %v7882_v54  ;;  %v7918_v38 = vld [vmem:[%s13355_s25 + $0x290] sm:$0xff]  ;;  %v7920_v12 = vld [vmem:[%s13355_s25 + $0x298] sm:$0xff] }
 0xcfb   : > { %7885 = vst [vmem:[%s15173_s20 + $0x408] sm:$0xff] %v7884_v22  ;;  %7887 = vst [vmem:[%s15173_s20 + $0x410] sm:$0xff] %v7886_v10  ;;  %v7922_v36 = vld [vmem:[%s13355_s25 + $0x2a0] sm:$0xff]  ;;  %v7924_v31 = vld [vmem:[%s13355_s25 + $0x2a8] sm:$0xff] }
 0xcfc   : > { %7889 = vst [vmem:[%s15173_s20 + $0x418] sm:$0xff] %v7888_v41  ;;  %7891 = vst [vmem:[%s15173_s20 + $0x420] sm:$0xff] %v7890_v49  ;;  %v7926_v47 = vld [vmem:[%s13355_s25 + $0x2b0] sm:$0xff]  ;;  %v7928_v42 = vld [vmem:[%s13355_s25 + $0x2b8] sm:$0xff] }
 0xcfd   : > { %7893 = vst [vmem:[%s15173_s20 + $0x428] sm:$0xff] %v7892_v21  ;;  %7895 = vst [vmem:[%s15173_s20 + $0x430] sm:$0xff] %v7894_v0  ;;  %v7930_v60 = vld [vmem:[%s13355_s25 + $0x2c0] sm:$0xff]  ;;  %v7932_v9 = vld [vmem:[%s13355_s25 + $0x2c8] sm:$0xff] }
 0xcfe   : > { %7897 = vst [vmem:[%s15173_s20 + $0x438] sm:$0xff] %v7896_v51  ;;  %7899 = vst [vmem:[%s15173_s20 + $0x440] sm:$0xff] %v7898_v25  ;;  %v7934_v17 = vld [vmem:[%s13355_s25 + $0x2d0] sm:$0xff]  ;;  %v7936_v59 = vld [vmem:[%s13355_s25 + $0x2d8] sm:$0xff] }
 0xcff   : > { %7901 = vst [vmem:[%s15173_s20 + $0x448] sm:$0xff] %v7900_v61  ;;  %7903 = vst [vmem:[%s15173_s20 + $0x450] sm:$0xff] %v7902_v23  ;;  %v7938_v24 = vld [vmem:[%s13355_s25 + $0x2e0] sm:$0xff]  ;;  %v7940_v62 = vld [vmem:[%s13355_s25 + $0x2e8] sm:$0xff] }
 0xd00   : > { %7905 = vst [vmem:[%s15173_s20 + $0x458] sm:$0xff] %v7904_v26  ;;  %7907 = vst [vmem:[%s15173_s20 + $0x460] sm:$0xff] %v7906_v57  ;;  %v7942_v4 = vld [vmem:[%s13355_s25 + $0x2f0] sm:$0xff]  ;;  %v7944_v6 = vld [vmem:[%s13355_s25 + $0x2f8] sm:$0xff] }
 0xd01   : > { %7909 = vst [vmem:[%s15173_s20 + $0x468] sm:$0xff] %v7908_v34  ;;  %7911 = vst [vmem:[%s15173_s20 + $0x470] sm:$0xff] %v7910_v28  ;;  %v7946_v2 = vld [vmem:[%s13355_s25 + $0x300] sm:$0xff]  ;;  %v7948_v20 = vld [vmem:[%s13355_s25 + $0x308] sm:$0xff] }
 0xd02   : > { %7913 = vst [vmem:[%s15173_s20 + $0x478] sm:$0xff] %v7912_v3  ;;  %7915 = vst [vmem:[%s15173_s20 + $0x480] sm:$0xff] %v7914_v8  ;;  %v7950_v52 = vld [vmem:[%s13355_s25 + $0x310] sm:$0xff]  ;;  %v7952_v11 = vld [vmem:[%s13355_s25 + $0x318] sm:$0xff] }
 0xd03   : > { %7917 = vst [vmem:[%s15173_s20 + $0x488] sm:$0xff] %v7916_v1  ;;  %7919 = vst [vmem:[%s15173_s20 + $0x490] sm:$0xff] %v7918_v38  ;;  %v7954_v48 = vld [vmem:[%s13355_s25 + $0x320] sm:$0xff]  ;;  %v7956_v43 = vld [vmem:[%s13355_s25 + $0x328] sm:$0xff] }
 0xd04   : > { %7921 = vst [vmem:[%s15173_s20 + $0x498] sm:$0xff] %v7920_v12  ;;  %7923 = vst [vmem:[%s15173_s20 + $0x4a0] sm:$0xff] %v7922_v36  ;;  %v7958_v13 = vld [vmem:[%s13355_s25 + $0x330] sm:$0xff]  ;;  %v7960_v56 = vld [vmem:[%s13355_s25 + $0x338] sm:$0xff] }
 0xd05   : > { %7925 = vst [vmem:[%s15173_s20 + $0x4a8] sm:$0xff] %v7924_v31  ;;  %7927 = vst [vmem:[%s15173_s20 + $0x4b0] sm:$0xff] %v7926_v47  ;;  %v7962_v18 = vld [vmem:[%s13355_s25 + $0x340] sm:$0xff]  ;;  %v7964_v5 = vld [vmem:[%s13355_s25 + $0x348] sm:$0xff] }
 0xd06   : > { %7929 = vst [vmem:[%s15173_s20 + $0x4b8] sm:$0xff] %v7928_v42  ;;  %7931 = vst [vmem:[%s15173_s20 + $0x4c0] sm:$0xff] %v7930_v60  ;;  %v7966_v50 = vld [vmem:[%s13355_s25 + $0x350] sm:$0xff]  ;;  %v7968_v46 = vld [vmem:[%s13355_s25 + $0x358] sm:$0xff] }
 0xd07   : > { %7933 = vst [vmem:[%s15173_s20 + $0x4c8] sm:$0xff] %v7932_v9  ;;  %7935 = vst [vmem:[%s15173_s20 + $0x4d0] sm:$0xff] %v7934_v17  ;;  %v7970_v7 = vld [vmem:[%s13355_s25 + $0x360] sm:$0xff]  ;;  %v7972_v53 = vld [vmem:[%s13355_s25 + $0x368] sm:$0xff] }
 0xd08   : > { %7937 = vst [vmem:[%s15173_s20 + $0x4d8] sm:$0xff] %v7936_v59  ;;  %7939 = vst [vmem:[%s15173_s20 + $0x4e0] sm:$0xff] %v7938_v24  ;;  %v7974_v29 = vld [vmem:[%s13355_s25 + $0x370] sm:$0xff]  ;;  %v7976_v39 = vld [vmem:[%s13355_s25 + $0x378] sm:$0xff] }
 0xd09   : > { %7941 = vst [vmem:[%s15173_s20 + $0x4e8] sm:$0xff] %v7940_v62  ;;  %7943 = vst [vmem:[%s15173_s20 + $0x4f0] sm:$0xff] %v7942_v4  ;;  %v7978_v32 = vld [vmem:[%s13355_s25 + $0x380] sm:$0xff]  ;;  %v7980_v58 = vld [vmem:[%s13355_s25 + $0x388] sm:$0xff] }
 0xd0a   : > { %7945 = vst [vmem:[%s15173_s20 + $0x4f8] sm:$0xff] %v7944_v6  ;;  %7947 = vst [vmem:[%s15173_s20 + $0x600] sm:$0xff] %v7946_v2  ;;  %v7982_v33 = vld [vmem:[%s13355_s25 + $0x390] sm:$0xff]  ;;  %v7984_v37 = vld [vmem:[%s13355_s25 + $0x398] sm:$0xff] }
 0xd0b   : > { %7949 = vst [vmem:[%s15173_s20 + $0x608] sm:$0xff] %v7948_v20  ;;  %7951 = vst [vmem:[%s15173_s20 + $0x610] sm:$0xff] %v7950_v52  ;;  %v7986_v14 = vld [vmem:[%s13355_s25 + $0x3a0] sm:$0xff]  ;;  %v7988_v45 = vld [vmem:[%s13355_s25 + $0x3a8] sm:$0xff] }
 0xd0c   : > { %7953 = vst [vmem:[%s15173_s20 + $0x618] sm:$0xff] %v7952_v11  ;;  %7955 = vst [vmem:[%s15173_s20 + $0x620] sm:$0xff] %v7954_v48  ;;  %v7990_v40 = vld [vmem:[%s13355_s25 + $0x3b0] sm:$0xff]  ;;  %v7992_v30 = vld [vmem:[%s13355_s25 + $0x3b8] sm:$0xff] }
 0xd0d   : > { %7957 = vst [vmem:[%s15173_s20 + $0x628] sm:$0xff] %v7956_v43  ;;  %7959 = vst [vmem:[%s15173_s20 + $0x630] sm:$0xff] %v7958_v13  ;;  %v7994_v55 = vld [vmem:[%s13355_s25 + $0x3c0] sm:$0xff]  ;;  %v7996_v35 = vld [vmem:[%s13355_s25 + $0x3c8] sm:$0xff] }
 0xd0e   : > { %7961 = vst [vmem:[%s15173_s20 + $0x638] sm:$0xff] %v7960_v56  ;;  %7963 = vst [vmem:[%s15173_s20 + $0x640] sm:$0xff] %v7962_v18  ;;  %v7998_v44 = vld [vmem:[%s13355_s25 + $0x3d0] sm:$0xff]  ;;  %v8000_v16 = vld [vmem:[%s13355_s25 + $0x3d8] sm:$0xff] }
 0xd0f   : > { %7965 = vst [vmem:[%s15173_s20 + $0x648] sm:$0xff] %v7964_v5  ;;  %7967 = vst [vmem:[%s15173_s20 + $0x650] sm:$0xff] %v7966_v50  ;;  %v8002_v19 = vld [vmem:[%s13355_s25 + $0x3e0] sm:$0xff]  ;;  %v8004_v63 = vld [vmem:[%s13355_s25 + $0x3e8] sm:$0xff] }
 0xd10   : > { %7969 = vst [vmem:[%s15173_s20 + $0x658] sm:$0xff] %v7968_v46  ;;  %7971 = vst [vmem:[%s15173_s20 + $0x660] sm:$0xff] %v7970_v7  ;;  %v8006_v15 = vld [vmem:[%s13355_s25 + $0x3f0] sm:$0xff]  ;;  %v8008_v27 = vld [vmem:[%s13355_s25 + $0x3f8] sm:$0xff] }
 0xd11   : > { %7973 = vst [vmem:[%s15173_s20 + $0x668] sm:$0xff] %v7972_v53  ;;  %7975 = vst [vmem:[%s15173_s20 + $0x670] sm:$0xff] %v7974_v29  ;;  %v8010_v54 = vld [vmem:[%s13355_s25 + $0x400] sm:$0xff]  ;;  %v8012_v22 = vld [vmem:[%s13355_s25 + $0x408] sm:$0xff] }
 0xd12   : > { %7977 = vst [vmem:[%s15173_s20 + $0x678] sm:$0xff] %v7976_v39  ;;  %7979 = vst [vmem:[%s15173_s20 + $0x680] sm:$0xff] %v7978_v32  ;;  %v8014_v10 = vld [vmem:[%s13355_s25 + $0x410] sm:$0xff]  ;;  %v8016_v41 = vld [vmem:[%s13355_s25 + $0x418] sm:$0xff] }
 0xd13   : > { %7981 = vst [vmem:[%s15173_s20 + $0x688] sm:$0xff] %v7980_v58  ;;  %7983 = vst [vmem:[%s15173_s20 + $0x690] sm:$0xff] %v7982_v33  ;;  %v8018_v49 = vld [vmem:[%s13355_s25 + $0x420] sm:$0xff]  ;;  %v8020_v21 = vld [vmem:[%s13355_s25 + $0x428] sm:$0xff] }
 0xd14   : > { %7985 = vst [vmem:[%s15173_s20 + $0x698] sm:$0xff] %v7984_v37  ;;  %7987 = vst [vmem:[%s15173_s20 + $0x6a0] sm:$0xff] %v7986_v14  ;;  %v8022_v0 = vld [vmem:[%s13355_s25 + $0x430] sm:$0xff]  ;;  %v8024_v51 = vld [vmem:[%s13355_s25 + $0x438] sm:$0xff] }
 0xd15   : > { %7989 = vst [vmem:[%s15173_s20 + $0x6a8] sm:$0xff] %v7988_v45  ;;  %7991 = vst [vmem:[%s15173_s20 + $0x6b0] sm:$0xff] %v7990_v40  ;;  %v8026_v25 = vld [vmem:[%s13355_s25 + $0x440] sm:$0xff]  ;;  %v8028_v61 = vld [vmem:[%s13355_s25 + $0x448] sm:$0xff] }
 0xd16   : > { %7993 = vst [vmem:[%s15173_s20 + $0x6b8] sm:$0xff] %v7992_v30  ;;  %7995 = vst [vmem:[%s15173_s20 + $0x6c0] sm:$0xff] %v7994_v55  ;;  %v8030_v23 = vld [vmem:[%s13355_s25 + $0x450] sm:$0xff]  ;;  %v8032_v26 = vld [vmem:[%s13355_s25 + $0x458] sm:$0xff] }
 0xd17   : > { %7997 = vst [vmem:[%s15173_s20 + $0x6c8] sm:$0xff] %v7996_v35  ;;  %7999 = vst [vmem:[%s15173_s20 + $0x6d0] sm:$0xff] %v7998_v44  ;;  %v8034_v57 = vld [vmem:[%s13355_s25 + $0x460] sm:$0xff]  ;;  %v8036_v34 = vld [vmem:[%s13355_s25 + $0x468] sm:$0xff] }
 0xd18   : > { %8001 = vst [vmem:[%s15173_s20 + $0x6d8] sm:$0xff] %v8000_v16  ;;  %8003 = vst [vmem:[%s15173_s20 + $0x6e0] sm:$0xff] %v8002_v19  ;;  %v8038_v28 = vld [vmem:[%s13355_s25 + $0x470] sm:$0xff]  ;;  %v8040_v3 = vld [vmem:[%s13355_s25 + $0x478] sm:$0xff] }
 0xd19   : > { %8005 = vst [vmem:[%s15173_s20 + $0x6e8] sm:$0xff] %v8004_v63  ;;  %8007 = vst [vmem:[%s15173_s20 + $0x6f0] sm:$0xff] %v8006_v15  ;;  %v8042_v8 = vld [vmem:[%s13355_s25 + $0x480] sm:$0xff]  ;;  %v8044_v1 = vld [vmem:[%s13355_s25 + $0x488] sm:$0xff] }
 0xd1a   : > { %8009 = vst [vmem:[%s15173_s20 + $0x6f8] sm:$0xff] %v8008_v27  ;;  %8011 = vst [vmem:[%s15173_s20 + $0x800] sm:$0xff] %v8010_v54  ;;  %v8046_v38 = vld [vmem:[%s13355_s25 + $0x490] sm:$0xff]  ;;  %v8048_v12 = vld [vmem:[%s13355_s25 + $0x498] sm:$0xff] }
 0xd1b   : > { %8013 = vst [vmem:[%s15173_s20 + $0x808] sm:$0xff] %v8012_v22  ;;  %8015 = vst [vmem:[%s15173_s20 + $0x810] sm:$0xff] %v8014_v10  ;;  %v8050_v36 = vld [vmem:[%s13355_s25 + $0x4a0] sm:$0xff]  ;;  %v8052_v31 = vld [vmem:[%s13355_s25 + $0x4a8] sm:$0xff] }
 0xd1c   : > { %8017 = vst [vmem:[%s15173_s20 + $0x818] sm:$0xff] %v8016_v41  ;;  %8019 = vst [vmem:[%s15173_s20 + $0x820] sm:$0xff] %v8018_v49  ;;  %v8054_v47 = vld [vmem:[%s13355_s25 + $0x4b0] sm:$0xff]  ;;  %v8056_v42 = vld [vmem:[%s13355_s25 + $0x4b8] sm:$0xff] }
 0xd1d   : > { %8021 = vst [vmem:[%s15173_s20 + $0x828] sm:$0xff] %v8020_v21  ;;  %8023 = vst [vmem:[%s15173_s20 + $0x830] sm:$0xff] %v8022_v0  ;;  %v8058_v60 = vld [vmem:[%s13355_s25 + $0x4c0] sm:$0xff]  ;;  %v8060_v9 = vld [vmem:[%s13355_s25 + $0x4c8] sm:$0xff] }
 0xd1e   : > { %8025 = vst [vmem:[%s15173_s20 + $0x838] sm:$0xff] %v8024_v51  ;;  %8027 = vst [vmem:[%s15173_s20 + $0x840] sm:$0xff] %v8026_v25  ;;  %v8062_v17 = vld [vmem:[%s13355_s25 + $0x4d0] sm:$0xff]  ;;  %v8064_v59 = vld [vmem:[%s13355_s25 + $0x4d8] sm:$0xff] }
 0xd1f   : > { %8029 = vst [vmem:[%s15173_s20 + $0x848] sm:$0xff] %v8028_v61  ;;  %8031 = vst [vmem:[%s15173_s20 + $0x850] sm:$0xff] %v8030_v23  ;;  %v8066_v24 = vld [vmem:[%s13355_s25 + $0x4e0] sm:$0xff]  ;;  %v8068_v62 = vld [vmem:[%s13355_s25 + $0x4e8] sm:$0xff] }
 0xd20   : > { %8033 = vst [vmem:[%s15173_s20 + $0x858] sm:$0xff] %v8032_v26  ;;  %8035 = vst [vmem:[%s15173_s20 + $0x860] sm:$0xff] %v8034_v57  ;;  %v8070_v4 = vld [vmem:[%s13355_s25 + $0x4f0] sm:$0xff]  ;;  %v8072_v6 = vld [vmem:[%s13355_s25 + $0x4f8] sm:$0xff] }
 0xd21   : > { %8037 = vst [vmem:[%s15173_s20 + $0x868] sm:$0xff] %v8036_v34  ;;  %8039 = vst [vmem:[%s15173_s20 + $0x870] sm:$0xff] %v8038_v28  ;;  %v8074_v2 = vld [vmem:[%s13355_s25 + $0x500] sm:$0xff]  ;;  %v8076_v20 = vld [vmem:[%s13355_s25 + $0x508] sm:$0xff] }
 0xd22   : > { %8041 = vst [vmem:[%s15173_s20 + $0x878] sm:$0xff] %v8040_v3  ;;  %8043 = vst [vmem:[%s15173_s20 + $0x880] sm:$0xff] %v8042_v8  ;;  %v8078_v52 = vld [vmem:[%s13355_s25 + $0x510] sm:$0xff]  ;;  %v8080_v11 = vld [vmem:[%s13355_s25 + $0x518] sm:$0xff] }
 0xd23   : > { %8045 = vst [vmem:[%s15173_s20 + $0x888] sm:$0xff] %v8044_v1  ;;  %8047 = vst [vmem:[%s15173_s20 + $0x890] sm:$0xff] %v8046_v38  ;;  %v8082_v48 = vld [vmem:[%s13355_s25 + $0x520] sm:$0xff]  ;;  %v8084_v43 = vld [vmem:[%s13355_s25 + $0x528] sm:$0xff] }
 0xd24   : > { %8049 = vst [vmem:[%s15173_s20 + $0x898] sm:$0xff] %v8048_v12  ;;  %8051 = vst [vmem:[%s15173_s20 + $0x8a0] sm:$0xff] %v8050_v36  ;;  %v8086_v13 = vld [vmem:[%s13355_s25 + $0x530] sm:$0xff]  ;;  %v8088_v56 = vld [vmem:[%s13355_s25 + $0x538] sm:$0xff] }
 0xd25   : > { %8053 = vst [vmem:[%s15173_s20 + $0x8a8] sm:$0xff] %v8052_v31  ;;  %8055 = vst [vmem:[%s15173_s20 + $0x8b0] sm:$0xff] %v8054_v47  ;;  %v8090_v18 = vld [vmem:[%s13355_s25 + $0x540] sm:$0xff]  ;;  %v8092_v5 = vld [vmem:[%s13355_s25 + $0x548] sm:$0xff] }
 0xd26   : > { %8057 = vst [vmem:[%s15173_s20 + $0x8b8] sm:$0xff] %v8056_v42  ;;  %8059 = vst [vmem:[%s15173_s20 + $0x8c0] sm:$0xff] %v8058_v60  ;;  %v8094_v50 = vld [vmem:[%s13355_s25 + $0x550] sm:$0xff]  ;;  %v8096_v46 = vld [vmem:[%s13355_s25 + $0x558] sm:$0xff] }
 0xd27   : > { %8061 = vst [vmem:[%s15173_s20 + $0x8c8] sm:$0xff] %v8060_v9  ;;  %8063 = vst [vmem:[%s15173_s20 + $0x8d0] sm:$0xff] %v8062_v17  ;;  %v8098_v7 = vld [vmem:[%s13355_s25 + $0x560] sm:$0xff]  ;;  %v8100_v53 = vld [vmem:[%s13355_s25 + $0x568] sm:$0xff] }
 0xd28   : > { %8065 = vst [vmem:[%s15173_s20 + $0x8d8] sm:$0xff] %v8064_v59  ;;  %8067 = vst [vmem:[%s15173_s20 + $0x8e0] sm:$0xff] %v8066_v24  ;;  %v8102_v29 = vld [vmem:[%s13355_s25 + $0x570] sm:$0xff]  ;;  %v8104_v39 = vld [vmem:[%s13355_s25 + $0x578] sm:$0xff] }
 0xd29   : > { %8069 = vst [vmem:[%s15173_s20 + $0x8e8] sm:$0xff] %v8068_v62  ;;  %8071 = vst [vmem:[%s15173_s20 + $0x8f0] sm:$0xff] %v8070_v4  ;;  %v8106_v32 = vld [vmem:[%s13355_s25 + $0x580] sm:$0xff]  ;;  %v8108_v58 = vld [vmem:[%s13355_s25 + $0x588] sm:$0xff] }
 0xd2a   : > { %8073 = vst [vmem:[%s15173_s20 + $0x8f8] sm:$0xff] %v8072_v6  ;;  %8075 = vst [vmem:[%s15173_s20 + $0xa00] sm:$0xff] %v8074_v2  ;;  %v8110_v33 = vld [vmem:[%s13355_s25 + $0x590] sm:$0xff]  ;;  %v8112_v37 = vld [vmem:[%s13355_s25 + $0x598] sm:$0xff] }
 0xd2b   : > { %8077 = vst [vmem:[%s15173_s20 + $0xa08] sm:$0xff] %v8076_v20  ;;  %8079 = vst [vmem:[%s15173_s20 + $0xa10] sm:$0xff] %v8078_v52  ;;  %v8114_v14 = vld [vmem:[%s13355_s25 + $0x5a0] sm:$0xff]  ;;  %v8116_v45 = vld [vmem:[%s13355_s25 + $0x5a8] sm:$0xff] }
 0xd2c   : > { %8081 = vst [vmem:[%s15173_s20 + $0xa18] sm:$0xff] %v8080_v11  ;;  %8083 = vst [vmem:[%s15173_s20 + $0xa20] sm:$0xff] %v8082_v48  ;;  %v8118_v40 = vld [vmem:[%s13355_s25 + $0x5b0] sm:$0xff]  ;;  %v8120_v30 = vld [vmem:[%s13355_s25 + $0x5b8] sm:$0xff] }
 0xd2d   : > { %8085 = vst [vmem:[%s15173_s20 + $0xa28] sm:$0xff] %v8084_v43  ;;  %8087 = vst [vmem:[%s15173_s20 + $0xa30] sm:$0xff] %v8086_v13  ;;  %v8122_v55 = vld [vmem:[%s13355_s25 + $0x5c0] sm:$0xff]  ;;  %v8124_v35 = vld [vmem:[%s13355_s25 + $0x5c8] sm:$0xff] }
 0xd2e   : > { %8089 = vst [vmem:[%s15173_s20 + $0xa38] sm:$0xff] %v8088_v56  ;;  %8091 = vst [vmem:[%s15173_s20 + $0xa40] sm:$0xff] %v8090_v18  ;;  %v8126_v44 = vld [vmem:[%s13355_s25 + $0x5d0] sm:$0xff]  ;;  %v8128_v16 = vld [vmem:[%s13355_s25 + $0x5d8] sm:$0xff] }
 0xd2f   : > { %8093 = vst [vmem:[%s15173_s20 + $0xa48] sm:$0xff] %v8092_v5  ;;  %8095 = vst [vmem:[%s15173_s20 + $0xa50] sm:$0xff] %v8094_v50  ;;  %v8130_v19 = vld [vmem:[%s13355_s25 + $0x5e0] sm:$0xff]  ;;  %v8132_v63 = vld [vmem:[%s13355_s25 + $0x5e8] sm:$0xff] }
 0xd30   : > { %8097 = vst [vmem:[%s15173_s20 + $0xa58] sm:$0xff] %v8096_v46  ;;  %8099 = vst [vmem:[%s15173_s20 + $0xa60] sm:$0xff] %v8098_v7  ;;  %v8134_v15 = vld [vmem:[%s13355_s25 + $0x5f0] sm:$0xff]  ;;  %v8136_v27 = vld [vmem:[%s13355_s25 + $0x5f8] sm:$0xff] }
 0xd31   : > { %8101 = vst [vmem:[%s15173_s20 + $0xa68] sm:$0xff] %v8100_v53  ;;  %8103 = vst [vmem:[%s15173_s20 + $0xa70] sm:$0xff] %v8102_v29  ;;  %v8138_v54 = vld [vmem:[%s13355_s25 + $0x600] sm:$0xff]  ;;  %v8140_v22 = vld [vmem:[%s13355_s25 + $0x608] sm:$0xff] }
 0xd32   : > { %8105 = vst [vmem:[%s15173_s20 + $0xa78] sm:$0xff] %v8104_v39  ;;  %8107 = vst [vmem:[%s15173_s20 + $0xa80] sm:$0xff] %v8106_v32  ;;  %v8142_v10 = vld [vmem:[%s13355_s25 + $0x610] sm:$0xff]  ;;  %v8144_v41 = vld [vmem:[%s13355_s25 + $0x618] sm:$0xff] }
 0xd33   : > { %8109 = vst [vmem:[%s15173_s20 + $0xa88] sm:$0xff] %v8108_v58  ;;  %8111 = vst [vmem:[%s15173_s20 + $0xa90] sm:$0xff] %v8110_v33  ;;  %v8146_v49 = vld [vmem:[%s13355_s25 + $0x620] sm:$0xff]  ;;  %v8148_v21 = vld [vmem:[%s13355_s25 + $0x628] sm:$0xff] }
 0xd34   : > { %8113 = vst [vmem:[%s15173_s20 + $0xa98] sm:$0xff] %v8112_v37  ;;  %8115 = vst [vmem:[%s15173_s20 + $0xaa0] sm:$0xff] %v8114_v14  ;;  %v8150_v0 = vld [vmem:[%s13355_s25 + $0x630] sm:$0xff]  ;;  %v8152_v51 = vld [vmem:[%s13355_s25 + $0x638] sm:$0xff] }
 0xd35   : > { %8117 = vst [vmem:[%s15173_s20 + $0xaa8] sm:$0xff] %v8116_v45  ;;  %8119 = vst [vmem:[%s15173_s20 + $0xab0] sm:$0xff] %v8118_v40  ;;  %v8154_v25 = vld [vmem:[%s13355_s25 + $0x640] sm:$0xff]  ;;  %v8156_v61 = vld [vmem:[%s13355_s25 + $0x648] sm:$0xff] }
 0xd36   : > { %8121 = vst [vmem:[%s15173_s20 + $0xab8] sm:$0xff] %v8120_v30  ;;  %8123 = vst [vmem:[%s15173_s20 + $0xac0] sm:$0xff] %v8122_v55  ;;  %v8158_v23 = vld [vmem:[%s13355_s25 + $0x650] sm:$0xff]  ;;  %v8160_v26 = vld [vmem:[%s13355_s25 + $0x658] sm:$0xff] }
 0xd37   : > { %8125 = vst [vmem:[%s15173_s20 + $0xac8] sm:$0xff] %v8124_v35  ;;  %8127 = vst [vmem:[%s15173_s20 + $0xad0] sm:$0xff] %v8126_v44  ;;  %v8162_v57 = vld [vmem:[%s13355_s25 + $0x660] sm:$0xff]  ;;  %v8164_v34 = vld [vmem:[%s13355_s25 + $0x668] sm:$0xff] }
 0xd38   : > { %8129 = vst [vmem:[%s15173_s20 + $0xad8] sm:$0xff] %v8128_v16  ;;  %8131 = vst [vmem:[%s15173_s20 + $0xae0] sm:$0xff] %v8130_v19  ;;  %v8166_v28 = vld [vmem:[%s13355_s25 + $0x670] sm:$0xff]  ;;  %v8168_v3 = vld [vmem:[%s13355_s25 + $0x678] sm:$0xff] }
 0xd39   : > { %8133 = vst [vmem:[%s15173_s20 + $0xae8] sm:$0xff] %v8132_v63  ;;  %8135 = vst [vmem:[%s15173_s20 + $0xaf0] sm:$0xff] %v8134_v15  ;;  %v8170_v8 = vld [vmem:[%s13355_s25 + $0x680] sm:$0xff]  ;;  %v8172_v1 = vld [vmem:[%s13355_s25 + $0x688] sm:$0xff] }
 0xd3a   : > { %8137 = vst [vmem:[%s15173_s20 + $0xaf8] sm:$0xff] %v8136_v27  ;;  %8139 = vst [vmem:[%s15173_s20 + $0xc00] sm:$0xff] %v8138_v54  ;;  %v8174_v38 = vld [vmem:[%s13355_s25 + $0x690] sm:$0xff]  ;;  %v8176_v12 = vld [vmem:[%s13355_s25 + $0x698] sm:$0xff] }
 0xd3b   : > { %8141 = vst [vmem:[%s15173_s20 + $0xc08] sm:$0xff] %v8140_v22  ;;  %8143 = vst [vmem:[%s15173_s20 + $0xc10] sm:$0xff] %v8142_v10  ;;  %v8178_v36 = vld [vmem:[%s13355_s25 + $0x6a0] sm:$0xff]  ;;  %v8180_v31 = vld [vmem:[%s13355_s25 + $0x6a8] sm:$0xff] }
 0xd3c   : > { %8145 = vst [vmem:[%s15173_s20 + $0xc18] sm:$0xff] %v8144_v41  ;;  %8147 = vst [vmem:[%s15173_s20 + $0xc20] sm:$0xff] %v8146_v49  ;;  %v8182_v47 = vld [vmem:[%s13355_s25 + $0x6b0] sm:$0xff]  ;;  %v8184_v42 = vld [vmem:[%s13355_s25 + $0x6b8] sm:$0xff] }
 0xd3d   : > { %8149 = vst [vmem:[%s15173_s20 + $0xc28] sm:$0xff] %v8148_v21  ;;  %8151 = vst [vmem:[%s15173_s20 + $0xc30] sm:$0xff] %v8150_v0  ;;  %v8186_v60 = vld [vmem:[%s13355_s25 + $0x6c0] sm:$0xff]  ;;  %v8188_v9 = vld [vmem:[%s13355_s25 + $0x6c8] sm:$0xff] }
 0xd3e   : > { %8153 = vst [vmem:[%s15173_s20 + $0xc38] sm:$0xff] %v8152_v51  ;;  %8155 = vst [vmem:[%s15173_s20 + $0xc40] sm:$0xff] %v8154_v25  ;;  %v8190_v17 = vld [vmem:[%s13355_s25 + $0x6d0] sm:$0xff]  ;;  %v8192_v59 = vld [vmem:[%s13355_s25 + $0x6d8] sm:$0xff] }
 0xd3f   : > { %8157 = vst [vmem:[%s15173_s20 + $0xc48] sm:$0xff] %v8156_v61  ;;  %8159 = vst [vmem:[%s15173_s20 + $0xc50] sm:$0xff] %v8158_v23  ;;  %v8194_v24 = vld [vmem:[%s13355_s25 + $0x6e0] sm:$0xff]  ;;  %v8196_v62 = vld [vmem:[%s13355_s25 + $0x6e8] sm:$0xff] }
 0xd40   : > { %8161 = vst [vmem:[%s15173_s20 + $0xc58] sm:$0xff] %v8160_v26  ;;  %8163 = vst [vmem:[%s15173_s20 + $0xc60] sm:$0xff] %v8162_v57  ;;  %v8198_v4 = vld [vmem:[%s13355_s25 + $0x6f0] sm:$0xff]  ;;  %v8200_v6 = vld [vmem:[%s13355_s25 + $0x6f8] sm:$0xff] }
 0xd41   : > { %8165 = vst [vmem:[%s15173_s20 + $0xc68] sm:$0xff] %v8164_v34  ;;  %8167 = vst [vmem:[%s15173_s20 + $0xc70] sm:$0xff] %v8166_v28  ;;  %v8202_v2 = vld [vmem:[%s13355_s25 + $0x700] sm:$0xff]  ;;  %v8204_v20 = vld [vmem:[%s13355_s25 + $0x708] sm:$0xff] }
 0xd42   : > { %8169 = vst [vmem:[%s15173_s20 + $0xc78] sm:$0xff] %v8168_v3  ;;  %8171 = vst [vmem:[%s15173_s20 + $0xc80] sm:$0xff] %v8170_v8  ;;  %v8206_v52 = vld [vmem:[%s13355_s25 + $0x710] sm:$0xff]  ;;  %v8208_v11 = vld [vmem:[%s13355_s25 + $0x718] sm:$0xff] }
 0xd43   : > { %8173 = vst [vmem:[%s15173_s20 + $0xc88] sm:$0xff] %v8172_v1  ;;  %8175 = vst [vmem:[%s15173_s20 + $0xc90] sm:$0xff] %v8174_v38  ;;  %v8210_v48 = vld [vmem:[%s13355_s25 + $0x720] sm:$0xff]  ;;  %v8212_v43 = vld [vmem:[%s13355_s25 + $0x728] sm:$0xff] }
 0xd44   : > { %8177 = vst [vmem:[%s15173_s20 + $0xc98] sm:$0xff] %v8176_v12  ;;  %8179 = vst [vmem:[%s15173_s20 + $0xca0] sm:$0xff] %v8178_v36  ;;  %v8214_v13 = vld [vmem:[%s13355_s25 + $0x730] sm:$0xff]  ;;  %v8216_v56 = vld [vmem:[%s13355_s25 + $0x738] sm:$0xff] }
 0xd45   : > { %8181 = vst [vmem:[%s15173_s20 + $0xca8] sm:$0xff] %v8180_v31  ;;  %8183 = vst [vmem:[%s15173_s20 + $0xcb0] sm:$0xff] %v8182_v47  ;;  %v8218_v18 = vld [vmem:[%s13355_s25 + $0x740] sm:$0xff]  ;;  %v8220_v5 = vld [vmem:[%s13355_s25 + $0x748] sm:$0xff] }
 0xd46   : > { %8185 = vst [vmem:[%s15173_s20 + $0xcb8] sm:$0xff] %v8184_v42  ;;  %8187 = vst [vmem:[%s15173_s20 + $0xcc0] sm:$0xff] %v8186_v60  ;;  %v8222_v50 = vld [vmem:[%s13355_s25 + $0x750] sm:$0xff]  ;;  %v8224_v46 = vld [vmem:[%s13355_s25 + $0x758] sm:$0xff] }
 0xd47   : > { %8189 = vst [vmem:[%s15173_s20 + $0xcc8] sm:$0xff] %v8188_v9  ;;  %8191 = vst [vmem:[%s15173_s20 + $0xcd0] sm:$0xff] %v8190_v17  ;;  %v8226_v7 = vld [vmem:[%s13355_s25 + $0x760] sm:$0xff]  ;;  %v8228_v53 = vld [vmem:[%s13355_s25 + $0x768] sm:$0xff] }
 0xd48   : > { %8193 = vst [vmem:[%s15173_s20 + $0xcd8] sm:$0xff] %v8192_v59  ;;  %8195 = vst [vmem:[%s15173_s20 + $0xce0] sm:$0xff] %v8194_v24  ;;  %v8230_v29 = vld [vmem:[%s13355_s25 + $0x770] sm:$0xff]  ;;  %v8232_v39 = vld [vmem:[%s13355_s25 + $0x778] sm:$0xff] }
 0xd49   : > { %8197 = vst [vmem:[%s15173_s20 + $0xce8] sm:$0xff] %v8196_v62  ;;  %8199 = vst [vmem:[%s15173_s20 + $0xcf0] sm:$0xff] %v8198_v4  ;;  %v8234_v32 = vld [vmem:[%s13355_s25 + $0x780] sm:$0xff]  ;;  %v8236_v58 = vld [vmem:[%s13355_s25 + $0x788] sm:$0xff] }
 0xd4a   : > { %8201 = vst [vmem:[%s15173_s20 + $0xcf8] sm:$0xff] %v8200_v6  ;;  %8203 = vst [vmem:[%s15173_s20 + $0xe00] sm:$0xff] %v8202_v2  ;;  %v8238_v33 = vld [vmem:[%s13355_s25 + $0x790] sm:$0xff]  ;;  %v8240_v37 = vld [vmem:[%s13355_s25 + $0x798] sm:$0xff] }
 0xd4b   : > { %8205 = vst [vmem:[%s15173_s20 + $0xe08] sm:$0xff] %v8204_v20  ;;  %8207 = vst [vmem:[%s15173_s20 + $0xe10] sm:$0xff] %v8206_v52  ;;  %v8242_v14 = vld [vmem:[%s13355_s25 + $0x7a0] sm:$0xff]  ;;  %v8244_v45 = vld [vmem:[%s13355_s25 + $0x7a8] sm:$0xff] }
 0xd4c   : > { %8209 = vst [vmem:[%s15173_s20 + $0xe18] sm:$0xff] %v8208_v11  ;;  %8211 = vst [vmem:[%s15173_s20 + $0xe20] sm:$0xff] %v8210_v48  ;;  %v8246_v40 = vld [vmem:[%s13355_s25 + $0x7b0] sm:$0xff]  ;;  %v8248_v30 = vld [vmem:[%s13355_s25 + $0x7b8] sm:$0xff] }
 0xd4d   : > { %8213 = vst [vmem:[%s15173_s20 + $0xe28] sm:$0xff] %v8212_v43  ;;  %8215 = vst [vmem:[%s15173_s20 + $0xe30] sm:$0xff] %v8214_v13  ;;  %v8250_v55 = vld [vmem:[%s13355_s25 + $0x7c0] sm:$0xff]  ;;  %v8252_v35 = vld [vmem:[%s13355_s25 + $0x7c8] sm:$0xff] }
 0xd4e   : > { %8217 = vst [vmem:[%s15173_s20 + $0xe38] sm:$0xff] %v8216_v56  ;;  %8219 = vst [vmem:[%s15173_s20 + $0xe40] sm:$0xff] %v8218_v18  ;;  %v8254_v44 = vld [vmem:[%s13355_s25 + $0x7d0] sm:$0xff]  ;;  %v8256_v16 = vld [vmem:[%s13355_s25 + $0x7d8] sm:$0xff] }
 0xd4f   : > { %8221 = vst [vmem:[%s15173_s20 + $0xe48] sm:$0xff] %v8220_v5  ;;  %8223 = vst [vmem:[%s15173_s20 + $0xe50] sm:$0xff] %v8222_v50  ;;  %v8258_v19 = vld [vmem:[%s13355_s25 + $0x7e0] sm:$0xff]  ;;  %v8260_v63 = vld [vmem:[%s13355_s25 + $0x7e8] sm:$0xff] }
 0xd50   : > { %8225 = vst [vmem:[%s15173_s20 + $0xe58] sm:$0xff] %v8224_v46  ;;  %8227 = vst [vmem:[%s15173_s20 + $0xe60] sm:$0xff] %v8226_v7  ;;  %v8262_v15 = vld [vmem:[%s13355_s25 + $0x7f0] sm:$0xff]  ;;  %v8264_v27 = vld [vmem:[%s13355_s25 + $0x7f8] sm:$0xff] }
 0xd51   : > { %8229 = vst [vmem:[%s15173_s20 + $0xe68] sm:$0xff] %v8228_v53  ;;  %8231 = vst [vmem:[%s15173_s20 + $0xe70] sm:$0xff] %v8230_v29 }
 0xd52   : > { %8233 = vst [vmem:[%s15173_s20 + $0xe78] sm:$0xff] %v8232_v39  ;;  %8235 = vst [vmem:[%s15173_s20 + $0xe80] sm:$0xff] %v8234_v32 }
 0xd53   : > { %8237 = vst [vmem:[%s15173_s20 + $0xe88] sm:$0xff] %v8236_v58  ;;  %8239 = vst [vmem:[%s15173_s20 + $0xe90] sm:$0xff] %v8238_v33 }
 0xd54   : > { %8241 = vst [vmem:[%s15173_s20 + $0xe98] sm:$0xff] %v8240_v37  ;;  %8243 = vst [vmem:[%s15173_s20 + $0xea0] sm:$0xff] %v8242_v14 }
 0xd55   : > { %8245 = vst [vmem:[%s15173_s20 + $0xea8] sm:$0xff] %v8244_v45  ;;  %8247 = vst [vmem:[%s15173_s20 + $0xeb0] sm:$0xff] %v8246_v40 }
 0xd56   : > { %8249 = vst [vmem:[%s15173_s20 + $0xeb8] sm:$0xff] %v8248_v30  ;;  %8251 = vst [vmem:[%s15173_s20 + $0xec0] sm:$0xff] %v8250_v55 }
 0xd57   : > { %8253 = vst [vmem:[%s15173_s20 + $0xec8] sm:$0xff] %v8252_v35  ;;  %8255 = vst [vmem:[%s15173_s20 + $0xed0] sm:$0xff] %v8254_v44 }
 0xd58   : > { %8257 = vst [vmem:[%s15173_s20 + $0xed8] sm:$0xff] %v8256_v16  ;;  %8259 = vst [vmem:[%s15173_s20 + $0xee0] sm:$0xff] %v8258_v19 }
 0xd59   : > { %8261 = vst [vmem:[%s15173_s20 + $0xee8] sm:$0xff] %v8260_v63  ;;  %8263 = vst [vmem:[%s15173_s20 + $0xef0] sm:$0xff] %v8262_v15 }
 0xd5a   : > { %8265 = vst [vmem:[%s15173_s20 + $0xef8] sm:$0xff] %v8264_v27 }
 0xd5b PF: > { %p10_p10 = scmp.ge.s32.totalorder %s12626_s16, 4   ;;  %s15699_s12 = smov %s12583_s13 }
 0xd5c   : > { %s15700_s13 = smov %s12637_s19  ;;  %s15701_s14 = smov %s12626_s16 }
 0xd5d   :  { %12 = sbr.rel (!%p10_p10) target bundleno = 2 (0x2), region = 157 }

</bundles_post_ra>
